<compile_context>
chip_gen: v7x
topology: tpu7x:2x2x1
jax: 0.10.0
libtpu: 0.0.40
codegen_flags: <defaults>
</compile_context>

<pallas_src>
import functools
import math

import jax
import jax.numpy as jnp
from jax.experimental import pallas as pl
from jax.experimental.pallas import tpu as pltpu

KH = KW = 5            # conv kernel size
C_IN, C1, C2 = 3, 8, 16
IMG = 32               # image size (conv1 output width)
P1W, P2W = 16, 8       # pooled widths after pool1 / pool2
EMB = 64


# ----------------------------------------------------------------------------
# Fused kernel: conv1+ReLU+pool1 -> conv2+ReLU+pool2 -> fc -> classifier
# ----------------------------------------------------------------------------
def _tasknet_kernel(x_ref, w1_ref, b1_ref, w2_ref, b2_ref,
                    s1a_ref, s1b_ref, s2a_ref, s2b_ref,
                    fcw_ref, fcb_ref, clsw_ref, clsb_ref,
                    score_ref, emb_ref, p1e_ref, p1o_ref):
    f32 = jnp.float32
    bf16 = jnp.bfloat16

    # ---------------- conv1 + ReLU ------------------------------------------
    # acc1[8*r + k, 8*x + co] = conv1_out[4*k + r, x, co]          (32, 256)
    acc1 = jnp.zeros((32, IMG * C1), f32)
    for dy in range(KH):
        for dx in range(KW):
            t = dy * KW + dx
            rows = []
            for r in range(4):                       # output rows == r (mod 4)
                q = r + dy
                p, s = q % 4, q // 4                 # input row phase / offset
                rows.append(x_ref[0, p, s:s + 8, 3 * dx:3 * dx + 96])
            lhs = jnp.concatenate(rows, axis=0).astype(bf16)        # (32, 96)
            acc1 = acc1 + jnp.dot(lhs, w1_ref[t],
                                  preferred_element_type=f32)       # (32, 256)
    acc1 = jnp.maximum(acc1 + b1_ref[...], 0.0)

    # ---------------- pool1 (2x2, stride 2) ----------------------------------
    # row pooling: pooled row 2j   = max(conv rows 4j,   4j+1)
    #              pooled row 2j+1 = max(conv rows 4j+2, 4j+3)
    ye = jnp.maximum(acc1[0:8], acc1[8:16])          # (8, 256) even pooled rows
    yo = jnp.maximum(acc1[16:24], acc1[24:32])       # (8, 256) odd  pooled rows
    # column pooling + conv2 zero padding (pad=2) via 0/1 selection matmuls.
    p1e = jnp.maximum(jnp.dot(ye, s1a_ref[...], preferred_element_type=f32),
                      jnp.dot(ye, s1b_ref[...], preferred_element_type=f32))
    p1o = jnp.maximum(jnp.dot(yo, s1a_ref[...], preferred_element_type=f32),
                      jnp.dot(yo, s1b_ref[...], preferred_element_type=f32))
    # p1e/p1o: (8, 160) = x-padded rows of the pooled image, split by row parity

    # padded pooled image (20 rows x 20*8 lanes), row-parity split, kept in VMEM
    p1e_ref[...] = jnp.zeros((10, 20 * C1), f32)     # scratch row i <-> row 2i
    p1o_ref[...] = jnp.zeros((10, 20 * C1), f32)     # scratch row i <-> row 2i+1
    p1e_ref[1:9, :] = p1e
    p1o_ref[1:9, :] = p1o

    # ---------------- conv2 + ReLU ------------------------------------------
    # acc2[k,     16*x + co] = conv2_out[2*k,     x, co]
    # acc2[8 + k, 16*x + co] = conv2_out[2*k + 1, x, co]            (16, 256)
    acc2 = jnp.zeros((16, P1W * C2), f32)
    for dy in range(KH):
        for dx in range(KW):
            t = dy * KW + dx
            c0, c1 = 8 * dx, 8 * dx + 128
            if dy % 2 == 0:
                le = p1e_ref[dy // 2: dy // 2 + 8, c0:c1]
                lo = p1o_ref[dy // 2: dy // 2 + 8, c0:c1]
            else:
                le = p1o_ref[(dy - 1) // 2: (dy - 1) // 2 + 8, c0:c1]
                lo = p1e_ref[(dy + 1) // 2: (dy + 1) // 2 + 8, c0:c1]
            lhs = jnp.concatenate([le, lo], axis=0).astype(bf16)    # (16, 128)
            acc2 = acc2 + jnp.dot(lhs, w2_ref[t],
                                  preferred_element_type=f32)       # (16, 256)
    acc2 = jnp.maximum(acc2 + b2_ref[...], 0.0)

    # ---------------- pool2 (2x2, stride 2) ----------------------------------
    y2 = jnp.maximum(acc2[0:8], acc2[8:16])                         # (8, 256)
    p2 = jnp.maximum(jnp.dot(y2, s2a_ref[...], preferred_element_type=f32),
                     jnp.dot(y2, s2b_ref[...], preferred_element_type=f32))
    # p2: (8, 128) pooled features, column = 16*x + channel

    # ---------------- fc -> emb ; classifier -> score -------------------------
    p2b = p2.astype(bf16)
    emb = fcb_ref[...]                                              # (1, 64)
    for j in range(P2W):
        emb = emb + jnp.dot(p2b[j:j + 1, :], fcw_ref[j],
                            preferred_element_type=f32)
    # TODO(synk): ReverseLayerF (reverse_grad=True) only flips gradients; the
    # forward pass is identity, so nothing to emit here.
    score = jnp.dot(emb.astype(bf16), clsw_ref[...],
                    preferred_element_type=f32) + clsb_ref[...]

    score_ref[0] = score.astype(score_ref.dtype)
    emb_ref[0] = emb.astype(emb_ref.dtype)


# ----------------------------------------------------------------------------
# Parameter construction (done once, outside the kernel)
# ----------------------------------------------------------------------------
def _conv_taps_blockdiag(w, width):
    """(kh,kw,cin,cout) -> (kh*kw, width*cin, width*cout) block-diag tap mats."""
    kh, kw, cin, cout = w.shape
    taps = w.reshape(kh * kw, cin, cout)
    eye = jnp.eye(width, dtype=w.dtype)
    bd = jnp.einsum('tio,xy->txiyo', taps, eye)
    return bd.reshape(kh * kw, width * cin, width * cout)


def _pool_select(width_in, ch, phase, pad_out=0):
    """0/1 matrix selecting column x = 2*xo+phase into output column xo+pad_out."""
    w_out = width_in // 2
    xo = jnp.arange(w_out)
    c = jnp.arange(ch)
    rows = ((2 * xo[:, None] + phase) * ch + c[None, :]).reshape(-1)
    cols = ((xo[:, None] + pad_out) * ch + c[None, :]).reshape(-1)
    sel = jnp.zeros((width_in * ch, (w_out + 2 * pad_out) * ch), jnp.float32)
    return sel.at[rows, cols].set(1.0)


def init_params(key, num_cls=8):
    """'Logical' params (HWIO conv weights, pool2-flatten-ordered fc weight)."""
    k = jax.random.split(key, 8)

    def nrm(kk, shape, fan_in):
        return jax.random.normal(kk, shape, jnp.float32) / math.sqrt(fan_in)

    return {
        "w1": nrm(k[0], (KH, KW, C_IN, C1), KH * KW * C_IN),
        "b1": 0.1 * jax.random.normal(k[1], (C1,), jnp.float32),
        "w2": nrm(k[2], (KH, KW, C1, C2), KH * KW * C1),
        "b2": 0.1 * jax.random.normal(k[3], (C2,), jnp.float32),
        # fc weight indexed [pool2 row, 16*pool2 col + channel, out]
        "fc_w": nrm(k[4], (P2W, P2W * C2, EMB), P2W * P2W * C2),
        "fc_b": 0.1 * jax.random.normal(k[5], (EMB,), jnp.float32),
        "cls_w": nrm(k[6], (EMB, num_cls), EMB),
        "cls_b": 0.1 * jax.random.normal(k[7], (num_cls,), jnp.float32),
    }


def prepare_params(p):
    """Expand logical params into the VMEM-resident kernel layout."""
    bf16 = jnp.bfloat16
    return {
        "w1bd": _conv_taps_blockdiag(p["w1"], IMG).astype(bf16),   # (25, 96, 256)
        "b1t": jnp.tile(p["b1"], IMG)[None, :],                    # (1, 256)
        "w2bd": _conv_taps_blockdiag(p["w2"], P1W).astype(bf16),   # (25, 128, 256)
        "b2t": jnp.tile(p["b2"], P1W)[None, :],                    # (1, 256)
        "s1a": _pool_select(IMG, C1, 0, pad_out=2),                # (256, 160)
        "s1b": _pool_select(IMG, C1, 1, pad_out=2),                # (256, 160)
        "s2a": _pool_select(P1W, C2, 0, pad_out=0),                # (256, 128)
        "s2b": _pool_select(P1W, C2, 1, pad_out=0),                # (256, 128)
        "fcw": p["fc_w"].astype(bf16),                             # (8, 128, 64)
        "fcb": p["fc_b"][None, :],                                 # (1, 64)
        "clsw": p["cls_w"].astype(bf16),                           # (64, num_cls)
        "clsb": p["cls_b"][None, :],                               # (1, num_cls)
    }


# ----------------------------------------------------------------------------
# Forward wrapper (one pallas_call for the whole network)
# ----------------------------------------------------------------------------
def _full_block(a):
    nd = a.ndim
    return pl.BlockSpec(a.shape, lambda i, _nd=nd: (0,) * _nd)


@functools.partial(jax.jit, static_argnames=("with_emb",))
def tasknet_forward(kparams, x_nchw, with_emb=False):
    n = x_nchw.shape[0]
    num_cls = kparams["clsb"].shape[-1]

    # NCHW -> padded, (H, W*C)-flattened, row-phase-split input.  This is XLA
    # prep on the raw network input only; all intermediate activations stay in
    # VMEM inside the fused kernel.
    x = jnp.transpose(x_nchw, (0, 2, 3, 1)).astype(jnp.float32)     # (N,32,32,3)
    xp = jnp.pad(x, ((0, 0), (2, 2), (2, 2), (0, 0)))               # (N,36,36,3)
    xrows = xp.reshape(n, 36, 36 * C_IN)                            # (N,36,108)
    xph = xrows.reshape(n, 9, 4, 36 * C_IN).transpose(0, 2, 1, 3)   # (N,4,9,108)

    grid_spec = pltpu.PrefetchScalarGridSpec(
        num_scalar_prefetch=0,
        grid=(n,),
        in_specs=[
            pl.BlockSpec((1, 4, 9, 36 * C_IN), lambda i: (i, 0, 0, 0)),
            _full_block(kparams["w1bd"]), _full_block(kparams["b1t"]),
            _full_block(kparams["w2bd"]), _full_block(kparams["b2t"]),
            _full_block(kparams["s1a"]), _full_block(kparams["s1b"]),
            _full_block(kparams["s2a"]), _full_block(kparams["s2b"]),
            _full_block(kparams["fcw"]), _full_block(kparams["fcb"]),
            _full_block(kparams["clsw"]), _full_block(kparams["clsb"]),
        ],
        out_specs=[
            pl.BlockSpec((1, 1, num_cls), lambda i: (i, 0, 0)),
            pl.BlockSpec((1, 1, EMB), lambda i: (i, 0, 0)),
        ],
        scratch_shapes=[
            pltpu.VMEM((10, 20 * C1), jnp.float32),   # padded pool1, even rows
            pltpu.VMEM((10, 20 * C1), jnp.float32),   # padded pool1, odd rows
        ],
    )

    score3, emb3 = pl.pallas_call(
        _tasknet_kernel,
        grid_spec=grid_spec,
        out_shape=[
            jax.ShapeDtypeStruct((n, 1, num_cls), jnp.float32),
            jax.ShapeDtypeStruct((n, 1, EMB), jnp.float32),
        ],
        compiler_params=pltpu.CompilerParams(
            dimension_semantics=("parallel",),          # batch across cores
            vmem_limit_bytes=32 * 1024 * 1024,
        ),
    )(xph, kparams["w1bd"], kparams["b1t"], kparams["w2bd"], kparams["b2t"],
      kparams["s1a"], kparams["s1b"], kparams["s2a"], kparams["s2b"],
      kparams["fcw"], kparams["fcb"], kparams["clsw"], kparams["clsb"])

    score = score3[:, 0, :]
    emb = emb3[:, 0, :]
    if with_emb:
        return score, emb
    return score


# ----------------------------------------------------------------------------
# Pure-XLA reference (used only for the numeric self-check in __main__)
# ----------------------------------------------------------------------------
def _reference_forward(p, x_nchw):
    x = jnp.transpose(x_nchw, (0, 2, 3, 1)).astype(jnp.float32)

    def conv_relu(h, w, b):
        y = jax.lax.conv_general_dilated(
            h, w, window_strides=(1, 1), padding=((2, 2), (2, 2)),
            dimension_numbers=("NHWC", "HWIO", "NHWC"))
        return jnp.maximum(y + b, 0.0)

    def pool(h):
        return jax.lax.reduce_window(h, -jnp.inf, jax.lax.max,
                                     (1, 2, 2, 1), (1, 2, 2, 1), "VALID")

    h = pool(conv_relu(x, p["w1"], p["b1"]))          # (N,16,16,8)
    h = pool(conv_relu(h, p["w2"], p["b2"]))          # (N,8,8,16)
    feat = h.reshape(h.shape[0], -1)                  # (N,1024)  [h, w, c]
    emb = feat @ p["fc_w"].reshape(P2W * P2W * C2, EMB) + p["fc_b"]
    score = emb @ p["cls_w"] + p["cls_b"]
    return score, emb


if __name__ == "__main__":
    key = jax.random.PRNGKey(0)
    pkey, xkey = jax.random.split(key)

    logical = init_params(pkey, num_cls=8)
    kparams = prepare_params(logical)

    # TaskNet: num_channels=3, image_size=32; small batch of 2.
    x = jax.random.normal(xkey, (2, 3, 32, 32), jnp.float32)

    score, emb = tasknet_forward(kparams, x, with_emb=True)
    jax.block_until_ready((score, emb))

    assert score.shape == (2, 8), score.shape
    assert emb.shape == (2, 64), emb.shape

    # Numeric sanity check (kernel uses bf16 MXU operands -> loose tolerance).
    ref_score, ref_emb = _reference_forward(logical, x)
    assert jnp.allclose(score, ref_score, atol=0.1, rtol=0.1), (
        float(jnp.max(jnp.abs(score - ref_score))))
    assert jnp.allclose(emb, ref_emb, atol=0.1, rtol=0.1), (
        float(jnp.max(jnp.abs(emb - ref_emb))))

    print("KERNEL_OK")
</pallas_src>

<mosaic_0001>
module attributes {stable_mosaic.version = 11 : i64} {
  func.func @_tasknet_kernel(%arg0: i32, %arg1: memref<1x4x9x108xf32, #tpu.memory_space<vmem>>, %arg2: memref<25x96x256xbf16, #tpu.memory_space<vmem>>, %arg3: memref<1x256xf32, #tpu.memory_space<vmem>>, %arg4: memref<25x128x256xbf16, #tpu.memory_space<vmem>>, %arg5: memref<1x256xf32, #tpu.memory_space<vmem>>, %arg6: memref<256x160xf32, #tpu.memory_space<vmem>>, %arg7: memref<256x160xf32, #tpu.memory_space<vmem>>, %arg8: memref<256x128xf32, #tpu.memory_space<vmem>>, %arg9: memref<256x128xf32, #tpu.memory_space<vmem>>, %arg10: memref<8x128x64xbf16, #tpu.memory_space<vmem>>, %arg11: memref<1x64xf32, #tpu.memory_space<vmem>>, %arg12: memref<64x8xbf16, #tpu.memory_space<vmem>>, %arg13: memref<1x8xf32, #tpu.memory_space<vmem>>, %arg14: memref<1x1x8xf32, #tpu.memory_space<vmem>>, %arg15: memref<1x1x64xf32, #tpu.memory_space<vmem>>, %arg16: memref<10x160xf32, #tpu.memory_space<vmem>>, %arg17: memref<10x160xf32, #tpu.memory_space<vmem>>) attributes {dimension_semantics = [#tpu.dimension_semantics<parallel>], iteration_bounds = array<i64: 2>, scalar_prefetch = 0 : i64, scratch_operands = 2 : i64, tpu.core_type = #tpu.core_type<tc>, window_params = [{transform_indices = @transform_0, window_bounds = array<i64: 1, 4, 9, 108>}, {pipeline_mode = #tpu.pipeline_mode<synchronous>, transform_indices = @transform_1, window_bounds = array<i64: 25, 96, 256>}, {pipeline_mode = #tpu.pipeline_mode<synchronous>, transform_indices = @transform_2, window_bounds = array<i64: 1, 256>}, {pipeline_mode = #tpu.pipeline_mode<synchronous>, transform_indices = @transform_3, window_bounds = array<i64: 25, 128, 256>}, {pipeline_mode = #tpu.pipeline_mode<synchronous>, transform_indices = @transform_4, window_bounds = array<i64: 1, 256>}, {pipeline_mode = #tpu.pipeline_mode<synchronous>, transform_indices = @transform_5, window_bounds = array<i64: 256, 160>}, {pipeline_mode = #tpu.pipeline_mode<synchronous>, transform_indices = @transform_6, window_bounds = array<i64: 256, 160>}, {pipeline_mode = #tpu.pipeline_mode<synchronous>, transform_indices = @transform_7, window_bounds = array<i64: 256, 128>}, {pipeline_mode = #tpu.pipeline_mode<synchronous>, transform_indices = @transform_8, window_bounds = array<i64: 256, 128>}, {pipeline_mode = #tpu.pipeline_mode<synchronous>, transform_indices = @transform_9, window_bounds = array<i64: 8, 128, 64>}, {pipeline_mode = #tpu.pipeline_mode<synchronous>, transform_indices = @transform_10, window_bounds = array<i64: 1, 64>}, {pipeline_mode = #tpu.pipeline_mode<synchronous>, transform_indices = @transform_11, window_bounds = array<i64: 64, 8>}, {pipeline_mode = #tpu.pipeline_mode<synchronous>, transform_indices = @transform_12, window_bounds = array<i64: 1, 8>}, {transform_indices = @transform_13, window_bounds = array<i64: 1, 1, 8>}, {transform_indices = @transform_14, window_bounds = array<i64: 1, 1, 64>}]} {
    %cst = arith.constant 0.000000e+00 : f32
    %0 = vector.broadcast %cst : f32 to vector<32x256xf32>
    %c0 = arith.constant 0 : index
    %c0_0 = arith.constant 0 : index
    %c0_1 = arith.constant 0 : index
    %c0_2 = arith.constant 0 : index
    %1 = vector.load %arg1[%c0, %c0_0, %c0_1, %c0_2] : memref<1x4x9x108xf32, #tpu.memory_space<vmem>>, vector<1x1x8x96xf32>
    %2 = vector.shape_cast %1 : vector<1x1x8x96xf32> to vector<8x96xf32>
    %c0_3 = arith.constant 0 : index
    %c1 = arith.constant 1 : index
    %c0_4 = arith.constant 0 : index
    %c0_5 = arith.constant 0 : index
    %3 = vector.load %arg1[%c0_3, %c1, %c0_4, %c0_5] : memref<1x4x9x108xf32, #tpu.memory_space<vmem>>, vector<1x1x8x96xf32>
    %4 = vector.shape_cast %3 : vector<1x1x8x96xf32> to vector<8x96xf32>
    %c0_6 = arith.constant 0 : index
    %c2 = arith.constant 2 : index
    %c0_7 = arith.constant 0 : index
    %c0_8 = arith.constant 0 : index
    %5 = vector.load %arg1[%c0_6, %c2, %c0_7, %c0_8] : memref<1x4x9x108xf32, #tpu.memory_space<vmem>>, vector<1x1x8x96xf32>
    %6 = vector.shape_cast %5 : vector<1x1x8x96xf32> to vector<8x96xf32>
    %c0_9 = arith.constant 0 : index
    %c3 = arith.constant 3 : index
    %c0_10 = arith.constant 0 : index
    %c0_11 = arith.constant 0 : index
    %7 = vector.load %arg1[%c0_9, %c3, %c0_10, %c0_11] : memref<1x4x9x108xf32, #tpu.memory_space<vmem>>, vector<1x1x8x96xf32>
    %8 = vector.shape_cast %7 : vector<1x1x8x96xf32> to vector<8x96xf32>
    %9 = tpu.concatenate %2, %4, %6, %8 in 0 : vector<8x96xf32>, vector<8x96xf32>, vector<8x96xf32>, vector<8x96xf32> -> vector<32x96xf32>
    %10 = arith.truncf %9 : vector<32x96xf32> to vector<32x96xbf16>
    %c0_12 = arith.constant 0 : index
    %c0_13 = arith.constant 0 : index
    %c0_14 = arith.constant 0 : index
    %11 = vector.load %arg2[%c0_12, %c0_13, %c0_14] : memref<25x96x256xbf16, #tpu.memory_space<vmem>>, vector<1x96x256xbf16>
    %12 = vector.shape_cast %11 : vector<1x96x256xbf16> to vector<96x256xbf16>
    %cst_15 = arith.constant dense<0.000000e+00> : vector<32x256xf32>
    %13 = tpu.matmul %10, %12, %cst_15 {dimension_numbers = #tpu.dot_dimension_numbers<[1], [0], [0], [1], [0, 0, 1, 1], [], []>} : vector<32x96xbf16>, vector<96x256xbf16>, vector<32x256xf32> -> vector<32x256xf32>
    %14 = arith.addf %0, %13 : vector<32x256xf32>
    %c0_16 = arith.constant 0 : index
    %c0_17 = arith.constant 0 : index
    %c0_18 = arith.constant 0 : index
    %c3_19 = arith.constant 3 : index
    %15 = vector.load %arg1[%c0_16, %c0_17, %c0_18, %c3_19] : memref<1x4x9x108xf32, #tpu.memory_space<vmem>>, vector<1x1x8x96xf32>
    %16 = vector.shape_cast %15 : vector<1x1x8x96xf32> to vector<8x96xf32>
    %c0_20 = arith.constant 0 : index
    %c1_21 = arith.constant 1 : index
    %c0_22 = arith.constant 0 : index
    %c3_23 = arith.constant 3 : index
    %17 = vector.load %arg1[%c0_20, %c1_21, %c0_22, %c3_23] : memref<1x4x9x108xf32, #tpu.memory_space<vmem>>, vector<1x1x8x96xf32>
    %18 = vector.shape_cast %17 : vector<1x1x8x96xf32> to vector<8x96xf32>
    %c0_24 = arith.constant 0 : index
    %c2_25 = arith.constant 2 : index
    %c0_26 = arith.constant 0 : index
    %c3_27 = arith.constant 3 : index
    %19 = vector.load %arg1[%c0_24, %c2_25, %c0_26, %c3_27] : memref<1x4x9x108xf32, #tpu.memory_space<vmem>>, vector<1x1x8x96xf32>
    %20 = vector.shape_cast %19 : vector<1x1x8x96xf32> to vector<8x96xf32>
    %c0_28 = arith.constant 0 : index
    %c3_29 = arith.constant 3 : index
    %c0_30 = arith.constant 0 : index
    %c3_31 = arith.constant 3 : index
    %21 = vector.load %arg1[%c0_28, %c3_29, %c0_30, %c3_31] : memref<1x4x9x108xf32, #tpu.memory_space<vmem>>, vector<1x1x8x96xf32>
    %22 = vector.shape_cast %21 : vector<1x1x8x96xf32> to vector<8x96xf32>
    %23 = tpu.concatenate %16, %18, %20, %22 in 0 : vector<8x96xf32>, vector<8x96xf32>, vector<8x96xf32>, vector<8x96xf32> -> vector<32x96xf32>
    %24 = arith.truncf %23 : vector<32x96xf32> to vector<32x96xbf16>
    %c1_32 = arith.constant 1 : index
    %c0_33 = arith.constant 0 : index
    %c0_34 = arith.constant 0 : index
    %25 = vector.load %arg2[%c1_32, %c0_33, %c0_34] : memref<25x96x256xbf16, #tpu.memory_space<vmem>>, vector<1x96x256xbf16>
    %26 = vector.shape_cast %25 : vector<1x96x256xbf16> to vector<96x256xbf16>
    %cst_35 = arith.constant dense<0.000000e+00> : vector<32x256xf32>
    %27 = tpu.matmul %24, %26, %cst_35 {dimension_numbers = #tpu.dot_dimension_numbers<[1], [0], [0], [1], [0, 0, 1, 1], [], []>} : vector<32x96xbf16>, vector<96x256xbf16>, vector<32x256xf32> -> vector<32x256xf32>
    %28 = arith.addf %14, %27 : vector<32x256xf32>
    %c0_36 = arith.constant 0 : index
    %c0_37 = arith.constant 0 : index
    %c0_38 = arith.constant 0 : index
    %c6 = arith.constant 6 : index
    %29 = vector.load %arg1[%c0_36, %c0_37, %c0_38, %c6] : memref<1x4x9x108xf32, #tpu.memory_space<vmem>>, vector<1x1x8x96xf32>
    %30 = vector.shape_cast %29 : vector<1x1x8x96xf32> to vector<8x96xf32>
    %c0_39 = arith.constant 0 : index
    %c1_40 = arith.constant 1 : index
    %c0_41 = arith.constant 0 : index
    %c6_42 = arith.constant 6 : index
    %31 = vector.load %arg1[%c0_39, %c1_40, %c0_41, %c6_42] : memref<1x4x9x108xf32, #tpu.memory_space<vmem>>, vector<1x1x8x96xf32>
    %32 = vector.shape_cast %31 : vector<1x1x8x96xf32> to vector<8x96xf32>
    %c0_43 = arith.constant 0 : index
    %c2_44 = arith.constant 2 : index
    %c0_45 = arith.constant 0 : index
    %c6_46 = arith.constant 6 : index
    %33 = vector.load %arg1[%c0_43, %c2_44, %c0_45, %c6_46] : memref<1x4x9x108xf32, #tpu.memory_space<vmem>>, vector<1x1x8x96xf32>
    %34 = vector.shape_cast %33 : vector<1x1x8x96xf32> to vector<8x96xf32>
    %c0_47 = arith.constant 0 : index
    %c3_48 = arith.constant 3 : index
    %c0_49 = arith.constant 0 : index
    %c6_50 = arith.constant 6 : index
    %35 = vector.load %arg1[%c0_47, %c3_48, %c0_49, %c6_50] : memref<1x4x9x108xf32, #tpu.memory_space<vmem>>, vector<1x1x8x96xf32>
    %36 = vector.shape_cast %35 : vector<1x1x8x96xf32> to vector<8x96xf32>
    %37 = tpu.concatenate %30, %32, %34, %36 in 0 : vector<8x96xf32>, vector<8x96xf32>, vector<8x96xf32>, vector<8x96xf32> -> vector<32x96xf32>
    %38 = arith.truncf %37 : vector<32x96xf32> to vector<32x96xbf16>
    %c2_51 = arith.constant 2 : index
    %c0_52 = arith.constant 0 : index
    %c0_53 = arith.constant 0 : index
    %39 = vector.load %arg2[%c2_51, %c0_52, %c0_53] : memref<25x96x256xbf16, #tpu.memory_space<vmem>>, vector<1x96x256xbf16>
    %40 = vector.shape_cast %39 : vector<1x96x256xbf16> to vector<96x256xbf16>
    %cst_54 = arith.constant dense<0.000000e+00> : vector<32x256xf32>
    %41 = tpu.matmul %38, %40, %cst_54 {dimension_numbers = #tpu.dot_dimension_numbers<[1], [0], [0], [1], [0, 0, 1, 1], [], []>} : vector<32x96xbf16>, vector<96x256xbf16>, vector<32x256xf32> -> vector<32x256xf32>
    %42 = arith.addf %28, %41 : vector<32x256xf32>
    %c0_55 = arith.constant 0 : index
    %c0_56 = arith.constant 0 : index
    %c0_57 = arith.constant 0 : index
    %c9 = arith.constant 9 : index
    %43 = vector.load %arg1[%c0_55, %c0_56, %c0_57, %c9] : memref<1x4x9x108xf32, #tpu.memory_space<vmem>>, vector<1x1x8x96xf32>
    %44 = vector.shape_cast %43 : vector<1x1x8x96xf32> to vector<8x96xf32>
    %c0_58 = arith.constant 0 : index
    %c1_59 = arith.constant 1 : index
    %c0_60 = arith.constant 0 : index
    %c9_61 = arith.constant 9 : index
    %45 = vector.load %arg1[%c0_58, %c1_59, %c0_60, %c9_61] : memref<1x4x9x108xf32, #tpu.memory_space<vmem>>, vector<1x1x8x96xf32>
    %46 = vector.shape_cast %45 : vector<1x1x8x96xf32> to vector<8x96xf32>
    %c0_62 = arith.constant 0 : index
    %c2_63 = arith.constant 2 : index
    %c0_64 = arith.constant 0 : index
    %c9_65 = arith.constant 9 : index
    %47 = vector.load %arg1[%c0_62, %c2_63, %c0_64, %c9_65] : memref<1x4x9x108xf32, #tpu.memory_space<vmem>>, vector<1x1x8x96xf32>
    %48 = vector.shape_cast %47 : vector<1x1x8x96xf32> to vector<8x96xf32>
    %c0_66 = arith.constant 0 : index
    %c3_67 = arith.constant 3 : index
    %c0_68 = arith.constant 0 : index
    %c9_69 = arith.constant 9 : index
    %49 = vector.load %arg1[%c0_66, %c3_67, %c0_68, %c9_69] : memref<1x4x9x108xf32, #tpu.memory_space<vmem>>, vector<1x1x8x96xf32>
    %50 = vector.shape_cast %49 : vector<1x1x8x96xf32> to vector<8x96xf32>
    %51 = tpu.concatenate %44, %46, %48, %50 in 0 : vector<8x96xf32>, vector<8x96xf32>, vector<8x96xf32>, vector<8x96xf32> -> vector<32x96xf32>
    %52 = arith.truncf %51 : vector<32x96xf32> to vector<32x96xbf16>
    %c3_70 = arith.constant 3 : index
    %c0_71 = arith.constant 0 : index
    %c0_72 = arith.constant 0 : index
    %53 = vector.load %arg2[%c3_70, %c0_71, %c0_72] : memref<25x96x256xbf16, #tpu.memory_space<vmem>>, vector<1x96x256xbf16>
    %54 = vector.shape_cast %53 : vector<1x96x256xbf16> to vector<96x256xbf16>
    %cst_73 = arith.constant dense<0.000000e+00> : vector<32x256xf32>
    %55 = tpu.matmul %52, %54, %cst_73 {dimension_numbers = #tpu.dot_dimension_numbers<[1], [0], [0], [1], [0, 0, 1, 1], [], []>} : vector<32x96xbf16>, vector<96x256xbf16>, vector<32x256xf32> -> vector<32x256xf32>
    %56 = arith.addf %42, %55 : vector<32x256xf32>
    %c0_74 = arith.constant 0 : index
    %c0_75 = arith.constant 0 : index
    %c0_76 = arith.constant 0 : index
    %c12 = arith.constant 12 : index
    %57 = vector.load %arg1[%c0_74, %c0_75, %c0_76, %c12] : memref<1x4x9x108xf32, #tpu.memory_space<vmem>>, vector<1x1x8x96xf32>
    %58 = vector.shape_cast %57 : vector<1x1x8x96xf32> to vector<8x96xf32>
    %c0_77 = arith.constant 0 : index
    %c1_78 = arith.constant 1 : index
    %c0_79 = arith.constant 0 : index
    %c12_80 = arith.constant 12 : index
    %59 = vector.load %arg1[%c0_77, %c1_78, %c0_79, %c12_80] : memref<1x4x9x108xf32, #tpu.memory_space<vmem>>, vector<1x1x8x96xf32>
    %60 = vector.shape_cast %59 : vector<1x1x8x96xf32> to vector<8x96xf32>
    %c0_81 = arith.constant 0 : index
    %c2_82 = arith.constant 2 : index
    %c0_83 = arith.constant 0 : index
    %c12_84 = arith.constant 12 : index
    %61 = vector.load %arg1[%c0_81, %c2_82, %c0_83, %c12_84] : memref<1x4x9x108xf32, #tpu.memory_space<vmem>>, vector<1x1x8x96xf32>
    %62 = vector.shape_cast %61 : vector<1x1x8x96xf32> to vector<8x96xf32>
    %c0_85 = arith.constant 0 : index
    %c3_86 = arith.constant 3 : index
    %c0_87 = arith.constant 0 : index
    %c12_88 = arith.constant 12 : index
    %63 = vector.load %arg1[%c0_85, %c3_86, %c0_87, %c12_88] : memref<1x4x9x108xf32, #tpu.memory_space<vmem>>, vector<1x1x8x96xf32>
    %64 = vector.shape_cast %63 : vector<1x1x8x96xf32> to vector<8x96xf32>
    %65 = tpu.concatenate %58, %60, %62, %64 in 0 : vector<8x96xf32>, vector<8x96xf32>, vector<8x96xf32>, vector<8x96xf32> -> vector<32x96xf32>
    %66 = arith.truncf %65 : vector<32x96xf32> to vector<32x96xbf16>
    %c4 = arith.constant 4 : index
    %c0_89 = arith.constant 0 : index
    %c0_90 = arith.constant 0 : index
    %67 = vector.load %arg2[%c4, %c0_89, %c0_90] : memref<25x96x256xbf16, #tpu.memory_space<vmem>>, vector<1x96x256xbf16>
    %68 = vector.shape_cast %67 : vector<1x96x256xbf16> to vector<96x256xbf16>
    %cst_91 = arith.constant dense<0.000000e+00> : vector<32x256xf32>
    %69 = tpu.matmul %66, %68, %cst_91 {dimension_numbers = #tpu.dot_dimension_numbers<[1], [0], [0], [1], [0, 0, 1, 1], [], []>} : vector<32x96xbf16>, vector<96x256xbf16>, vector<32x256xf32> -> vector<32x256xf32>
    %70 = arith.addf %56, %69 : vector<32x256xf32>
    %c0_92 = arith.constant 0 : index
    %c1_93 = arith.constant 1 : index
    %c0_94 = arith.constant 0 : index
    %c0_95 = arith.constant 0 : index
    %71 = vector.load %arg1[%c0_92, %c1_93, %c0_94, %c0_95] : memref<1x4x9x108xf32, #tpu.memory_space<vmem>>, vector<1x1x8x96xf32>
    %72 = vector.shape_cast %71 : vector<1x1x8x96xf32> to vector<8x96xf32>
    %c0_96 = arith.constant 0 : index
    %c2_97 = arith.constant 2 : index
    %c0_98 = arith.constant 0 : index
    %c0_99 = arith.constant 0 : index
    %73 = vector.load %arg1[%c0_96, %c2_97, %c0_98, %c0_99] : memref<1x4x9x108xf32, #tpu.memory_space<vmem>>, vector<1x1x8x96xf32>
    %74 = vector.shape_cast %73 : vector<1x1x8x96xf32> to vector<8x96xf32>
    %c0_100 = arith.constant 0 : index
    %c3_101 = arith.constant 3 : index
    %c0_102 = arith.constant 0 : index
    %c0_103 = arith.constant 0 : index
    %75 = vector.load %arg1[%c0_100, %c3_101, %c0_102, %c0_103] : memref<1x4x9x108xf32, #tpu.memory_space<vmem>>, vector<1x1x8x96xf32>
    %76 = vector.shape_cast %75 : vector<1x1x8x96xf32> to vector<8x96xf32>
    %c0_104 = arith.constant 0 : index
    %c0_105 = arith.constant 0 : index
    %c1_106 = arith.constant 1 : index
    %c0_107 = arith.constant 0 : index
    %77 = vector.load %arg1[%c0_104, %c0_105, %c1_106, %c0_107] : memref<1x4x9x108xf32, #tpu.memory_space<vmem>>, vector<1x1x8x96xf32>
    %78 = vector.shape_cast %77 : vector<1x1x8x96xf32> to vector<8x96xf32>
    %79 = tpu.concatenate %72, %74, %76, %78 in 0 : vector<8x96xf32>, vector<8x96xf32>, vector<8x96xf32>, vector<8x96xf32> -> vector<32x96xf32>
    %80 = arith.truncf %79 : vector<32x96xf32> to vector<32x96xbf16>
    %c5 = arith.constant 5 : index
    %c0_108 = arith.constant 0 : index
    %c0_109 = arith.constant 0 : index
    %81 = vector.load %arg2[%c5, %c0_108, %c0_109] : memref<25x96x256xbf16, #tpu.memory_space<vmem>>, vector<1x96x256xbf16>
    %82 = vector.shape_cast %81 : vector<1x96x256xbf16> to vector<96x256xbf16>
    %cst_110 = arith.constant dense<0.000000e+00> : vector<32x256xf32>
    %83 = tpu.matmul %80, %82, %cst_110 {dimension_numbers = #tpu.dot_dimension_numbers<[1], [0], [0], [1], [0, 0, 1, 1], [], []>} : vector<32x96xbf16>, vector<96x256xbf16>, vector<32x256xf32> -> vector<32x256xf32>
    %84 = arith.addf %70, %83 : vector<32x256xf32>
    %c0_111 = arith.constant 0 : index
    %c1_112 = arith.constant 1 : index
    %c0_113 = arith.constant 0 : index
    %c3_114 = arith.constant 3 : index
    %85 = vector.load %arg1[%c0_111, %c1_112, %c0_113, %c3_114] : memref<1x4x9x108xf32, #tpu.memory_space<vmem>>, vector<1x1x8x96xf32>
    %86 = vector.shape_cast %85 : vector<1x1x8x96xf32> to vector<8x96xf32>
    %c0_115 = arith.constant 0 : index
    %c2_116 = arith.constant 2 : index
    %c0_117 = arith.constant 0 : index
    %c3_118 = arith.constant 3 : index
    %87 = vector.load %arg1[%c0_115, %c2_116, %c0_117, %c3_118] : memref<1x4x9x108xf32, #tpu.memory_space<vmem>>, vector<1x1x8x96xf32>
    %88 = vector.shape_cast %87 : vector<1x1x8x96xf32> to vector<8x96xf32>
    %c0_119 = arith.constant 0 : index
    %c3_120 = arith.constant 3 : index
    %c0_121 = arith.constant 0 : index
    %c3_122 = arith.constant 3 : index
    %89 = vector.load %arg1[%c0_119, %c3_120, %c0_121, %c3_122] : memref<1x4x9x108xf32, #tpu.memory_space<vmem>>, vector<1x1x8x96xf32>
    %90 = vector.shape_cast %89 : vector<1x1x8x96xf32> to vector<8x96xf32>
    %c0_123 = arith.constant 0 : index
    %c0_124 = arith.constant 0 : index
    %c1_125 = arith.constant 1 : index
    %c3_126 = arith.constant 3 : index
    %91 = vector.load %arg1[%c0_123, %c0_124, %c1_125, %c3_126] : memref<1x4x9x108xf32, #tpu.memory_space<vmem>>, vector<1x1x8x96xf32>
    %92 = vector.shape_cast %91 : vector<1x1x8x96xf32> to vector<8x96xf32>
    %93 = tpu.concatenate %86, %88, %90, %92 in 0 : vector<8x96xf32>, vector<8x96xf32>, vector<8x96xf32>, vector<8x96xf32> -> vector<32x96xf32>
    %94 = arith.truncf %93 : vector<32x96xf32> to vector<32x96xbf16>
    %c6_127 = arith.constant 6 : index
    %c0_128 = arith.constant 0 : index
    %c0_129 = arith.constant 0 : index
    %95 = vector.load %arg2[%c6_127, %c0_128, %c0_129] : memref<25x96x256xbf16, #tpu.memory_space<vmem>>, vector<1x96x256xbf16>
    %96 = vector.shape_cast %95 : vector<1x96x256xbf16> to vector<96x256xbf16>
    %cst_130 = arith.constant dense<0.000000e+00> : vector<32x256xf32>
    %97 = tpu.matmul %94, %96, %cst_130 {dimension_numbers = #tpu.dot_dimension_numbers<[1], [0], [0], [1], [0, 0, 1, 1], [], []>} : vector<32x96xbf16>, vector<96x256xbf16>, vector<32x256xf32> -> vector<32x256xf32>
    %98 = arith.addf %84, %97 : vector<32x256xf32>
    %c0_131 = arith.constant 0 : index
    %c1_132 = arith.constant 1 : index
    %c0_133 = arith.constant 0 : index
    %c6_134 = arith.constant 6 : index
    %99 = vector.load %arg1[%c0_131, %c1_132, %c0_133, %c6_134] : memref<1x4x9x108xf32, #tpu.memory_space<vmem>>, vector<1x1x8x96xf32>
    %100 = vector.shape_cast %99 : vector<1x1x8x96xf32> to vector<8x96xf32>
    %c0_135 = arith.constant 0 : index
    %c2_136 = arith.constant 2 : index
    %c0_137 = arith.constant 0 : index
    %c6_138 = arith.constant 6 : index
    %101 = vector.load %arg1[%c0_135, %c2_136, %c0_137, %c6_138] : memref<1x4x9x108xf32, #tpu.memory_space<vmem>>, vector<1x1x8x96xf32>
    %102 = vector.shape_cast %101 : vector<1x1x8x96xf32> to vector<8x96xf32>
    %c0_139 = arith.constant 0 : index
    %c3_140 = arith.constant 3 : index
    %c0_141 = arith.constant 0 : index
    %c6_142 = arith.constant 6 : index
    %103 = vector.load %arg1[%c0_139, %c3_140, %c0_141, %c6_142] : memref<1x4x9x108xf32, #tpu.memory_space<vmem>>, vector<1x1x8x96xf32>
    %104 = vector.shape_cast %103 : vector<1x1x8x96xf32> to vector<8x96xf32>
    %c0_143 = arith.constant 0 : index
    %c0_144 = arith.constant 0 : index
    %c1_145 = arith.constant 1 : index
    %c6_146 = arith.constant 6 : index
    %105 = vector.load %arg1[%c0_143, %c0_144, %c1_145, %c6_146] : memref<1x4x9x108xf32, #tpu.memory_space<vmem>>, vector<1x1x8x96xf32>
    %106 = vector.shape_cast %105 : vector<1x1x8x96xf32> to vector<8x96xf32>
    %107 = tpu.concatenate %100, %102, %104, %106 in 0 : vector<8x96xf32>, vector<8x96xf32>, vector<8x96xf32>, vector<8x96xf32> -> vector<32x96xf32>
    %108 = arith.truncf %107 : vector<32x96xf32> to vector<32x96xbf16>
    %c7 = arith.constant 7 : index
    %c0_147 = arith.constant 0 : index
    %c0_148 = arith.constant 0 : index
    %109 = vector.load %arg2[%c7, %c0_147, %c0_148] : memref<25x96x256xbf16, #tpu.memory_space<vmem>>, vector<1x96x256xbf16>
    %110 = vector.shape_cast %109 : vector<1x96x256xbf16> to vector<96x256xbf16>
    %cst_149 = arith.constant dense<0.000000e+00> : vector<32x256xf32>
    %111 = tpu.matmul %108, %110, %cst_149 {dimension_numbers = #tpu.dot_dimension_numbers<[1], [0], [0], [1], [0, 0, 1, 1], [], []>} : vector<32x96xbf16>, vector<96x256xbf16>, vector<32x256xf32> -> vector<32x256xf32>
    %112 = arith.addf %98, %111 : vector<32x256xf32>
    %c0_150 = arith.constant 0 : index
    %c1_151 = arith.constant 1 : index
    %c0_152 = arith.constant 0 : index
    %c9_153 = arith.constant 9 : index
    %113 = vector.load %arg1[%c0_150, %c1_151, %c0_152, %c9_153] : memref<1x4x9x108xf32, #tpu.memory_space<vmem>>, vector<1x1x8x96xf32>
    %114 = vector.shape_cast %113 : vector<1x1x8x96xf32> to vector<8x96xf32>
    %c0_154 = arith.constant 0 : index
    %c2_155 = arith.constant 2 : index
    %c0_156 = arith.constant 0 : index
    %c9_157 = arith.constant 9 : index
    %115 = vector.load %arg1[%c0_154, %c2_155, %c0_156, %c9_157] : memref<1x4x9x108xf32, #tpu.memory_space<vmem>>, vector<1x1x8x96xf32>
    %116 = vector.shape_cast %115 : vector<1x1x8x96xf32> to vector<8x96xf32>
    %c0_158 = arith.constant 0 : index
    %c3_159 = arith.constant 3 : index
    %c0_160 = arith.constant 0 : index
    %c9_161 = arith.constant 9 : index
    %117 = vector.load %arg1[%c0_158, %c3_159, %c0_160, %c9_161] : memref<1x4x9x108xf32, #tpu.memory_space<vmem>>, vector<1x1x8x96xf32>
    %118 = vector.shape_cast %117 : vector<1x1x8x96xf32> to vector<8x96xf32>
    %c0_162 = arith.constant 0 : index
    %c0_163 = arith.constant 0 : index
    %c1_164 = arith.constant 1 : index
    %c9_165 = arith.constant 9 : index
    %119 = vector.load %arg1[%c0_162, %c0_163, %c1_164, %c9_165] : memref<1x4x9x108xf32, #tpu.memory_space<vmem>>, vector<1x1x8x96xf32>
    %120 = vector.shape_cast %119 : vector<1x1x8x96xf32> to vector<8x96xf32>
    %121 = tpu.concatenate %114, %116, %118, %120 in 0 : vector<8x96xf32>, vector<8x96xf32>, vector<8x96xf32>, vector<8x96xf32> -> vector<32x96xf32>
    %122 = arith.truncf %121 : vector<32x96xf32> to vector<32x96xbf16>
    %c8 = arith.constant 8 : index
    %c0_166 = arith.constant 0 : index
    %c0_167 = arith.constant 0 : index
    %123 = vector.load %arg2[%c8, %c0_166, %c0_167] : memref<25x96x256xbf16, #tpu.memory_space<vmem>>, vector<1x96x256xbf16>
    %124 = vector.shape_cast %123 : vector<1x96x256xbf16> to vector<96x256xbf16>
    %cst_168 = arith.constant dense<0.000000e+00> : vector<32x256xf32>
    %125 = tpu.matmul %122, %124, %cst_168 {dimension_numbers = #tpu.dot_dimension_numbers<[1], [0], [0], [1], [0, 0, 1, 1], [], []>} : vector<32x96xbf16>, vector<96x256xbf16>, vector<32x256xf32> -> vector<32x256xf32>
    %126 = arith.addf %112, %125 : vector<32x256xf32>
    %c0_169 = arith.constant 0 : index
    %c1_170 = arith.constant 1 : index
    %c0_171 = arith.constant 0 : index
    %c12_172 = arith.constant 12 : index
    %127 = vector.load %arg1[%c0_169, %c1_170, %c0_171, %c12_172] : memref<1x4x9x108xf32, #tpu.memory_space<vmem>>, vector<1x1x8x96xf32>
    %128 = vector.shape_cast %127 : vector<1x1x8x96xf32> to vector<8x96xf32>
    %c0_173 = arith.constant 0 : index
    %c2_174 = arith.constant 2 : index
    %c0_175 = arith.constant 0 : index
    %c12_176 = arith.constant 12 : index
    %129 = vector.load %arg1[%c0_173, %c2_174, %c0_175, %c12_176] : memref<1x4x9x108xf32, #tpu.memory_space<vmem>>, vector<1x1x8x96xf32>
    %130 = vector.shape_cast %129 : vector<1x1x8x96xf32> to vector<8x96xf32>
    %c0_177 = arith.constant 0 : index
    %c3_178 = arith.constant 3 : index
    %c0_179 = arith.constant 0 : index
    %c12_180 = arith.constant 12 : index
    %131 = vector.load %arg1[%c0_177, %c3_178, %c0_179, %c12_180] : memref<1x4x9x108xf32, #tpu.memory_space<vmem>>, vector<1x1x8x96xf32>
    %132 = vector.shape_cast %131 : vector<1x1x8x96xf32> to vector<8x96xf32>
    %c0_181 = arith.constant 0 : index
    %c0_182 = arith.constant 0 : index
    %c1_183 = arith.constant 1 : index
    %c12_184 = arith.constant 12 : index
    %133 = vector.load %arg1[%c0_181, %c0_182, %c1_183, %c12_184] : memref<1x4x9x108xf32, #tpu.memory_space<vmem>>, vector<1x1x8x96xf32>
    %134 = vector.shape_cast %133 : vector<1x1x8x96xf32> to vector<8x96xf32>
    %135 = tpu.concatenate %128, %130, %132, %134 in 0 : vector<8x96xf32>, vector<8x96xf32>, vector<8x96xf32>, vector<8x96xf32> -> vector<32x96xf32>
    %136 = arith.truncf %135 : vector<32x96xf32> to vector<32x96xbf16>
    %c9_185 = arith.constant 9 : index
    %c0_186 = arith.constant 0 : index
    %c0_187 = arith.constant 0 : index
    %137 = vector.load %arg2[%c9_185, %c0_186, %c0_187] : memref<25x96x256xbf16, #tpu.memory_space<vmem>>, vector<1x96x256xbf16>
    %138 = vector.shape_cast %137 : vector<1x96x256xbf16> to vector<96x256xbf16>
    %cst_188 = arith.constant dense<0.000000e+00> : vector<32x256xf32>
    %139 = tpu.matmul %136, %138, %cst_188 {dimension_numbers = #tpu.dot_dimension_numbers<[1], [0], [0], [1], [0, 0, 1, 1], [], []>} : vector<32x96xbf16>, vector<96x256xbf16>, vector<32x256xf32> -> vector<32x256xf32>
    %140 = arith.addf %126, %139 : vector<32x256xf32>
    %c0_189 = arith.constant 0 : index
    %c2_190 = arith.constant 2 : index
    %c0_191 = arith.constant 0 : index
    %c0_192 = arith.constant 0 : index
    %141 = vector.load %arg1[%c0_189, %c2_190, %c0_191, %c0_192] : memref<1x4x9x108xf32, #tpu.memory_space<vmem>>, vector<1x1x8x96xf32>
    %142 = vector.shape_cast %141 : vector<1x1x8x96xf32> to vector<8x96xf32>
    %c0_193 = arith.constant 0 : index
    %c3_194 = arith.constant 3 : index
    %c0_195 = arith.constant 0 : index
    %c0_196 = arith.constant 0 : index
    %143 = vector.load %arg1[%c0_193, %c3_194, %c0_195, %c0_196] : memref<1x4x9x108xf32, #tpu.memory_space<vmem>>, vector<1x1x8x96xf32>
    %144 = vector.shape_cast %143 : vector<1x1x8x96xf32> to vector<8x96xf32>
    %c0_197 = arith.constant 0 : index
    %c0_198 = arith.constant 0 : index
    %c1_199 = arith.constant 1 : index
    %c0_200 = arith.constant 0 : index
    %145 = vector.load %arg1[%c0_197, %c0_198, %c1_199, %c0_200] : memref<1x4x9x108xf32, #tpu.memory_space<vmem>>, vector<1x1x8x96xf32>
    %146 = vector.shape_cast %145 : vector<1x1x8x96xf32> to vector<8x96xf32>
    %c0_201 = arith.constant 0 : index
    %c1_202 = arith.constant 1 : index
    %c1_203 = arith.constant 1 : index
    %c0_204 = arith.constant 0 : index
    %147 = vector.load %arg1[%c0_201, %c1_202, %c1_203, %c0_204] : memref<1x4x9x108xf32, #tpu.memory_space<vmem>>, vector<1x1x8x96xf32>
    %148 = vector.shape_cast %147 : vector<1x1x8x96xf32> to vector<8x96xf32>
    %149 = tpu.concatenate %142, %144, %146, %148 in 0 : vector<8x96xf32>, vector<8x96xf32>, vector<8x96xf32>, vector<8x96xf32> -> vector<32x96xf32>
    %150 = arith.truncf %149 : vector<32x96xf32> to vector<32x96xbf16>
    %c10 = arith.constant 10 : index
    %c0_205 = arith.constant 0 : index
    %c0_206 = arith.constant 0 : index
    %151 = vector.load %arg2[%c10, %c0_205, %c0_206] : memref<25x96x256xbf16, #tpu.memory_space<vmem>>, vector<1x96x256xbf16>
    %152 = vector.shape_cast %151 : vector<1x96x256xbf16> to vector<96x256xbf16>
    %cst_207 = arith.constant dense<0.000000e+00> : vector<32x256xf32>
    %153 = tpu.matmul %150, %152, %cst_207 {dimension_numbers = #tpu.dot_dimension_numbers<[1], [0], [0], [1], [0, 0, 1, 1], [], []>} : vector<32x96xbf16>, vector<96x256xbf16>, vector<32x256xf32> -> vector<32x256xf32>
    %154 = arith.addf %140, %153 : vector<32x256xf32>
    %c0_208 = arith.constant 0 : index
    %c2_209 = arith.constant 2 : index
    %c0_210 = arith.constant 0 : index
    %c3_211 = arith.constant 3 : index
    %155 = vector.load %arg1[%c0_208, %c2_209, %c0_210, %c3_211] : memref<1x4x9x108xf32, #tpu.memory_space<vmem>>, vector<1x1x8x96xf32>
    %156 = vector.shape_cast %155 : vector<1x1x8x96xf32> to vector<8x96xf32>
    %c0_212 = arith.constant 0 : index
    %c3_213 = arith.constant 3 : index
    %c0_214 = arith.constant 0 : index
    %c3_215 = arith.constant 3 : index
    %157 = vector.load %arg1[%c0_212, %c3_213, %c0_214, %c3_215] : memref<1x4x9x108xf32, #tpu.memory_space<vmem>>, vector<1x1x8x96xf32>
    %158 = vector.shape_cast %157 : vector<1x1x8x96xf32> to vector<8x96xf32>
    %c0_216 = arith.constant 0 : index
    %c0_217 = arith.constant 0 : index
    %c1_218 = arith.constant 1 : index
    %c3_219 = arith.constant 3 : index
    %159 = vector.load %arg1[%c0_216, %c0_217, %c1_218, %c3_219] : memref<1x4x9x108xf32, #tpu.memory_space<vmem>>, vector<1x1x8x96xf32>
    %160 = vector.shape_cast %159 : vector<1x1x8x96xf32> to vector<8x96xf32>
    %c0_220 = arith.constant 0 : index
    %c1_221 = arith.constant 1 : index
    %c1_222 = arith.constant 1 : index
    %c3_223 = arith.constant 3 : index
    %161 = vector.load %arg1[%c0_220, %c1_221, %c1_222, %c3_223] : memref<1x4x9x108xf32, #tpu.memory_space<vmem>>, vector<1x1x8x96xf32>
    %162 = vector.shape_cast %161 : vector<1x1x8x96xf32> to vector<8x96xf32>
    %163 = tpu.concatenate %156, %158, %160, %162 in 0 : vector<8x96xf32>, vector<8x96xf32>, vector<8x96xf32>, vector<8x96xf32> -> vector<32x96xf32>
    %164 = arith.truncf %163 : vector<32x96xf32> to vector<32x96xbf16>
    %c11 = arith.constant 11 : index
    %c0_224 = arith.constant 0 : index
    %c0_225 = arith.constant 0 : index
    %165 = vector.load %arg2[%c11, %c0_224, %c0_225] : memref<25x96x256xbf16, #tpu.memory_space<vmem>>, vector<1x96x256xbf16>
    %166 = vector.shape_cast %165 : vector<1x96x256xbf16> to vector<96x256xbf16>
    %cst_226 = arith.constant dense<0.000000e+00> : vector<32x256xf32>
    %167 = tpu.matmul %164, %166, %cst_226 {dimension_numbers = #tpu.dot_dimension_numbers<[1], [0], [0], [1], [0, 0, 1, 1], [], []>} : vector<32x96xbf16>, vector<96x256xbf16>, vector<32x256xf32> -> vector<32x256xf32>
    %168 = arith.addf %154, %167 : vector<32x256xf32>
    %c0_227 = arith.constant 0 : index
    %c2_228 = arith.constant 2 : index
    %c0_229 = arith.constant 0 : index
    %c6_230 = arith.constant 6 : index
    %169 = vector.load %arg1[%c0_227, %c2_228, %c0_229, %c6_230] : memref<1x4x9x108xf32, #tpu.memory_space<vmem>>, vector<1x1x8x96xf32>
    %170 = vector.shape_cast %169 : vector<1x1x8x96xf32> to vector<8x96xf32>
    %c0_231 = arith.constant 0 : index
    %c3_232 = arith.constant 3 : index
    %c0_233 = arith.constant 0 : index
    %c6_234 = arith.constant 6 : index
    %171 = vector.load %arg1[%c0_231, %c3_232, %c0_233, %c6_234] : memref<1x4x9x108xf32, #tpu.memory_space<vmem>>, vector<1x1x8x96xf32>
    %172 = vector.shape_cast %171 : vector<1x1x8x96xf32> to vector<8x96xf32>
    %c0_235 = arith.constant 0 : index
    %c0_236 = arith.constant 0 : index
    %c1_237 = arith.constant 1 : index
    %c6_238 = arith.constant 6 : index
    %173 = vector.load %arg1[%c0_235, %c0_236, %c1_237, %c6_238] : memref<1x4x9x108xf32, #tpu.memory_space<vmem>>, vector<1x1x8x96xf32>
    %174 = vector.shape_cast %173 : vector<1x1x8x96xf32> to vector<8x96xf32>
    %c0_239 = arith.constant 0 : index
    %c1_240 = arith.constant 1 : index
    %c1_241 = arith.constant 1 : index
    %c6_242 = arith.constant 6 : index
    %175 = vector.load %arg1[%c0_239, %c1_240, %c1_241, %c6_242] : memref<1x4x9x108xf32, #tpu.memory_space<vmem>>, vector<1x1x8x96xf32>
    %176 = vector.shape_cast %175 : vector<1x1x8x96xf32> to vector<8x96xf32>
    %177 = tpu.concatenate %170, %172, %174, %176 in 0 : vector<8x96xf32>, vector<8x96xf32>, vector<8x96xf32>, vector<8x96xf32> -> vector<32x96xf32>
    %178 = arith.truncf %177 : vector<32x96xf32> to vector<32x96xbf16>
    %c12_243 = arith.constant 12 : index
    %c0_244 = arith.constant 0 : index
    %c0_245 = arith.constant 0 : index
    %179 = vector.load %arg2[%c12_243, %c0_244, %c0_245] : memref<25x96x256xbf16, #tpu.memory_space<vmem>>, vector<1x96x256xbf16>
    %180 = vector.shape_cast %179 : vector<1x96x256xbf16> to vector<96x256xbf16>
    %cst_246 = arith.constant dense<0.000000e+00> : vector<32x256xf32>
    %181 = tpu.matmul %178, %180, %cst_246 {dimension_numbers = #tpu.dot_dimension_numbers<[1], [0], [0], [1], [0, 0, 1, 1], [], []>} : vector<32x96xbf16>, vector<96x256xbf16>, vector<32x256xf32> -> vector<32x256xf32>
    %182 = arith.addf %168, %181 : vector<32x256xf32>
    %c0_247 = arith.constant 0 : index
    %c2_248 = arith.constant 2 : index
    %c0_249 = arith.constant 0 : index
    %c9_250 = arith.constant 9 : index
    %183 = vector.load %arg1[%c0_247, %c2_248, %c0_249, %c9_250] : memref<1x4x9x108xf32, #tpu.memory_space<vmem>>, vector<1x1x8x96xf32>
    %184 = vector.shape_cast %183 : vector<1x1x8x96xf32> to vector<8x96xf32>
    %c0_251 = arith.constant 0 : index
    %c3_252 = arith.constant 3 : index
    %c0_253 = arith.constant 0 : index
    %c9_254 = arith.constant 9 : index
    %185 = vector.load %arg1[%c0_251, %c3_252, %c0_253, %c9_254] : memref<1x4x9x108xf32, #tpu.memory_space<vmem>>, vector<1x1x8x96xf32>
    %186 = vector.shape_cast %185 : vector<1x1x8x96xf32> to vector<8x96xf32>
    %c0_255 = arith.constant 0 : index
    %c0_256 = arith.constant 0 : index
    %c1_257 = arith.constant 1 : index
    %c9_258 = arith.constant 9 : index
    %187 = vector.load %arg1[%c0_255, %c0_256, %c1_257, %c9_258] : memref<1x4x9x108xf32, #tpu.memory_space<vmem>>, vector<1x1x8x96xf32>
    %188 = vector.shape_cast %187 : vector<1x1x8x96xf32> to vector<8x96xf32>
    %c0_259 = arith.constant 0 : index
    %c1_260 = arith.constant 1 : index
    %c1_261 = arith.constant 1 : index
    %c9_262 = arith.constant 9 : index
    %189 = vector.load %arg1[%c0_259, %c1_260, %c1_261, %c9_262] : memref<1x4x9x108xf32, #tpu.memory_space<vmem>>, vector<1x1x8x96xf32>
    %190 = vector.shape_cast %189 : vector<1x1x8x96xf32> to vector<8x96xf32>
    %191 = tpu.concatenate %184, %186, %188, %190 in 0 : vector<8x96xf32>, vector<8x96xf32>, vector<8x96xf32>, vector<8x96xf32> -> vector<32x96xf32>
    %192 = arith.truncf %191 : vector<32x96xf32> to vector<32x96xbf16>
    %c13 = arith.constant 13 : index
    %c0_263 = arith.constant 0 : index
    %c0_264 = arith.constant 0 : index
    %193 = vector.load %arg2[%c13, %c0_263, %c0_264] : memref<25x96x256xbf16, #tpu.memory_space<vmem>>, vector<1x96x256xbf16>
    %194 = vector.shape_cast %193 : vector<1x96x256xbf16> to vector<96x256xbf16>
    %cst_265 = arith.constant dense<0.000000e+00> : vector<32x256xf32>
    %195 = tpu.matmul %192, %194, %cst_265 {dimension_numbers = #tpu.dot_dimension_numbers<[1], [0], [0], [1], [0, 0, 1, 1], [], []>} : vector<32x96xbf16>, vector<96x256xbf16>, vector<32x256xf32> -> vector<32x256xf32>
    %196 = arith.addf %182, %195 : vector<32x256xf32>
    %c0_266 = arith.constant 0 : index
    %c2_267 = arith.constant 2 : index
    %c0_268 = arith.constant 0 : index
    %c12_269 = arith.constant 12 : index
    %197 = vector.load %arg1[%c0_266, %c2_267, %c0_268, %c12_269] : memref<1x4x9x108xf32, #tpu.memory_space<vmem>>, vector<1x1x8x96xf32>
    %198 = vector.shape_cast %197 : vector<1x1x8x96xf32> to vector<8x96xf32>
    %c0_270 = arith.constant 0 : index
    %c3_271 = arith.constant 3 : index
    %c0_272 = arith.constant 0 : index
    %c12_273 = arith.constant 12 : index
    %199 = vector.load %arg1[%c0_270, %c3_271, %c0_272, %c12_273] : memref<1x4x9x108xf32, #tpu.memory_space<vmem>>, vector<1x1x8x96xf32>
    %200 = vector.shape_cast %199 : vector<1x1x8x96xf32> to vector<8x96xf32>
    %c0_274 = arith.constant 0 : index
    %c0_275 = arith.constant 0 : index
    %c1_276 = arith.constant 1 : index
    %c12_277 = arith.constant 12 : index
    %201 = vector.load %arg1[%c0_274, %c0_275, %c1_276, %c12_277] : memref<1x4x9x108xf32, #tpu.memory_space<vmem>>, vector<1x1x8x96xf32>
    %202 = vector.shape_cast %201 : vector<1x1x8x96xf32> to vector<8x96xf32>
    %c0_278 = arith.constant 0 : index
    %c1_279 = arith.constant 1 : index
    %c1_280 = arith.constant 1 : index
    %c12_281 = arith.constant 12 : index
    %203 = vector.load %arg1[%c0_278, %c1_279, %c1_280, %c12_281] : memref<1x4x9x108xf32, #tpu.memory_space<vmem>>, vector<1x1x8x96xf32>
    %204 = vector.shape_cast %203 : vector<1x1x8x96xf32> to vector<8x96xf32>
    %205 = tpu.concatenate %198, %200, %202, %204 in 0 : vector<8x96xf32>, vector<8x96xf32>, vector<8x96xf32>, vector<8x96xf32> -> vector<32x96xf32>
    %206 = arith.truncf %205 : vector<32x96xf32> to vector<32x96xbf16>
    %c14 = arith.constant 14 : index
    %c0_282 = arith.constant 0 : index
    %c0_283 = arith.constant 0 : index
    %207 = vector.load %arg2[%c14, %c0_282, %c0_283] : memref<25x96x256xbf16, #tpu.memory_space<vmem>>, vector<1x96x256xbf16>
    %208 = vector.shape_cast %207 : vector<1x96x256xbf16> to vector<96x256xbf16>
    %cst_284 = arith.constant dense<0.000000e+00> : vector<32x256xf32>
    %209 = tpu.matmul %206, %208, %cst_284 {dimension_numbers = #tpu.dot_dimension_numbers<[1], [0], [0], [1], [0, 0, 1, 1], [], []>} : vector<32x96xbf16>, vector<96x256xbf16>, vector<32x256xf32> -> vector<32x256xf32>
    %210 = arith.addf %196, %209 : vector<32x256xf32>
    %c0_285 = arith.constant 0 : index
    %c3_286 = arith.constant 3 : index
    %c0_287 = arith.constant 0 : index
    %c0_288 = arith.constant 0 : index
    %211 = vector.load %arg1[%c0_285, %c3_286, %c0_287, %c0_288] : memref<1x4x9x108xf32, #tpu.memory_space<vmem>>, vector<1x1x8x96xf32>
    %212 = vector.shape_cast %211 : vector<1x1x8x96xf32> to vector<8x96xf32>
    %c0_289 = arith.constant 0 : index
    %c0_290 = arith.constant 0 : index
    %c1_291 = arith.constant 1 : index
    %c0_292 = arith.constant 0 : index
    %213 = vector.load %arg1[%c0_289, %c0_290, %c1_291, %c0_292] : memref<1x4x9x108xf32, #tpu.memory_space<vmem>>, vector<1x1x8x96xf32>
    %214 = vector.shape_cast %213 : vector<1x1x8x96xf32> to vector<8x96xf32>
    %c0_293 = arith.constant 0 : index
    %c1_294 = arith.constant 1 : index
    %c1_295 = arith.constant 1 : index
    %c0_296 = arith.constant 0 : index
    %215 = vector.load %arg1[%c0_293, %c1_294, %c1_295, %c0_296] : memref<1x4x9x108xf32, #tpu.memory_space<vmem>>, vector<1x1x8x96xf32>
    %216 = vector.shape_cast %215 : vector<1x1x8x96xf32> to vector<8x96xf32>
    %c0_297 = arith.constant 0 : index
    %c2_298 = arith.constant 2 : index
    %c1_299 = arith.constant 1 : index
    %c0_300 = arith.constant 0 : index
    %217 = vector.load %arg1[%c0_297, %c2_298, %c1_299, %c0_300] : memref<1x4x9x108xf32, #tpu.memory_space<vmem>>, vector<1x1x8x96xf32>
    %218 = vector.shape_cast %217 : vector<1x1x8x96xf32> to vector<8x96xf32>
    %219 = tpu.concatenate %212, %214, %216, %218 in 0 : vector<8x96xf32>, vector<8x96xf32>, vector<8x96xf32>, vector<8x96xf32> -> vector<32x96xf32>
    %220 = arith.truncf %219 : vector<32x96xf32> to vector<32x96xbf16>
    %c15 = arith.constant 15 : index
    %c0_301 = arith.constant 0 : index
    %c0_302 = arith.constant 0 : index
    %221 = vector.load %arg2[%c15, %c0_301, %c0_302] : memref<25x96x256xbf16, #tpu.memory_space<vmem>>, vector<1x96x256xbf16>
    %222 = vector.shape_cast %221 : vector<1x96x256xbf16> to vector<96x256xbf16>
    %cst_303 = arith.constant dense<0.000000e+00> : vector<32x256xf32>
    %223 = tpu.matmul %220, %222, %cst_303 {dimension_numbers = #tpu.dot_dimension_numbers<[1], [0], [0], [1], [0, 0, 1, 1], [], []>} : vector<32x96xbf16>, vector<96x256xbf16>, vector<32x256xf32> -> vector<32x256xf32>
    %224 = arith.addf %210, %223 : vector<32x256xf32>
    %c0_304 = arith.constant 0 : index
    %c3_305 = arith.constant 3 : index
    %c0_306 = arith.constant 0 : index
    %c3_307 = arith.constant 3 : index
    %225 = vector.load %arg1[%c0_304, %c3_305, %c0_306, %c3_307] : memref<1x4x9x108xf32, #tpu.memory_space<vmem>>, vector<1x1x8x96xf32>
    %226 = vector.shape_cast %225 : vector<1x1x8x96xf32> to vector<8x96xf32>
    %c0_308 = arith.constant 0 : index
    %c0_309 = arith.constant 0 : index
    %c1_310 = arith.constant 1 : index
    %c3_311 = arith.constant 3 : index
    %227 = vector.load %arg1[%c0_308, %c0_309, %c1_310, %c3_311] : memref<1x4x9x108xf32, #tpu.memory_space<vmem>>, vector<1x1x8x96xf32>
    %228 = vector.shape_cast %227 : vector<1x1x8x96xf32> to vector<8x96xf32>
    %c0_312 = arith.constant 0 : index
    %c1_313 = arith.constant 1 : index
    %c1_314 = arith.constant 1 : index
    %c3_315 = arith.constant 3 : index
    %229 = vector.load %arg1[%c0_312, %c1_313, %c1_314, %c3_315] : memref<1x4x9x108xf32, #tpu.memory_space<vmem>>, vector<1x1x8x96xf32>
    %230 = vector.shape_cast %229 : vector<1x1x8x96xf32> to vector<8x96xf32>
    %c0_316 = arith.constant 0 : index
    %c2_317 = arith.constant 2 : index
    %c1_318 = arith.constant 1 : index
    %c3_319 = arith.constant 3 : index
    %231 = vector.load %arg1[%c0_316, %c2_317, %c1_318, %c3_319] : memref<1x4x9x108xf32, #tpu.memory_space<vmem>>, vector<1x1x8x96xf32>
    %232 = vector.shape_cast %231 : vector<1x1x8x96xf32> to vector<8x96xf32>
    %233 = tpu.concatenate %226, %228, %230, %232 in 0 : vector<8x96xf32>, vector<8x96xf32>, vector<8x96xf32>, vector<8x96xf32> -> vector<32x96xf32>
    %234 = arith.truncf %233 : vector<32x96xf32> to vector<32x96xbf16>
    %c16 = arith.constant 16 : index
    %c0_320 = arith.constant 0 : index
    %c0_321 = arith.constant 0 : index
    %235 = vector.load %arg2[%c16, %c0_320, %c0_321] : memref<25x96x256xbf16, #tpu.memory_space<vmem>>, vector<1x96x256xbf16>
    %236 = vector.shape_cast %235 : vector<1x96x256xbf16> to vector<96x256xbf16>
    %cst_322 = arith.constant dense<0.000000e+00> : vector<32x256xf32>
    %237 = tpu.matmul %234, %236, %cst_322 {dimension_numbers = #tpu.dot_dimension_numbers<[1], [0], [0], [1], [0, 0, 1, 1], [], []>} : vector<32x96xbf16>, vector<96x256xbf16>, vector<32x256xf32> -> vector<32x256xf32>
    %238 = arith.addf %224, %237 : vector<32x256xf32>
    %c0_323 = arith.constant 0 : index
    %c3_324 = arith.constant 3 : index
    %c0_325 = arith.constant 0 : index
    %c6_326 = arith.constant 6 : index
    %239 = vector.load %arg1[%c0_323, %c3_324, %c0_325, %c6_326] : memref<1x4x9x108xf32, #tpu.memory_space<vmem>>, vector<1x1x8x96xf32>
    %240 = vector.shape_cast %239 : vector<1x1x8x96xf32> to vector<8x96xf32>
    %c0_327 = arith.constant 0 : index
    %c0_328 = arith.constant 0 : index
    %c1_329 = arith.constant 1 : index
    %c6_330 = arith.constant 6 : index
    %241 = vector.load %arg1[%c0_327, %c0_328, %c1_329, %c6_330] : memref<1x4x9x108xf32, #tpu.memory_space<vmem>>, vector<1x1x8x96xf32>
    %242 = vector.shape_cast %241 : vector<1x1x8x96xf32> to vector<8x96xf32>
    %c0_331 = arith.constant 0 : index
    %c1_332 = arith.constant 1 : index
    %c1_333 = arith.constant 1 : index
    %c6_334 = arith.constant 6 : index
    %243 = vector.load %arg1[%c0_331, %c1_332, %c1_333, %c6_334] : memref<1x4x9x108xf32, #tpu.memory_space<vmem>>, vector<1x1x8x96xf32>
    %244 = vector.shape_cast %243 : vector<1x1x8x96xf32> to vector<8x96xf32>
    %c0_335 = arith.constant 0 : index
    %c2_336 = arith.constant 2 : index
    %c1_337 = arith.constant 1 : index
    %c6_338 = arith.constant 6 : index
    %245 = vector.load %arg1[%c0_335, %c2_336, %c1_337, %c6_338] : memref<1x4x9x108xf32, #tpu.memory_space<vmem>>, vector<1x1x8x96xf32>
    %246 = vector.shape_cast %245 : vector<1x1x8x96xf32> to vector<8x96xf32>
    %247 = tpu.concatenate %240, %242, %244, %246 in 0 : vector<8x96xf32>, vector<8x96xf32>, vector<8x96xf32>, vector<8x96xf32> -> vector<32x96xf32>
    %248 = arith.truncf %247 : vector<32x96xf32> to vector<32x96xbf16>
    %c17 = arith.constant 17 : index
    %c0_339 = arith.constant 0 : index
    %c0_340 = arith.constant 0 : index
    %249 = vector.load %arg2[%c17, %c0_339, %c0_340] : memref<25x96x256xbf16, #tpu.memory_space<vmem>>, vector<1x96x256xbf16>
    %250 = vector.shape_cast %249 : vector<1x96x256xbf16> to vector<96x256xbf16>
    %cst_341 = arith.constant dense<0.000000e+00> : vector<32x256xf32>
    %251 = tpu.matmul %248, %250, %cst_341 {dimension_numbers = #tpu.dot_dimension_numbers<[1], [0], [0], [1], [0, 0, 1, 1], [], []>} : vector<32x96xbf16>, vector<96x256xbf16>, vector<32x256xf32> -> vector<32x256xf32>
    %252 = arith.addf %238, %251 : vector<32x256xf32>
    %c0_342 = arith.constant 0 : index
    %c3_343 = arith.constant 3 : index
    %c0_344 = arith.constant 0 : index
    %c9_345 = arith.constant 9 : index
    %253 = vector.load %arg1[%c0_342, %c3_343, %c0_344, %c9_345] : memref<1x4x9x108xf32, #tpu.memory_space<vmem>>, vector<1x1x8x96xf32>
    %254 = vector.shape_cast %253 : vector<1x1x8x96xf32> to vector<8x96xf32>
    %c0_346 = arith.constant 0 : index
    %c0_347 = arith.constant 0 : index
    %c1_348 = arith.constant 1 : index
    %c9_349 = arith.constant 9 : index
    %255 = vector.load %arg1[%c0_346, %c0_347, %c1_348, %c9_349] : memref<1x4x9x108xf32, #tpu.memory_space<vmem>>, vector<1x1x8x96xf32>
    %256 = vector.shape_cast %255 : vector<1x1x8x96xf32> to vector<8x96xf32>
    %c0_350 = arith.constant 0 : index
    %c1_351 = arith.constant 1 : index
    %c1_352 = arith.constant 1 : index
    %c9_353 = arith.constant 9 : index
    %257 = vector.load %arg1[%c0_350, %c1_351, %c1_352, %c9_353] : memref<1x4x9x108xf32, #tpu.memory_space<vmem>>, vector<1x1x8x96xf32>
    %258 = vector.shape_cast %257 : vector<1x1x8x96xf32> to vector<8x96xf32>
    %c0_354 = arith.constant 0 : index
    %c2_355 = arith.constant 2 : index
    %c1_356 = arith.constant 1 : index
    %c9_357 = arith.constant 9 : index
    %259 = vector.load %arg1[%c0_354, %c2_355, %c1_356, %c9_357] : memref<1x4x9x108xf32, #tpu.memory_space<vmem>>, vector<1x1x8x96xf32>
    %260 = vector.shape_cast %259 : vector<1x1x8x96xf32> to vector<8x96xf32>
    %261 = tpu.concatenate %254, %256, %258, %260 in 0 : vector<8x96xf32>, vector<8x96xf32>, vector<8x96xf32>, vector<8x96xf32> -> vector<32x96xf32>
    %262 = arith.truncf %261 : vector<32x96xf32> to vector<32x96xbf16>
    %c18 = arith.constant 18 : index
    %c0_358 = arith.constant 0 : index
    %c0_359 = arith.constant 0 : index
    %263 = vector.load %arg2[%c18, %c0_358, %c0_359] : memref<25x96x256xbf16, #tpu.memory_space<vmem>>, vector<1x96x256xbf16>
    %264 = vector.shape_cast %263 : vector<1x96x256xbf16> to vector<96x256xbf16>
    %cst_360 = arith.constant dense<0.000000e+00> : vector<32x256xf32>
    %265 = tpu.matmul %262, %264, %cst_360 {dimension_numbers = #tpu.dot_dimension_numbers<[1], [0], [0], [1], [0, 0, 1, 1], [], []>} : vector<32x96xbf16>, vector<96x256xbf16>, vector<32x256xf32> -> vector<32x256xf32>
    %266 = arith.addf %252, %265 : vector<32x256xf32>
    %c0_361 = arith.constant 0 : index
    %c3_362 = arith.constant 3 : index
    %c0_363 = arith.constant 0 : index
    %c12_364 = arith.constant 12 : index
    %267 = vector.load %arg1[%c0_361, %c3_362, %c0_363, %c12_364] : memref<1x4x9x108xf32, #tpu.memory_space<vmem>>, vector<1x1x8x96xf32>
    %268 = vector.shape_cast %267 : vector<1x1x8x96xf32> to vector<8x96xf32>
    %c0_365 = arith.constant 0 : index
    %c0_366 = arith.constant 0 : index
    %c1_367 = arith.constant 1 : index
    %c12_368 = arith.constant 12 : index
    %269 = vector.load %arg1[%c0_365, %c0_366, %c1_367, %c12_368] : memref<1x4x9x108xf32, #tpu.memory_space<vmem>>, vector<1x1x8x96xf32>
    %270 = vector.shape_cast %269 : vector<1x1x8x96xf32> to vector<8x96xf32>
    %c0_369 = arith.constant 0 : index
    %c1_370 = arith.constant 1 : index
    %c1_371 = arith.constant 1 : index
    %c12_372 = arith.constant 12 : index
    %271 = vector.load %arg1[%c0_369, %c1_370, %c1_371, %c12_372] : memref<1x4x9x108xf32, #tpu.memory_space<vmem>>, vector<1x1x8x96xf32>
    %272 = vector.shape_cast %271 : vector<1x1x8x96xf32> to vector<8x96xf32>
    %c0_373 = arith.constant 0 : index
    %c2_374 = arith.constant 2 : index
    %c1_375 = arith.constant 1 : index
    %c12_376 = arith.constant 12 : index
    %273 = vector.load %arg1[%c0_373, %c2_374, %c1_375, %c12_376] : memref<1x4x9x108xf32, #tpu.memory_space<vmem>>, vector<1x1x8x96xf32>
    %274 = vector.shape_cast %273 : vector<1x1x8x96xf32> to vector<8x96xf32>
    %275 = tpu.concatenate %268, %270, %272, %274 in 0 : vector<8x96xf32>, vector<8x96xf32>, vector<8x96xf32>, vector<8x96xf32> -> vector<32x96xf32>
    %276 = arith.truncf %275 : vector<32x96xf32> to vector<32x96xbf16>
    %c19 = arith.constant 19 : index
    %c0_377 = arith.constant 0 : index
    %c0_378 = arith.constant 0 : index
    %277 = vector.load %arg2[%c19, %c0_377, %c0_378] : memref<25x96x256xbf16, #tpu.memory_space<vmem>>, vector<1x96x256xbf16>
    %278 = vector.shape_cast %277 : vector<1x96x256xbf16> to vector<96x256xbf16>
    %cst_379 = arith.constant dense<0.000000e+00> : vector<32x256xf32>
    %279 = tpu.matmul %276, %278, %cst_379 {dimension_numbers = #tpu.dot_dimension_numbers<[1], [0], [0], [1], [0, 0, 1, 1], [], []>} : vector<32x96xbf16>, vector<96x256xbf16>, vector<32x256xf32> -> vector<32x256xf32>
    %280 = arith.addf %266, %279 : vector<32x256xf32>
    %c0_380 = arith.constant 0 : index
    %c0_381 = arith.constant 0 : index
    %c1_382 = arith.constant 1 : index
    %c0_383 = arith.constant 0 : index
    %281 = vector.load %arg1[%c0_380, %c0_381, %c1_382, %c0_383] : memref<1x4x9x108xf32, #tpu.memory_space<vmem>>, vector<1x1x8x96xf32>
    %282 = vector.shape_cast %281 : vector<1x1x8x96xf32> to vector<8x96xf32>
    %c0_384 = arith.constant 0 : index
    %c1_385 = arith.constant 1 : index
    %c1_386 = arith.constant 1 : index
    %c0_387 = arith.constant 0 : index
    %283 = vector.load %arg1[%c0_384, %c1_385, %c1_386, %c0_387] : memref<1x4x9x108xf32, #tpu.memory_space<vmem>>, vector<1x1x8x96xf32>
    %284 = vector.shape_cast %283 : vector<1x1x8x96xf32> to vector<8x96xf32>
    %c0_388 = arith.constant 0 : index
    %c2_389 = arith.constant 2 : index
    %c1_390 = arith.constant 1 : index
    %c0_391 = arith.constant 0 : index
    %285 = vector.load %arg1[%c0_388, %c2_389, %c1_390, %c0_391] : memref<1x4x9x108xf32, #tpu.memory_space<vmem>>, vector<1x1x8x96xf32>
    %286 = vector.shape_cast %285 : vector<1x1x8x96xf32> to vector<8x96xf32>
    %c0_392 = arith.constant 0 : index
    %c3_393 = arith.constant 3 : index
    %c1_394 = arith.constant 1 : index
    %c0_395 = arith.constant 0 : index
    %287 = vector.load %arg1[%c0_392, %c3_393, %c1_394, %c0_395] : memref<1x4x9x108xf32, #tpu.memory_space<vmem>>, vector<1x1x8x96xf32>
    %288 = vector.shape_cast %287 : vector<1x1x8x96xf32> to vector<8x96xf32>
    %289 = tpu.concatenate %282, %284, %286, %288 in 0 : vector<8x96xf32>, vector<8x96xf32>, vector<8x96xf32>, vector<8x96xf32> -> vector<32x96xf32>
    %290 = arith.truncf %289 : vector<32x96xf32> to vector<32x96xbf16>
    %c20 = arith.constant 20 : index
    %c0_396 = arith.constant 0 : index
    %c0_397 = arith.constant 0 : index
    %291 = vector.load %arg2[%c20, %c0_396, %c0_397] : memref<25x96x256xbf16, #tpu.memory_space<vmem>>, vector<1x96x256xbf16>
    %292 = vector.shape_cast %291 : vector<1x96x256xbf16> to vector<96x256xbf16>
    %cst_398 = arith.constant dense<0.000000e+00> : vector<32x256xf32>
    %293 = tpu.matmul %290, %292, %cst_398 {dimension_numbers = #tpu.dot_dimension_numbers<[1], [0], [0], [1], [0, 0, 1, 1], [], []>} : vector<32x96xbf16>, vector<96x256xbf16>, vector<32x256xf32> -> vector<32x256xf32>
    %294 = arith.addf %280, %293 : vector<32x256xf32>
    %c0_399 = arith.constant 0 : index
    %c0_400 = arith.constant 0 : index
    %c1_401 = arith.constant 1 : index
    %c3_402 = arith.constant 3 : index
    %295 = vector.load %arg1[%c0_399, %c0_400, %c1_401, %c3_402] : memref<1x4x9x108xf32, #tpu.memory_space<vmem>>, vector<1x1x8x96xf32>
    %296 = vector.shape_cast %295 : vector<1x1x8x96xf32> to vector<8x96xf32>
    %c0_403 = arith.constant 0 : index
    %c1_404 = arith.constant 1 : index
    %c1_405 = arith.constant 1 : index
    %c3_406 = arith.constant 3 : index
    %297 = vector.load %arg1[%c0_403, %c1_404, %c1_405, %c3_406] : memref<1x4x9x108xf32, #tpu.memory_space<vmem>>, vector<1x1x8x96xf32>
    %298 = vector.shape_cast %297 : vector<1x1x8x96xf32> to vector<8x96xf32>
    %c0_407 = arith.constant 0 : index
    %c2_408 = arith.constant 2 : index
    %c1_409 = arith.constant 1 : index
    %c3_410 = arith.constant 3 : index
    %299 = vector.load %arg1[%c0_407, %c2_408, %c1_409, %c3_410] : memref<1x4x9x108xf32, #tpu.memory_space<vmem>>, vector<1x1x8x96xf32>
    %300 = vector.shape_cast %299 : vector<1x1x8x96xf32> to vector<8x96xf32>
    %c0_411 = arith.constant 0 : index
    %c3_412 = arith.constant 3 : index
    %c1_413 = arith.constant 1 : index
    %c3_414 = arith.constant 3 : index
    %301 = vector.load %arg1[%c0_411, %c3_412, %c1_413, %c3_414] : memref<1x4x9x108xf32, #tpu.memory_space<vmem>>, vector<1x1x8x96xf32>
    %302 = vector.shape_cast %301 : vector<1x1x8x96xf32> to vector<8x96xf32>
    %303 = tpu.concatenate %296, %298, %300, %302 in 0 : vector<8x96xf32>, vector<8x96xf32>, vector<8x96xf32>, vector<8x96xf32> -> vector<32x96xf32>
    %304 = arith.truncf %303 : vector<32x96xf32> to vector<32x96xbf16>
    %c21 = arith.constant 21 : index
    %c0_415 = arith.constant 0 : index
    %c0_416 = arith.constant 0 : index
    %305 = vector.load %arg2[%c21, %c0_415, %c0_416] : memref<25x96x256xbf16, #tpu.memory_space<vmem>>, vector<1x96x256xbf16>
    %306 = vector.shape_cast %305 : vector<1x96x256xbf16> to vector<96x256xbf16>
    %cst_417 = arith.constant dense<0.000000e+00> : vector<32x256xf32>
    %307 = tpu.matmul %304, %306, %cst_417 {dimension_numbers = #tpu.dot_dimension_numbers<[1], [0], [0], [1], [0, 0, 1, 1], [], []>} : vector<32x96xbf16>, vector<96x256xbf16>, vector<32x256xf32> -> vector<32x256xf32>
    %308 = arith.addf %294, %307 : vector<32x256xf32>
    %c0_418 = arith.constant 0 : index
    %c0_419 = arith.constant 0 : index
    %c1_420 = arith.constant 1 : index
    %c6_421 = arith.constant 6 : index
    %309 = vector.load %arg1[%c0_418, %c0_419, %c1_420, %c6_421] : memref<1x4x9x108xf32, #tpu.memory_space<vmem>>, vector<1x1x8x96xf32>
    %310 = vector.shape_cast %309 : vector<1x1x8x96xf32> to vector<8x96xf32>
    %c0_422 = arith.constant 0 : index
    %c1_423 = arith.constant 1 : index
    %c1_424 = arith.constant 1 : index
    %c6_425 = arith.constant 6 : index
    %311 = vector.load %arg1[%c0_422, %c1_423, %c1_424, %c6_425] : memref<1x4x9x108xf32, #tpu.memory_space<vmem>>, vector<1x1x8x96xf32>
    %312 = vector.shape_cast %311 : vector<1x1x8x96xf32> to vector<8x96xf32>
    %c0_426 = arith.constant 0 : index
    %c2_427 = arith.constant 2 : index
    %c1_428 = arith.constant 1 : index
    %c6_429 = arith.constant 6 : index
    %313 = vector.load %arg1[%c0_426, %c2_427, %c1_428, %c6_429] : memref<1x4x9x108xf32, #tpu.memory_space<vmem>>, vector<1x1x8x96xf32>
    %314 = vector.shape_cast %313 : vector<1x1x8x96xf32> to vector<8x96xf32>
    %c0_430 = arith.constant 0 : index
    %c3_431 = arith.constant 3 : index
    %c1_432 = arith.constant 1 : index
    %c6_433 = arith.constant 6 : index
    %315 = vector.load %arg1[%c0_430, %c3_431, %c1_432, %c6_433] : memref<1x4x9x108xf32, #tpu.memory_space<vmem>>, vector<1x1x8x96xf32>
    %316 = vector.shape_cast %315 : vector<1x1x8x96xf32> to vector<8x96xf32>
    %317 = tpu.concatenate %310, %312, %314, %316 in 0 : vector<8x96xf32>, vector<8x96xf32>, vector<8x96xf32>, vector<8x96xf32> -> vector<32x96xf32>
    %318 = arith.truncf %317 : vector<32x96xf32> to vector<32x96xbf16>
    %c22 = arith.constant 22 : index
    %c0_434 = arith.constant 0 : index
    %c0_435 = arith.constant 0 : index
    %319 = vector.load %arg2[%c22, %c0_434, %c0_435] : memref<25x96x256xbf16, #tpu.memory_space<vmem>>, vector<1x96x256xbf16>
    %320 = vector.shape_cast %319 : vector<1x96x256xbf16> to vector<96x256xbf16>
    %cst_436 = arith.constant dense<0.000000e+00> : vector<32x256xf32>
    %321 = tpu.matmul %318, %320, %cst_436 {dimension_numbers = #tpu.dot_dimension_numbers<[1], [0], [0], [1], [0, 0, 1, 1], [], []>} : vector<32x96xbf16>, vector<96x256xbf16>, vector<32x256xf32> -> vector<32x256xf32>
    %322 = arith.addf %308, %321 : vector<32x256xf32>
    %c0_437 = arith.constant 0 : index
    %c0_438 = arith.constant 0 : index
    %c1_439 = arith.constant 1 : index
    %c9_440 = arith.constant 9 : index
    %323 = vector.load %arg1[%c0_437, %c0_438, %c1_439, %c9_440] : memref<1x4x9x108xf32, #tpu.memory_space<vmem>>, vector<1x1x8x96xf32>
    %324 = vector.shape_cast %323 : vector<1x1x8x96xf32> to vector<8x96xf32>
    %c0_441 = arith.constant 0 : index
    %c1_442 = arith.constant 1 : index
    %c1_443 = arith.constant 1 : index
    %c9_444 = arith.constant 9 : index
    %325 = vector.load %arg1[%c0_441, %c1_442, %c1_443, %c9_444] : memref<1x4x9x108xf32, #tpu.memory_space<vmem>>, vector<1x1x8x96xf32>
    %326 = vector.shape_cast %325 : vector<1x1x8x96xf32> to vector<8x96xf32>
    %c0_445 = arith.constant 0 : index
    %c2_446 = arith.constant 2 : index
    %c1_447 = arith.constant 1 : index
    %c9_448 = arith.constant 9 : index
    %327 = vector.load %arg1[%c0_445, %c2_446, %c1_447, %c9_448] : memref<1x4x9x108xf32, #tpu.memory_space<vmem>>, vector<1x1x8x96xf32>
    %328 = vector.shape_cast %327 : vector<1x1x8x96xf32> to vector<8x96xf32>
    %c0_449 = arith.constant 0 : index
    %c3_450 = arith.constant 3 : index
    %c1_451 = arith.constant 1 : index
    %c9_452 = arith.constant 9 : index
    %329 = vector.load %arg1[%c0_449, %c3_450, %c1_451, %c9_452] : memref<1x4x9x108xf32, #tpu.memory_space<vmem>>, vector<1x1x8x96xf32>
    %330 = vector.shape_cast %329 : vector<1x1x8x96xf32> to vector<8x96xf32>
    %331 = tpu.concatenate %324, %326, %328, %330 in 0 : vector<8x96xf32>, vector<8x96xf32>, vector<8x96xf32>, vector<8x96xf32> -> vector<32x96xf32>
    %332 = arith.truncf %331 : vector<32x96xf32> to vector<32x96xbf16>
    %c23 = arith.constant 23 : index
    %c0_453 = arith.constant 0 : index
    %c0_454 = arith.constant 0 : index
    %333 = vector.load %arg2[%c23, %c0_453, %c0_454] : memref<25x96x256xbf16, #tpu.memory_space<vmem>>, vector<1x96x256xbf16>
    %334 = vector.shape_cast %333 : vector<1x96x256xbf16> to vector<96x256xbf16>
    %cst_455 = arith.constant dense<0.000000e+00> : vector<32x256xf32>
    %335 = tpu.matmul %332, %334, %cst_455 {dimension_numbers = #tpu.dot_dimension_numbers<[1], [0], [0], [1], [0, 0, 1, 1], [], []>} : vector<32x96xbf16>, vector<96x256xbf16>, vector<32x256xf32> -> vector<32x256xf32>
    %336 = arith.addf %322, %335 : vector<32x256xf32>
    %c0_456 = arith.constant 0 : index
    %c0_457 = arith.constant 0 : index
    %c1_458 = arith.constant 1 : index
    %c12_459 = arith.constant 12 : index
    %337 = vector.load %arg1[%c0_456, %c0_457, %c1_458, %c12_459] : memref<1x4x9x108xf32, #tpu.memory_space<vmem>>, vector<1x1x8x96xf32>
    %338 = vector.shape_cast %337 : vector<1x1x8x96xf32> to vector<8x96xf32>
    %c0_460 = arith.constant 0 : index
    %c1_461 = arith.constant 1 : index
    %c1_462 = arith.constant 1 : index
    %c12_463 = arith.constant 12 : index
    %339 = vector.load %arg1[%c0_460, %c1_461, %c1_462, %c12_463] : memref<1x4x9x108xf32, #tpu.memory_space<vmem>>, vector<1x1x8x96xf32>
    %340 = vector.shape_cast %339 : vector<1x1x8x96xf32> to vector<8x96xf32>
    %c0_464 = arith.constant 0 : index
    %c2_465 = arith.constant 2 : index
    %c1_466 = arith.constant 1 : index
    %c12_467 = arith.constant 12 : index
    %341 = vector.load %arg1[%c0_464, %c2_465, %c1_466, %c12_467] : memref<1x4x9x108xf32, #tpu.memory_space<vmem>>, vector<1x1x8x96xf32>
    %342 = vector.shape_cast %341 : vector<1x1x8x96xf32> to vector<8x96xf32>
    %c0_468 = arith.constant 0 : index
    %c3_469 = arith.constant 3 : index
    %c1_470 = arith.constant 1 : index
    %c12_471 = arith.constant 12 : index
    %343 = vector.load %arg1[%c0_468, %c3_469, %c1_470, %c12_471] : memref<1x4x9x108xf32, #tpu.memory_space<vmem>>, vector<1x1x8x96xf32>
    %344 = vector.shape_cast %343 : vector<1x1x8x96xf32> to vector<8x96xf32>
    %345 = tpu.concatenate %338, %340, %342, %344 in 0 : vector<8x96xf32>, vector<8x96xf32>, vector<8x96xf32>, vector<8x96xf32> -> vector<32x96xf32>
    %346 = arith.truncf %345 : vector<32x96xf32> to vector<32x96xbf16>
    %c24 = arith.constant 24 : index
    %c0_472 = arith.constant 0 : index
    %c0_473 = arith.constant 0 : index
    %347 = vector.load %arg2[%c24, %c0_472, %c0_473] : memref<25x96x256xbf16, #tpu.memory_space<vmem>>, vector<1x96x256xbf16>
    %348 = vector.shape_cast %347 : vector<1x96x256xbf16> to vector<96x256xbf16>
    %cst_474 = arith.constant dense<0.000000e+00> : vector<32x256xf32>
    %349 = tpu.matmul %346, %348, %cst_474 {dimension_numbers = #tpu.dot_dimension_numbers<[1], [0], [0], [1], [0, 0, 1, 1], [], []>} : vector<32x96xbf16>, vector<96x256xbf16>, vector<32x256xf32> -> vector<32x256xf32>
    %350 = arith.addf %336, %349 : vector<32x256xf32>
    %c0_475 = arith.constant 0 : index
    %c0_476 = arith.constant 0 : index
    %351 = vector.load %arg3[%c0_475, %c0_476] : memref<1x256xf32, #tpu.memory_space<vmem>>, vector<1x256xf32>
    %352 = vector.broadcast %351 : vector<1x256xf32> to vector<32x256xf32>
    %353 = arith.addf %350, %352 : vector<32x256xf32>
    %cst_477 = arith.constant 0.000000e+00 : f32
    %354 = vector.broadcast %cst_477 : f32 to vector<32x256xf32>
    %355 = arith.maximumf %353, %354 : vector<32x256xf32>
    %356 = vector.extract_strided_slice %355 {offsets = [0, 0], sizes = [8, 256], strides = [1, 1]} : vector<32x256xf32> to vector<8x256xf32>
    %357 = vector.extract_strided_slice %355 {offsets = [8, 0], sizes = [8, 256], strides = [1, 1]} : vector<32x256xf32> to vector<8x256xf32>
    %358 = arith.maximumf %356, %357 : vector<8x256xf32>
    %359 = vector.extract_strided_slice %355 {offsets = [16, 0], sizes = [8, 256], strides = [1, 1]} : vector<32x256xf32> to vector<8x256xf32>
    %360 = vector.extract_strided_slice %355 {offsets = [24, 0], sizes = [8, 256], strides = [1, 1]} : vector<32x256xf32> to vector<8x256xf32>
    %361 = arith.maximumf %359, %360 : vector<8x256xf32>
    %c0_478 = arith.constant 0 : index
    %c0_479 = arith.constant 0 : index
    %362 = vector.load %arg6[%c0_478, %c0_479] : memref<256x160xf32, #tpu.memory_space<vmem>>, vector<256x160xf32>
    %cst_480 = arith.constant dense<0.000000e+00> : vector<8x160xf32>
    %363 = tpu.matmul %358, %362, %cst_480 {dimension_numbers = #tpu.dot_dimension_numbers<[1], [0], [0], [1], [0, 0, 1, 1], [], []>} : vector<8x256xf32>, vector<256x160xf32>, vector<8x160xf32> -> vector<8x160xf32>
    %c0_481 = arith.constant 0 : index
    %c0_482 = arith.constant 0 : index
    %364 = vector.load %arg7[%c0_481, %c0_482] : memref<256x160xf32, #tpu.memory_space<vmem>>, vector<256x160xf32>
    %cst_483 = arith.constant dense<0.000000e+00> : vector<8x160xf32>
    %365 = tpu.matmul %358, %364, %cst_483 {dimension_numbers = #tpu.dot_dimension_numbers<[1], [0], [0], [1], [0, 0, 1, 1], [], []>} : vector<8x256xf32>, vector<256x160xf32>, vector<8x160xf32> -> vector<8x160xf32>
    %366 = arith.maximumf %363, %365 : vector<8x160xf32>
    %c0_484 = arith.constant 0 : index
    %c0_485 = arith.constant 0 : index
    %367 = vector.load %arg6[%c0_484, %c0_485] : memref<256x160xf32, #tpu.memory_space<vmem>>, vector<256x160xf32>
    %cst_486 = arith.constant dense<0.000000e+00> : vector<8x160xf32>
    %368 = tpu.matmul %361, %367, %cst_486 {dimension_numbers = #tpu.dot_dimension_numbers<[1], [0], [0], [1], [0, 0, 1, 1], [], []>} : vector<8x256xf32>, vector<256x160xf32>, vector<8x160xf32> -> vector<8x160xf32>
    %c0_487 = arith.constant 0 : index
    %c0_488 = arith.constant 0 : index
    %369 = vector.load %arg7[%c0_487, %c0_488] : memref<256x160xf32, #tpu.memory_space<vmem>>, vector<256x160xf32>
    %cst_489 = arith.constant dense<0.000000e+00> : vector<8x160xf32>
    %370 = tpu.matmul %361, %369, %cst_489 {dimension_numbers = #tpu.dot_dimension_numbers<[1], [0], [0], [1], [0, 0, 1, 1], [], []>} : vector<8x256xf32>, vector<256x160xf32>, vector<8x160xf32> -> vector<8x160xf32>
    %371 = arith.maximumf %368, %370 : vector<8x160xf32>
    %cst_490 = arith.constant 0.000000e+00 : f32
    %372 = vector.broadcast %cst_490 : f32 to vector<10x160xf32>
    %c0_491 = arith.constant 0 : index
    %c0_492 = arith.constant 0 : index
    %373 = vector.load %arg16[%c0_491, %c0_492] : memref<10x160xf32, #tpu.memory_space<vmem>>, vector<10x160xf32>
    tpu.vector_store %arg16[%c0_491, %c0_492], %372 {strides = array<i32>} : memref<10x160xf32, #tpu.memory_space<vmem>>, vector<10x160xf32>,
    %cst_493 = arith.constant 0.000000e+00 : f32
    %374 = vector.broadcast %cst_493 : f32 to vector<10x160xf32>
    %c0_494 = arith.constant 0 : index
    %c0_495 = arith.constant 0 : index
    %375 = vector.load %arg17[%c0_494, %c0_495] : memref<10x160xf32, #tpu.memory_space<vmem>>, vector<10x160xf32>
    tpu.vector_store %arg17[%c0_494, %c0_495], %374 {strides = array<i32>} : memref<10x160xf32, #tpu.memory_space<vmem>>, vector<10x160xf32>,
    %c1_496 = arith.constant 1 : index
    %c0_497 = arith.constant 0 : index
    %376 = vector.load %arg16[%c1_496, %c0_497] : memref<10x160xf32, #tpu.memory_space<vmem>>, vector<8x160xf32>
    tpu.vector_store %arg16[%c1_496, %c0_497], %366 {strides = array<i32>} : memref<10x160xf32, #tpu.memory_space<vmem>>, vector<8x160xf32>,
    %c1_498 = arith.constant 1 : index
    %c0_499 = arith.constant 0 : index
    %377 = vector.load %arg17[%c1_498, %c0_499] : memref<10x160xf32, #tpu.memory_space<vmem>>, vector<8x160xf32>
    tpu.vector_store %arg17[%c1_498, %c0_499], %371 {strides = array<i32>} : memref<10x160xf32, #tpu.memory_space<vmem>>, vector<8x160xf32>,
    %cst_500 = arith.constant 0.000000e+00 : f32
    %378 = vector.broadcast %cst_500 : f32 to vector<16x256xf32>
    %c0_501 = arith.constant 0 : index
    %c0_502 = arith.constant 0 : index
    %379 = vector.load %arg16[%c0_501, %c0_502] : memref<10x160xf32, #tpu.memory_space<vmem>>, vector<8x128xf32>
    %c0_503 = arith.constant 0 : index
    %c0_504 = arith.constant 0 : index
    %380 = vector.load %arg17[%c0_503, %c0_504] : memref<10x160xf32, #tpu.memory_space<vmem>>, vector<8x128xf32>
    %381 = tpu.concatenate %379, %380 in 0 : vector<8x128xf32>, vector<8x128xf32> -> vector<16x128xf32>
    %382 = arith.truncf %381 : vector<16x128xf32> to vector<16x128xbf16>
    %c0_505 = arith.constant 0 : index
    %c0_506 = arith.constant 0 : index
    %c0_507 = arith.constant 0 : index
    %383 = vector.load %arg4[%c0_505, %c0_506, %c0_507] : memref<25x128x256xbf16, #tpu.memory_space<vmem>>, vector<1x128x256xbf16>
    %384 = vector.shape_cast %383 : vector<1x128x256xbf16> to vector<128x256xbf16>
    %cst_508 = arith.constant dense<0.000000e+00> : vector<16x256xf32>
    %385 = tpu.matmul %382, %384, %cst_508 {dimension_numbers = #tpu.dot_dimension_numbers<[1], [0], [0], [1], [0, 0, 1, 1], [], []>} : vector<16x128xbf16>, vector<128x256xbf16>, vector<16x256xf32> -> vector<16x256xf32>
    %386 = arith.addf %378, %385 : vector<16x256xf32>
    %c0_509 = arith.constant 0 : index
    %c8_510 = arith.constant 8 : index
    %387 = vector.load %arg16[%c0_509, %c8_510] : memref<10x160xf32, #tpu.memory_space<vmem>>, vector<8x128xf32>
    %c0_511 = arith.constant 0 : index
    %c8_512 = arith.constant 8 : index
    %388 = vector.load %arg17[%c0_511, %c8_512] : memref<10x160xf32, #tpu.memory_space<vmem>>, vector<8x128xf32>
    %389 = tpu.concatenate %387, %388 in 0 : vector<8x128xf32>, vector<8x128xf32> -> vector<16x128xf32>
    %390 = arith.truncf %389 : vector<16x128xf32> to vector<16x128xbf16>
    %c1_513 = arith.constant 1 : index
    %c0_514 = arith.constant 0 : index
    %c0_515 = arith.constant 0 : index
    %391 = vector.load %arg4[%c1_513, %c0_514, %c0_515] : memref<25x128x256xbf16, #tpu.memory_space<vmem>>, vector<1x128x256xbf16>
    %392 = vector.shape_cast %391 : vector<1x128x256xbf16> to vector<128x256xbf16>
    %cst_516 = arith.constant dense<0.000000e+00> : vector<16x256xf32>
    %393 = tpu.matmul %390, %392, %cst_516 {dimension_numbers = #tpu.dot_dimension_numbers<[1], [0], [0], [1], [0, 0, 1, 1], [], []>} : vector<16x128xbf16>, vector<128x256xbf16>, vector<16x256xf32> -> vector<16x256xf32>
    %394 = arith.addf %386, %393 : vector<16x256xf32>
    %c0_517 = arith.constant 0 : index
    %c16_518 = arith.constant 16 : index
    %395 = vector.load %arg16[%c0_517, %c16_518] : memref<10x160xf32, #tpu.memory_space<vmem>>, vector<8x128xf32>
    %c0_519 = arith.constant 0 : index
    %c16_520 = arith.constant 16 : index
    %396 = vector.load %arg17[%c0_519, %c16_520] : memref<10x160xf32, #tpu.memory_space<vmem>>, vector<8x128xf32>
    %397 = tpu.concatenate %395, %396 in 0 : vector<8x128xf32>, vector<8x128xf32> -> vector<16x128xf32>
    %398 = arith.truncf %397 : vector<16x128xf32> to vector<16x128xbf16>
    %c2_521 = arith.constant 2 : index
    %c0_522 = arith.constant 0 : index
    %c0_523 = arith.constant 0 : index
    %399 = vector.load %arg4[%c2_521, %c0_522, %c0_523] : memref<25x128x256xbf16, #tpu.memory_space<vmem>>, vector<1x128x256xbf16>
    %400 = vector.shape_cast %399 : vector<1x128x256xbf16> to vector<128x256xbf16>
    %cst_524 = arith.constant dense<0.000000e+00> : vector<16x256xf32>
    %401 = tpu.matmul %398, %400, %cst_524 {dimension_numbers = #tpu.dot_dimension_numbers<[1], [0], [0], [1], [0, 0, 1, 1], [], []>} : vector<16x128xbf16>, vector<128x256xbf16>, vector<16x256xf32> -> vector<16x256xf32>
    %402 = arith.addf %394, %401 : vector<16x256xf32>
    %c0_525 = arith.constant 0 : index
    %c24_526 = arith.constant 24 : index
    %403 = vector.load %arg16[%c0_525, %c24_526] : memref<10x160xf32, #tpu.memory_space<vmem>>, vector<8x128xf32>
    %c0_527 = arith.constant 0 : index
    %c24_528 = arith.constant 24 : index
    %404 = vector.load %arg17[%c0_527, %c24_528] : memref<10x160xf32, #tpu.memory_space<vmem>>, vector<8x128xf32>
    %405 = tpu.concatenate %403, %404 in 0 : vector<8x128xf32>, vector<8x128xf32> -> vector<16x128xf32>
    %406 = arith.truncf %405 : vector<16x128xf32> to vector<16x128xbf16>
    %c3_529 = arith.constant 3 : index
    %c0_530 = arith.constant 0 : index
    %c0_531 = arith.constant 0 : index
    %407 = vector.load %arg4[%c3_529, %c0_530, %c0_531] : memref<25x128x256xbf16, #tpu.memory_space<vmem>>, vector<1x128x256xbf16>
    %408 = vector.shape_cast %407 : vector<1x128x256xbf16> to vector<128x256xbf16>
    %cst_532 = arith.constant dense<0.000000e+00> : vector<16x256xf32>
    %409 = tpu.matmul %406, %408, %cst_532 {dimension_numbers = #tpu.dot_dimension_numbers<[1], [0], [0], [1], [0, 0, 1, 1], [], []>} : vector<16x128xbf16>, vector<128x256xbf16>, vector<16x256xf32> -> vector<16x256xf32>
    %410 = arith.addf %402, %409 : vector<16x256xf32>
    %c0_533 = arith.constant 0 : index
    %c32 = arith.constant 32 : index
    %411 = vector.load %arg16[%c0_533, %c32] : memref<10x160xf32, #tpu.memory_space<vmem>>, vector<8x128xf32>
    %c0_534 = arith.constant 0 : index
    %c32_535 = arith.constant 32 : index
    %412 = vector.load %arg17[%c0_534, %c32_535] : memref<10x160xf32, #tpu.memory_space<vmem>>, vector<8x128xf32>
    %413 = tpu.concatenate %411, %412 in 0 : vector<8x128xf32>, vector<8x128xf32> -> vector<16x128xf32>
    %414 = arith.truncf %413 : vector<16x128xf32> to vector<16x128xbf16>
    %c4_536 = arith.constant 4 : index
    %c0_537 = arith.constant 0 : index
    %c0_538 = arith.constant 0 : index
    %415 = vector.load %arg4[%c4_536, %c0_537, %c0_538] : memref<25x128x256xbf16, #tpu.memory_space<vmem>>, vector<1x128x256xbf16>
    %416 = vector.shape_cast %415 : vector<1x128x256xbf16> to vector<128x256xbf16>
    %cst_539 = arith.constant dense<0.000000e+00> : vector<16x256xf32>
    %417 = tpu.matmul %414, %416, %cst_539 {dimension_numbers = #tpu.dot_dimension_numbers<[1], [0], [0], [1], [0, 0, 1, 1], [], []>} : vector<16x128xbf16>, vector<128x256xbf16>, vector<16x256xf32> -> vector<16x256xf32>
    %418 = arith.addf %410, %417 : vector<16x256xf32>
    %c0_540 = arith.constant 0 : index
    %c0_541 = arith.constant 0 : index
    %419 = vector.load %arg17[%c0_540, %c0_541] : memref<10x160xf32, #tpu.memory_space<vmem>>, vector<8x128xf32>
    %c1_542 = arith.constant 1 : index
    %c0_543 = arith.constant 0 : index
    %420 = vector.load %arg16[%c1_542, %c0_543] : memref<10x160xf32, #tpu.memory_space<vmem>>, vector<8x128xf32>
    %421 = tpu.concatenate %419, %420 in 0 : vector<8x128xf32>, vector<8x128xf32> -> vector<16x128xf32>
    %422 = arith.truncf %421 : vector<16x128xf32> to vector<16x128xbf16>
    %c5_544 = arith.constant 5 : index
    %c0_545 = arith.constant 0 : index
    %c0_546 = arith.constant 0 : index
    %423 = vector.load %arg4[%c5_544, %c0_545, %c0_546] : memref<25x128x256xbf16, #tpu.memory_space<vmem>>, vector<1x128x256xbf16>
    %424 = vector.shape_cast %423 : vector<1x128x256xbf16> to vector<128x256xbf16>
    %cst_547 = arith.constant dense<0.000000e+00> : vector<16x256xf32>
    %425 = tpu.matmul %422, %424, %cst_547 {dimension_numbers = #tpu.dot_dimension_numbers<[1], [0], [0], [1], [0, 0, 1, 1], [], []>} : vector<16x128xbf16>, vector<128x256xbf16>, vector<16x256xf32> -> vector<16x256xf32>
    %426 = arith.addf %418, %425 : vector<16x256xf32>
    %c0_548 = arith.constant 0 : index
    %c8_549 = arith.constant 8 : index
    %427 = vector.load %arg17[%c0_548, %c8_549] : memref<10x160xf32, #tpu.memory_space<vmem>>, vector<8x128xf32>
    %c1_550 = arith.constant 1 : index
    %c8_551 = arith.constant 8 : index
    %428 = vector.load %arg16[%c1_550, %c8_551] : memref<10x160xf32, #tpu.memory_space<vmem>>, vector<8x128xf32>
    %429 = tpu.concatenate %427, %428 in 0 : vector<8x128xf32>, vector<8x128xf32> -> vector<16x128xf32>
    %430 = arith.truncf %429 : vector<16x128xf32> to vector<16x128xbf16>
    %c6_552 = arith.constant 6 : index
    %c0_553 = arith.constant 0 : index
    %c0_554 = arith.constant 0 : index
    %431 = vector.load %arg4[%c6_552, %c0_553, %c0_554] : memref<25x128x256xbf16, #tpu.memory_space<vmem>>, vector<1x128x256xbf16>
    %432 = vector.shape_cast %431 : vector<1x128x256xbf16> to vector<128x256xbf16>
    %cst_555 = arith.constant dense<0.000000e+00> : vector<16x256xf32>
    %433 = tpu.matmul %430, %432, %cst_555 {dimension_numbers = #tpu.dot_dimension_numbers<[1], [0], [0], [1], [0, 0, 1, 1], [], []>} : vector<16x128xbf16>, vector<128x256xbf16>, vector<16x256xf32> -> vector<16x256xf32>
    %434 = arith.addf %426, %433 : vector<16x256xf32>
    %c0_556 = arith.constant 0 : index
    %c16_557 = arith.constant 16 : index
    %435 = vector.load %arg17[%c0_556, %c16_557] : memref<10x160xf32, #tpu.memory_space<vmem>>, vector<8x128xf32>
    %c1_558 = arith.constant 1 : index
    %c16_559 = arith.constant 16 : index
    %436 = vector.load %arg16[%c1_558, %c16_559] : memref<10x160xf32, #tpu.memory_space<vmem>>, vector<8x128xf32>
    %437 = tpu.concatenate %435, %436 in 0 : vector<8x128xf32>, vector<8x128xf32> -> vector<16x128xf32>
    %438 = arith.truncf %437 : vector<16x128xf32> to vector<16x128xbf16>
    %c7_560 = arith.constant 7 : index
    %c0_561 = arith.constant 0 : index
    %c0_562 = arith.constant 0 : index
    %439 = vector.load %arg4[%c7_560, %c0_561, %c0_562] : memref<25x128x256xbf16, #tpu.memory_space<vmem>>, vector<1x128x256xbf16>
    %440 = vector.shape_cast %439 : vector<1x128x256xbf16> to vector<128x256xbf16>
    %cst_563 = arith.constant dense<0.000000e+00> : vector<16x256xf32>
    %441 = tpu.matmul %438, %440, %cst_563 {dimension_numbers = #tpu.dot_dimension_numbers<[1], [0], [0], [1], [0, 0, 1, 1], [], []>} : vector<16x128xbf16>, vector<128x256xbf16>, vector<16x256xf32> -> vector<16x256xf32>
    %442 = arith.addf %434, %441 : vector<16x256xf32>
    %c0_564 = arith.constant 0 : index
    %c24_565 = arith.constant 24 : index
    %443 = vector.load %arg17[%c0_564, %c24_565] : memref<10x160xf32, #tpu.memory_space<vmem>>, vector<8x128xf32>
    %c1_566 = arith.constant 1 : index
    %c24_567 = arith.constant 24 : index
    %444 = vector.load %arg16[%c1_566, %c24_567] : memref<10x160xf32, #tpu.memory_space<vmem>>, vector<8x128xf32>
    %445 = tpu.concatenate %443, %444 in 0 : vector<8x128xf32>, vector<8x128xf32> -> vector<16x128xf32>
    %446 = arith.truncf %445 : vector<16x128xf32> to vector<16x128xbf16>
    %c8_568 = arith.constant 8 : index
    %c0_569 = arith.constant 0 : index
    %c0_570 = arith.constant 0 : index
    %447 = vector.load %arg4[%c8_568, %c0_569, %c0_570] : memref<25x128x256xbf16, #tpu.memory_space<vmem>>, vector<1x128x256xbf16>
    %448 = vector.shape_cast %447 : vector<1x128x256xbf16> to vector<128x256xbf16>
    %cst_571 = arith.constant dense<0.000000e+00> : vector<16x256xf32>
    %449 = tpu.matmul %446, %448, %cst_571 {dimension_numbers = #tpu.dot_dimension_numbers<[1], [0], [0], [1], [0, 0, 1, 1], [], []>} : vector<16x128xbf16>, vector<128x256xbf16>, vector<16x256xf32> -> vector<16x256xf32>
    %450 = arith.addf %442, %449 : vector<16x256xf32>
    %c0_572 = arith.constant 0 : index
    %c32_573 = arith.constant 32 : index
    %451 = vector.load %arg17[%c0_572, %c32_573] : memref<10x160xf32, #tpu.memory_space<vmem>>, vector<8x128xf32>
    %c1_574 = arith.constant 1 : index
    %c32_575 = arith.constant 32 : index
    %452 = vector.load %arg16[%c1_574, %c32_575] : memref<10x160xf32, #tpu.memory_space<vmem>>, vector<8x128xf32>
    %453 = tpu.concatenate %451, %452 in 0 : vector<8x128xf32>, vector<8x128xf32> -> vector<16x128xf32>
    %454 = arith.truncf %453 : vector<16x128xf32> to vector<16x128xbf16>
    %c9_576 = arith.constant 9 : index
    %c0_577 = arith.constant 0 : index
    %c0_578 = arith.constant 0 : index
    %455 = vector.load %arg4[%c9_576, %c0_577, %c0_578] : memref<25x128x256xbf16, #tpu.memory_space<vmem>>, vector<1x128x256xbf16>
    %456 = vector.shape_cast %455 : vector<1x128x256xbf16> to vector<128x256xbf16>
    %cst_579 = arith.constant dense<0.000000e+00> : vector<16x256xf32>
    %457 = tpu.matmul %454, %456, %cst_579 {dimension_numbers = #tpu.dot_dimension_numbers<[1], [0], [0], [1], [0, 0, 1, 1], [], []>} : vector<16x128xbf16>, vector<128x256xbf16>, vector<16x256xf32> -> vector<16x256xf32>
    %458 = arith.addf %450, %457 : vector<16x256xf32>
    %c1_580 = arith.constant 1 : index
    %c0_581 = arith.constant 0 : index
    %459 = vector.load %arg16[%c1_580, %c0_581] : memref<10x160xf32, #tpu.memory_space<vmem>>, vector<8x128xf32>
    %c1_582 = arith.constant 1 : index
    %c0_583 = arith.constant 0 : index
    %460 = vector.load %arg17[%c1_582, %c0_583] : memref<10x160xf32, #tpu.memory_space<vmem>>, vector<8x128xf32>
    %461 = tpu.concatenate %459, %460 in 0 : vector<8x128xf32>, vector<8x128xf32> -> vector<16x128xf32>
    %462 = arith.truncf %461 : vector<16x128xf32> to vector<16x128xbf16>
    %c10_584 = arith.constant 10 : index
    %c0_585 = arith.constant 0 : index
    %c0_586 = arith.constant 0 : index
    %463 = vector.load %arg4[%c10_584, %c0_585, %c0_586] : memref<25x128x256xbf16, #tpu.memory_space<vmem>>, vector<1x128x256xbf16>
    %464 = vector.shape_cast %463 : vector<1x128x256xbf16> to vector<128x256xbf16>
    %cst_587 = arith.constant dense<0.000000e+00> : vector<16x256xf32>
    %465 = tpu.matmul %462, %464, %cst_587 {dimension_numbers = #tpu.dot_dimension_numbers<[1], [0], [0], [1], [0, 0, 1, 1], [], []>} : vector<16x128xbf16>, vector<128x256xbf16>, vector<16x256xf32> -> vector<16x256xf32>
    %466 = arith.addf %458, %465 : vector<16x256xf32>
    %c1_588 = arith.constant 1 : index
    %c8_589 = arith.constant 8 : index
    %467 = vector.load %arg16[%c1_588, %c8_589] : memref<10x160xf32, #tpu.memory_space<vmem>>, vector<8x128xf32>
    %c1_590 = arith.constant 1 : index
    %c8_591 = arith.constant 8 : index
    %468 = vector.load %arg17[%c1_590, %c8_591] : memref<10x160xf32, #tpu.memory_space<vmem>>, vector<8x128xf32>
    %469 = tpu.concatenate %467, %468 in 0 : vector<8x128xf32>, vector<8x128xf32> -> vector<16x128xf32>
    %470 = arith.truncf %469 : vector<16x128xf32> to vector<16x128xbf16>
    %c11_592 = arith.constant 11 : index
    %c0_593 = arith.constant 0 : index
    %c0_594 = arith.constant 0 : index
    %471 = vector.load %arg4[%c11_592, %c0_593, %c0_594] : memref<25x128x256xbf16, #tpu.memory_space<vmem>>, vector<1x128x256xbf16>
    %472 = vector.shape_cast %471 : vector<1x128x256xbf16> to vector<128x256xbf16>
    %cst_595 = arith.constant dense<0.000000e+00> : vector<16x256xf32>
    %473 = tpu.matmul %470, %472, %cst_595 {dimension_numbers = #tpu.dot_dimension_numbers<[1], [0], [0], [1], [0, 0, 1, 1], [], []>} : vector<16x128xbf16>, vector<128x256xbf16>, vector<16x256xf32> -> vector<16x256xf32>
    %474 = arith.addf %466, %473 : vector<16x256xf32>
    %c1_596 = arith.constant 1 : index
    %c16_597 = arith.constant 16 : index
    %475 = vector.load %arg16[%c1_596, %c16_597] : memref<10x160xf32, #tpu.memory_space<vmem>>, vector<8x128xf32>
    %c1_598 = arith.constant 1 : index
    %c16_599 = arith.constant 16 : index
    %476 = vector.load %arg17[%c1_598, %c16_599] : memref<10x160xf32, #tpu.memory_space<vmem>>, vector<8x128xf32>
    %477 = tpu.concatenate %475, %476 in 0 : vector<8x128xf32>, vector<8x128xf32> -> vector<16x128xf32>
    %478 = arith.truncf %477 : vector<16x128xf32> to vector<16x128xbf16>
    %c12_600 = arith.constant 12 : index
    %c0_601 = arith.constant 0 : index
    %c0_602 = arith.constant 0 : index
    %479 = vector.load %arg4[%c12_600, %c0_601, %c0_602] : memref<25x128x256xbf16, #tpu.memory_space<vmem>>, vector<1x128x256xbf16>
    %480 = vector.shape_cast %479 : vector<1x128x256xbf16> to vector<128x256xbf16>
    %cst_603 = arith.constant dense<0.000000e+00> : vector<16x256xf32>
    %481 = tpu.matmul %478, %480, %cst_603 {dimension_numbers = #tpu.dot_dimension_numbers<[1], [0], [0], [1], [0, 0, 1, 1], [], []>} : vector<16x128xbf16>, vector<128x256xbf16>, vector<16x256xf32> -> vector<16x256xf32>
    %482 = arith.addf %474, %481 : vector<16x256xf32>
    %c1_604 = arith.constant 1 : index
    %c24_605 = arith.constant 24 : index
    %483 = vector.load %arg16[%c1_604, %c24_605] : memref<10x160xf32, #tpu.memory_space<vmem>>, vector<8x128xf32>
    %c1_606 = arith.constant 1 : index
    %c24_607 = arith.constant 24 : index
    %484 = vector.load %arg17[%c1_606, %c24_607] : memref<10x160xf32, #tpu.memory_space<vmem>>, vector<8x128xf32>
    %485 = tpu.concatenate %483, %484 in 0 : vector<8x128xf32>, vector<8x128xf32> -> vector<16x128xf32>
    %486 = arith.truncf %485 : vector<16x128xf32> to vector<16x128xbf16>
    %c13_608 = arith.constant 13 : index
    %c0_609 = arith.constant 0 : index
    %c0_610 = arith.constant 0 : index
    %487 = vector.load %arg4[%c13_608, %c0_609, %c0_610] : memref<25x128x256xbf16, #tpu.memory_space<vmem>>, vector<1x128x256xbf16>
    %488 = vector.shape_cast %487 : vector<1x128x256xbf16> to vector<128x256xbf16>
    %cst_611 = arith.constant dense<0.000000e+00> : vector<16x256xf32>
    %489 = tpu.matmul %486, %488, %cst_611 {dimension_numbers = #tpu.dot_dimension_numbers<[1], [0], [0], [1], [0, 0, 1, 1], [], []>} : vector<16x128xbf16>, vector<128x256xbf16>, vector<16x256xf32> -> vector<16x256xf32>
    %490 = arith.addf %482, %489 : vector<16x256xf32>
    %c1_612 = arith.constant 1 : index
    %c32_613 = arith.constant 32 : index
    %491 = vector.load %arg16[%c1_612, %c32_613] : memref<10x160xf32, #tpu.memory_space<vmem>>, vector<8x128xf32>
    %c1_614 = arith.constant 1 : index
    %c32_615 = arith.constant 32 : index
    %492 = vector.load %arg17[%c1_614, %c32_615] : memref<10x160xf32, #tpu.memory_space<vmem>>, vector<8x128xf32>
    %493 = tpu.concatenate %491, %492 in 0 : vector<8x128xf32>, vector<8x128xf32> -> vector<16x128xf32>
    %494 = arith.truncf %493 : vector<16x128xf32> to vector<16x128xbf16>
    %c14_616 = arith.constant 14 : index
    %c0_617 = arith.constant 0 : index
    %c0_618 = arith.constant 0 : index
    %495 = vector.load %arg4[%c14_616, %c0_617, %c0_618] : memref<25x128x256xbf16, #tpu.memory_space<vmem>>, vector<1x128x256xbf16>
    %496 = vector.shape_cast %495 : vector<1x128x256xbf16> to vector<128x256xbf16>
    %cst_619 = arith.constant dense<0.000000e+00> : vector<16x256xf32>
    %497 = tpu.matmul %494, %496, %cst_619 {dimension_numbers = #tpu.dot_dimension_numbers<[1], [0], [0], [1], [0, 0, 1, 1], [], []>} : vector<16x128xbf16>, vector<128x256xbf16>, vector<16x256xf32> -> vector<16x256xf32>
    %498 = arith.addf %490, %497 : vector<16x256xf32>
    %c1_620 = arith.constant 1 : index
    %c0_621 = arith.constant 0 : index
    %499 = vector.load %arg17[%c1_620, %c0_621] : memref<10x160xf32, #tpu.memory_space<vmem>>, vector<8x128xf32>
    %c2_622 = arith.constant 2 : index
    %c0_623 = arith.constant 0 : index
    %500 = vector.load %arg16[%c2_622, %c0_623] : memref<10x160xf32, #tpu.memory_space<vmem>>, vector<8x128xf32>
    %501 = tpu.concatenate %499, %500 in 0 : vector<8x128xf32>, vector<8x128xf32> -> vector<16x128xf32>
    %502 = arith.truncf %501 : vector<16x128xf32> to vector<16x128xbf16>
    %c15_624 = arith.constant 15 : index
    %c0_625 = arith.constant 0 : index
    %c0_626 = arith.constant 0 : index
    %503 = vector.load %arg4[%c15_624, %c0_625, %c0_626] : memref<25x128x256xbf16, #tpu.memory_space<vmem>>, vector<1x128x256xbf16>
    %504 = vector.shape_cast %503 : vector<1x128x256xbf16> to vector<128x256xbf16>
    %cst_627 = arith.constant dense<0.000000e+00> : vector<16x256xf32>
    %505 = tpu.matmul %502, %504, %cst_627 {dimension_numbers = #tpu.dot_dimension_numbers<[1], [0], [0], [1], [0, 0, 1, 1], [], []>} : vector<16x128xbf16>, vector<128x256xbf16>, vector<16x256xf32> -> vector<16x256xf32>
    %506 = arith.addf %498, %505 : vector<16x256xf32>
    %c1_628 = arith.constant 1 : index
    %c8_629 = arith.constant 8 : index
    %507 = vector.load %arg17[%c1_628, %c8_629] : memref<10x160xf32, #tpu.memory_space<vmem>>, vector<8x128xf32>
    %c2_630 = arith.constant 2 : index
    %c8_631 = arith.constant 8 : index
    %508 = vector.load %arg16[%c2_630, %c8_631] : memref<10x160xf32, #tpu.memory_space<vmem>>, vector<8x128xf32>
    %509 = tpu.concatenate %507, %508 in 0 : vector<8x128xf32>, vector<8x128xf32> -> vector<16x128xf32>
    %510 = arith.truncf %509 : vector<16x128xf32> to vector<16x128xbf16>
    %c16_632 = arith.constant 16 : index
    %c0_633 = arith.constant 0 : index
    %c0_634 = arith.constant 0 : index
    %511 = vector.load %arg4[%c16_632, %c0_633, %c0_634] : memref<25x128x256xbf16, #tpu.memory_space<vmem>>, vector<1x128x256xbf16>
    %512 = vector.shape_cast %511 : vector<1x128x256xbf16> to vector<128x256xbf16>
    %cst_635 = arith.constant dense<0.000000e+00> : vector<16x256xf32>
    %513 = tpu.matmul %510, %512, %cst_635 {dimension_numbers = #tpu.dot_dimension_numbers<[1], [0], [0], [1], [0, 0, 1, 1], [], []>} : vector<16x128xbf16>, vector<128x256xbf16>, vector<16x256xf32> -> vector<16x256xf32>
    %514 = arith.addf %506, %513 : vector<16x256xf32>
    %c1_636 = arith.constant 1 : index
    %c16_637 = arith.constant 16 : index
    %515 = vector.load %arg17[%c1_636, %c16_637] : memref<10x160xf32, #tpu.memory_space<vmem>>, vector<8x128xf32>
    %c2_638 = arith.constant 2 : index
    %c16_639 = arith.constant 16 : index
    %516 = vector.load %arg16[%c2_638, %c16_639] : memref<10x160xf32, #tpu.memory_space<vmem>>, vector<8x128xf32>
    %517 = tpu.concatenate %515, %516 in 0 : vector<8x128xf32>, vector<8x128xf32> -> vector<16x128xf32>
    %518 = arith.truncf %517 : vector<16x128xf32> to vector<16x128xbf16>
    %c17_640 = arith.constant 17 : index
    %c0_641 = arith.constant 0 : index
    %c0_642 = arith.constant 0 : index
    %519 = vector.load %arg4[%c17_640, %c0_641, %c0_642] : memref<25x128x256xbf16, #tpu.memory_space<vmem>>, vector<1x128x256xbf16>
    %520 = vector.shape_cast %519 : vector<1x128x256xbf16> to vector<128x256xbf16>
    %cst_643 = arith.constant dense<0.000000e+00> : vector<16x256xf32>
    %521 = tpu.matmul %518, %520, %cst_643 {dimension_numbers = #tpu.dot_dimension_numbers<[1], [0], [0], [1], [0, 0, 1, 1], [], []>} : vector<16x128xbf16>, vector<128x256xbf16>, vector<16x256xf32> -> vector<16x256xf32>
    %522 = arith.addf %514, %521 : vector<16x256xf32>
    %c1_644 = arith.constant 1 : index
    %c24_645 = arith.constant 24 : index
    %523 = vector.load %arg17[%c1_644, %c24_645] : memref<10x160xf32, #tpu.memory_space<vmem>>, vector<8x128xf32>
    %c2_646 = arith.constant 2 : index
    %c24_647 = arith.constant 24 : index
    %524 = vector.load %arg16[%c2_646, %c24_647] : memref<10x160xf32, #tpu.memory_space<vmem>>, vector<8x128xf32>
    %525 = tpu.concatenate %523, %524 in 0 : vector<8x128xf32>, vector<8x128xf32> -> vector<16x128xf32>
    %526 = arith.truncf %525 : vector<16x128xf32> to vector<16x128xbf16>
    %c18_648 = arith.constant 18 : index
    %c0_649 = arith.constant 0 : index
    %c0_650 = arith.constant 0 : index
    %527 = vector.load %arg4[%c18_648, %c0_649, %c0_650] : memref<25x128x256xbf16, #tpu.memory_space<vmem>>, vector<1x128x256xbf16>
    %528 = vector.shape_cast %527 : vector<1x128x256xbf16> to vector<128x256xbf16>
    %cst_651 = arith.constant dense<0.000000e+00> : vector<16x256xf32>
    %529 = tpu.matmul %526, %528, %cst_651 {dimension_numbers = #tpu.dot_dimension_numbers<[1], [0], [0], [1], [0, 0, 1, 1], [], []>} : vector<16x128xbf16>, vector<128x256xbf16>, vector<16x256xf32> -> vector<16x256xf32>
    %530 = arith.addf %522, %529 : vector<16x256xf32>
    %c1_652 = arith.constant 1 : index
    %c32_653 = arith.constant 32 : index
    %531 = vector.load %arg17[%c1_652, %c32_653] : memref<10x160xf32, #tpu.memory_space<vmem>>, vector<8x128xf32>
    %c2_654 = arith.constant 2 : index
    %c32_655 = arith.constant 32 : index
    %532 = vector.load %arg16[%c2_654, %c32_655] : memref<10x160xf32, #tpu.memory_space<vmem>>, vector<8x128xf32>
    %533 = tpu.concatenate %531, %532 in 0 : vector<8x128xf32>, vector<8x128xf32> -> vector<16x128xf32>
    %534 = arith.truncf %533 : vector<16x128xf32> to vector<16x128xbf16>
    %c19_656 = arith.constant 19 : index
    %c0_657 = arith.constant 0 : index
    %c0_658 = arith.constant 0 : index
    %535 = vector.load %arg4[%c19_656, %c0_657, %c0_658] : memref<25x128x256xbf16, #tpu.memory_space<vmem>>, vector<1x128x256xbf16>
    %536 = vector.shape_cast %535 : vector<1x128x256xbf16> to vector<128x256xbf16>
    %cst_659 = arith.constant dense<0.000000e+00> : vector<16x256xf32>
    %537 = tpu.matmul %534, %536, %cst_659 {dimension_numbers = #tpu.dot_dimension_numbers<[1], [0], [0], [1], [0, 0, 1, 1], [], []>} : vector<16x128xbf16>, vector<128x256xbf16>, vector<16x256xf32> -> vector<16x256xf32>
    %538 = arith.addf %530, %537 : vector<16x256xf32>
    %c2_660 = arith.constant 2 : index
    %c0_661 = arith.constant 0 : index
    %539 = vector.load %arg16[%c2_660, %c0_661] : memref<10x160xf32, #tpu.memory_space<vmem>>, vector<8x128xf32>
    %c2_662 = arith.constant 2 : index
    %c0_663 = arith.constant 0 : index
    %540 = vector.load %arg17[%c2_662, %c0_663] : memref<10x160xf32, #tpu.memory_space<vmem>>, vector<8x128xf32>
    %541 = tpu.concatenate %539, %540 in 0 : vector<8x128xf32>, vector<8x128xf32> -> vector<16x128xf32>
    %542 = arith.truncf %541 : vector<16x128xf32> to vector<16x128xbf16>
    %c20_664 = arith.constant 20 : index
    %c0_665 = arith.constant 0 : index
    %c0_666 = arith.constant 0 : index
    %543 = vector.load %arg4[%c20_664, %c0_665, %c0_666] : memref<25x128x256xbf16, #tpu.memory_space<vmem>>, vector<1x128x256xbf16>
    %544 = vector.shape_cast %543 : vector<1x128x256xbf16> to vector<128x256xbf16>
    %cst_667 = arith.constant dense<0.000000e+00> : vector<16x256xf32>
    %545 = tpu.matmul %542, %544, %cst_667 {dimension_numbers = #tpu.dot_dimension_numbers<[1], [0], [0], [1], [0, 0, 1, 1], [], []>} : vector<16x128xbf16>, vector<128x256xbf16>, vector<16x256xf32> -> vector<16x256xf32>
    %546 = arith.addf %538, %545 : vector<16x256xf32>
    %c2_668 = arith.constant 2 : index
    %c8_669 = arith.constant 8 : index
    %547 = vector.load %arg16[%c2_668, %c8_669] : memref<10x160xf32, #tpu.memory_space<vmem>>, vector<8x128xf32>
    %c2_670 = arith.constant 2 : index
    %c8_671 = arith.constant 8 : index
    %548 = vector.load %arg17[%c2_670, %c8_671] : memref<10x160xf32, #tpu.memory_space<vmem>>, vector<8x128xf32>
    %549 = tpu.concatenate %547, %548 in 0 : vector<8x128xf32>, vector<8x128xf32> -> vector<16x128xf32>
    %550 = arith.truncf %549 : vector<16x128xf32> to vector<16x128xbf16>
    %c21_672 = arith.constant 21 : index
    %c0_673 = arith.constant 0 : index
    %c0_674 = arith.constant 0 : index
    %551 = vector.load %arg4[%c21_672, %c0_673, %c0_674] : memref<25x128x256xbf16, #tpu.memory_space<vmem>>, vector<1x128x256xbf16>
    %552 = vector.shape_cast %551 : vector<1x128x256xbf16> to vector<128x256xbf16>
    %cst_675 = arith.constant dense<0.000000e+00> : vector<16x256xf32>
    %553 = tpu.matmul %550, %552, %cst_675 {dimension_numbers = #tpu.dot_dimension_numbers<[1], [0], [0], [1], [0, 0, 1, 1], [], []>} : vector<16x128xbf16>, vector<128x256xbf16>, vector<16x256xf32> -> vector<16x256xf32>
    %554 = arith.addf %546, %553 : vector<16x256xf32>
    %c2_676 = arith.constant 2 : index
    %c16_677 = arith.constant 16 : index
    %555 = vector.load %arg16[%c2_676, %c16_677] : memref<10x160xf32, #tpu.memory_space<vmem>>, vector<8x128xf32>
    %c2_678 = arith.constant 2 : index
    %c16_679 = arith.constant 16 : index
    %556 = vector.load %arg17[%c2_678, %c16_679] : memref<10x160xf32, #tpu.memory_space<vmem>>, vector<8x128xf32>
    %557 = tpu.concatenate %555, %556 in 0 : vector<8x128xf32>, vector<8x128xf32> -> vector<16x128xf32>
    %558 = arith.truncf %557 : vector<16x128xf32> to vector<16x128xbf16>
    %c22_680 = arith.constant 22 : index
    %c0_681 = arith.constant 0 : index
    %c0_682 = arith.constant 0 : index
    %559 = vector.load %arg4[%c22_680, %c0_681, %c0_682] : memref<25x128x256xbf16, #tpu.memory_space<vmem>>, vector<1x128x256xbf16>
    %560 = vector.shape_cast %559 : vector<1x128x256xbf16> to vector<128x256xbf16>
    %cst_683 = arith.constant dense<0.000000e+00> : vector<16x256xf32>
    %561 = tpu.matmul %558, %560, %cst_683 {dimension_numbers = #tpu.dot_dimension_numbers<[1], [0], [0], [1], [0, 0, 1, 1], [], []>} : vector<16x128xbf16>, vector<128x256xbf16>, vector<16x256xf32> -> vector<16x256xf32>
    %562 = arith.addf %554, %561 : vector<16x256xf32>
    %c2_684 = arith.constant 2 : index
    %c24_685 = arith.constant 24 : index
    %563 = vector.load %arg16[%c2_684, %c24_685] : memref<10x160xf32, #tpu.memory_space<vmem>>, vector<8x128xf32>
    %c2_686 = arith.constant 2 : index
    %c24_687 = arith.constant 24 : index
    %564 = vector.load %arg17[%c2_686, %c24_687] : memref<10x160xf32, #tpu.memory_space<vmem>>, vector<8x128xf32>
    %565 = tpu.concatenate %563, %564 in 0 : vector<8x128xf32>, vector<8x128xf32> -> vector<16x128xf32>
    %566 = arith.truncf %565 : vector<16x128xf32> to vector<16x128xbf16>
    %c23_688 = arith.constant 23 : index
    %c0_689 = arith.constant 0 : index
    %c0_690 = arith.constant 0 : index
    %567 = vector.load %arg4[%c23_688, %c0_689, %c0_690] : memref<25x128x256xbf16, #tpu.memory_space<vmem>>, vector<1x128x256xbf16>
    %568 = vector.shape_cast %567 : vector<1x128x256xbf16> to vector<128x256xbf16>
    %cst_691 = arith.constant dense<0.000000e+00> : vector<16x256xf32>
    %569 = tpu.matmul %566, %568, %cst_691 {dimension_numbers = #tpu.dot_dimension_numbers<[1], [0], [0], [1], [0, 0, 1, 1], [], []>} : vector<16x128xbf16>, vector<128x256xbf16>, vector<16x256xf32> -> vector<16x256xf32>
    %570 = arith.addf %562, %569 : vector<16x256xf32>
    %c2_692 = arith.constant 2 : index
    %c32_693 = arith.constant 32 : index
    %571 = vector.load %arg16[%c2_692, %c32_693] : memref<10x160xf32, #tpu.memory_space<vmem>>, vector<8x128xf32>
    %c2_694 = arith.constant 2 : index
    %c32_695 = arith.constant 32 : index
    %572 = vector.load %arg17[%c2_694, %c32_695] : memref<10x160xf32, #tpu.memory_space<vmem>>, vector<8x128xf32>
    %573 = tpu.concatenate %571, %572 in 0 : vector<8x128xf32>, vector<8x128xf32> -> vector<16x128xf32>
    %574 = arith.truncf %573 : vector<16x128xf32> to vector<16x128xbf16>
    %c24_696 = arith.constant 24 : index
    %c0_697 = arith.constant 0 : index
    %c0_698 = arith.constant 0 : index
    %575 = vector.load %arg4[%c24_696, %c0_697, %c0_698] : memref<25x128x256xbf16, #tpu.memory_space<vmem>>, vector<1x128x256xbf16>
    %576 = vector.shape_cast %575 : vector<1x128x256xbf16> to vector<128x256xbf16>
    %cst_699 = arith.constant dense<0.000000e+00> : vector<16x256xf32>
    %577 = tpu.matmul %574, %576, %cst_699 {dimension_numbers = #tpu.dot_dimension_numbers<[1], [0], [0], [1], [0, 0, 1, 1], [], []>} : vector<16x128xbf16>, vector<128x256xbf16>, vector<16x256xf32> -> vector<16x256xf32>
    %578 = arith.addf %570, %577 : vector<16x256xf32>
    %c0_700 = arith.constant 0 : index
    %c0_701 = arith.constant 0 : index
    %579 = vector.load %arg5[%c0_700, %c0_701] : memref<1x256xf32, #tpu.memory_space<vmem>>, vector<1x256xf32>
    %580 = vector.broadcast %579 : vector<1x256xf32> to vector<16x256xf32>
    %581 = arith.addf %578, %580 : vector<16x256xf32>
    %cst_702 = arith.constant 0.000000e+00 : f32
    %582 = vector.broadcast %cst_702 : f32 to vector<16x256xf32>
    %583 = arith.maximumf %581, %582 : vector<16x256xf32>
    %584 = vector.extract_strided_slice %583 {offsets = [0, 0], sizes = [8, 256], strides = [1, 1]} : vector<16x256xf32> to vector<8x256xf32>
    %585 = vector.extract_strided_slice %583 {offsets = [8, 0], sizes = [8, 256], strides = [1, 1]} : vector<16x256xf32> to vector<8x256xf32>
    %586 = arith.maximumf %584, %585 : vector<8x256xf32>
    %c0_703 = arith.constant 0 : index
    %c0_704 = arith.constant 0 : index
    %587 = vector.load %arg8[%c0_703, %c0_704] : memref<256x128xf32, #tpu.memory_space<vmem>>, vector<256x128xf32>
    %cst_705 = arith.constant dense<0.000000e+00> : vector<8x128xf32>
    %588 = tpu.matmul %586, %587, %cst_705 {dimension_numbers = #tpu.dot_dimension_numbers<[1], [0], [0], [1], [0, 0, 1, 1], [], []>} : vector<8x256xf32>, vector<256x128xf32>, vector<8x128xf32> -> vector<8x128xf32>
    %c0_706 = arith.constant 0 : index
    %c0_707 = arith.constant 0 : index
    %589 = vector.load %arg9[%c0_706, %c0_707] : memref<256x128xf32, #tpu.memory_space<vmem>>, vector<256x128xf32>
    %cst_708 = arith.constant dense<0.000000e+00> : vector<8x128xf32>
    %590 = tpu.matmul %586, %589, %cst_708 {dimension_numbers = #tpu.dot_dimension_numbers<[1], [0], [0], [1], [0, 0, 1, 1], [], []>} : vector<8x256xf32>, vector<256x128xf32>, vector<8x128xf32> -> vector<8x128xf32>
    %591 = arith.maximumf %588, %590 : vector<8x128xf32>
    %592 = arith.truncf %591 : vector<8x128xf32> to vector<8x128xbf16>
    %c0_709 = arith.constant 0 : index
    %c0_710 = arith.constant 0 : index
    %593 = vector.load %arg11[%c0_709, %c0_710] : memref<1x64xf32, #tpu.memory_space<vmem>>, vector<1x64xf32>
    %594 = vector.extract_strided_slice %592 {offsets = [0, 0], sizes = [1, 128], strides = [1, 1]} : vector<8x128xbf16> to vector<1x128xbf16>
    %c0_711 = arith.constant 0 : index
    %c0_712 = arith.constant 0 : index
    %c0_713 = arith.constant 0 : index
    %595 = vector.load %arg10[%c0_711, %c0_712, %c0_713] : memref<8x128x64xbf16, #tpu.memory_space<vmem>>, vector<1x128x64xbf16>
    %596 = vector.shape_cast %595 : vector<1x128x64xbf16> to vector<128x64xbf16>
    %cst_714 = arith.constant dense<0.000000e+00> : vector<1x64xf32>
    %597 = tpu.matmul %594, %596, %cst_714 {dimension_numbers = #tpu.dot_dimension_numbers<[1], [0], [0], [1], [0, 0, 1, 1], [], []>} : vector<1x128xbf16>, vector<128x64xbf16>, vector<1x64xf32> -> vector<1x64xf32>
    %598 = arith.addf %593, %597 : vector<1x64xf32>
    %599 = vector.extract_strided_slice %592 {offsets = [1, 0], sizes = [1, 128], strides = [1, 1]} : vector<8x128xbf16> to vector<1x128xbf16>
    %c1_715 = arith.constant 1 : index
    %c0_716 = arith.constant 0 : index
    %c0_717 = arith.constant 0 : index
    %600 = vector.load %arg10[%c1_715, %c0_716, %c0_717] : memref<8x128x64xbf16, #tpu.memory_space<vmem>>, vector<1x128x64xbf16>
    %601 = vector.shape_cast %600 : vector<1x128x64xbf16> to vector<128x64xbf16>
    %cst_718 = arith.constant dense<0.000000e+00> : vector<1x64xf32>
    %602 = tpu.matmul %599, %601, %cst_718 {dimension_numbers = #tpu.dot_dimension_numbers<[1], [0], [0], [1], [0, 0, 1, 1], [], []>} : vector<1x128xbf16>, vector<128x64xbf16>, vector<1x64xf32> -> vector<1x64xf32>
    %603 = arith.addf %598, %602 : vector<1x64xf32>
    %604 = vector.extract_strided_slice %592 {offsets = [2, 0], sizes = [1, 128], strides = [1, 1]} : vector<8x128xbf16> to vector<1x128xbf16>
    %c2_719 = arith.constant 2 : index
    %c0_720 = arith.constant 0 : index
    %c0_721 = arith.constant 0 : index
    %605 = vector.load %arg10[%c2_719, %c0_720, %c0_721] : memref<8x128x64xbf16, #tpu.memory_space<vmem>>, vector<1x128x64xbf16>
    %606 = vector.shape_cast %605 : vector<1x128x64xbf16> to vector<128x64xbf16>
    %cst_722 = arith.constant dense<0.000000e+00> : vector<1x64xf32>
    %607 = tpu.matmul %604, %606, %cst_722 {dimension_numbers = #tpu.dot_dimension_numbers<[1], [0], [0], [1], [0, 0, 1, 1], [], []>} : vector<1x128xbf16>, vector<128x64xbf16>, vector<1x64xf32> -> vector<1x64xf32>
    %608 = arith.addf %603, %607 : vector<1x64xf32>
    %609 = vector.extract_strided_slice %592 {offsets = [3, 0], sizes = [1, 128], strides = [1, 1]} : vector<8x128xbf16> to vector<1x128xbf16>
    %c3_723 = arith.constant 3 : index
    %c0_724 = arith.constant 0 : index
    %c0_725 = arith.constant 0 : index
    %610 = vector.load %arg10[%c3_723, %c0_724, %c0_725] : memref<8x128x64xbf16, #tpu.memory_space<vmem>>, vector<1x128x64xbf16>
    %611 = vector.shape_cast %610 : vector<1x128x64xbf16> to vector<128x64xbf16>
    %cst_726 = arith.constant dense<0.000000e+00> : vector<1x64xf32>
    %612 = tpu.matmul %609, %611, %cst_726 {dimension_numbers = #tpu.dot_dimension_numbers<[1], [0], [0], [1], [0, 0, 1, 1], [], []>} : vector<1x128xbf16>, vector<128x64xbf16>, vector<1x64xf32> -> vector<1x64xf32>
    %613 = arith.addf %608, %612 : vector<1x64xf32>
    %614 = vector.extract_strided_slice %592 {offsets = [4, 0], sizes = [1, 128], strides = [1, 1]} : vector<8x128xbf16> to vector<1x128xbf16>
    %c4_727 = arith.constant 4 : index
    %c0_728 = arith.constant 0 : index
    %c0_729 = arith.constant 0 : index
    %615 = vector.load %arg10[%c4_727, %c0_728, %c0_729] : memref<8x128x64xbf16, #tpu.memory_space<vmem>>, vector<1x128x64xbf16>
    %616 = vector.shape_cast %615 : vector<1x128x64xbf16> to vector<128x64xbf16>
    %cst_730 = arith.constant dense<0.000000e+00> : vector<1x64xf32>
    %617 = tpu.matmul %614, %616, %cst_730 {dimension_numbers = #tpu.dot_dimension_numbers<[1], [0], [0], [1], [0, 0, 1, 1], [], []>} : vector<1x128xbf16>, vector<128x64xbf16>, vector<1x64xf32> -> vector<1x64xf32>
    %618 = arith.addf %613, %617 : vector<1x64xf32>
    %619 = vector.extract_strided_slice %592 {offsets = [5, 0], sizes = [1, 128], strides = [1, 1]} : vector<8x128xbf16> to vector<1x128xbf16>
    %c5_731 = arith.constant 5 : index
    %c0_732 = arith.constant 0 : index
    %c0_733 = arith.constant 0 : index
    %620 = vector.load %arg10[%c5_731, %c0_732, %c0_733] : memref<8x128x64xbf16, #tpu.memory_space<vmem>>, vector<1x128x64xbf16>
    %621 = vector.shape_cast %620 : vector<1x128x64xbf16> to vector<128x64xbf16>
    %cst_734 = arith.constant dense<0.000000e+00> : vector<1x64xf32>
    %622 = tpu.matmul %619, %621, %cst_734 {dimension_numbers = #tpu.dot_dimension_numbers<[1], [0], [0], [1], [0, 0, 1, 1], [], []>} : vector<1x128xbf16>, vector<128x64xbf16>, vector<1x64xf32> -> vector<1x64xf32>
    %623 = arith.addf %618, %622 : vector<1x64xf32>
    %624 = vector.extract_strided_slice %592 {offsets = [6, 0], sizes = [1, 128], strides = [1, 1]} : vector<8x128xbf16> to vector<1x128xbf16>
    %c6_735 = arith.constant 6 : index
    %c0_736 = arith.constant 0 : index
    %c0_737 = arith.constant 0 : index
    %625 = vector.load %arg10[%c6_735, %c0_736, %c0_737] : memref<8x128x64xbf16, #tpu.memory_space<vmem>>, vector<1x128x64xbf16>
    %626 = vector.shape_cast %625 : vector<1x128x64xbf16> to vector<128x64xbf16>
    %cst_738 = arith.constant dense<0.000000e+00> : vector<1x64xf32>
    %627 = tpu.matmul %624, %626, %cst_738 {dimension_numbers = #tpu.dot_dimension_numbers<[1], [0], [0], [1], [0, 0, 1, 1], [], []>} : vector<1x128xbf16>, vector<128x64xbf16>, vector<1x64xf32> -> vector<1x64xf32>
    %628 = arith.addf %623, %627 : vector<1x64xf32>
    %629 = vector.extract_strided_slice %592 {offsets = [7, 0], sizes = [1, 128], strides = [1, 1]} : vector<8x128xbf16> to vector<1x128xbf16>
    %c7_739 = arith.constant 7 : index
    %c0_740 = arith.constant 0 : index
    %c0_741 = arith.constant 0 : index
    %630 = vector.load %arg10[%c7_739, %c0_740, %c0_741] : memref<8x128x64xbf16, #tpu.memory_space<vmem>>, vector<1x128x64xbf16>
    %631 = vector.shape_cast %630 : vector<1x128x64xbf16> to vector<128x64xbf16>
    %cst_742 = arith.constant dense<0.000000e+00> : vector<1x64xf32>
    %632 = tpu.matmul %629, %631, %cst_742 {dimension_numbers = #tpu.dot_dimension_numbers<[1], [0], [0], [1], [0, 0, 1, 1], [], []>} : vector<1x128xbf16>, vector<128x64xbf16>, vector<1x64xf32> -> vector<1x64xf32>
    %633 = arith.addf %628, %632 : vector<1x64xf32>
    %634 = arith.truncf %633 : vector<1x64xf32> to vector<1x64xbf16>
    %c0_743 = arith.constant 0 : index
    %c0_744 = arith.constant 0 : index
    %635 = vector.load %arg12[%c0_743, %c0_744] : memref<64x8xbf16, #tpu.memory_space<vmem>>, vector<64x8xbf16>
    %cst_745 = arith.constant dense<0.000000e+00> : vector<1x8xf32>
    %636 = tpu.matmul %634, %635, %cst_745 {dimension_numbers = #tpu.dot_dimension_numbers<[1], [0], [0], [1], [0, 0, 1, 1], [], []>} : vector<1x64xbf16>, vector<64x8xbf16>, vector<1x8xf32> -> vector<1x8xf32>
    %c0_746 = arith.constant 0 : index
    %c0_747 = arith.constant 0 : index
    %637 = vector.load %arg13[%c0_746, %c0_747] : memref<1x8xf32, #tpu.memory_space<vmem>>, vector<1x8xf32>
    %638 = arith.addf %636, %637 : vector<1x8xf32>
    %c0_748 = arith.constant 0 : index
    %c0_749 = arith.constant 0 : index
    %c0_750 = arith.constant 0 : index
    %639 = vector.load %arg14[%c0_748, %c0_749, %c0_750] : memref<1x1x8xf32, #tpu.memory_space<vmem>>, vector<1x1x8xf32>
    %640 = vector.shape_cast %639 : vector<1x1x8xf32> to vector<1x8xf32>
    %641 = vector.shape_cast %638 : vector<1x8xf32> to vector<1x1x8xf32>
    tpu.vector_store %arg14[%c0_748, %c0_749, %c0_750], %641 {strides = array<i32>} : memref<1x1x8xf32, #tpu.memory_space<vmem>>, vector<1x1x8xf32>,
    %c0_751 = arith.constant 0 : index
    %c0_752 = arith.constant 0 : index
    %c0_753 = arith.constant 0 : index
    %642 = vector.load %arg15[%c0_751, %c0_752, %c0_753] : memref<1x1x64xf32, #tpu.memory_space<vmem>>, vector<1x1x64xf32>
    %643 = vector.shape_cast %642 : vector<1x1x64xf32> to vector<1x64xf32>
    %644 = vector.shape_cast %633 : vector<1x64xf32> to vector<1x1x64xf32>
    tpu.vector_store %arg15[%c0_751, %c0_752, %c0_753], %644 {strides = array<i32>} : memref<1x1x64xf32, #tpu.memory_space<vmem>>, vector<1x1x64xf32>,
    return
  }
  func.func @transform_0(%arg0: i32) -> (i32, i32, i32, i32) {
    %c0_i32 = arith.constant 0 : i32
    %c0_i32_0 = arith.constant 0 : i32
    %c0_i32_1 = arith.constant 0 : i32
    %c0_i32_2 = arith.constant 0 : i32
    return %arg0, %c0_i32, %c0_i32_0, %c0_i32_1 : i32, i32, i32, i32
  }
  func.func @transform_1(%arg0: i32) -> (i32, i32, i32) {
    %c0_i32 = arith.constant 0 : i32
    %c0_i32_0 = arith.constant 0 : i32
    %c0_i32_1 = arith.constant 0 : i32
    %c0_i32_2 = arith.constant 0 : i32
    return %c0_i32, %c0_i32_0, %c0_i32_1 : i32, i32, i32
  }
  func.func @transform_2(%arg0: i32) -> (i32, i32) {
    %c0_i32 = arith.constant 0 : i32
    %c0_i32_0 = arith.constant 0 : i32
    %c0_i32_1 = arith.constant 0 : i32
    return %c0_i32, %c0_i32_0 : i32, i32
  }
  func.func @transform_3(%arg0: i32) -> (i32, i32, i32) {
    %c0_i32 = arith.constant 0 : i32
    %c0_i32_0 = arith.constant 0 : i32
    %c0_i32_1 = arith.constant 0 : i32
    %c0_i32_2 = arith.constant 0 : i32
    return %c0_i32, %c0_i32_0, %c0_i32_1 : i32, i32, i32
  }
  func.func @transform_4(%arg0: i32) -> (i32, i32) {
    %c0_i32 = arith.constant 0 : i32
    %c0_i32_0 = arith.constant 0 : i32
    %c0_i32_1 = arith.constant 0 : i32
    return %c0_i32, %c0_i32_0 : i32, i32
  }
  func.func @transform_5(%arg0: i32) -> (i32, i32) {
    %c0_i32 = arith.constant 0 : i32
    %c0_i32_0 = arith.constant 0 : i32
    %c0_i32_1 = arith.constant 0 : i32
    return %c0_i32, %c0_i32_0 : i32, i32
  }
  func.func @transform_6(%arg0: i32) -> (i32, i32) {
    %c0_i32 = arith.constant 0 : i32
    %c0_i32_0 = arith.constant 0 : i32
    %c0_i32_1 = arith.constant 0 : i32
    return %c0_i32, %c0_i32_0 : i32, i32
  }
  func.func @transform_7(%arg0: i32) -> (i32, i32) {
    %c0_i32 = arith.constant 0 : i32
    %c0_i32_0 = arith.constant 0 : i32
    %c0_i32_1 = arith.constant 0 : i32
    return %c0_i32, %c0_i32_0 : i32, i32
  }
  func.func @transform_8(%arg0: i32) -> (i32, i32) {
    %c0_i32 = arith.constant 0 : i32
    %c0_i32_0 = arith.constant 0 : i32
    %c0_i32_1 = arith.constant 0 : i32
    return %c0_i32, %c0_i32_0 : i32, i32
  }
  func.func @transform_9(%arg0: i32) -> (i32, i32, i32) {
    %c0_i32 = arith.constant 0 : i32
    %c0_i32_0 = arith.constant 0 : i32
    %c0_i32_1 = arith.constant 0 : i32
    %c0_i32_2 = arith.constant 0 : i32
    return %c0_i32, %c0_i32_0, %c0_i32_1 : i32, i32, i32
  }
  func.func @transform_10(%arg0: i32) -> (i32, i32) {
    %c0_i32 = arith.constant 0 : i32
    %c0_i32_0 = arith.constant 0 : i32
    %c0_i32_1 = arith.constant 0 : i32
    return %c0_i32, %c0_i32_0 : i32, i32
  }
  func.func @transform_11(%arg0: i32) -> (i32, i32) {
    %c0_i32 = arith.constant 0 : i32
    %c0_i32_0 = arith.constant 0 : i32
    %c0_i32_1 = arith.constant 0 : i32
    return %c0_i32, %c0_i32_0 : i32, i32
  }
  func.func @transform_12(%arg0: i32) -> (i32, i32) {
    %c0_i32 = arith.constant 0 : i32
    %c0_i32_0 = arith.constant 0 : i32
    %c0_i32_1 = arith.constant 0 : i32
    return %c0_i32, %c0_i32_0 : i32, i32
  }
  func.func @transform_13(%arg0: i32) -> (i32, i32, i32) {
    %c0_i32 = arith.constant 0 : i32
    %c0_i32_0 = arith.constant 0 : i32
    %c0_i32_1 = arith.constant 0 : i32
    return %arg0, %c0_i32, %c0_i32_0 : i32, i32, i32
  }
  func.func @transform_14(%arg0: i32) -> (i32, i32, i32) {
    %c0_i32 = arith.constant 0 : i32
    %c0_i32_0 = arith.constant 0 : i32
    %c0_i32_1 = arith.constant 0 : i32
    return %arg0, %c0_i32, %c0_i32_0 : i32, i32, i32
  }
}

</mosaic_0001>

<bundles_post_ra>
// kernel: tasknet_forward.1
= control target key start
LH: loop header
LB: loop body
LE: loop exit
PB: predicated region body
PF: predicated region fallthrough
CT: control target
= control target key end

     0   :  { %s17312_s0 = inlined_call_operand.vmem [shape: f32[2,4,9,108], index: 0, kind: input, shape index: {}]   ;;  %s17313_s1 = inlined_call_operand.vmem [shape: bf16[25,96,256], index: 1, kind: input, shape index: {}]   ;;  %s17314_s2 = inlined_call_operand.vmem [shape: f32[1,256], index: 2, kind: input, shape index: {}]   ;;  %s17315_s3 = inlined_call_operand.vmem [shape: bf16[25,128,256], index: 3, kind: input, shape index: {}]   ;;  %s17316_s4 = inlined_call_operand.vmem [shape: f32[1,256], index: 4, kind: input, shape index: {}]   ;;  %s17317_s5 = inlined_call_operand.vmem [shape: f32[256,160], index: 5, kind: input, shape index: {}]   ;;  %s17318_s6 = inlined_call_operand.vmem [shape: f32[256,160], index: 6, kind: input, shape index: {}]   ;;  %s17319_s7 = inlined_call_operand.vmem [shape: f32[256,128], index: 7, kind: input, shape index: {}]   ;;  %s17320_s8 = inlined_call_operand.vmem [shape: f32[256,128], index: 8, kind: input, shape index: {}]   ;;  %s17321_s9 = inlined_call_operand.vmem [shape: bf16[8,128,64], index: 9, kind: input, shape index: {}]   ;;  %s17322_s10 = inlined_call_operand.vmem [shape: f32[1,64], index: 10, kind: input, shape index: {}]   ;;  %s17323_s11 = inlined_call_operand.vmem [shape: bf16[64,8], index: 11, kind: input, shape index: {}]   ;;  %s17324_s12 = inlined_call_operand.vmem [shape: f32[1,8], index: 12, kind: input, shape index: {}]   ;;  %s17325_s13 = inlined_call_operand.hbm [shape: f32[2,1,8], index: 13, kind: output, shape index: {0}]   ;;  %s17326_s14 = inlined_call_operand.hbm [shape: f32[2,1,64], index: 14, kind: output, shape index: {1}]  }
   0x1   :  { %17369 = sst [smem:[#allocation39_spill]] %s17312_s0 }
   0x2   :  { %17370 = sst [smem:[#allocation40_spill]] %s17325_s13 }
   0x3   :  { %20 = vsyncpa [#allocation5], 0 }
   0x4   :  { %22 = vsyncpa [#allocation5 + $0x1], 0 }
   0x5   :  { %23 = vsyncpa [#allocation7], 0 }
   0x6   :  { %25 = vsyncpa [#allocation7 + $0x1], 0  ;;  %s13538_s29 = smov 0   ;;  %s13540_s30 = smov 0  }
   0x7   :  { %s13542_s15 = smov 0   ;;  %s13544_s16 = smov 0  }
   0x8 LB: > { %17371 = sst [smem:[#allocation10_spill]] %s13436_s29  ;;  %s13559_s17 = sadd.s32 4294967295, %s13448_s16   ;;  %s13448_s16 = sphi %s13544_s16, %s17436_s16   ;;  %s13444_s15 = sphi %s13542_s15, %s17438_s15   ;;  %s13440_s30 = sphi %s13540_s30, %s17440_s30   ;;  %s13436_s29 = sphi %s13538_s29, %s17439_s29  }
   0x9   : > { %17372 = sst [smem:[#allocation11_spill]] %s13444_s15  ;;  %s9605_s18 = sadd.s32 4294967294, %s13448_s16  }
   0xa   : > { %17373 = sst [smem:[#allocation12_spill]] %s13448_s16  ;;  %s13563_s19 = sadd.s32 1, %s13448_s16  }
   0xb   : > { %17374 = sst [smem:[#allocation13_spill]] %s13563_s19  ;;  %s316_s20 = sadd.s32 1, %s13444_s15 }
   0xc   : > { %s313_s21 = ssub.s32 %s13448_s16, %s13563_s19  ;;  %p326_p0 = scmp.ne.s32.totalorder %s13444_s15, %s13440_s30 }
   0xd   : > { %p314_p1 = scmp.eq.s32.totalorder %s313_s21, 0  ;;  %p327_p2 = scmp.eq.s32.totalorder %s13559_s17, 1 }
   0xe   : > { %p332_p3 = scmp.ne.s32.totalorder %s13440_s30, %s13436_s29  ;;  %p333_p4 = scmp.eq.s32.totalorder %s9605_s18, 1 }
   0xf   : > { %s13574_s22 = scalar_select %p314_p1, %s13444_s15, %s316_s20  }
  0x10   : > { %p13576_p5 = por %p327_p2, %p326_p0  ;;  %p13580_p6 = por %p333_p4, %p332_p3 }
  0x11   : > { %17375 = sst [smem:[#allocation14_spill]] %s13574_s22  ;;  %p9608_p7 = scmp.ge.s32.totalorder %s13448_s16, 1 }
  0x12   : > { %s17377_s24 = scalar_select %p13580_p6, 1, 0 }
  0x13   : > { %p421_p8 = scmp.lt.s32.totalorder %s13448_s16, 3 }
  0x14   : > { %17378 = sst [smem:[#allocation15_spill]] %s17377_s24 }
  0x15   : > { %p422_p9 = pnand %p9608_p7, %p421_p8 }
  0x17   : > { %425 = sbr.rel (%p422_p9) target bundleno = 3333 (0xd05), region = 72 }
  0x1e   : > { %p470_p10 = scmp.lt.s32.totalorder %s13559_s17, 1  ;;  %v12236_v0 = vld [vmem:[%s17313_s1 + $0x64] ss:$8 sps:$4 sm:$0xff]   ;;  %v12238_v1 = vld [vmem:[%s17313_s1 + $0x60] ss:$8 sps:$4 sm:$0xff]   ;;  %s17379_s0 = sld [smem:[#allocation39_spill]] }
  0x1f   : > { %583 = vmatprep.subr.bf16.mxu0 %v12236_v0  ;;  %v12239_v2 = vld [vmem:[%s17313_s1 + $0x74] ss:$8 sps:$4 sm:$0xff]   ;;  %v12241_v3 = vld [vmem:[%s17313_s1 + $0x70] ss:$8 sps:$4 sm:$0xff]   ;;  %v12242_v4 = vld [vmem:[%s17313_s1 + $0x84] ss:$8 sps:$4 sm:$0xff]  }
  0x20   : > { %s471_s18 = scalar_select %p470_p10, %s13559_s17, 1  ;;  %584 = vmatpush1.bf16.msra.mxu0 %v12238_v1  ;;  %v17342_v5 = vmov 0   ;;  %v12244_v11 = vld [vmem:[%s17313_s1 + $0x80] ss:$8 sps:$4 sm:$0xff]   ;;  %v12245_v12 = vld [vmem:[%s17313_s1 + $0x94] ss:$8 sps:$4 sm:$0xff]  }
  0x21   : > { %585 = vmatprep.subr.bf16.mxu0 %v12239_v2  ;;  %615 = vmatprep.mubr.bf16.mxu0 %v17342_v5  ;;  %s17333_s20 = smov 122   ;;  %v12247_v14 = vld [vmem:[%s17313_s1 + $0x90] ss:$8 sps:$4 sm:$0xff]   ;;  %v12248_v15 = vld [vmem:[%s17313_s1 + $0xa4] ss:$8 sps:$4 sm:$0xff]   ;;  %s17331_s21 = smov 119  }
  0x22   : > { %s11224_s19 = sshll.u32 %s471_s18, 6  ;;  %s17337_s18 = smov 125   ;;  %v12250_v16 = vld [vmem:[%s17313_s1 + $0xa0] ss:$8 sps:$4 sm:$0xff]   ;;  %v12251_v17 = vld [vmem:[%s17313_s1 + $0xb4] ss:$8 sps:$4 sm:$0xff]  }
  0x23   : > { %v12253_v18 = vld [vmem:[%s17313_s1 + $0xb0] ss:$8 sps:$4 sm:$0xff]   ;;  %v12256_v19 = vld [vmem:[%s17313_s1 + $0x4] ss:$8 sps:$4 sm:$0xff]   ;;  %s17335_s22 = smov 116   ;;  %vm576_vm0 = vcmask 785408  }
  0x24   : > { %s13606_s28 = scalar_lea.vmem %s17379_s0, %s11224_s19  ;;  %586 = vmatpush1.bf16.msra.mxu0 %v12241_v3  ;;  %v12254_v23 = vld [vmem:[%s17313_s1] ss:$8 sps:$4 sm:$0xff]   ;;  %v12259_v24 = vld [vmem:[%s17313_s1 + $0x14] ss:$8 sps:$4 sm:$0xff]   ;;  %v12257_v26 = vld [vmem:[%s17313_s1 + $0x10] ss:$8 sps:$4 sm:$0xff]  }
  0x25   : > { %v476_v6 = vld [vmem:[%s13606_s28] sm:$0xff]  ;;  %v9611_v7 = vld [vmem:[%s13606_s28 + $0x10] sm:$0xff]  ;;  %587 = vmatprep.subr.bf16.mxu0 %v12242_v4  ;;  %s17380_s27 = smov 125   ;;  %s17381_s15 = smov 122   ;;  %vm4445_vm1 = vcmask 261120   ;;  %vm4448_vm2 = vcmask 254976  }
  0x26   : > { %v9612_v8 = vld [vmem:[%s13606_s28 + $0x20] sm:$0xff]  ;;  %v13612_v9 = vpack.c.bf16 %v9611_v7, %v476_v6  ;;  %v9613_v10 = vld [vmem:[%s13606_s28 + $0x30] sm:$0xff]  ;;  %vm4461_vm3 = vcmask 261121   ;;  %vm4464_vm4 = vcmask 253952   ;;  %s13456_s16 = smov 120   ;;  %s13457_s25 = smov 112  }
  0x27   : > { %v13623_v13 = vpack.c.bf16 %v9613_v10, %v9612_v8  ;;  %v13657_v20 = vpack.c.bf16 %v9612_v8, %v9611_v7  ;;  %v1187_v21 = vld [vmem:[%s13606_s28 + $0x1] sm:$0xff]  ;;  %v12265_v29 = vld [vmem:[%s17313_s1 + $0x34] ss:$8 sps:$4 sm:$0xff]   ;;  %v12263_v31 = vld [vmem:[%s17313_s1 + $0x30] ss:$8 sps:$4 sm:$0xff]   ;;  %s13458_s26 = smov 104  }
  0x28   : > { %512 = vrot.lane.b32.xlu0 %v13612_v9, %s17337_s18  ;;  %768 = vrot.lane.b32.xlu1 %v13612_v9, %s17333_s20  ;;  %v13668_v22 = vpack.c.bf16 %v1187_v21, %v9613_v10  ;;  %v12262_v27 = vld [vmem:[%s17313_s1 + $0x24] ss:$8 sps:$4 sm:$0xff]   ;;  %v12260_v28 = vld [vmem:[%s17313_s1 + $0x20] ss:$8 sps:$4 sm:$0xff]   ;;  %vm5227_vm5 = vcmask 1046528   ;;  %vm6774_vm6 = vcmask 1045504  }
  0x29   : > { %588 = vmatpush1.bf16.msra.mxu0 %v12244_v11  ;;  %v12268_v32 = vld [vmem:[%s17313_s1 + $0x44] ss:$8 sps:$4 sm:$0xff]   ;;  %v12266_v33 = vld [vmem:[%s17313_s1 + $0x40] ss:$8 sps:$4 sm:$0xff]   ;;  %v12271_v34 = vld [vmem:[%s17313_s1 + $0x54] ss:$8 sps:$4 sm:$0xff]  }
  0x2a   : > { %589 = vmatprep.subr.bf16.mxu0 %v12245_v12  ;;  %v12269_v35 = vld [vmem:[%s17313_s1 + $0x50] ss:$8 sps:$4 sm:$0xff]   ;;  %v12274_v36 = vld [vmem:[%s17313_s1 + $0xc4] ss:$8 sps:$4 sm:$0xff]   ;;  %v12272_v37 = vld [vmem:[%s17313_s1 + $0xc0] ss:$8 sps:$4 sm:$0xff]  }
  0x2b   : > { %v12277_v38 = vld [vmem:[%s17313_s1 + $0xd4] ss:$8 sps:$4 sm:$0xff]   ;;  %v12275_v39 = vld [vmem:[%s17313_s1 + $0xd0] ss:$8 sps:$4 sm:$0xff]   ;;  %v12280_v40 = vld [vmem:[%s17313_s1 + $0xe4] ss:$8 sps:$4 sm:$0xff]  }
  0x2c   : > { %514 = vrot.lane.b32.xlu0 %v13623_v13, %s17337_s18  ;;  %770 = vrot.lane.b32.xlu1 %v13623_v13, %s17333_s20  ;;  %v12278_v41 = vld [vmem:[%s17313_s1 + $0xe0] ss:$8 sps:$4 sm:$0xff]   ;;  %v12283_v42 = vld [vmem:[%s17313_s1 + $0xf4] ss:$8 sps:$4 sm:$0xff]   ;;  %vm4521_vm7 = vcmask 982016   ;;  %vm4791_vm8 = vcmask 916480  }
  0x2d   : > { %590 = vmatpush1.bf16.msra.mxu0 %v12247_v14  ;;  %v12281_v43 = vld [vmem:[%s17313_s1 + $0xf0] ss:$8 sps:$4 sm:$0xff]   ;;  %v12286_v44 = vld [vmem:[%s17313_s1 + $0x104] ss:$8 sps:$4 sm:$0xff]   ;;  %v12284_v47 = vld [vmem:[%s17313_s1 + $0x100] ss:$8 sps:$4 sm:$0xff]  }
  0x2e   : > { %591 = vmatprep.subr.bf16.mxu0 %v12248_v15  ;;  %v13752_v45 = vld [vmem:[%s13606_s28 + $0x11] sm:$0xff]  ;;  %v12292_v50 = vld [vmem:[%s17313_s1 + $0x124] ss:$8 sps:$4 sm:$0xff]   ;;  %v12290_v52 = vld [vmem:[%s17313_s1 + $0x120] ss:$8 sps:$4 sm:$0xff]   ;;  %vm4942_vm9 = vcmask 850944  }
  0x2f   : > { %v13755_v46 = vpack.c.bf16 %v13752_v45, %v1187_v21  ;;  %v12289_v48 = vld [vmem:[%s17313_s1 + $0x114] ss:$8 sps:$4 sm:$0xff]   ;;  %v12287_v49 = vld [vmem:[%s17313_s1 + $0x110] ss:$8 sps:$4 sm:$0xff]   ;;  %v12298_v55 = vld [vmem:[%s17313_s1 + $0x144] ss:$8 sps:$4 sm:$0xff]  }
  0x30   : > { %912 = vrot.lane.b32.xlu0 %v13612_v9, %s17331_s21  ;;  %914 = vrot.lane.b32.xlu1 %v13623_v13, %s17331_s21  ;;  %v12295_v53 = vld [vmem:[%s17313_s1 + $0x134] ss:$8 sps:$4 sm:$0xff]   ;;  %v12293_v54 = vld [vmem:[%s17313_s1 + $0x130] ss:$8 sps:$4 sm:$0xff]   ;;  %vm13460_vm10 = vmmov 0   ;;  %vm9490_vm11 = vcmask 516096  }
  0x31   : > { %592 = vmatpush1.bf16.msra.mxu0 %v12250_v16  ;;  %v12296_v56 = vld [vmem:[%s17313_s1 + $0x140] ss:$8 sps:$4 sm:$0xff]   ;;  %v12301_v57 = vld [vmem:[%s17313_s1 + $0x154] ss:$8 sps:$4 sm:$0xff]   ;;  %v12299_v59 = vld [vmem:[%s17313_s1 + $0x150] ss:$8 sps:$4 sm:$0xff]  }
  0x32   : > { %593 = vmatprep.subr.bf16.mxu0 %v12251_v17  ;;  %v12304_v60 = vld [vmem:[%s17313_s1 + $0x164] ss:$8 sps:$4 sm:$0xff]   ;;  %v12302_v61 = vld [vmem:[%s17313_s1 + $0x160] ss:$8 sps:$4 sm:$0xff]   ;;  %v12307_v62 = vld [vmem:[%s17313_s1 + $0x174] ss:$8 sps:$4 sm:$0xff]  }
  0x33   : > { %v12305_v63 = vld [vmem:[%s17313_s1 + $0x170] ss:$8 sps:$4 sm:$0xff]   ;;  %v12310_v0 = vld [vmem:[%s17313_s1 + $0x184] ss:$8 sps:$4 sm:$0xff]   ;;  %v12308_v1 = vld [vmem:[%s17313_s1 + $0x180] ss:$8 sps:$4 sm:$0xff]  }
  0x34   : > { %1056 = vrot.lane.b32.xlu0 %v13612_v9, %s17335_s22  ;;  %1058 = vrot.lane.b32.xlu1 %v13623_v13, %s17335_s22  ;;  %v12313_v3 = vld [vmem:[%s17313_s1 + $0x194] ss:$8 sps:$4 sm:$0xff]   ;;  %v12311_v4 = vld [vmem:[%s17313_s1 + $0x190] ss:$8 sps:$4 sm:$0xff]   ;;  %vm9444_vm12 = vcmask 523264   ;;  %s13461_s24 = smov [#allocation6]  }
  0x35   : > { %594 = vmatpush1.bf16.msra.mxu0 %v12253_v18  ;;  %v12316_v6 = vld [vmem:[%s17313_s1 + $0x1a4] ss:$8 sps:$4 sm:$0xff]   ;;  %v12314_v7 = vld [vmem:[%s17313_s1 + $0x1a0] ss:$8 sps:$4 sm:$0xff]   ;;  %v12319_v8 = vld [vmem:[%s17313_s1 + $0x1b4] ss:$8 sps:$4 sm:$0xff]  }
  0x36   : > { %702 = vmatprep.subr.bf16.mxu0 %v12256_v19  ;;  %v12317_v10 = vld [vmem:[%s17313_s1 + $0x1b0] ss:$8 sps:$4 sm:$0xff]   ;;  %v12322_v11 = vld [vmem:[%s17313_s1 + $0x1c4] ss:$8 sps:$4 sm:$0xff]   ;;  %v12320_v12 = vld [vmem:[%s17313_s1 + $0x1c0] ss:$8 sps:$4 sm:$0xff]  }
  0x37   : > { %v12325_v14 = vld [vmem:[%s17313_s1 + $0x1d4] ss:$8 sps:$4 sm:$0xff]   ;;  %v12323_v15 = vld [vmem:[%s17313_s1 + $0x1d0] ss:$8 sps:$4 sm:$0xff]   ;;  %v12328_v16 = vld [vmem:[%s17313_s1 + $0x1e4] ss:$8 sps:$4 sm:$0xff]  }
  0x38   : > { %1345 = vrot.lane.b32.xlu0 %v13657_v20, %s17337_s18  ;;  %1347 = vrot.lane.b32.xlu1 %v13668_v22, %s17337_s18  ;;  %v12326_v17 = vld [vmem:[%s17313_s1 + $0x1e0] ss:$8 sps:$4 sm:$0xff]   ;;  %v12331_v19 = vld [vmem:[%s17313_s1 + $0x1f4] ss:$8 sps:$4 sm:$0xff]  }
  0x39   : > { %v12329_v21 = vld [vmem:[%s17313_s1 + $0x1f0] ss:$8 sps:$4 sm:$0xff]  }
  0x3c   : > { %1489 = vrot.lane.b32.xlu0 %v13657_v20, %s17333_s20  ;;  %1491 = vrot.lane.b32.xlu1 %v13668_v22, %s17333_s20  ;;  %s17382_s20 = smov 119  }
  0x40   : > { %1633 = vrot.lane.b32.xlu0 %v13657_v20, %s17331_s21  ;;  %1635 = vrot.lane.b32.xlu1 %v13668_v22, %s17331_s21  ;;  %s17383_s21 = smov 116  }
  0x44   : > { %1777 = vrot.lane.b32.xlu0 %v13657_v20, %s17335_s22  ;;  %1779 = vrot.lane.b32.xlu1 %v13668_v22, %s17335_s22  ;;  %s11220_s22 = sshll.u32 %s13559_s17, 4 }
  0x45   : > { %s17240_s19 = scalar_lea.hbm %s17326_s14, %s11220_s22 }
  0x48   : > { %2061 = vrot.lane.b32.xlu0 %v13755_v46, %s17380_s27  ;;  %2200 = vrot.lane.b32.xlu1 %v13755_v46, %s17381_s15 }
  0x4c   : > { %2339 = vrot.lane.b32.xlu0 %v13755_v46, %s17382_s20  ;;  %2478 = vrot.lane.b32.xlu1 %v13755_v46, %s17383_s21 }
  0x9a   : > { %v513_v25 = vpop.permute.xlu0 %512  ;;  %v769_v51 = vpop.permute.xlu1 %768 }
  0x9b   : > { %9638 = vmatmul.mubr.msk.bf16.vlgmr.msra.gmra.mrb[0].mxu0 %vm576_vm0, %v513_v25  ;;  %v12337_v25 = vld [vmem:[%s17313_s1 + $0x214] ss:$8 sps:$4 sm:$0xff]  }
  0x9c   : > { %703 = vmatpush1.bf16.msra.mxu0 %v12254_v23  ;;  %625 = vmatprep.mubr.bf16.mxu0 %v17342_v5  ;;  %v12334_v23 = vld [vmem:[%s17313_s1 + $0x204] ss:$8 sps:$4 sm:$0xff]  }
  0x9d   : > { %704 = vmatprep.subr.bf16.mxu0 %v12259_v24  ;;  %v12332_v24 = vld [vmem:[%s17313_s1 + $0x200] ss:$8 sps:$4 sm:$0xff]  }
  0x9e   : > { %v13698_v30 = vpop.permute.xlu0 %514  ;;  %v13797_v58 = vpop.permute.xlu1 %770 }
  0xa0   : > { %705 = vmatpush1.bf16.msra.mxu0 %v12257_v26 }
  0xa1   : > { %706 = vmatprep.subr.bf16.mxu0 %v12262_v27  ;;  %v12335_v27 = vld [vmem:[%s17313_s1 + $0x210] ss:$8 sps:$4 sm:$0xff]  }
  0xa2   : > { %v913_v2 = vpop.permute.xlu0 %912 }
  0xa3   : > { %9639 = vmatmul.mubr.msk.bf16.gmra.mrb[4].mxu0 %vm576_vm0, %v13698_v30 }
  0xa4   : > { %707 = vmatpush1.bf16.msra.mxu0 %v12260_v28  ;;  %734 = vmatprep.mubr.bf16.mxu0 %v17342_v5  ;;  %v12340_v28 = vld [vmem:[%s17313_s1 + $0x224] ss:$8 sps:$4 sm:$0xff]  }
  0xa5   : > { %708 = vmatprep.subr.bf16.mxu0 %v12265_v29  ;;  %v12338_v29 = vld [vmem:[%s17313_s1 + $0x220] ss:$8 sps:$4 sm:$0xff]  }
  0xa6   : > { %v1057_v18 = vpop.permute.xlu0 %1056 }
  0xa8   : > { %709 = vmatpush1.bf16.msra.mxu0 %v12263_v31  ;;  %v12343_v31 = vld [vmem:[%s17313_s1 + $0x234] ss:$8 sps:$4 sm:$0xff]  }
  0xa9   : > { %710 = vmatprep.subr.bf16.mxu0 %v12268_v32  ;;  %v12341_v32 = vld [vmem:[%s17313_s1 + $0x230] ss:$8 sps:$4 sm:$0xff]  }
  0xac   : > { %711 = vmatpush1.bf16.msra.mxu0 %v12266_v33  ;;  %v12346_v33 = vld [vmem:[%s17313_s1 + $0x244] ss:$8 sps:$4 sm:$0xff]  }
  0xad   : > { %712 = vmatprep.subr.bf16.mxu0 %v12271_v34  ;;  %v12344_v34 = vld [vmem:[%s17313_s1 + $0x240] ss:$8 sps:$4 sm:$0xff]  }
  0xb0   : > { %713 = vmatpush1.bf16.msra.mxu0 %v12269_v35  ;;  %v12349_v35 = vld [vmem:[%s17313_s1 + $0x254] ss:$8 sps:$4 sm:$0xff]  }
  0xb1   : > { %838 = vmatprep.subr.bf16.mxu0 %v12274_v36  ;;  %v12347_v36 = vld [vmem:[%s17313_s1 + $0x250] ss:$8 sps:$4 sm:$0xff]  }
  0xb3   : > { %9652 = vmatmul.mubr.msk.bf16.vlgmr.msra.gmra.mrb[0].mxu0 %vm576_vm0, %v13612_v9  ;;  %v13840_v9 = vpop.permute.xlu1 %914 }
  0xb4   : > { %839 = vmatpush1.bf16.msra.mxu0 %v12272_v37  ;;  %744 = vmatprep.mubr.bf16.mxu0 %v17342_v5  ;;  %v12352_v37 = vld [vmem:[%s17313_s1 + $0x264] ss:$8 sps:$4 sm:$0xff]  }
  0xb5   : > { %840 = vmatprep.subr.bf16.mxu0 %v12277_v38  ;;  %v12350_v38 = vld [vmem:[%s17313_s1 + $0x260] ss:$8 sps:$4 sm:$0xff]  }
  0xb7   : > { %v13883_v26 = vpop.permute.xlu1 %1058 }
  0xb8   : > { %841 = vmatpush1.bf16.msra.mxu0 %v12275_v39  ;;  %v12353_v39 = vld [vmem:[%s17313_s1 + $0x270] ss:$8 sps:$4 sm:$0xff]  }
  0xb9   : > { %842 = vmatprep.subr.bf16.mxu0 %v12280_v40  ;;  %v12358_v40 = vld [vmem:[%s17313_s1 + $0x284] ss:$8 sps:$4 sm:$0xff]  }
  0xbb   : > { %9653 = vmatmul.mubr.msk.bf16.gmra.mrb[4].mxu0 %vm576_vm0, %v13623_v13 }
  0xbc   : > { %843 = vmatpush1.bf16.msra.mxu0 %v12278_v41  ;;  %870 = vmatprep.mubr.bf16.mxu0 %v17342_v5  ;;  %v12356_v41 = vld [vmem:[%s17313_s1 + $0x280] ss:$8 sps:$4 sm:$0xff]  }
  0xbd   : > { %844 = vmatprep.subr.bf16.mxu0 %v12283_v42  ;;  %v12361_v42 = vld [vmem:[%s17313_s1 + $0x294] ss:$8 sps:$4 sm:$0xff]  }
  0xc0   : > { %845 = vmatpush1.bf16.msra.mxu0 %v12281_v43  ;;  %v12359_v43 = vld [vmem:[%s17313_s1 + $0x290] ss:$8 sps:$4 sm:$0xff]  }
  0xc1   : > { %846 = vmatprep.subr.bf16.mxu0 %v12286_v44  ;;  %v12364_v44 = vld [vmem:[%s17313_s1 + $0x2a4] ss:$8 sps:$4 sm:$0xff]  }
  0xc4   : > { %847 = vmatpush1.bf16.msra.mxu0 %v12284_v47  ;;  %v12362_v47 = vld [vmem:[%s17313_s1 + $0x2a0] ss:$8 sps:$4 sm:$0xff]  }
  0xc5   : > { %848 = vmatprep.subr.bf16.mxu0 %v12289_v48  ;;  %v1346_v48 = vpop.permute.xlu0 %1345 }
  0xc8   : > { %849 = vmatpush1.bf16.msra.mxu0 %v12287_v49  ;;  %v12367_v49 = vld [vmem:[%s17313_s1 + $0x2b4] ss:$8 sps:$4 sm:$0xff]  }
  0xc9   : > { %982 = vmatprep.subr.bf16.mxu0 %v12292_v50  ;;  %v12365_v50 = vld [vmem:[%s17313_s1 + $0x2b0] ss:$8 sps:$4 sm:$0xff]  }
  0xcb   : > { %9678 = vmatmul.mubr.msk.bf16.vlgmr.msra.gmra.mrb[0].mxu0 %vm576_vm0, %v769_v51  ;;  %v12370_v51 = vld [vmem:[%s17313_s1 + $0x2c4] ss:$8 sps:$4 sm:$0xff]  }
  0xcc   : > { %983 = vmatpush1.bf16.msra.mxu0 %v12290_v52  ;;  %880 = vmatprep.mubr.bf16.mxu0 %v17342_v5  ;;  %v12368_v52 = vld [vmem:[%s17313_s1 + $0x2c0] ss:$8 sps:$4 sm:$0xff]  }
  0xcd   : > { %984 = vmatprep.subr.bf16.mxu0 %v12295_v53  ;;  %v12373_v53 = vld [vmem:[%s17313_s1 + $0x2d4] ss:$8 sps:$4 sm:$0xff]  }
  0xd0   : > { %985 = vmatpush1.bf16.msra.mxu0 %v12293_v54  ;;  %v13968_v54 = vpop.permute.xlu1 %1347 }
  0xd1   : > { %986 = vmatprep.subr.bf16.mxu0 %v12298_v55  ;;  %v12371_v55 = vld [vmem:[%s17313_s1 + $0x2d0] ss:$8 sps:$4 sm:$0xff]  }
  0xd3   : > { %9679 = vmatmul.mubr.msk.bf16.gmra.mrb[4].mxu0 %vm576_vm0, %v13797_v58 }
  0xd4   : > { %987 = vmatpush1.bf16.msra.mxu0 %v12296_v56  ;;  %1014 = vmatprep.mubr.bf16.mxu0 %v17342_v5  ;;  %v12376_v56 = vld [vmem:[%s17313_s1 + $0x2e4] ss:$8 sps:$4 sm:$0xff]  }
  0xd5   : > { %988 = vmatprep.subr.bf16.mxu0 %v12301_v57  ;;  %v13980_v57 = vld [vmem:[%s13606_s28 + $0x21] sm:$0xff] }
  0xd8   : > { %989 = vmatpush1.bf16.msra.mxu0 %v12299_v59  ;;  %v12374_v59 = vld [vmem:[%s17313_s1 + $0x2e0] ss:$8 sps:$4 sm:$0xff]  }
  0xd9   : > { %990 = vmatprep.subr.bf16.mxu0 %v12304_v60  ;;  %v13987_v60 = vpack.c.bf16 %v13980_v57, %v13752_v45  ;;  %v12382_v45 = vld [vmem:[%s17313_s1 + $0x304] ss:$8 sps:$4 sm:$0xff]  }
  0xdb   : > { %2757 = vrot.lane.b32.xlu0 %v13987_v60, %s17380_s27  ;;  %2896 = vrot.lane.b32.xlu1 %v13987_v60, %s17381_s15 }
  0xdc   : > { %991 = vmatpush1.bf16.msra.mxu0 %v12302_v61  ;;  %v12379_v61 = vld [vmem:[%s17313_s1 + $0x2f4] ss:$8 sps:$4 sm:$0xff]  }
  0xdd   : > { %992 = vmatprep.subr.bf16.mxu0 %v12307_v62  ;;  %v12377_v62 = vld [vmem:[%s17313_s1 + $0x2f0] ss:$8 sps:$4 sm:$0xff]  }
  0xdf   : > { %3035 = vrot.lane.b32.xlu0 %v13987_v60, %s17382_s20  ;;  %3174 = vrot.lane.b32.xlu1 %v13987_v60, %s17383_s21 }
  0xe0   : > { %993 = vmatpush1.bf16.msra.mxu0 %v12305_v63  ;;  %v12380_v63 = vld [vmem:[%s17313_s1 + $0x300] ss:$8 sps:$4 sm:$0xff]  }
  0xe1   : > { %1126 = vmatprep.subr.bf16.mxu0 %v12310_v0  ;;  %v1490_v0 = vpop.permute.xlu0 %1489 }
  0xe3   : > { %9704 = vmatmul.mubr.msk.bf16.vlgmr.msra.gmra.mrb[0].mxu0 %vm576_vm0, %v913_v2  ;;  %v12383_v2 = vld [vmem:[%s17313_s1 + $0x310] ss:$8 sps:$4 sm:$0xff]  }
  0xe4   : > { %1127 = vmatpush1.bf16.msra.mxu0 %v12308_v1  ;;  %1024 = vmatprep.mubr.bf16.mxu0 %v17342_v5  ;;  %v12385_v1 = vld [vmem:[%s17313_s1 + $0x314] ss:$8 sps:$4 sm:$0xff]  }
  0xe5   : > { %1128 = vmatprep.subr.bf16.mxu0 %v12313_v3  ;;  %v12388_v3 = vld [vmem:[%s17313_s1 + $0x324] ss:$8 sps:$4 sm:$0xff]  }
  0xe8   : > { %1129 = vmatpush1.bf16.msra.mxu0 %v12311_v4  ;;  %v12386_v4 = vld [vmem:[%s17313_s1 + $0x320] ss:$8 sps:$4 sm:$0xff]  }
  0xe9   : > { %1130 = vmatprep.subr.bf16.mxu0 %v12316_v6  ;;  %v12391_v6 = vld [vmem:[%s17313_s1 + $0x334] ss:$8 sps:$4 sm:$0xff]  }
  0xeb   : > { %9705 = vmatmul.mubr.msk.bf16.gmra.mrb[4].mxu0 %vm576_vm0, %v13840_v9 }
  0xec   : > { %1131 = vmatpush1.bf16.msra.mxu0 %v12314_v7  ;;  %1158 = vmatprep.mubr.bf16.mxu0 %v17342_v5  ;;  %v14026_v7 = vpop.permute.xlu1 %1491 }
  0xed   : > { %1132 = vmatprep.subr.bf16.mxu0 %v12319_v8  ;;  %v12389_v8 = vld [vmem:[%s17313_s1 + $0x330] ss:$8 sps:$4 sm:$0xff]  }
  0xf0   : > { %1133 = vmatpush1.bf16.msra.mxu0 %v12317_v10  ;;  %v12394_v10 = vld [vmem:[%s17313_s1 + $0x344] ss:$8 sps:$4 sm:$0xff]  }
  0xf1   : > { %1134 = vmatprep.subr.bf16.mxu0 %v12322_v11  ;;  %v12392_v11 = vld [vmem:[%s17313_s1 + $0x340] ss:$8 sps:$4 sm:$0xff]  }
  0xf4   : > { %1135 = vmatpush1.bf16.msra.mxu0 %v12320_v12  ;;  %v12397_v12 = vld [vmem:[%s17313_s1 + $0x354] ss:$8 sps:$4 sm:$0xff]  }
  0xf5   : > { %1136 = vmatprep.subr.bf16.mxu0 %v12325_v14  ;;  %v12395_v14 = vld [vmem:[%s17313_s1 + $0x350] ss:$8 sps:$4 sm:$0xff]  }
  0xf8   : > { %1137 = vmatpush1.bf16.msra.mxu0 %v12323_v15  ;;  %v12400_v15 = vld [vmem:[%s17313_s1 + $0x364] ss:$8 sps:$4 sm:$0xff]  }
  0xf9   : > { %1269 = vmatprep.subr.bf16.mxu0 %v12328_v16  ;;  %v12398_v16 = vld [vmem:[%s17313_s1 + $0x360] ss:$8 sps:$4 sm:$0xff]  }
  0xfb   : > { %9730 = vmatmul.mubr.msk.bf16.vlgmr.msra.gmra.mrb[0].mxu0 %vm576_vm0, %v1057_v18  ;;  %v12403_v18 = vld [vmem:[%s17313_s1 + $0x374] ss:$8 sps:$4 sm:$0xff]  }
  0xfc   : > { %1270 = vmatpush1.bf16.msra.mxu0 %v12326_v17  ;;  %1168 = vmatprep.mubr.bf16.mxu0 %v17342_v5  ;;  %v1634_v17 = vpop.permute.xlu0 %1633 }
  0xfd   : > { %1271 = vmatprep.subr.bf16.mxu0 %v12331_v19  ;;  %v12401_v19 = vld [vmem:[%s17313_s1 + $0x370] ss:$8 sps:$4 sm:$0xff]  }
 0x100   : > { %1272 = vmatpush1.bf16.msra.mxu0 %v12329_v21  ;;  %v12406_v21 = vld [vmem:[%s17313_s1 + $0x384] ss:$8 sps:$4 sm:$0xff]  }
 0x101   : > { %1273 = vmatprep.subr.bf16.mxu0 %v12334_v23  ;;  %v12404_v23 = vld [vmem:[%s17313_s1 + $0x380] ss:$8 sps:$4 sm:$0xff]  }
 0x103   : > { %9731 = vmatmul.mubr.msk.bf16.gmra.mrb[4].mxu0 %vm576_vm0, %v13883_v26 }
 0x104   : > { %1274 = vmatpush1.bf16.msra.mxu0 %v12332_v24  ;;  %1301 = vmatprep.mubr.bf16.mxu0 %v17342_v5  ;;  %v12409_v24 = vld [vmem:[%s17313_s1 + $0x394] ss:$8 sps:$4 sm:$0xff]  }
 0x105   : > { %1275 = vmatprep.subr.bf16.mxu0 %v12337_v25  ;;  %v14069_v25 = vpop.permute.xlu1 %1635 }
 0x108   : > { %1276 = vmatpush1.bf16.msra.mxu0 %v12335_v27  ;;  %v12407_v27 = vld [vmem:[%s17313_s1 + $0x390] ss:$8 sps:$4 sm:$0xff]  }
 0x109   : > { %1277 = vmatprep.subr.bf16.mxu0 %v12340_v28  ;;  %v12412_v28 = vld [vmem:[%s17313_s1 + $0x3a4] ss:$8 sps:$4 sm:$0xff]  }
 0x10c   : > { %1278 = vmatpush1.bf16.msra.mxu0 %v12338_v29  ;;  %v12410_v29 = vld [vmem:[%s17313_s1 + $0x3a0] ss:$8 sps:$4 sm:$0xff]  }
 0x10d   : > { %1279 = vmatprep.subr.bf16.mxu0 %v12343_v31  ;;  %v12415_v31 = vld [vmem:[%s17313_s1 + $0x3b4] ss:$8 sps:$4 sm:$0xff]  }
 0x110   : > { %1280 = vmatpush1.bf16.msra.mxu0 %v12341_v32  ;;  %v12413_v32 = vld [vmem:[%s17313_s1 + $0x3b0] ss:$8 sps:$4 sm:$0xff]  }
 0x111   : > { %1415 = vmatprep.subr.bf16.mxu0 %v12346_v33  ;;  %v12418_v33 = vld [vmem:[%s17313_s1 + $0x3c4] ss:$8 sps:$4 sm:$0xff]  }
 0x113   : > { %9756 = vmatmul.mubr.msk.bf16.vlgmr.msra.gmra.mrb[0].mxu0 %vm576_vm0, %v13657_v20  ;;  %v12355_v20 = vld [vmem:[%s17313_s1 + $0x274] ss:$8 sps:$4 sm:$0xff]  }
 0x114   : > { %1416 = vmatpush1.bf16.msra.mxu0 %v12344_v34  ;;  %1311 = vmatprep.mubr.bf16.mxu0 %v17342_v5  ;;  %v12416_v34 = vld [vmem:[%s17313_s1 + $0x3c0] ss:$8 sps:$4 sm:$0xff]  }
 0x115   : > { %1417 = vmatprep.subr.bf16.mxu0 %v12349_v35  ;;  %v1778_v35 = vpop.permute.xlu0 %1777 }
 0x118   : > { %1418 = vmatpush1.bf16.msra.mxu0 %v12347_v36  ;;  %v12421_v36 = vld [vmem:[%s17313_s1 + $0x3d4] ss:$8 sps:$4 sm:$0xff]  }
 0x119   : > { %1419 = vmatprep.subr.bf16.mxu0 %v12352_v37  ;;  %v12419_v37 = vld [vmem:[%s17313_s1 + $0x3d0] ss:$8 sps:$4 sm:$0xff]  }
 0x11b   : > { %9757 = vmatmul.mubr.msk.bf16.gmra.mrb[4].mxu0 %vm576_vm0, %v13668_v22 }
 0x11c   : > { %1420 = vmatpush1.bf16.msra.mxu0 %v12350_v38  ;;  %1447 = vmatprep.mubr.bf16.mxu0 %v17342_v5  ;;  %v12424_v38 = vld [vmem:[%s17313_s1 + $0x3e4] ss:$8 sps:$4 sm:$0xff]  }
 0x11d   : > { %1421 = vmatprep.subr.bf16.mxu0 %v12355_v20  ;;  %v12422_v20 = vld [vmem:[%s17313_s1 + $0x3e0] ss:$8 sps:$4 sm:$0xff]  }
 0x120   : > { %1422 = vmatpush1.bf16.msra.mxu0 %v12353_v39  ;;  %v14109_v39 = vpop.permute.xlu1 %1779 }
 0x121   : > { %1423 = vmatprep.subr.bf16.mxu0 %v12358_v40  ;;  %v12427_v40 = vld [vmem:[%s17313_s1 + $0x3f4] ss:$8 sps:$4 sm:$0xff]  }
 0x124   : > { %1424 = vmatpush1.bf16.msra.mxu0 %v12356_v41  ;;  %v12425_v41 = vld [vmem:[%s17313_s1 + $0x3f0] ss:$8 sps:$4 sm:$0xff]  }
 0x125   : > { %1425 = vmatprep.subr.bf16.mxu0 %v12361_v42  ;;  %v12430_v42 = vld [vmem:[%s17313_s1 + $0x404] ss:$8 sps:$4 sm:$0xff]  }
 0x128   : > { %1426 = vmatpush1.bf16.msra.mxu0 %v12359_v43  ;;  %v12428_v43 = vld [vmem:[%s17313_s1 + $0x400] ss:$8 sps:$4 sm:$0xff]  }
 0x129   : > { %1559 = vmatprep.subr.bf16.mxu0 %v12364_v44  ;;  %v12433_v44 = vld [vmem:[%s17313_s1 + $0x414] ss:$8 sps:$4 sm:$0xff]  }
 0x12b   : > { %9782 = vmatmul.mubr.msk.bf16.vlgmr.msra.gmra.mrb[0].mxu0 %vm576_vm0, %v1346_v48  ;;  %v12436_v48 = vld [vmem:[%s17313_s1 + $0x424] ss:$8 sps:$4 sm:$0xff]  }
 0x12c   : > { %1560 = vmatpush1.bf16.msra.mxu0 %v12362_v47  ;;  %1457 = vmatprep.mubr.bf16.mxu0 %v17342_v5  ;;  %v12431_v47 = vld [vmem:[%s17313_s1 + $0x410] ss:$8 sps:$4 sm:$0xff]  }
 0x12d   : > { %1561 = vmatprep.subr.bf16.mxu0 %v12367_v49  ;;  %v12434_v49 = vld [vmem:[%s17313_s1 + $0x420] ss:$8 sps:$4 sm:$0xff]  }
 0x130   : > { %1562 = vmatpush1.bf16.msra.mxu0 %v12365_v50  ;;  %v12439_v50 = vld [vmem:[%s17313_s1 + $0x434] ss:$8 sps:$4 sm:$0xff]  }
 0x131   : > { %1563 = vmatprep.subr.bf16.mxu0 %v12370_v51  ;;  %v12437_v51 = vld [vmem:[%s17313_s1 + $0x430] ss:$8 sps:$4 sm:$0xff]  }
 0x133   : > { %9783 = vmatmul.mubr.msk.bf16.gmra.mrb[4].mxu0 %vm576_vm0, %v13968_v54 }
 0x134   : > { %1564 = vmatpush1.bf16.msra.mxu0 %v12368_v52  ;;  %1591 = vmatprep.mubr.bf16.mxu0 %v17342_v5  ;;  %v12442_v52 = vld [vmem:[%s17313_s1 + $0x444] ss:$8 sps:$4 sm:$0xff]  }
 0x135   : > { %1565 = vmatprep.subr.bf16.mxu0 %v12373_v53  ;;  %v12440_v53 = vld [vmem:[%s17313_s1 + $0x440] ss:$8 sps:$4 sm:$0xff]  }
 0x138   : > { %1566 = vmatpush1.bf16.msra.mxu0 %v12371_v55  ;;  %v12443_v55 = vld [vmem:[%s17313_s1 + $0x450] ss:$8 sps:$4 sm:$0xff]  }
 0x139   : > { %1567 = vmatprep.subr.bf16.mxu0 %v12376_v56  ;;  %v12448_v56 = vld [vmem:[%s17313_s1 + $0x464] ss:$8 sps:$4 sm:$0xff]  }
 0x13c   : > { %1568 = vmatpush1.bf16.msra.mxu0 %v12374_v59  ;;  %v12446_v59 = vld [vmem:[%s17313_s1 + $0x460] ss:$8 sps:$4 sm:$0xff]  }
 0x13d   : > { %1569 = vmatprep.subr.bf16.mxu0 %v12379_v61  ;;  %v12451_v61 = vld [vmem:[%s17313_s1 + $0x474] ss:$8 sps:$4 sm:$0xff]  }
 0x140   : > { %1570 = vmatpush1.bf16.msra.mxu0 %v12377_v62  ;;  %v12449_v62 = vld [vmem:[%s17313_s1 + $0x470] ss:$8 sps:$4 sm:$0xff]  }
 0x141   : > { %1703 = vmatprep.subr.bf16.mxu0 %v12382_v45  ;;  %v12454_v45 = vld [vmem:[%s17313_s1 + $0x484] ss:$8 sps:$4 sm:$0xff]  }
 0x143   : > { %9808 = vmatmul.mubr.msk.bf16.vlgmr.msra.gmra.mrb[0].mxu0 %vm576_vm0, %v1490_v0  ;;  %v12457_v0 = vld [vmem:[%s17313_s1 + $0x494] ss:$8 sps:$4 sm:$0xff]  }
 0x144   : > { %1704 = vmatpush1.bf16.msra.mxu0 %v12380_v63  ;;  %1601 = vmatprep.mubr.bf16.mxu0 %v17342_v5  ;;  %v12452_v63 = vld [vmem:[%s17313_s1 + $0x480] ss:$8 sps:$4 sm:$0xff]  }
 0x145   : > { %1705 = vmatprep.subr.bf16.mxu0 %v12385_v1  ;;  %v12455_v1 = vld [vmem:[%s17313_s1 + $0x490] ss:$8 sps:$4 sm:$0xff]  }
 0x148   : > { %1706 = vmatpush1.bf16.msra.mxu0 %v12383_v2  ;;  %v12460_v2 = vld [vmem:[%s17313_s1 + $0x4a4] ss:$8 sps:$4 sm:$0xff]  }
 0x149   : > { %1707 = vmatprep.subr.bf16.mxu0 %v12388_v3  ;;  %v12458_v3 = vld [vmem:[%s17313_s1 + $0x4a0] ss:$8 sps:$4 sm:$0xff]  }
 0x14b   : > { %9809 = vmatmul.mubr.msk.bf16.gmra.mrb[4].mxu0 %vm576_vm0, %v14026_v7 }
 0x14c   : > { %1708 = vmatpush1.bf16.msra.mxu0 %v12386_v4  ;;  %1735 = vmatprep.mubr.bf16.mxu0 %v17342_v5  ;;  %v14195_v4 = vpop.permute.xlu0 %2061 }
 0x14d   : > { %1709 = vmatprep.subr.bf16.mxu0 %v12391_v6  ;;  %v12461_v6 = vld [vmem:[%s17313_s1 + $0x4b0] ss:$8 sps:$4 sm:$0xff]  }
 0x150   : > { %1710 = vmatpush1.bf16.msra.mxu0 %v12389_v8  ;;  %v12466_v8 = vld [vmem:[%s17313_s1 + $0x4c4] ss:$8 sps:$4 sm:$0xff]  }
 0x151   : > { %1711 = vmatprep.subr.bf16.mxu0 %v12394_v10  ;;  %v10124_v10 = vld [vmem:[%s13606_s28 + $0x31] sm:$0xff]  ;;  %s13459_s28 = smov 96  }
 0x154   : > { %1712 = vmatpush1.bf16.msra.mxu0 %v12392_v11  ;;  %v14211_v11 = vpack.c.bf16 %v10124_v10, %v13980_v57  ;;  %v12467_v57 = vld [vmem:[%s17313_s1 + $0x4d0] ss:$8 sps:$4 sm:$0xff]   ;;  %v12542_v10 = vld [vmem:[%s17313_s1 + $0x660] ss:$8 sps:$4 sm:$0xff]  }
 0x155   : > { %1713 = vmatprep.subr.bf16.mxu0 %v12397_v12  ;;  %v12464_v12 = vld [vmem:[%s17313_s1 + $0x4c0] ss:$8 sps:$4 sm:$0xff]  }
 0x156   : > { %3453 = vrot.lane.b32.xlu0 %v14211_v11, %s17380_s27  ;;  %3592 = vrot.lane.b32.xlu1 %v14211_v11, %s17381_s15 }
 0x158   : > { %1714 = vmatpush1.bf16.msra.mxu0 %v12395_v14  ;;  %v12469_v14 = vld [vmem:[%s17313_s1 + $0x4d4] ss:$8 sps:$4 sm:$0xff]  }
 0x159   : > { %1847 = vmatprep.subr.bf16.mxu0 %v12400_v15  ;;  %v12472_v15 = vld [vmem:[%s17313_s1 + $0x4e4] ss:$8 sps:$4 sm:$0xff]  }
 0x15a   : > { %3731 = vrot.lane.b32.xlu0 %v14211_v11, %s17382_s20  ;;  %3870 = vrot.lane.b32.xlu1 %v14211_v11, %s17383_s21  ;;  %s13358_s21 = sshll.u32 %s13461_s24, 4  ;;  %s13359_s21 = int_to_ptr.vmem [resolvable:$false] %s13358_s21 }
 0x15b   : > { %9834 = vmatmul.mubr.msk.bf16.vlgmr.msra.gmra.mrb[0].mxu0 %vm576_vm0, %v1634_v17  ;;  %v12475_v17 = vld [vmem:[%s17313_s1 + $0x4f4] ss:$8 sps:$4 sm:$0xff]   ;;  %s13360_s13 = scalar_lea.vmem %s13359_s21, 32 }
 0x15c   : > { %1848 = vmatpush1.bf16.msra.mxu0 %v12398_v16  ;;  %1745 = vmatprep.mubr.bf16.mxu0 %v17342_v5  ;;  %v12470_v16 = vld [vmem:[%s17313_s1 + $0x4e0] ss:$8 sps:$4 sm:$0xff]  }
 0x15d   : > { %1849 = vmatprep.subr.bf16.mxu0 %v12403_v18  ;;  %v12473_v18 = vld [vmem:[%s17313_s1 + $0x4f0] ss:$8 sps:$4 sm:$0xff]  }
 0x160   : > { %1850 = vmatpush1.bf16.msra.mxu0 %v12401_v19  ;;  %v12478_v19 = vld [vmem:[%s17313_s1 + $0x504] ss:$8 sps:$4 sm:$0xff]  }
 0x161   : > { %1851 = vmatprep.subr.bf16.mxu0 %v12406_v21  ;;  %v12476_v21 = vld [vmem:[%s17313_s1 + $0x500] ss:$8 sps:$4 sm:$0xff]  }
 0x163   : > { %9835 = vmatmul.mubr.msk.bf16.gmra.mrb[4].mxu0 %vm576_vm0, %v14069_v25 }
 0x164   : > { %1852 = vmatpush1.bf16.msra.mxu0 %v12404_v23  ;;  %1879 = vmatprep.mubr.bf16.mxu0 %v17342_v5  ;;  %v14251_v23 = vpop.permute.xlu1 %2200 }
 0x165   : > { %1853 = vmatprep.subr.bf16.mxu0 %v12409_v24  ;;  %v12479_v24 = vld [vmem:[%s17313_s1 + $0x510] ss:$8 sps:$4 sm:$0xff]  }
 0x168   : > { %1854 = vmatpush1.bf16.msra.mxu0 %v12407_v27  ;;  %v12484_v27 = vld [vmem:[%s17313_s1 + $0x524] ss:$8 sps:$4 sm:$0xff]  }
 0x169   : > { %1855 = vmatprep.subr.bf16.mxu0 %v12412_v28  ;;  %v12482_v28 = vld [vmem:[%s17313_s1 + $0x520] ss:$8 sps:$4 sm:$0xff]  }
 0x16c   : > { %1856 = vmatpush1.bf16.msra.mxu0 %v12410_v29  ;;  %v12487_v29 = vld [vmem:[%s17313_s1 + $0x534] ss:$8 sps:$4 sm:$0xff]  }
 0x16d   : > { %1857 = vmatprep.subr.bf16.mxu0 %v12415_v31  ;;  %v12485_v31 = vld [vmem:[%s17313_s1 + $0x530] ss:$8 sps:$4 sm:$0xff]  }
 0x170   : > { %1858 = vmatpush1.bf16.msra.mxu0 %v12413_v32  ;;  %v12490_v32 = vld [vmem:[%s17313_s1 + $0x544] ss:$8 sps:$4 sm:$0xff]  }
 0x171   : > { %1986 = vmatprep.subr.bf16.mxu0 %v12418_v33  ;;  %v12488_v33 = vld [vmem:[%s17313_s1 + $0x540] ss:$8 sps:$4 sm:$0xff]  }
 0x173   : > { %9860 = vmatmul.mubr.msk.bf16.vlgmr.msra.gmra.mrb[0].mxu0 %vm576_vm0, %v1778_v35  ;;  %v12491_v35 = vld [vmem:[%s17313_s1 + $0x550] ss:$8 sps:$4 sm:$0xff]  }
 0x174   : > { %1987 = vmatpush1.bf16.msra.mxu0 %v12416_v34  ;;  %1889 = vmatprep.mubr.bf16.mxu0 %v17342_v5  ;;  %v12493_v34 = vld [vmem:[%s17313_s1 + $0x554] ss:$8 sps:$4 sm:$0xff]  }
 0x175   : > { %1988 = vmatprep.subr.bf16.mxu0 %v12421_v36  ;;  %v12496_v36 = vld [vmem:[%s17313_s1 + $0x564] ss:$8 sps:$4 sm:$0xff]  }
 0x178   : > { %1989 = vmatpush1.bf16.msra.mxu0 %v12419_v37  ;;  %v12494_v37 = vld [vmem:[%s17313_s1 + $0x560] ss:$8 sps:$4 sm:$0xff]  }
 0x179   : > { %1990 = vmatprep.subr.bf16.mxu0 %v12424_v38  ;;  %v14295_v38 = vpop.permute.xlu0 %2339 }
 0x17b   : > { %9861 = vmatmul.mubr.msk.bf16.gmra.mrb[4].mxu0 %vm576_vm0, %v14109_v39 }
 0x17c   : > { %1991 = vmatpush1.bf16.msra.mxu0 %v12422_v20  ;;  %2018 = vmatprep.mubr.bf16.mxu0 %v17342_v5  ;;  %v12497_v20 = vld [vmem:[%s17313_s1 + $0x570] ss:$8 sps:$4 sm:$0xff]  }
 0x17d   : > { %1992 = vmatprep.subr.bf16.mxu0 %v12427_v40  ;;  %v12502_v40 = vld [vmem:[%s17313_s1 + $0x584] ss:$8 sps:$4 sm:$0xff]  }
 0x180   : > { %1993 = vmatpush1.bf16.msra.mxu0 %v12425_v41  ;;  %v12500_v41 = vld [vmem:[%s17313_s1 + $0x580] ss:$8 sps:$4 sm:$0xff]  }
 0x181   : > { %1994 = vmatprep.subr.bf16.mxu0 %v12430_v42  ;;  %v12505_v42 = vld [vmem:[%s17313_s1 + $0x594] ss:$8 sps:$4 sm:$0xff]  }
 0x184   : > { %1995 = vmatpush1.bf16.msra.mxu0 %v12428_v43  ;;  %v12503_v43 = vld [vmem:[%s17313_s1 + $0x590] ss:$8 sps:$4 sm:$0xff]  }
 0x185   : > { %1996 = vmatprep.subr.bf16.mxu0 %v12433_v44  ;;  %v12508_v44 = vld [vmem:[%s17313_s1 + $0x5a4] ss:$8 sps:$4 sm:$0xff]  }
 0x188   : > { %1997 = vmatpush1.bf16.msra.mxu0 %v12431_v47  ;;  %v12506_v47 = vld [vmem:[%s17313_s1 + $0x5a0] ss:$8 sps:$4 sm:$0xff]  }
 0x189   : > { %2126 = vmatprep.subr.bf16.mxu0 %v12436_v48  ;;  %v12511_v48 = vld [vmem:[%s17313_s1 + $0x5b4] ss:$8 sps:$4 sm:$0xff]  }
 0x18b   : > { %9887 = vmatmul.mubr.msk.bf16.vlgmr.msra.gmra.mrb[0].mxu0 %vm576_vm0, %v13623_v13  ;;  %v12445_v13 = vld [vmem:[%s17313_s1 + $0x454] ss:$8 sps:$4 sm:$0xff]  }
 0x18c   : > { %2127 = vmatpush1.bf16.msra.mxu0 %v12434_v49  ;;  %2028 = vmatprep.mubr.bf16.mxu0 %v17342_v5  ;;  %v12509_v49 = vld [vmem:[%s17313_s1 + $0x5b0] ss:$8 sps:$4 sm:$0xff]  }
 0x18d   : > { %2128 = vmatprep.subr.bf16.mxu0 %v12439_v50  ;;  %v12514_v50 = vld [vmem:[%s17313_s1 + $0x5c4] ss:$8 sps:$4 sm:$0xff]  }
 0x190   : > { %2129 = vmatpush1.bf16.msra.mxu0 %v12437_v51  ;;  %v12512_v51 = vld [vmem:[%s17313_s1 + $0x5c0] ss:$8 sps:$4 sm:$0xff]  }
 0x191   : > { %2130 = vmatprep.subr.bf16.mxu0 %v12442_v52  ;;  %v14339_v52 = vpop.permute.xlu1 %2478 }
 0x193   : > { %9888 = vmatmul.mubr.msk.bf16.gmra.mrb[4].mxu0 %vm576_vm0, %v13755_v46 }
 0x194   : > { %2131 = vmatpush1.bf16.msra.mxu0 %v12440_v53  ;;  %2158 = vmatprep.mubr.bf16.mxu0 %v17342_v5  ;;  %v12515_v53 = vld [vmem:[%s17313_s1 + $0x5d0] ss:$8 sps:$4 sm:$0xff]  }
 0x195   : > { %2132 = vmatprep.subr.bf16.mxu0 %v12445_v13  ;;  %v12520_v13 = vld [vmem:[%s17313_s1 + $0x5e4] ss:$8 sps:$4 sm:$0xff]  }
 0x198   : > { %2133 = vmatpush1.bf16.msra.mxu0 %v12443_v55  ;;  %v12518_v55 = vld [vmem:[%s17313_s1 + $0x5e0] ss:$8 sps:$4 sm:$0xff]  }
 0x199   : > { %2134 = vmatprep.subr.bf16.mxu0 %v12448_v56  ;;  %v12523_v56 = vld [vmem:[%s17313_s1 + $0x5f4] ss:$8 sps:$4 sm:$0xff]  }
 0x19c   : > { %2135 = vmatpush1.bf16.msra.mxu0 %v12446_v59  ;;  %v12521_v59 = vld [vmem:[%s17313_s1 + $0x5f0] ss:$8 sps:$4 sm:$0xff]  }
 0x19d   : > { %2136 = vmatprep.subr.bf16.mxu0 %v12451_v61  ;;  %v12526_v61 = vld [vmem:[%s17313_s1 + $0x604] ss:$8 sps:$4 sm:$0xff]  }
 0x1a0   : > { %2137 = vmatpush1.bf16.msra.mxu0 %v12449_v62  ;;  %v12524_v62 = vld [vmem:[%s17313_s1 + $0x600] ss:$8 sps:$4 sm:$0xff]  }
 0x1a1   : > { %2265 = vmatprep.subr.bf16.mxu0 %v12454_v45  ;;  %v12529_v45 = vld [vmem:[%s17313_s1 + $0x614] ss:$8 sps:$4 sm:$0xff]  }
 0x1a3   : > { %9913 = vmatmul.mubr.msk.bf16.vlgmr.msra.gmra.mrb[0].mxu0 %vm576_vm0, %v13698_v30  ;;  %v12463_v30 = vld [vmem:[%s17313_s1 + $0x4b4] ss:$8 sps:$4 sm:$0xff]  }
 0x1a4   : > { %2266 = vmatpush1.bf16.msra.mxu0 %v12452_v63  ;;  %2168 = vmatprep.mubr.bf16.mxu0 %v17342_v5  ;;  %v12527_v63 = vld [vmem:[%s17313_s1 + $0x610] ss:$8 sps:$4 sm:$0xff]  }
 0x1a5   : > { %2267 = vmatprep.subr.bf16.mxu0 %v12457_v0  ;;  %v12532_v0 = vld [vmem:[%s17313_s1 + $0x624] ss:$8 sps:$4 sm:$0xff]  }
 0x1a8   : > { %2268 = vmatpush1.bf16.msra.mxu0 %v12455_v1  ;;  %v12530_v1 = vld [vmem:[%s17313_s1 + $0x620] ss:$8 sps:$4 sm:$0xff]  }
 0x1a9   : > { %2269 = vmatprep.subr.bf16.mxu0 %v12460_v2  ;;  %v12533_v2 = vld [vmem:[%s17313_s1 + $0x630] ss:$8 sps:$4 sm:$0xff]  }
 0x1ab   : > { %9914 = vmatmul.mubr.msk.bf16.gmra.mrb[4].mxu0 %vm576_vm0, %v14195_v4 }
 0x1ac   : > { %2270 = vmatpush1.bf16.msra.mxu0 %v12458_v3  ;;  %2297 = vmatprep.mubr.bf16.mxu0 %v17342_v5  ;;  %v12538_v3 = vld [vmem:[%s17313_s1 + $0x644] ss:$8 sps:$4 sm:$0xff]  }
 0x1ad   : > { %2271 = vmatprep.subr.bf16.mxu0 %v12463_v30  ;;  %v12536_v30 = vld [vmem:[%s17313_s1 + $0x640] ss:$8 sps:$4 sm:$0xff]  }
 0x1b0   : > { %2272 = vmatpush1.bf16.msra.mxu0 %v12461_v6  ;;  %v12539_v6 = vld [vmem:[%s17313_s1 + $0x650] ss:$8 sps:$4 sm:$0xff]  }
 0x1b1   : > { %2273 = vmatprep.subr.bf16.mxu0 %v12466_v8  ;;  %v12544_v8 = vld [vmem:[%s17313_s1 + $0x664] ss:$8 sps:$4 sm:$0xff]  }
 0x1b4   : > { %2274 = vmatpush1.bf16.msra.mxu0 %v12464_v12  ;;  %v12547_v12 = vld [vmem:[%s17313_s1 + $0x674] ss:$8 sps:$4 sm:$0xff]  }
 0x1b5   : > { %2275 = vmatprep.subr.bf16.mxu0 %v12469_v14  ;;  %v12545_v14 = vld [vmem:[%s17313_s1 + $0x670] ss:$8 sps:$4 sm:$0xff]  }
 0x1b8   : > { %2276 = vmatpush1.bf16.msra.mxu0 %v12467_v57  ;;  %v12550_v57 = vld [vmem:[%s17313_s1 + $0x684] ss:$8 sps:$4 sm:$0xff]  }
 0x1b9   : > { %2404 = vmatprep.subr.bf16.mxu0 %v12472_v15  ;;  %v12548_v15 = vld [vmem:[%s17313_s1 + $0x680] ss:$8 sps:$4 sm:$0xff]  }
 0x1bb   : > { %9939 = vmatmul.mubr.msk.bf16.vlgmr.msra.gmra.mrb[0].mxu0 %vm576_vm0, %v13797_v58  ;;  %v12481_v58 = vld [vmem:[%s17313_s1 + $0x514] ss:$8 sps:$4 sm:$0xff]  }
 0x1bc   : > { %2405 = vmatpush1.bf16.msra.mxu0 %v12470_v16  ;;  %2307 = vmatprep.mubr.bf16.mxu0 %v17342_v5  ;;  %v2758_v16 = vpop.permute.xlu0 %2757 }
 0x1bd   : > { %2406 = vmatprep.subr.bf16.mxu0 %v12475_v17  ;;  %v12551_v17 = vld [vmem:[%s17313_s1 + $0x690] ss:$8 sps:$4 sm:$0xff]  }
 0x1c0   : > { %2407 = vmatpush1.bf16.msra.mxu0 %v12473_v18  ;;  %v12556_v18 = vld [vmem:[%s17313_s1 + $0x6a4] ss:$8 sps:$4 sm:$0xff]  }
 0x1c1   : > { %2408 = vmatprep.subr.bf16.mxu0 %v12478_v19  ;;  %v12554_v19 = vld [vmem:[%s17313_s1 + $0x6a0] ss:$8 sps:$4 sm:$0xff]  }
 0x1c3   : > { %9940 = vmatmul.mubr.msk.bf16.gmra.mrb[4].mxu0 %vm576_vm0, %v14251_v23 }
 0x1c4   : > { %2409 = vmatpush1.bf16.msra.mxu0 %v12476_v21  ;;  %2436 = vmatprep.mubr.bf16.mxu0 %v17342_v5  ;;  %v12559_v21 = vld [vmem:[%s17313_s1 + $0x6b4] ss:$8 sps:$4 sm:$0xff]  }
 0x1c5   : > { %2410 = vmatprep.subr.bf16.mxu0 %v12481_v58  ;;  %v12557_v58 = vld [vmem:[%s17313_s1 + $0x6b0] ss:$8 sps:$4 sm:$0xff]  }
 0x1c8   : > { %2411 = vmatpush1.bf16.msra.mxu0 %v12479_v24  ;;  %v12562_v24 = vld [vmem:[%s17313_s1 + $0x6c4] ss:$8 sps:$4 sm:$0xff]  }
 0x1c9   : > { %2412 = vmatprep.subr.bf16.mxu0 %v12484_v27  ;;  %v12560_v27 = vld [vmem:[%s17313_s1 + $0x6c0] ss:$8 sps:$4 sm:$0xff]  }
 0x1cc   : > { %2413 = vmatpush1.bf16.msra.mxu0 %v12482_v28  ;;  %v12565_v28 = vld [vmem:[%s17313_s1 + $0x6d4] ss:$8 sps:$4 sm:$0xff]  }
 0x1cd   : > { %2414 = vmatprep.subr.bf16.mxu0 %v12487_v29  ;;  %v12563_v29 = vld [vmem:[%s17313_s1 + $0x6d0] ss:$8 sps:$4 sm:$0xff]  }
 0x1d0   : > { %2415 = vmatpush1.bf16.msra.mxu0 %v12485_v31  ;;  %v12568_v31 = vld [vmem:[%s17313_s1 + $0x6e4] ss:$8 sps:$4 sm:$0xff]  }
 0x1d1   : > { %2543 = vmatprep.subr.bf16.mxu0 %v12490_v32  ;;  %v12566_v32 = vld [vmem:[%s17313_s1 + $0x6e0] ss:$8 sps:$4 sm:$0xff]  }
 0x1d3   : > { %9965 = vmatmul.mubr.msk.bf16.vlgmr.msra.gmra.mrb[0].mxu0 %vm576_vm0, %v13840_v9  ;;  %v12499_v9 = vld [vmem:[%s17313_s1 + $0x574] ss:$8 sps:$4 sm:$0xff]  }
 0x1d4   : > { %2544 = vmatpush1.bf16.msra.mxu0 %v12488_v33  ;;  %2446 = vmatprep.mubr.bf16.mxu0 %v17342_v5  ;;  %v2897_v33 = vpop.permute.xlu1 %2896 }
 0x1d5   : > { %2545 = vmatprep.subr.bf16.mxu0 %v12493_v34  ;;  %v12569_v34 = vld [vmem:[%s17313_s1 + $0x6f0] ss:$8 sps:$4 sm:$0xff]  }
 0x1d8   : > { %2546 = vmatpush1.bf16.msra.mxu0 %v12491_v35  ;;  %v12574_v35 = vld [vmem:[%s17313_s1 + $0x704] ss:$8 sps:$4 sm:$0xff]  }
 0x1d9   : > { %2547 = vmatprep.subr.bf16.mxu0 %v12496_v36  ;;  %v12572_v36 = vld [vmem:[%s17313_s1 + $0x700] ss:$8 sps:$4 sm:$0xff]  }
 0x1db   : > { %9966 = vmatmul.mubr.msk.bf16.gmra.mrb[4].mxu0 %vm576_vm0, %v14295_v38 }
 0x1dc   : > { %2548 = vmatpush1.bf16.msra.mxu0 %v12494_v37  ;;  %2575 = vmatprep.mubr.bf16.mxu0 %v17342_v5  ;;  %v12577_v37 = vld [vmem:[%s17313_s1 + $0x714] ss:$8 sps:$4 sm:$0xff]  }
 0x1dd   : > { %2549 = vmatprep.subr.bf16.mxu0 %v12499_v9  ;;  %v12575_v9 = vld [vmem:[%s17313_s1 + $0x710] ss:$8 sps:$4 sm:$0xff]  }
 0x1e0   : > { %2550 = vmatpush1.bf16.msra.mxu0 %v12497_v20  ;;  %v12580_v20 = vld [vmem:[%s17313_s1 + $0x724] ss:$8 sps:$4 sm:$0xff]  }
 0x1e1   : > { %2551 = vmatprep.subr.bf16.mxu0 %v12502_v40  ;;  %v12578_v40 = vld [vmem:[%s17313_s1 + $0x720] ss:$8 sps:$4 sm:$0xff]  }
 0x1e4   : > { %2552 = vmatpush1.bf16.msra.mxu0 %v12500_v41  ;;  %v12583_v41 = vld [vmem:[%s17313_s1 + $0x734] ss:$8 sps:$4 sm:$0xff]  }
 0x1e5   : > { %2553 = vmatprep.subr.bf16.mxu0 %v12505_v42  ;;  %v12581_v42 = vld [vmem:[%s17313_s1 + $0x730] ss:$8 sps:$4 sm:$0xff]  }
 0x1e8   : > { %2554 = vmatpush1.bf16.msra.mxu0 %v12503_v43  ;;  %v12586_v43 = vld [vmem:[%s17313_s1 + $0x744] ss:$8 sps:$4 sm:$0xff]  }
 0x1e9   : > { %2682 = vmatprep.subr.bf16.mxu0 %v12508_v44  ;;  %v12584_v44 = vld [vmem:[%s17313_s1 + $0x740] ss:$8 sps:$4 sm:$0xff]  }
 0x1eb   : > { %9991 = vmatmul.mubr.msk.bf16.vlgmr.msra.gmra.mrb[0].mxu0 %vm576_vm0, %v13883_v26  ;;  %v12517_v26 = vld [vmem:[%s17313_s1 + $0x5d4] ss:$8 sps:$4 sm:$0xff]  }
 0x1ec   : > { %2683 = vmatpush1.bf16.msra.mxu0 %v12506_v47  ;;  %2585 = vmatprep.mubr.bf16.mxu0 %v17342_v5  ;;  %v3036_v47 = vpop.permute.xlu0 %3035 }
 0x1ed   : > { %2684 = vmatprep.subr.bf16.mxu0 %v12511_v48  ;;  %v12587_v48 = vld [vmem:[%s17313_s1 + $0x750] ss:$8 sps:$4 sm:$0xff]  }
 0x1f0   : > { %2685 = vmatpush1.bf16.msra.mxu0 %v12509_v49  ;;  %v12592_v49 = vld [vmem:[%s17313_s1 + $0x764] ss:$8 sps:$4 sm:$0xff]  }
 0x1f1   : > { %2686 = vmatprep.subr.bf16.mxu0 %v12514_v50  ;;  %v12590_v50 = vld [vmem:[%s17313_s1 + $0x760] ss:$8 sps:$4 sm:$0xff]  }
 0x1f3   : > { %9992 = vmatmul.mubr.msk.bf16.gmra.mrb[4].mxu0 %vm576_vm0, %v14339_v52 }
 0x1f4   : > { %2687 = vmatpush1.bf16.msra.mxu0 %v12512_v51  ;;  %2714 = vmatprep.mubr.bf16.mxu0 %v17342_v5  ;;  %v12595_v51 = vld [vmem:[%s17313_s1 + $0x774] ss:$8 sps:$4 sm:$0xff]  }
 0x1f5   : > { %2688 = vmatprep.subr.bf16.mxu0 %v12517_v26  ;;  %v12593_v26 = vld [vmem:[%s17313_s1 + $0x770] ss:$8 sps:$4 sm:$0xff]  }
 0x1f8   : > { %2689 = vmatpush1.bf16.msra.mxu0 %v12515_v53  ;;  %v12598_v53 = vld [vmem:[%s17313_s1 + $0x784] ss:$8 sps:$4 sm:$0xff]  }
 0x1f9   : > { %2690 = vmatprep.subr.bf16.mxu0 %v12520_v13  ;;  %v12596_v13 = vld [vmem:[%s17313_s1 + $0x780] ss:$8 sps:$4 sm:$0xff]  }
 0x1fc   : > { %2691 = vmatpush1.bf16.msra.mxu0 %v12518_v55  ;;  %v12601_v55 = vld [vmem:[%s17313_s1 + $0x794] ss:$8 sps:$4 sm:$0xff]  }
 0x1fd   : > { %2692 = vmatprep.subr.bf16.mxu0 %v12523_v56  ;;  %v4164_v56 = vld [vmem:[%s17318_s6 + $0x8] sm:$0xff] }
 0x200   : > { %2693 = vmatpush1.bf16.msra.mxu0 %v12521_v59  ;;  %v4166_v59 = vld [vmem:[%s17318_s6 + $0x18] sm:$0xff] }
 0x201   : > { %2822 = vmatprep.subr.bf16.mxu0 %v12526_v61  ;;  %v12599_v61 = vld [vmem:[%s17313_s1 + $0x790] ss:$8 sps:$4 sm:$0xff]  }
 0x203   : > { %10018 = vmatmul.mubr.msk.bf16.vlgmr.msra.gmra.mrb[0].mxu0 %vm576_vm0, %v13668_v22  ;;  %v12535_v22 = vld [vmem:[%s17313_s1 + $0x634] ss:$8 sps:$4 sm:$0xff]  }
 0x204   : > { %2823 = vmatpush1.bf16.msra.mxu0 %v12524_v62  ;;  %2724 = vmatprep.mubr.bf16.mxu0 %v17342_v5  ;;  %v14548_v62 = vpack.c.bf16 %v4166_v59, %v4164_v56  ;;  %v12617_v56 = vld [vmem:[%s17313_s1 + $0x7f0] ss:$8 sps:$4 sm:$0xff]  }
 0x205   : > { %2824 = vmatprep.subr.bf16.mxu0 %v12529_v45  ;;  %v4165_v45 = vld [vmem:[%s17318_s6 + $0x10] sm:$0xff] }
 0x206   : > { %11609 = vmatprep.subr.bf16.mxu1 %v14548_v62 }
 0x208   : > { %2825 = vmatpush1.bf16.msra.mxu0 %v12527_v63  ;;  %v12604_v63 = vld [vmem:[%s17313_s1 + $0x7a4] ss:$8 sps:$4 sm:$0xff]  }
 0x209   : > { %2826 = vmatprep.subr.bf16.mxu0 %v12532_v0 }
 0x20b   : > { %10019 = vmatmul.mubr.msk.bf16.gmra.mrb[4].mxu0 %vm576_vm0, %v13987_v60  ;;  %v12541_v60 = vld [vmem:[%s17313_s1 + $0x654] ss:$8 sps:$4 sm:$0xff]  }
 0x20c   : > { %2827 = vmatpush1.bf16.msra.mxu0 %v12530_v1  ;;  %2854 = vmatprep.mubr.bf16.mxu0 %v17342_v5  ;;  %v4168_v1 = vld [vmem:[%s17318_s6 + $0x28] sm:$0xff] }
 0x20d   : > { %2828 = vmatprep.subr.bf16.mxu0 %v12535_v22  ;;  %v4170_v22 = vld [vmem:[%s17318_s6 + $0x38] sm:$0xff] }
 0x210   : > { %2829 = vmatpush1.bf16.msra.mxu0 %v12533_v2  ;;  %v14569_v2 = vpack.c.bf16 %v4170_v22, %v4168_v1  ;;  %v12620_v22 = vld [vmem:[%s17313_s1 + $0x800] ss:$8 sps:$4 sm:$0xff]  }
 0x211   : > { %2830 = vmatprep.subr.bf16.mxu0 %v12538_v3  ;;  %v4167_v3 = vld [vmem:[%s17318_s6 + $0x20] sm:$0xff] }
 0x214   : > { %2831 = vmatpush1.bf16.msra.mxu0 %v12536_v30  ;;  %v4169_v30 = vld [vmem:[%s17318_s6 + $0x30] sm:$0xff] }
 0x215   : > { %2832 = vmatprep.subr.bf16.mxu0 %v12541_v60  ;;  %v12602_v60 = vld [vmem:[%s17313_s1 + $0x7a0] ss:$8 sps:$4 sm:$0xff]  }
 0x218   : > { %2833 = vmatpush1.bf16.msra.mxu0 %v12539_v6  ;;  %v3175_v6 = vpop.permute.xlu1 %3174 }
 0x219   : > { %2961 = vmatprep.subr.bf16.mxu0 %v12544_v8  ;;  %v14580_v8 = vpack.c.bf16 %v4169_v30, %v4167_v3  ;;  %v4195_v3 = vld [vmem:[%s17318_s6 + $0x100] sm:$0xff]  ;;  %v4197_v30 = vld [vmem:[%s17318_s6 + $0x110] sm:$0xff] }
 0x21b   : > { %10044 = vmatmul.mubr.msk.bf16.vlgmr.msra.gmra.mrb[0].mxu0 %vm576_vm0, %v13968_v54  ;;  %v12553_v54 = vld [vmem:[%s17313_s1 + $0x694] ss:$8 sps:$4 sm:$0xff]  }
 0x21c   : > { %2962 = vmatpush1.bf16.msra.mxu0 %v12542_v10  ;;  %2864 = vmatprep.mubr.bf16.mxu0 %v17342_v5  ;;  %v4172_v10 = vld [vmem:[%s17318_s6 + $0x48] sm:$0xff] }
 0x21d   : > { %2963 = vmatprep.subr.bf16.mxu0 %v12547_v12  ;;  %v4174_v12 = vld [vmem:[%s17318_s6 + $0x58] sm:$0xff] }
 0x220   : > { %2964 = vmatpush1.bf16.msra.mxu0 %v12545_v14  ;;  %v12607_v14 = vld [vmem:[%s17313_s1 + $0x7b4] ss:$8 sps:$4 sm:$0xff]  }
 0x221   : > { %2965 = vmatprep.subr.bf16.mxu0 %v12550_v57  ;;  %v14592_v57 = vpack.c.bf16 %v4174_v12, %v4172_v10  ;;  %v4200_v10 = vld [vmem:[%s17318_s6 + $0x128] sm:$0xff]  ;;  %v4202_v12 = vld [vmem:[%s17318_s6 + $0x138] sm:$0xff] }
 0x223   : > { %10045 = vmatmul.mubr.msk.bf16.gmra.mrb[4].mxu0 %vm576_vm0, %v2758_v16  ;;  %v4173_v16 = vld [vmem:[%s17318_s6 + $0x50] sm:$0xff] }
 0x224   : > { %2966 = vmatpush1.bf16.msra.mxu0 %v12548_v15  ;;  %2993 = vmatprep.mubr.bf16.mxu0 %v17342_v5  ;;  %v4171_v15 = vld [vmem:[%s17318_s6 + $0x40] sm:$0xff] }
 0x225   : > { %2967 = vmatprep.subr.bf16.mxu0 %v12553_v54  ;;  %v14602_v54 = vpack.c.bf16 %v4173_v16, %v4171_v15  ;;  %v12623_v15 = vld [vmem:[%s17313_s1 + $0x810] ss:$8 sps:$4 sm:$0xff]   ;;  %v14764_v16 = vpack.c.bf16 %v4202_v12, %v4200_v10  ;;  %v12643_v10 = vld [vmem:[%s17313_s1 + $0x874] ss:$8 sps:$4 sm:$0xff]  }
 0x226   : > { %v12641_v12 = vld [vmem:[%s17313_s1 + $0x870] ss:$8 sps:$4 sm:$0xff]  }
 0x227   : > { %17392 = vst [vmem:[#allocation24_spill] sm:$0xff] %v14764_v16 }
 0x228   : > { %2968 = vmatpush1.bf16.msra.mxu0 %v12551_v17  ;;  %v4176_v17 = vld [vmem:[%s17318_s6 + $0x68] sm:$0xff] }
 0x229   : > { %2969 = vmatprep.subr.bf16.mxu0 %v12556_v18  ;;  %v4178_v18 = vld [vmem:[%s17318_s6 + $0x78] sm:$0xff] }
 0x22c   : > { %2970 = vmatpush1.bf16.msra.mxu0 %v12554_v19  ;;  %v12605_v19 = vld [vmem:[%s17313_s1 + $0x7b0] ss:$8 sps:$4 sm:$0xff]  }
 0x22d   : > { %2971 = vmatprep.subr.bf16.mxu0 %v12559_v21  ;;  %v14614_v21 = vpack.c.bf16 %v4178_v18, %v4176_v17  ;;  %v4199_v17 = vld [vmem:[%s17318_s6 + $0x120] sm:$0xff] }
 0x22e   : > { %v12628_v18 = vld [vmem:[%s17313_s1 + $0x824] ss:$8 sps:$4 sm:$0xff]  }
 0x230   : > { %2972 = vmatpush1.bf16.msra.mxu0 %v12557_v58  ;;  %v4175_v58 = vld [vmem:[%s17318_s6 + $0x60] sm:$0xff] }
 0x231   : > { %3100 = vmatprep.subr.bf16.mxu0 %v12562_v24  ;;  %v4177_v24 = vld [vmem:[%s17318_s6 + $0x70] sm:$0xff] }
 0x233   : > { %10070 = vmatmul.mubr.msk.bf16.vlgmr.msra.gmra.mrb[0].mxu0 %vm576_vm0, %v14026_v7  ;;  %v12571_v7 = vld [vmem:[%s17313_s1 + $0x6f4] ss:$8 sps:$4 sm:$0xff]  }
 0x234   : > { %3101 = vmatpush1.bf16.msra.mxu0 %v12560_v27  ;;  %3003 = vmatprep.mubr.bf16.mxu0 %v17342_v5  ;;  %v12610_v27 = vld [vmem:[%s17313_s1 + $0x7c4] ss:$8 sps:$4 sm:$0xff]  }
 0x235   : > { %3102 = vmatprep.subr.bf16.mxu0 %v12565_v28  ;;  %v4180_v28 = vld [vmem:[%s17318_s6 + $0x88] sm:$0xff] }
 0x238   : > { %3103 = vmatpush1.bf16.msra.mxu0 %v12563_v29  ;;  %v4182_v29 = vld [vmem:[%s17318_s6 + $0x98] sm:$0xff] }
 0x239   : > { %3104 = vmatprep.subr.bf16.mxu0 %v12568_v31  ;;  %v14633_v31 = vpack.c.bf16 %v4177_v24, %v4175_v58  ;;  %v4206_v58 = vld [vmem:[%s17318_s6 + $0x158] sm:$0xff] }
 0x23b   : > { %10071 = vmatmul.mubr.msk.bf16.gmra.mrb[4].mxu0 %vm576_vm0, %v2897_v33  ;;  %v14639_v33 = vpack.c.bf16 %v4182_v29, %v4180_v28  ;;  %v4203_v29 = vld [vmem:[%s17318_s6 + $0x140] sm:$0xff] }
 0x23c   : > { %3105 = vmatpush1.bf16.msra.mxu0 %v12566_v32  ;;  %3132 = vmatprep.mubr.bf16.mxu0 %v17342_v5  ;;  %v12608_v32 = vld [vmem:[%s17313_s1 + $0x7c0] ss:$8 sps:$4 sm:$0xff]  }
 0x23d   : > { %3106 = vmatprep.subr.bf16.mxu0 %v12571_v7  ;;  %v4179_v7 = vld [vmem:[%s17318_s6 + $0x80] sm:$0xff] }
 0x240   : > { %3107 = vmatpush1.bf16.msra.mxu0 %v12569_v34  ;;  %v4181_v34 = vld [vmem:[%s17318_s6 + $0x90] sm:$0xff] }
 0x241   : > { %3108 = vmatprep.subr.bf16.mxu0 %v12574_v35  ;;  %v12613_v35 = vld [vmem:[%s17313_s1 + $0x7d4] ss:$8 sps:$4 sm:$0xff]  }
 0x244   : > { %3109 = vmatpush1.bf16.msra.mxu0 %v12572_v36  ;;  %v4184_v36 = vld [vmem:[%s17318_s6 + $0xa8] sm:$0xff] }
 0x245   : > { %3110 = vmatprep.subr.bf16.mxu0 %v12577_v37  ;;  %v4186_v37 = vld [vmem:[%s17318_s6 + $0xb8] sm:$0xff] }
 0x248   : > { %3111 = vmatpush1.bf16.msra.mxu0 %v12575_v9  ;;  %v14657_v9 = vpack.c.bf16 %v4181_v34, %v4179_v7  ;;  %v12631_v7 = vld [vmem:[%s17313_s1 + $0x834] ss:$8 sps:$4 sm:$0xff]   ;;  %v4208_v34 = vld [vmem:[%s17318_s6 + $0x168] sm:$0xff] }
 0x249   : > { %3239 = vmatprep.subr.bf16.mxu0 %v12580_v20  ;;  %v12611_v20 = vld [vmem:[%s17313_s1 + $0x7d0] ss:$8 sps:$4 sm:$0xff]  }
 0x24b   : > { %10096 = vmatmul.mubr.msk.bf16.vlgmr.msra.gmra.mrb[0].mxu0 %vm576_vm0, %v14069_v25  ;;  %v12589_v25 = vld [vmem:[%s17313_s1 + $0x754] ss:$8 sps:$4 sm:$0xff]  }
 0x24c   : > { %3240 = vmatpush1.bf16.msra.mxu0 %v12578_v40  ;;  %3142 = vmatprep.mubr.bf16.mxu0 %v17342_v5  ;;  %v14663_v40 = vpack.c.bf16 %v4186_v37, %v4184_v36  ;;  %v12629_v37 = vld [vmem:[%s17313_s1 + $0x830] ss:$8 sps:$4 sm:$0xff]  }
 0x24d   : > { %3241 = vmatprep.subr.bf16.mxu0 %v12583_v41  ;;  %v4183_v41 = vld [vmem:[%s17318_s6 + $0xa0] sm:$0xff] }
 0x24e   : > { %17384 = vst [vmem:[#allocation16_spill] sm:$0xff] %v14663_v40 }
 0x250   : > { %3242 = vmatpush1.bf16.msra.mxu0 %v12581_v42  ;;  %v4185_v42 = vld [vmem:[%s17318_s6 + $0xb0] sm:$0xff] }
 0x251   : > { %3243 = vmatprep.subr.bf16.mxu0 %v12586_v43  ;;  %v12616_v43 = vld [vmem:[%s17313_s1 + $0x7e4] ss:$8 sps:$4 sm:$0xff]  }
 0x253   : > { %10097 = vmatmul.mubr.msk.bf16.gmra.mrb[4].mxu0 %vm576_vm0, %v3036_v47  ;;  %v4190_v47 = vld [vmem:[%s17318_s6 + $0xd8] sm:$0xff] }
 0x254   : > { %3244 = vmatpush1.bf16.msra.mxu0 %v12584_v44  ;;  %3271 = vmatprep.mubr.bf16.mxu0 %v17342_v5  ;;  %v4188_v44 = vld [vmem:[%s17318_s6 + $0xc8] sm:$0xff] }
 0x255   : > { %3245 = vmatprep.subr.bf16.mxu0 %v12589_v25  ;;  %v14681_v25 = vpack.c.bf16 %v4185_v42, %v4183_v41  ;;  %v4207_v41 = vld [vmem:[%s17318_s6 + $0x160] sm:$0xff]  ;;  %v4209_v42 = vld [vmem:[%s17318_s6 + $0x170] sm:$0xff] }
 0x257   : > { %17385 = vst [vmem:[#allocation17_spill] sm:$0xff] %v14681_v25 }
 0x258   : > { %3246 = vmatpush1.bf16.msra.mxu0 %v12587_v48  ;;  %v12614_v48 = vld [vmem:[%s17313_s1 + $0x7e0] ss:$8 sps:$4 sm:$0xff]  }
 0x259   : > { %3247 = vmatprep.subr.bf16.mxu0 %v12592_v49  ;;  %v4187_v49 = vld [vmem:[%s17318_s6 + $0xc0] sm:$0xff] }
 0x25c   : > { %3248 = vmatpush1.bf16.msra.mxu0 %v12590_v50  ;;  %v4189_v50 = vld [vmem:[%s17318_s6 + $0xd0] sm:$0xff] }
 0x25d   : > { %3249 = vmatprep.subr.bf16.mxu0 %v12595_v51  ;;  %v12619_v51 = vld [vmem:[%s17313_s1 + $0x7f4] ss:$8 sps:$4 sm:$0xff]  }
 0x260   : > { %3250 = vmatpush1.bf16.msra.mxu0 %v12593_v26  ;;  %v14696_v26 = vpack.c.bf16 %v4190_v47, %v4188_v44  ;;  %v4212_v44 = vld [vmem:[%s17318_s6 + $0x188] sm:$0xff]  ;;  %v4214_v47 = vld [vmem:[%s17318_s6 + $0x198] sm:$0xff] }
 0x261   : > { %3378 = vmatprep.subr.bf16.mxu0 %v12598_v53  ;;  %v4192_v53 = vld [vmem:[%s17318_s6 + $0xe8] sm:$0xff] }
 0x262   : > { %17386 = vst [vmem:[#allocation18_spill] sm:$0xff] %v14696_v26 }
 0x263   : > { %10122 = vmatmul.mubr.msk.bf16.vlgmr.msra.gmra.mrb[0].mxu0 %vm576_vm0, %v14109_v39  ;;  %v4163_v39 = vld [vmem:[%s17318_s6] sm:$0xff] }
 0x264   : > { %3379 = vmatpush1.bf16.msra.mxu0 %v12596_v13  ;;  %3281 = vmatprep.mubr.bf16.mxu0 %v17342_v5  ;;  %v14559_v0 = vpack.c.bf16 %v4165_v45, %v4163_v39  ;;  %v4194_v13 = vld [vmem:[%s17318_s6 + $0xf8] sm:$0xff]  ;;  %v12622_v39 = vld [vmem:[%s17313_s1 + $0x804] ss:$8 sps:$4 sm:$0xff]  }
 0x265   : > { %3380 = vmatprep.subr.bf16.mxu0 %v12601_v55  ;;  %v14707_v55 = vpack.c.bf16 %v4189_v50, %v4187_v49  ;;  %v14713_v59 = vpack.c.bf16 %v4194_v13, %v4192_v53  ;;  %v4196_v45 = vld [vmem:[%s17318_s6 + $0x108] sm:$0xff]  ;;  %v4211_v50 = vld [vmem:[%s17318_s6 + $0x180] sm:$0xff]  ;;  %v12637_v53 = vld [vmem:[%s17313_s1 + $0x854] ss:$8 sps:$4 sm:$0xff]   ;;  %v14846_v13 = vpack.c.bf16 %v4214_v47, %v4212_v44 }
 0x266   : > { %11611 = vmatpush1.bf16.msra.mxu1 %v14559_v0  ;;  %v12632_v49 = vld [vmem:[%s17313_s1 + $0x840] ss:$8 sps:$4 sm:$0xff]   ;;  %v12670_v44 = vld [vmem:[%s17313_s1 + $0x904] ss:$8 sps:$4 sm:$0xff]  }
 0x267   : > { %11613 = vmatprep.subr.bf16.mxu1 %v14569_v2  ;;  %17387 = vst [vmem:[#allocation19_spill] sm:$0xff] %v14707_v55  ;;  %17388 = vst [vmem:[#allocation20_spill] sm:$0xff] %v14713_v59  ;;  %v12668_v47 = vld [vmem:[%s17313_s1 + $0x900] ss:$8 sps:$4 sm:$0xff]  }
 0x268   : > { %3381 = vmatpush1.bf16.msra.mxu0 %v12599_v61  ;;  %v4191_v61 = vld [vmem:[%s17318_s6 + $0xe0] sm:$0xff]  ;;  %17398 = vst [vmem:[#allocation30_spill] sm:$0xff] %v14846_v13 }
 0x269   : > { %3382 = vmatprep.subr.bf16.mxu0 %v12604_v63  ;;  %v4198_v63 = vld [vmem:[%s17318_s6 + $0x118] sm:$0xff] }
 0x26a   : > { %11615 = vmatpush1.bf16.msra.mxu1 %v14580_v8 }
 0x26b   : > { %10123 = vmatmul.mubr.msk.bf16.gmra.mrb[4].mxu0 %vm576_vm0, %v3175_v6  ;;  %11617 = vmatprep.subr.bf16.mxu1 %v14592_v57  ;;  %v14747_v6 = vpack.c.bf16 %v4198_v63, %v4196_v45  ;;  %v4215_v63 = vld [vmem:[%s17318_s6 + $0x1a0] sm:$0xff] }
 0x26c   : > { %3383 = vmatpush1.bf16.msra.mxu0 %v12602_v60  ;;  %3410 = vmatprep.mubr.bf16.mxu0 %v17342_v5  ;;  %v12625_v60 = vld [vmem:[%s17313_s1 + $0x814] ss:$8 sps:$4 sm:$0xff]  }
 0x26d   : > { %3384 = vmatprep.subr.bf16.mxu0 %v12607_v14  ;;  %17390 = vst [vmem:[#allocation22_spill] sm:$0xff] %v14747_v6  ;;  %v14758_v14 = vpack.c.bf16 %v4197_v30, %v4195_v3  ;;  %v12638_v30 = vld [vmem:[%s17313_s1 + $0x860] ss:$8 sps:$4 sm:$0xff]  }
 0x26e   : > { %11619 = vmatpush1.bf16.msra.mxu1 %v14602_v54 }
 0x26f   : > { %11621 = vmatprep.subr.bf16.mxu1 %v14614_v21  ;;  %17391 = vst [vmem:[#allocation23_spill] sm:$0xff] %v14758_v14 }
 0x270   : > { %3385 = vmatpush1.bf16.msra.mxu0 %v12605_v19  ;;  %v4204_v19 = vld [vmem:[%s17318_s6 + $0x148] sm:$0xff] }
 0x271   : > { %3386 = vmatprep.subr.bf16.mxu0 %v12610_v27  ;;  %v12626_v27 = vld [vmem:[%s17313_s1 + $0x820] ss:$8 sps:$4 sm:$0xff]   ;;  %v14789_v28 = vpack.c.bf16 %v4206_v58, %v4204_v19  ;;  %v12652_v19 = vld [vmem:[%s17313_s1 + $0x8a4] ss:$8 sps:$4 sm:$0xff]  }
 0x272   : > { %11623 = vmatpush1.bf16.msra.mxu1 %v14633_v31  ;;  %v12650_v58 = vld [vmem:[%s17313_s1 + $0x8a0] ss:$8 sps:$4 sm:$0xff]  }
 0x273   : > { %11625 = vmatprep.subr.bf16.mxu1 %v14639_v33  ;;  %17394 = vst [vmem:[#allocation26_spill] sm:$0xff] %v14789_v28 }
 0x274   : > { %3387 = vmatpush1.bf16.msra.mxu0 %v12608_v32  ;;  %v4205_v32 = vld [vmem:[%s17318_s6 + $0x150] sm:$0xff] }
 0x275   : > { %3388 = vmatprep.subr.bf16.mxu0 %v12613_v35  ;;  %v4210_v35 = vld [vmem:[%s17318_s6 + $0x178] sm:$0xff]  ;;  %v14807_v36 = vpack.c.bf16 %v4205_v32, %v4203_v29  ;;  %v12658_v32 = vld [vmem:[%s17313_s1 + $0x8c4] ss:$8 sps:$4 sm:$0xff]  }
 0x276   : > { %11627 = vmatpush1.bf16.msra.mxu1 %v14657_v9  ;;  %v12653_v29 = vld [vmem:[%s17313_s1 + $0x8b0] ss:$8 sps:$4 sm:$0xff]  }
 0x277   : > { %11629 = vmatprep.subr.bf16.mxu1 %v14663_v40  ;;  %17395 = vst [vmem:[#allocation27_spill] sm:$0xff] %v14807_v36 }
 0x278   : > { %3389 = vmatpush1.bf16.msra.mxu0 %v12611_v20  ;;  %v14813_v20 = vpack.c.bf16 %v4210_v35, %v4208_v34  ;;  %v3593_v34 = vpop.permute.xlu1 %3592  ;;  %v12659_v35 = vld [vmem:[%s17313_s1 + $0x8d0] ss:$8 sps:$4 sm:$0xff]  }
 0x279   : > { %3518 = vmatprep.subr.bf16.mxu0 %v12616_v43  ;;  %v12634_v43 = vld [vmem:[%s17313_s1 + $0x844] ss:$8 sps:$4 sm:$0xff]  }
 0x27a   : > { %11631 = vmatpush1.bf16.msra.mxu1 %v14681_v25  ;;  %17396 = vst [vmem:[#allocation28_spill] sm:$0xff] %v14813_v20 }
 0x27b   : > { %10149 = vmatmul.mubr.msk.bf16.vlgmr.msra.gmra.mrb[0].mxu0 %vm576_vm0, %v13755_v46  ;;  %v4193_v46 = vld [vmem:[%s17318_s6 + $0xf0] sm:$0xff]  ;;  %11633 = vmatprep.subr.bf16.mxu1 %v14696_v26 }
 0x27c   : > { %3519 = vmatpush1.bf16.msra.mxu0 %v12614_v48  ;;  %3420 = vmatprep.mubr.bf16.mxu0 %v17342_v5  ;;  %v14732_v1 = vpack.c.bf16 %v4193_v46, %v4191_v61  ;;  %v14831_v48 = vpack.c.bf16 %v4209_v42, %v4207_v41  ;;  %v4218_v61 = vld [vmem:[%s17318_s6 + $0x1b8] sm:$0xff]  ;;  %v12662_v41 = vld [vmem:[%s17313_s1 + $0x8e0] ss:$8 sps:$4 sm:$0xff]  }
 0x27d   : > { %3520 = vmatprep.subr.bf16.mxu0 %v12619_v51  ;;  %v4213_v51 = vld [vmem:[%s17318_s6 + $0x190] sm:$0xff] }
 0x27e   : > { %11635 = vmatpush1.bf16.msra.mxu1 %v14707_v55  ;;  %17389 = vst [vmem:[#allocation21_spill] sm:$0xff] %v14732_v1  ;;  %17397 = vst [vmem:[#allocation29_spill] sm:$0xff] %v14831_v48  ;;  %v14857_v46 = vpack.c.bf16 %v4213_v51, %v4211_v50  ;;  %v12667_v42 = vld [vmem:[%s17313_s1 + $0x8f4] ss:$8 sps:$4 sm:$0xff]   ;;  %v12671_v50 = vld [vmem:[%s17313_s1 + $0x910] ss:$8 sps:$4 sm:$0xff]  }
 0x27f   : > { %11637 = vmatprep.subr.bf16.mxu1 %v14713_v59  ;;  %v12676_v51 = vld [vmem:[%s17313_s1 + $0x924] ss:$8 sps:$4 sm:$0xff]  }
 0x280   : > { %3521 = vmatpush1.bf16.msra.mxu0 %v12617_v56  ;;  %v4216_v56 = vld [vmem:[%s17318_s6 + $0x1a8] sm:$0xff]  ;;  %17399 = vst [vmem:[#allocation31_spill] sm:$0xff] %v14857_v46 }
 0x281   : > { %3522 = vmatprep.subr.bf16.mxu0 %v12622_v39  ;;  %v12635_v39 = vld [vmem:[%s17313_s1 + $0x850] ss:$8 sps:$4 sm:$0xff]   ;;  %v14863_v45 = vpack.c.bf16 %v4218_v61, %v4216_v56 }
 0x282   : > { %11639 = vmatpush1.bf16.msra.mxu1 %v14732_v1  ;;  %v12677_v61 = vld [vmem:[%s17313_s1 + $0x930] ss:$8 sps:$4 sm:$0xff]  }
 0x283   : > { %10150 = vmatmul.mubr.msk.bf16.gmra.mrb[4].mxu0 %vm576_vm0, %v14211_v11  ;;  %v4201_v11 = vld [vmem:[%s17318_s6 + $0x130] sm:$0xff]  ;;  %11641 = vmatprep.subr.bf16.mxu1 %v14747_v6  ;;  %17400 = vst [vmem:[#allocation32_spill] sm:$0xff] %v14863_v45 }
 0x284   : > { %3523 = vmatpush1.bf16.msra.mxu0 %v12620_v22  ;;  %3550 = vmatprep.mubr.bf16.mxu0 %v17342_v5  ;;  %v14783_v24 = vpack.c.bf16 %v4201_v11, %v4199_v17  ;;  %v12640_v22 = vld [vmem:[%s17313_s1 + $0x864] ss:$8 sps:$4 sm:$0xff]   ;;  %v12644_v17 = vld [vmem:[%s17313_s1 + $0x880] ss:$8 sps:$4 sm:$0xff]   ;;  %v12649_v11 = vld [vmem:[%s17313_s1 + $0x894] ss:$8 sps:$4 sm:$0xff]  }
 0x285   : > { %3524 = vmatprep.subr.bf16.mxu0 %v12625_v60  ;;  %v3454_v60 = vpop.permute.xlu0 %3453 }
 0x286   : > { %11643 = vmatpush1.bf16.msra.mxu1 %v14758_v14  ;;  %17393 = vst [vmem:[#allocation25_spill] sm:$0xff] %v14783_v24 }
 0x287   : > { %11645 = vmatprep.subr.bf16.mxu1 %v14764_v16 }
 0x288   : > { %3525 = vmatpush1.bf16.msra.mxu0 %v12623_v15  ;;  %v12646_v15 = vld [vmem:[%s17313_s1 + $0x884] ss:$8 sps:$4 sm:$0xff]  }
 0x289   : > { %3526 = vmatprep.subr.bf16.mxu0 %v12628_v18  ;;  %v12647_v18 = vld [vmem:[%s17313_s1 + $0x890] ss:$8 sps:$4 sm:$0xff]   ;;  %v3732_v56 = vpop.permute.xlu0 %3731 }
 0x28a   : > { %11647 = vmatpush1.bf16.msra.mxu1 %v14783_v24 }
 0x28b   : > { %11649 = vmatprep.subr.bf16.mxu1 %v14789_v28 }
 0x28c   : > { %3527 = vmatpush1.bf16.msra.mxu0 %v12626_v27  ;;  %v12655_v27 = vld [vmem:[%s17313_s1 + $0x8b4] ss:$8 sps:$4 sm:$0xff]  }
 0x28d   : > { %3528 = vmatprep.subr.bf16.mxu0 %v12631_v7  ;;  %v12656_v7 = vld [vmem:[%s17313_s1 + $0x8c0] ss:$8 sps:$4 sm:$0xff]  }
 0x28e   : > { %11651 = vmatpush1.bf16.msra.mxu1 %v14807_v36 }
 0x28f   : > { %11653 = vmatprep.subr.bf16.mxu1 %v14813_v20 }
 0x290   : > { %3529 = vmatpush1.bf16.msra.mxu0 %v12629_v37  ;;  %v12664_v37 = vld [vmem:[%s17313_s1 + $0x8e4] ss:$8 sps:$4 sm:$0xff]  }
 0x291   : > { %3657 = vmatprep.subr.bf16.mxu0 %v12634_v43  ;;  %v12665_v43 = vld [vmem:[%s17313_s1 + $0x8f0] ss:$8 sps:$4 sm:$0xff]  }
 0x292   : > { %11655 = vmatpush1.bf16.msra.mxu1 %v14831_v48 }
 0x293   : > { %10175 = vmatmul.mubr.msk.bf16.vlgmr.msra.gmra.mrb[0].mxu0 %vm576_vm0, %v14195_v4  ;;  %v4217_v4 = vld [vmem:[%s17318_s6 + $0x1b0] sm:$0xff]  ;;  %11657 = vmatprep.subr.bf16.mxu1 %v14846_v13 }
 0x294   : > { %3658 = vmatpush1.bf16.msra.mxu0 %v12632_v49  ;;  %3560 = vmatprep.mubr.bf16.mxu0 %v17342_v5  ;;  %v14876_v3 = vpack.c.bf16 %v4217_v4, %v4215_v63  ;;  %v12673_v49 = vld [vmem:[%s17313_s1 + $0x914] ss:$8 sps:$4 sm:$0xff]   ;;  %v12680_v63 = vld [vmem:[%s17313_s1 + $0x940] ss:$8 sps:$4 sm:$0xff]  }
 0x295   : > { %3659 = vmatprep.subr.bf16.mxu0 %v12637_v53  ;;  %v12674_v53 = vld [vmem:[%s17313_s1 + $0x920] ss:$8 sps:$4 sm:$0xff]   ;;  %v12685_v4 = vld [vmem:[%s17313_s1 + $0x954] ss:$8 sps:$4 sm:$0xff]  }
 0x296   : > { %11659 = vmatpush1.bf16.msra.mxu1 %v14857_v46  ;;  %17401 = vst [vmem:[#allocation33_spill] sm:$0xff] %v14876_v3 }
 0x297   : > { %11661 = vmatprep.subr.bf16.mxu1 %v14863_v45 }
 0x298   : > { %3660 = vmatpush1.bf16.msra.mxu0 %v12635_v39  ;;  %v12682_v39 = vld [vmem:[%s17313_s1 + $0x944] ss:$8 sps:$4 sm:$0xff]  }
 0x299   : > { %3661 = vmatprep.subr.bf16.mxu0 %v12640_v22  ;;  %v4029_v22 = vld [vmem:[%s17317_s5 + $0x8] sm:$0xff] }
 0x29a   : > { %11663 = vmatpush1.bf16.msra.mxu1 %v14876_v3 }
 0x29b   : > { %10176 = vmatmul.mubr.msk.bf16.gmra.mrb[4].mxu0 %vm576_vm0, %v3454_v60  ;;  %v12683_v60 = vld [vmem:[%s17313_s1 + $0x950] ss:$8 sps:$4 sm:$0xff]  }
 0x29c   : > { %3662 = vmatpush1.bf16.msra.mxu0 %v12638_v30  ;;  %3689 = vmatprep.mubr.bf16.mxu0 %v17342_v5  ;;  %v4031_v30 = vld [vmem:[%s17317_s5 + $0x18] sm:$0xff] }
 0x29d   : > { %3663 = vmatprep.subr.bf16.mxu0 %v12643_v10  ;;  %v14991_v10 = vpack.c.bf16 %v4031_v30, %v4029_v22  ;;  %v4048_v22 = vld [vmem:[%s17317_s5 + $0xa0] sm:$0xff]  ;;  %v4050_v30 = vld [vmem:[%s17317_s5 + $0xb0] sm:$0xff] }
 0x2a0   : > { %3664 = vmatpush1.bf16.msra.mxu0 %v12641_v12  ;;  %v4028_v12 = vld [vmem:[%s17317_s5] sm:$0xff] }
 0x2a1   : > { %3665 = vmatprep.subr.bf16.mxu0 %v12646_v15  ;;  %v4030_v15 = vld [vmem:[%s17317_s5 + $0x10] sm:$0xff] }
 0x2a4   : > { %3666 = vmatpush1.bf16.msra.mxu0 %v12644_v17  ;;  %v4033_v17 = vld [vmem:[%s17317_s5 + $0x28] sm:$0xff] }
 0x2a5   : > { %3667 = vmatprep.subr.bf16.mxu0 %v12649_v11  ;;  %v4035_v11 = vld [vmem:[%s17317_s5 + $0x38] sm:$0xff] }
 0x2a8   : > { %3668 = vmatpush1.bf16.msra.mxu0 %v12647_v18  ;;  %v15005_v18 = vpack.c.bf16 %v4030_v15, %v4028_v12  ;;  %v4055_v12 = vld [vmem:[%s17317_s5 + $0xd8] sm:$0xff]  ;;  %v15099_v15 = vpack.c.bf16 %v4050_v30, %v4048_v22  ;;  %v4064_v22 = vld [vmem:[%s17317_s5 + $0x120] sm:$0xff]  ;;  %v4066_v30 = vld [vmem:[%s17317_s5 + $0x130] sm:$0xff] }
 0x2a9   : > { %3796 = vmatprep.subr.bf16.mxu0 %v12652_v19  ;;  %v15008_v19 = vpack.c.bf16 %v4035_v11, %v4033_v17  ;;  %v4052_v11 = vld [vmem:[%s17317_s5 + $0xc0] sm:$0xff] }
 0x2ab   : > { %10201 = vmatmul.mubr.msk.bf16.vlgmr.msra.gmra.mrb[0].mxu0 %vm576_vm0, %v14251_v23  ;;  %v12661_v23 = vld [vmem:[%s17313_s1 + $0x8d4] ss:$8 sps:$4 sm:$0xff]  }
 0x2ac   : > { %3797 = vmatpush1.bf16.msra.mxu0 %v12650_v58  ;;  %3699 = vmatprep.mubr.bf16.mxu0 %v17342_v5  ;;  %v4032_v58 = vld [vmem:[%s17317_s5 + $0x20] sm:$0xff] }
 0x2ad   : > { %3798 = vmatprep.subr.bf16.mxu0 %v12655_v27  ;;  %v4034_v27 = vld [vmem:[%s17317_s5 + $0x30] sm:$0xff] }
 0x2b0   : > { %3799 = vmatpush1.bf16.msra.mxu0 %v12653_v29  ;;  %v4037_v29 = vld [vmem:[%s17317_s5 + $0x48] sm:$0xff] }
 0x2b1   : > { %3800 = vmatprep.subr.bf16.mxu0 %v12658_v32  ;;  %v4039_v32 = vld [vmem:[%s17317_s5 + $0x58] sm:$0xff] }
 0x2b3   : > { %10202 = vmatmul.mubr.msk.bf16.gmra.mrb[4].mxu0 %vm576_vm0, %v3593_v34  ;;  %v15029_v34 = vpack.c.bf16 %v4039_v32, %v4037_v29  ;;  %v4059_v29 = vld [vmem:[%s17317_s5 + $0xf8] sm:$0xff] }
 0x2b4   : > { %3801 = vmatpush1.bf16.msra.mxu0 %v12656_v7  ;;  %3828 = vmatprep.mubr.bf16.mxu0 %v17342_v5  ;;  %v15026_v7 = vpack.c.bf16 %v4034_v27, %v4032_v58  ;;  %v4054_v58 = vld [vmem:[%s17317_s5 + $0xd0] sm:$0xff]  ;;  %v4057_v27 = vld [vmem:[%s17317_s5 + $0xe8] sm:$0xff] }
 0x2b5   : > { %3802 = vmatprep.subr.bf16.mxu0 %v12661_v23  ;;  %v4036_v23 = vld [vmem:[%s17317_s5 + $0x40] sm:$0xff]  ;;  %v15117_v32 = vpack.c.bf16 %v4054_v58, %v4052_v11  ;;  %v15171_v11 = vpack.c.bf16 %v4066_v30, %v4064_v22 }
 0x2b8   : > { %3803 = vmatpush1.bf16.msra.mxu0 %v12659_v35  ;;  %v4038_v35 = vld [vmem:[%s17317_s5 + $0x50] sm:$0xff] }
 0x2b9   : > { %3804 = vmatprep.subr.bf16.mxu0 %v12664_v37  ;;  %v4043_v37 = vld [vmem:[%s17317_s5 + $0x78] sm:$0xff] }
 0x2bc   : > { %3805 = vmatpush1.bf16.msra.mxu0 %v12662_v41  ;;  %v3871_v41 = vpop.permute.xlu1 %3870 }
 0x2bd   : > { %3806 = vmatprep.subr.bf16.mxu0 %v12667_v42  ;;  %v15044_v42 = vpack.c.bf16 %v4038_v35, %v4036_v23  ;;  %v15120_v23 = vpack.c.bf16 %v4059_v29, %v4057_v27  ;;  %v4056_v35 = vld [vmem:[%s17317_s5 + $0xe0] sm:$0xff]  ;;  %v4070_v29 = vld [vmem:[%s17317_s5 + $0x150] sm:$0xff] }
 0x2be   : > { %v4068_v27 = vld [vmem:[%s17317_s5 + $0x140] sm:$0xff] }
 0x2c0   : > { %3807 = vmatpush1.bf16.msra.mxu0 %v12665_v43 }
 0x2c1   : > { %3935 = vmatprep.subr.bf16.mxu0 %v12670_v44  ;;  %v4040_v44 = vld [vmem:[%s17317_s5 + $0x60] sm:$0xff] }
 0x2c3   : > { %10227 = vmatmul.mubr.msk.bf16.vlgmr.msra.gmra.mrb[0].mxu0 %vm576_vm0, %v14295_v38  ;;  %v12679_v38 = vld [vmem:[%s17313_s1 + $0x934] ss:$8 sps:$4 sm:$0xff]  }
 0x2c4   : > { %3936 = vmatpush1.bf16.msra.mxu0 %v12668_v47  ;;  %3838 = vmatprep.mubr.bf16.mxu0 %v17342_v5  ;;  %v4042_v47 = vld [vmem:[%s17317_s5 + $0x70] sm:$0xff] }
 0x2c5   : > { %3937 = vmatprep.subr.bf16.mxu0 %v12673_v49  ;;  %v4045_v49 = vld [vmem:[%s17317_s5 + $0x88] sm:$0xff] }
 0x2c8   : > { %3938 = vmatpush1.bf16.msra.mxu0 %v12671_v50  ;;  %v4047_v50 = vld [vmem:[%s17317_s5 + $0x98] sm:$0xff] }
 0x2c9   : > { %3939 = vmatprep.subr.bf16.mxu0 %v12676_v51  ;;  %v15063_v51 = vpack.c.bf16 %v4042_v47, %v4040_v44 }
 0x2cb   : > { %10228 = vmatmul.mubr.msk.bf16.gmra.mrb[4].mxu0 %vm576_vm0, %v3732_v56  ;;  %v4044_v56 = vld [vmem:[%s17317_s5 + $0x80] sm:$0xff] }
 0x2cc   : > { %3940 = vmatpush1.bf16.msra.mxu0 %v12674_v53  ;;  %3967 = vmatprep.mubr.bf16.mxu0 %v17342_v5  ;;  %v15066_v53 = vpack.c.bf16 %v4047_v50, %v4045_v49  ;;  %v4060_v49 = vld [vmem:[%s17317_s5 + $0x100] sm:$0xff]  ;;  %v4062_v50 = vld [vmem:[%s17317_s5 + $0x110] sm:$0xff] }
 0x2cd   : > { %3941 = vmatprep.subr.bf16.mxu0 %v12679_v38  ;;  %v4046_v38 = vld [vmem:[%s17317_s5 + $0x90] sm:$0xff] }
 0x2d0   : > { %3942 = vmatpush1.bf16.msra.mxu0 %v12677_v61  ;;  %v4049_v61 = vld [vmem:[%s17317_s5 + $0xa8] sm:$0xff] }
 0x2d1   : > { %3943 = vmatprep.subr.bf16.mxu0 %v12682_v39  ;;  %v4051_v39 = vld [vmem:[%s17317_s5 + $0xb8] sm:$0xff] }
 0x2d4   : > { %3944 = vmatpush1.bf16.msra.mxu0 %v12680_v63  ;;  %v15081_v63 = vpack.c.bf16 %v4046_v38, %v4044_v56  ;;  %v4065_v56 = vld [vmem:[%s17317_s5 + $0x128] sm:$0xff]  ;;  %v4067_v38 = vld [vmem:[%s17317_s5 + $0x138] sm:$0xff] }
 0x2d5   : > { %3945 = vmatprep.subr.bf16.mxu0 %v12685_v4  ;;  %v15084_v4 = vpack.c.bf16 %v4051_v39, %v4049_v61  ;;  %v15153_v61 = vpack.c.bf16 %v4062_v50, %v4060_v49  ;;  %v15156_v39 = vpack.c.bf16 %v4067_v38, %v4065_v56  ;;  %v4072_v49 = vld [vmem:[%s17317_s5 + $0x160] sm:$0xff]  ;;  %v4074_v50 = vld [vmem:[%s17317_s5 + $0x170] sm:$0xff]  ;;  %v4077_v56 = vld [vmem:[%s17317_s5 + $0x188] sm:$0xff] }
 0x2d6   : > { %v4079_v38 = vld [vmem:[%s17317_s5 + $0x198] sm:$0xff]  ;;  %v15207_v22 = vpack.c.bf16 %v4074_v50, %v4072_v49  ;;  %v4080_v49 = vld [vmem:[%s17317_s5 + $0x1a0] sm:$0xff]  ;;  %v4082_v50 = vld [vmem:[%s17317_s5 + $0x1b0] sm:$0xff] }
 0x2d7   : > { %v15210_v30 = vpack.c.bf16 %v4079_v38, %v4077_v56  ;;  %v15238_v56 = vpack.c.bf16 %v4082_v50, %v4080_v49  ;;  %v4220_v38 = vld [vmem:[%s17318_s6 + $0x1c8] sm:$0xff]  ;;  %v4219_v49 = vld [vmem:[%s17318_s6 + $0x1c0] sm:$0xff] }
 0x2d8   : > { %3946 = vmatpush1.bf16.msra.mxu0 %v12683_v60  ;;  %v4053_v60 = vld [vmem:[%s17317_s5 + $0xc8] sm:$0xff] }
 0x2d9   : > { %11545 = vmatprep.subr.bf16.mxu0 %v14991_v10  ;;  %v15102_v17 = vpack.c.bf16 %v4055_v12, %v4053_v60  ;;  %v4069_v60 = vld [vmem:[%s17317_s5 + $0x148] sm:$0xff]  ;;  %v4071_v12 = vld [vmem:[%s17317_s5 + $0x158] sm:$0xff] }
 0x2da   : > { %v15174_v58 = vpack.c.bf16 %v4071_v12, %v4069_v60  ;;  %v4076_v60 = vld [vmem:[%s17317_s5 + $0x180] sm:$0xff]  ;;  %v4078_v12 = vld [vmem:[%s17317_s5 + $0x190] sm:$0xff] }
 0x2db   : > { %10253 = vmatmul.mubr.msk.bf16.vlgmr.msra.gmra.mrb[0].mxu0 %vm576_vm0, %v14339_v52  ;;  %v4041_v52 = vld [vmem:[%s17317_s5 + $0x68] sm:$0xff] }
 0x2dc   : > { %3977 = vmatprep.mubr.bf16.mxu0 %v17342_v5  ;;  %11547 = vmatpush1.bf16.msra.mxu0 %v15005_v18  ;;  %v15047_v43 = vpack.c.bf16 %v4043_v37, %v4041_v52  ;;  %v4058_v52 = vld [vmem:[%s17317_s5 + $0xf0] sm:$0xff]  ;;  %v4061_v37 = vld [vmem:[%s17317_s5 + $0x108] sm:$0xff] }
 0x2dd   : > { %11549 = vmatprep.subr.bf16.mxu0 %v15008_v19  ;;  %v15135_v44 = vpack.c.bf16 %v4058_v52, %v4056_v35  ;;  %v4073_v35 = vld [vmem:[%s17317_s5 + $0x168] sm:$0xff]  ;;  %v4075_v52 = vld [vmem:[%s17317_s5 + $0x178] sm:$0xff]  ;;  %v4221_v5 = vld [vmem:[%s17318_s6 + $0x1d0] sm:$0xff] }
 0x2de   : > { %v15270_v3 = vpack.c.bf16 %v4221_v5, %v4219_v49  ;;  %v4089_v5 = vld [vmem:[%s17317_s5 + $0x1e8] sm:$0xff]  ;;  %v4091_v49 = vld [vmem:[%s17317_s5 + $0x1f8] sm:$0xff] }
 0x2e0   : > { %11551 = vmatpush1.bf16.msra.mxu0 %v15026_v7  ;;  %17403 = vst [vmem:[#allocation35_spill] sm:$0xff] %v15270_v3 }
 0x2e1   : > { %11553 = vmatprep.subr.bf16.mxu0 %v15029_v34 }
 0x2e3   : > { %10254 = vmatmul.mubr.msk.bf16.gmra.mrb[4].mxu0 %vm576_vm0, %v3871_v41  ;;  %v4063_v41 = vld [vmem:[%s17317_s5 + $0x118] sm:$0xff] }
 0x2e4   : > { %11555 = vmatpush1.bf16.msra.mxu0 %v15044_v42  ;;  %v15138_v47 = vpack.c.bf16 %v4063_v41, %v4061_v37  ;;  %v15189_v37 = vpack.c.bf16 %v4070_v29, %v4068_v27  ;;  %v15192_v41 = vpack.c.bf16 %v4075_v52, %v4073_v35  ;;  %v4081_v27 = vld [vmem:[%s17317_s5 + $0x1a8] sm:$0xff]  ;;  %v4083_v29 = vld [vmem:[%s17317_s5 + $0x1b8] sm:$0xff]  ;;  %v15225_v35 = vpack.c.bf16 %v4078_v12, %v4076_v60 }
 0x2e5   : > { %11557 = vmatprep.subr.bf16.mxu0 %v15047_v43  ;;  %v15228_v52 = vpack.c.bf16 %v4083_v29, %v4081_v27  ;;  %v4222_v60 = vld [vmem:[%s17318_s6 + $0x1d8] sm:$0xff]  ;;  %v4085_v27 = vld [vmem:[%s17317_s5 + $0x1c8] sm:$0xff] }
 0x2e6   : > { %v15247_v12 = vpack.c.bf16 %v4222_v60, %v4220_v38  ;;  %v4087_v29 = vld [vmem:[%s17317_s5 + $0x1d8] sm:$0xff]  ;;  %v4084_v38 = vld [vmem:[%s17317_s5 + $0x1c0] sm:$0xff]  ;;  %v4086_v60 = vld [vmem:[%s17317_s5 + $0x1d0] sm:$0xff] }
 0x2e7   : > { %v15258_v50 = vpack.c.bf16 %v4087_v29, %v4085_v27  ;;  %v15272_v45 = vpack.c.bf16 %v4086_v60, %v4084_v38  ;;  %v4224_v27 = vld [vmem:[%s17318_s6 + $0x1e8] sm:$0xff]  ;;  %v4226_v29 = vld [vmem:[%s17318_s6 + $0x1f8] sm:$0xff]  ;;  %v4223_v38 = vld [vmem:[%s17318_s6 + $0x1e0] sm:$0xff]  ;;  %v15294_v60 = vpack.c.bf16 %v4091_v49, %v4089_v5  ;;  %v3998_v5 = vlaneseq }
 0x2e8   : > { %11559 = vmatpush1.bf16.msra.mxu0 %v15063_v51  ;;  %17402 = vst [vmem:[#allocation34_spill] sm:$0xff] %v15247_v12  ;;  %11665 = vmatprep.subr.bf16.mxu1 %v15247_v12  ;;  %v15283_v46 = vpack.c.bf16 %v4226_v29, %v4224_v27  ;;  %v4088_v27 = vld [vmem:[%s17317_s5 + $0x1e0] sm:$0xff]  ;;  %v4090_v29 = vld [vmem:[%s17317_s5 + $0x1f0] sm:$0xff] }
 0x2e9   : > { %11561 = vmatprep.subr.bf16.mxu0 %v15066_v53  ;;  %11667 = vmatpush1.bf16.msra.mxu1 %v15270_v3  ;;  %v4225_v3 = vld [vmem:[%s17318_s6 + $0x1f0] sm:$0xff]  ;;  %v15308_v13 = vpack.c.bf16 %v4090_v29, %v4088_v27  ;;  %v15314_v49 = vshrl.u32 %v3998_v5, 7 }
 0x2ea   : > { %17404 = vst [vmem:[#allocation36_spill] sm:$0xff] %v15283_v46  ;;  %11669 = vmatprep.subr.bf16.mxu1 %v15283_v46  ;;  %v15306_v12 = vpack.c.bf16 %v4225_v3, %v4223_v38  ;;  %v3996_v3 = vld [vmem:[%s17314_s2] sm:$0x3] }
 0x2eb   : > { %17406 = vst [vmem:[#allocation38_spill] sm:$0xff] %v15314_v49  ;;  %v17365_v48 = vsub.s32 0, %v15314_v49  ;;  %v4004_v38 = vsub.s32 1, %v15314_v49 }
 0x2ec   : > { %11563 = vmatpush1.bf16.msra.mxu0 %v15081_v63  ;;  %17405 = vst [vmem:[#allocation37_spill] sm:$0xff] %v15306_v12 }
 0x2ed   : > { %11565 = vmatprep.subr.bf16.mxu0 %v15084_v4  ;;  %11671 = vmatpush1.bf16.msra.mxu1 %v15306_v12  ;;  %v4001_v27 = vrot.slane %v3996_v3, %v17365_v48  ;;  %v4005_v29 = vrot.slane %v3996_v3, %v4004_v38 }
 0x2ee   : > { %11673 = vmatprep.subr.bf16.mxu1 %v14991_v10 }
 0x2f0   : > { %11567 = vmatpush1.bf16.msra.mxu0 %v15099_v15 }
 0x2f1   : > { %11569 = vmatprep.subr.bf16.mxu0 %v15102_v17 }
 0x2f4   : > { %11571 = vmatpush1.bf16.msra.mxu0 %v15117_v32 }
 0x2f5   : > { %11573 = vmatprep.subr.bf16.mxu0 %v15120_v23 }
 0x2f8   : > { %11575 = vmatpush1.bf16.msra.mxu0 %v15135_v44 }
 0x2f9   : > { %11577 = vmatprep.subr.bf16.mxu0 %v15138_v47 }
 0x2fc   : > { %11579 = vmatpush1.bf16.msra.mxu0 %v15153_v61 }
 0x2fd   : > { %11581 = vmatprep.subr.bf16.mxu0 %v15156_v39 }
 0x300   : > { %11583 = vmatpush1.bf16.msra.mxu0 %v15171_v11 }
 0x301   : > { %11585 = vmatprep.subr.bf16.mxu0 %v15174_v58 }
 0x304   : > { %11587 = vmatpush1.bf16.msra.mxu0 %v15189_v37 }
 0x305   : > { %11589 = vmatprep.subr.bf16.mxu0 %v15192_v41 }
 0x308   : > { %11591 = vmatpush1.bf16.msra.mxu0 %v15207_v22 }
 0x309   : > { %11593 = vmatprep.subr.bf16.mxu0 %v15210_v30 }
 0x30c   : > { %11595 = vmatpush1.bf16.msra.mxu0 %v15225_v35 }
 0x30d   : > { %11597 = vmatprep.subr.bf16.mxu0 %v15228_v52 }
 0x310   : > { %11599 = vmatpush1.bf16.msra.mxu0 %v15238_v56 }
 0x311   : > { %11601 = vmatprep.subr.bf16.mxu0 %v15258_v50 }
 0x314   : > { %11603 = vmatpush1.bf16.msra.mxu0 %v15272_v45 }
 0x315   : > { %11605 = vmatprep.subr.bf16.mxu0 %v15294_v60 }
 0x318   : > { %11607 = vmatpush1.bf16.msra.mxu0 %v15308_v13 }
 0x3ae   : > { %v3969_v12 = vpop.f32.mrb[0].mxu0 }
 0x3af   : > { %v4008_v46 = vadd.f32 %v4001_v27, %v3969_v12  ;;  %v3971_v10 = vpop.f32.mrb[1].mxu0 }
 0x3b0   : > { %v4009_v20 = vadd.f32 %v4005_v29, %v3971_v10  ;;  %v3973_v5 = vpop.f32.mrb[2].mxu0 }
 0x3b1   : > { %v4010_v36 = vadd.f32 %v4001_v27, %v3973_v5  ;;  %v3975_v28 = vpop.f32.mrb[3].mxu0  ;;  %v4016_v16 = vmax.f32 %v4008_v46, 0.0  ;;  %v17425_v46 = vld [vmem:[#allocation34_spill] sm:$0xff] }
 0x3b2   : > { %v4011_v24 = vadd.f32 %v4005_v29, %v3975_v28  ;;  %v4017_v6 = vmax.f32 %v4009_v20, 0.0  ;;  %v17422_v20 = vld [vmem:[#allocation31_spill] sm:$0xff] }
 0x3b3   : > { %v4018_v14 = vmax.f32 %v4010_v36, 0.0 }
 0x3b4   : > { %v4019_v1 = vmax.f32 %v4011_v24, 0.0  ;;  %v17421_v24 = vld [vmem:[#allocation30_spill] sm:$0xff] }
 0x3b5   : > { %v4024_v59 = vmax.f32 %v4016_v16, %v4018_v14  ;;  %v17420_v16 = vld [vmem:[#allocation29_spill] sm:$0xff] }
 0x3b6   : > { %v4025_v55 = vmax.f32 %v4017_v6, %v4019_v1  ;;  %v3979_v26 = vpop.f32.mrb[4].mxu0 }
 0x3b7   : > { %v4012_v25 = vadd.f32 %v4001_v27, %v3979_v26  ;;  %v3981_v48 = vpop.f32.mrb[5].mxu0 }
 0x3b8   : > { %v4013_v40 = vadd.f32 %v4005_v29, %v3981_v48  ;;  %v3983_v49 = vpop.f32.mrb[6].mxu0  ;;  %4156 = vmatprep.mubr.f32.mxu0 %v4025_v55  ;;  %4291 = vmatprep.mubr.f32.mxu1 %v4025_v55  ;;  %v17418_v55 = vld [vmem:[#allocation27_spill] sm:$0xff]  ;;  %v17423_v48 = vld [vmem:[#allocation32_spill] sm:$0xff] }
 0x3b9   : > { %v4014_v12 = vadd.f32 %v4001_v27, %v3983_v49  ;;  %v3985_v3 = vpop.f32.mrb[7].mxu0  ;;  %4157 = vmatmul.mubr.f32.vlgmr.msra.gmra.mrb[8].mxu0 %v4024_v59  ;;  %4292 = vmatmul.mubr.f32.vlgmr.msra.gmra.mrb[0].mxu1 %v4024_v59  ;;  %v4020_v28 = vmax.f32 %v4012_v25, 0.0  ;;  %v17417_v25 = vld [vmem:[#allocation26_spill] sm:$0xff]  ;;  %v17419_v59 = vld [vmem:[#allocation28_spill] sm:$0xff] }
 0x3ba   : > { %v4015_v10 = vadd.f32 %v4005_v29, %v3985_v3  ;;  %11675 = vmatpush1.bf16.msra.mxu1 %v15005_v18  ;;  %v4021_v14 = vmax.f32 %v4013_v40, 0.0  ;;  %v13455_v40 = vmov 0.0   ;;  %v17427_v18 = vld [vmem:[#allocation36_spill] sm:$0xff] }
 0x3bb   : > { %v4022_v36 = vmax.f32 %v4014_v12, 0.0  ;;  %11677 = vmatprep.subr.bf16.mxu1 %v15008_v19  ;;  %4444 = vst [vmem:[#allocation2] sm:$0xff] %v13455_v40  ;;  %4447 = vst [vmem:[#allocation2 + $0x10] sm:$0x3] %v13455_v40  ;;  %v17428_v19 = vld [vmem:[#allocation37_spill] sm:$0xff] }
 0x3bc   : > { %v4023_v1 = vmax.f32 %v4015_v10, 0.0  ;;  %4450 = vst [vmem:[#allocation3] sm:$0xff] %v13455_v40  ;;  %4452 = vst [vmem:[#allocation3 + $0x10] sm:$0x3] %v13455_v40  ;;  %v12712_v3 = vld [vmem:[%s17315_s3 + $0x4] ss:$8 sps:$4 sm:$0xff]  }
 0x3bd   : > { %v15327_v6 = vmax.f32 %v4020_v28, %v4022_v36  ;;  %4446 = vst.msk [vmem:[#allocation2 + $0x8] sm:$0xff] %vm4445_vm1, %v13455_v40  ;;  %4451 = vst.msk [vmem:[#allocation3 + $0x8] sm:$0xff] %vm4445_vm1, %v13455_v40 }
 0x3be   : > { %v4027_v26 = vmax.f32 %v4021_v14, %v4023_v1  ;;  %11679 = vmatpush1.bf16.msra.mxu1 %v15026_v7  ;;  %4449 = vst.msk [vmem:[#allocation2 + $0x18] sm:$0x3] %vm4448_vm2, %v13455_v40  ;;  %4453 = vst.msk [vmem:[#allocation3 + $0x18] sm:$0x3] %vm4448_vm2, %v13455_v40  ;;  %v17429_v7 = vmov 0  }
 0x3bf   : > { %11681 = vmatprep.subr.bf16.mxu1 %v15029_v34 }
 0x3c0   : > { %4364 = vmatprep.mubr.f32.mxu1 %v4027_v26 }
 0x3c2   : > { %11683 = vmatpush1.bf16.msra.mxu1 %v15044_v42 }
 0x3c3   : > { %11685 = vmatprep.subr.bf16.mxu1 %v15047_v43 }
 0x3c6   : > { %11687 = vmatpush1.bf16.msra.mxu1 %v15063_v51 }
 0x3c7   : > { %11689 = vmatprep.subr.bf16.mxu1 %v15066_v53 }
 0x3ca   : > { %11691 = vmatpush1.bf16.msra.mxu1 %v15081_v63 }
 0x3cb   : > { %11693 = vmatprep.subr.bf16.mxu1 %v15084_v4 }
 0x3ce   : > { %11695 = vmatpush1.bf16.msra.mxu1 %v15099_v15 }
 0x3cf   : > { %11697 = vmatprep.subr.bf16.mxu1 %v15102_v17 }
 0x3d2   : > { %11699 = vmatpush1.bf16.msra.mxu1 %v15117_v32 }
 0x3d3   : > { %11701 = vmatprep.subr.bf16.mxu1 %v15120_v23  ;;  %v12686_v23 = vld [vmem:[%s17315_s3 + $0x80] ss:$8 sps:$4 sm:$0xff]  }
 0x3d6   : > { %11703 = vmatpush1.bf16.msra.mxu1 %v15135_v44  ;;  %v12688_v44 = vld [vmem:[%s17315_s3 + $0x84] ss:$8 sps:$4 sm:$0xff]  }
 0x3d7   : > { %11705 = vmatprep.subr.bf16.mxu1 %v15138_v47  ;;  %v12691_v47 = vld [vmem:[%s17315_s3 + $0x94] ss:$8 sps:$4 sm:$0xff]  }
 0x3da   : > { %11707 = vmatpush1.bf16.msra.mxu1 %v15153_v61  ;;  %v12689_v61 = vld [vmem:[%s17315_s3 + $0x90] ss:$8 sps:$4 sm:$0xff]  }
 0x3db   : > { %11709 = vmatprep.subr.bf16.mxu1 %v15156_v39  ;;  %v12694_v39 = vld [vmem:[%s17315_s3 + $0xa4] ss:$8 sps:$4 sm:$0xff]  }
 0x3de   : > { %11711 = vmatpush1.bf16.msra.mxu1 %v15171_v11  ;;  %v12692_v11 = vld [vmem:[%s17315_s3 + $0xa0] ss:$8 sps:$4 sm:$0xff]  }
 0x3df   : > { %11713 = vmatprep.subr.bf16.mxu1 %v15174_v58  ;;  %v12697_v58 = vld [vmem:[%s17315_s3 + $0xb4] ss:$8 sps:$4 sm:$0xff]  }
 0x3e2   : > { %11715 = vmatpush1.bf16.msra.mxu1 %v15189_v37  ;;  %v12695_v37 = vld [vmem:[%s17315_s3 + $0xb0] ss:$8 sps:$4 sm:$0xff]  }
 0x3e3   : > { %11717 = vmatprep.subr.bf16.mxu1 %v15192_v41  ;;  %v12700_v41 = vld [vmem:[%s17315_s3 + $0xc4] ss:$8 sps:$4 sm:$0xff]  }
 0x3e6   : > { %11719 = vmatpush1.bf16.msra.mxu1 %v15207_v22  ;;  %v12698_v22 = vld [vmem:[%s17315_s3 + $0xc0] ss:$8 sps:$4 sm:$0xff]  }
 0x3e7   : > { %11721 = vmatprep.subr.bf16.mxu1 %v15210_v30  ;;  %v12703_v30 = vld [vmem:[%s17315_s3 + $0xd4] ss:$8 sps:$4 sm:$0xff]  }
 0x3ea   : > { %11723 = vmatpush1.bf16.msra.mxu1 %v15225_v35  ;;  %v12701_v35 = vld [vmem:[%s17315_s3 + $0xd0] ss:$8 sps:$4 sm:$0xff]  }
 0x3eb   : > { %11725 = vmatprep.subr.bf16.mxu1 %v15228_v52  ;;  %v12706_v52 = vld [vmem:[%s17315_s3 + $0xe4] ss:$8 sps:$4 sm:$0xff]  }
 0x3ee   : > { %11727 = vmatpush1.bf16.msra.mxu1 %v15238_v56  ;;  %v12704_v56 = vld [vmem:[%s17315_s3 + $0xe0] ss:$8 sps:$4 sm:$0xff]  }
 0x3ef   : > { %11729 = vmatprep.subr.bf16.mxu1 %v15258_v50  ;;  %v12709_v50 = vld [vmem:[%s17315_s3 + $0xf4] ss:$8 sps:$4 sm:$0xff]  }
 0x3f2   : > { %11731 = vmatpush1.bf16.msra.mxu1 %v15272_v45  ;;  %v17426_v45 = vld [vmem:[#allocation35_spill] sm:$0xff] }
 0x3f3   : > { %11733 = vmatprep.subr.bf16.mxu1 %v15294_v60  ;;  %v12707_v60 = vld [vmem:[%s17315_s3 + $0xf0] ss:$8 sps:$4 sm:$0xff]  }
 0x3f6   : > { %11735 = vmatpush1.bf16.msra.mxu1 %v15308_v13  ;;  %v17424_v13 = vld [vmem:[#allocation33_spill] sm:$0xff] }
 0x3f7   : > { %11737 = vmatprep.subr.bf16.mxu1 %v14548_v62  ;;  %v17407_v62 = vld [vmem:[#allocation16_spill] sm:$0xff] }
 0x3f9   : > { %4365 = vmatmul.mubr.f32.vlgmr.msra.gmra.mrb[2].mxu1 %v15327_v6 }
 0x3fa   : > { %11739 = vmatpush1.bf16.msra.mxu1 %v14559_v0  ;;  %4435 = vmatprep.mubr.f32.mxu1 %v4027_v26  ;;  %v17408_v0 = vld [vmem:[#allocation17_spill] sm:$0xff] }
 0x3fb   : > { %11741 = vmatprep.subr.bf16.mxu1 %v14569_v2  ;;  %v17409_v2 = vld [vmem:[#allocation18_spill] sm:$0xff] }
 0x3fe   : > { %11743 = vmatpush1.bf16.msra.mxu1 %v14580_v8  ;;  %v17410_v8 = vld [vmem:[#allocation19_spill] sm:$0xff] }
 0x3ff   : > { %11745 = vmatprep.subr.bf16.mxu1 %v14592_v57  ;;  %v17411_v57 = vld [vmem:[#allocation20_spill] sm:$0xff] }
 0x402   : > { %11747 = vmatpush1.bf16.msra.mxu1 %v14602_v54  ;;  %v17412_v54 = vld [vmem:[#allocation21_spill] sm:$0xff] }
 0x403   : > { %11749 = vmatprep.subr.bf16.mxu1 %v14614_v21  ;;  %v17413_v21 = vld [vmem:[#allocation22_spill] sm:$0xff] }
 0x406   : > { %11751 = vmatpush1.bf16.msra.mxu1 %v14633_v31  ;;  %v17414_v31 = vld [vmem:[#allocation23_spill] sm:$0xff] }
 0x407   : > { %11753 = vmatprep.subr.bf16.mxu1 %v14639_v33  ;;  %v17415_v33 = vld [vmem:[#allocation24_spill] sm:$0xff] }
 0x40a   : > { %11755 = vmatpush1.bf16.msra.mxu1 %v14657_v9  ;;  %v17416_v9 = vld [vmem:[#allocation25_spill] sm:$0xff] }
 0x40b   : > { %11757 = vmatprep.subr.bf16.mxu1 %v17407_v62 }
 0x40e   : > { %11759 = vmatpush1.bf16.msra.mxu1 %v17408_v0 }
 0x40f   : > { %11761 = vmatprep.subr.bf16.mxu1 %v17409_v2 }
 0x412   : > { %11763 = vmatpush1.bf16.msra.mxu1 %v17410_v8 }
 0x413   : > { %11765 = vmatprep.subr.bf16.mxu1 %v17411_v57 }
 0x416   : > { %11767 = vmatpush1.bf16.msra.mxu1 %v17412_v54 }
 0x417   : > { %11769 = vmatprep.subr.bf16.mxu1 %v17413_v21 }
 0x41a   : > { %11771 = vmatpush1.bf16.msra.mxu1 %v17414_v31 }
 0x41b   : > { %11773 = vmatprep.subr.bf16.mxu1 %v17415_v33 }
 0x41e   : > { %11775 = vmatpush1.bf16.msra.mxu1 %v17416_v9 }
 0x41f   : > { %11777 = vmatprep.subr.bf16.mxu1 %v17417_v25 }
 0x422   : > { %11779 = vmatpush1.bf16.msra.mxu1 %v17418_v55 }
 0x423   : > { %11781 = vmatprep.subr.bf16.mxu1 %v17419_v59 }
 0x426   : > { %11783 = vmatpush1.bf16.msra.mxu1 %v17420_v16 }
 0x427   : > { %11785 = vmatprep.subr.bf16.mxu1 %v17421_v24 }
 0x42a   : > { %11787 = vmatpush1.bf16.msra.mxu1 %v17422_v20 }
 0x42b   : > { %11789 = vmatprep.subr.bf16.mxu1 %v17423_v48 }
 0x42e   : > { %11791 = vmatpush1.bf16.msra.mxu1 %v17424_v13 }
 0x42f   : > { %11793 = vmatprep.subr.bf16.mxu1 %v17425_v46 }
 0x432   : > { %11795 = vmatpush1.bf16.msra.mxu1 %v17426_v45 }
 0x433   : > { %11797 = vmatprep.subr.bf16.mxu1 %v17427_v18 }
 0x436   : > { %11799 = vmatpush1.bf16.msra.mxu1 %v17428_v19 }
 0x437   : > { %4604 = vmatprep.subr.bf16.mxu1 %v12688_v44 }
 0x439   : > { %4436 = vmatmul.mubr.f32.vlgmr.msra.gmra.mrb[4].mxu1 %v15327_v6 }
 0x43a   : > { %4636 = vmatprep.mubr.bf16.mxu1 %v17429_v7  ;;  %4605 = vmatpush1.bf16.msra.mxu1 %v12686_v23 }
 0x43b   : > { %4606 = vmatprep.subr.bf16.mxu1 %v12691_v47 }
 0x43e   : > { %4607 = vmatpush1.bf16.msra.mxu1 %v12689_v61 }
 0x43f   : > { %4608 = vmatprep.subr.bf16.mxu1 %v12694_v39 }
 0x442   : > { %4609 = vmatpush1.bf16.msra.mxu1 %v12692_v11 }
 0x443   : > { %4610 = vmatprep.subr.bf16.mxu1 %v12697_v58 }
 0x446   : > { %4611 = vmatpush1.bf16.msra.mxu1 %v12695_v37 }
 0x447   : > { %4612 = vmatprep.subr.bf16.mxu1 %v12700_v41 }
 0x44a   : > { %4613 = vmatpush1.bf16.msra.mxu1 %v12698_v22 }
 0x44b   : > { %4614 = vmatprep.subr.bf16.mxu1 %v12703_v30 }
 0x44e   : > { %4615 = vmatpush1.bf16.msra.mxu1 %v12701_v35 }
 0x44f   : > { %4616 = vmatprep.subr.bf16.mxu1 %v12706_v52 }
 0x452   : > { %4617 = vmatpush1.bf16.msra.mxu1 %v12704_v56 }
 0x453   : > { %4618 = vmatprep.subr.bf16.mxu1 %v12709_v50 }
 0x456   : > { %4619 = vmatpush1.bf16.msra.mxu1 %v12707_v60 }
 0x457   : > { %4727 = vmatprep.subr.bf16.mxu1 %v12712_v3  ;;  %v12713_v3 = vld [vmem:[%s17315_s3 + $0x10] ss:$8 sps:$4 sm:$0xff]  }
 0x48c   : > { %v4158_v34 = vpop.f32.mrb[8].mxu0  ;;  %v4293_v42 = vpop.f32.mrb[0].mxu1 }
 0x48d   : > { %v4298_v43 = vmax.f32 %v4158_v34, %v4293_v42  ;;  %v4160_v51 = vpop.f32.mrb[9].mxu0  ;;  %v4295_v53 = vpop.f32.mrb[1].mxu1 }
 0x48e   : > { %v4299_v63 = vmax.f32 %v4160_v51, %v4295_v53 }
 0x48f   : > { %v4456_v4 = vrot.slane %v4298_v43, 7 }
 0x490   : > { %v4457_v15 = vrot.slane %v4299_v63, 7 }
 0x491   : > { %4460 = vst [vmem:[#allocation2] sm:$0xfe] %v4456_v4  ;;  %4463 = vst [vmem:[#allocation2 + $0x10] sm:$0x1] %v4456_v4 }
 0x492   : > { %4462 = vst.msk [vmem:[#allocation2 + $0x8] sm:$0xfe] %vm4461_vm3, %v4457_v15 }
 0x493   : > { %4465 = vst.msk [vmem:[#allocation2 + $0x18] sm:$0x1] %vm4464_vm4, %v4457_v15 }
 0x498   : > { %v4476_v28 = vld [vmem:[#allocation2] sm:$0xff]  ;;  %v5379_v0 = vld [vmem:[#allocation2 + $0x10] sm:$0x1] }
 0x499   : > { %v4495_v1 = vld [vmem:[#allocation2 + $0x8] sm:$0xff]  ;;  %v5377_v62 = vld [vmem:[#allocation2] sm:$0xfe]  ;;  %v5386_v54 = vrot.slane %v5379_v0, 1  ;;  %v6926_v51 = vld [vmem:[#allocation2 + $0x10] sm:$0x3] }
 0x49a   : > { %v5378_v2 = vld [vmem:[#allocation2 + $0x8] sm:$0xfe]  ;;  %v5380_v8 = vld [vmem:[#allocation2 + $0x18] sm:$0x1]  ;;  %v5385_v57 = vrot.slane %v5377_v62, 1  ;;  %v6933_v15 = vrot.slane %v6926_v51, 2 }
 0x49b   : > { %v5388_v21 = vrot.slane %v5378_v2, 1  ;;  %v5389_v31 = vrot.slane %v5380_v8, 1  ;;  %v6924_v43 = vld [vmem:[#allocation2] sm:$0xfc]  ;;  %v6925_v53 = vld [vmem:[#allocation2 + $0x8] sm:$0xfc] }
 0x49c   : > { %v5387_v33 = vsel %vm5227_vm5, %v5385_v57, %v5386_v54  ;;  %v6927_v63 = vld [vmem:[#allocation2 + $0x18] sm:$0x3]  ;;  %v6932_v4 = vrot.slane %v6924_v43, 2  ;;  %v12722_v62 = vld [vmem:[%s17315_s3 + $0x40] ss:$8 sps:$4 sm:$0xff]  }
 0x49d   : > { %v5390_v25 = vsel %vm5227_vm5, %v5388_v21, %v5389_v31  ;;  %v12727_v0 = vld [vmem:[%s17315_s3 + $0x54] ss:$8 sps:$4 sm:$0xff]   ;;  %v12725_v2 = vld [vmem:[%s17315_s3 + $0x50] ss:$8 sps:$4 sm:$0xff]   ;;  %v12730_v8 = vld [vmem:[%s17315_s3 + $0x64] ss:$8 sps:$4 sm:$0xff]  }
 0x49e   : > { %v6934_v23 = vsel %vm6774_vm6, %v6932_v4, %v6933_v15  ;;  %v12728_v57 = vld [vmem:[%s17315_s3 + $0x60] ss:$8 sps:$4 sm:$0xff]   ;;  %v12733_v54 = vld [vmem:[%s17315_s3 + $0x74] ss:$8 sps:$4 sm:$0xff]   ;;  %v12731_v21 = vld [vmem:[%s17315_s3 + $0x70] ss:$8 sps:$4 sm:$0xff]  }
 0x49f   : > { %v12736_v31 = vld [vmem:[%s17315_s3 + $0x104] ss:$8 sps:$4 sm:$0xff]   ;;  %v12758_v51 = vld [vmem:[%s17315_s3 + $0x180] ss:$8 sps:$4 sm:$0xff]   ;;  %v12761_v4 = vld [vmem:[%s17315_s3 + $0x190] ss:$8 sps:$4 sm:$0xff]  }
 0x4a0   : > { %v12766_v15 = vld [vmem:[%s17315_s3 + $0x1a4] ss:$8 sps:$4 sm:$0xff]  }
 0x4cc   : > { %v4366_v17 = vpop.f32.mrb[2].mxu1 }
 0x4cd   : > { %v4368_v32 = vpop.f32.mrb[3].mxu1 }
 0x50c   : > { %v4437_v49 = vpop.f32.mrb[4].mxu1 }
 0x50d   : > { %v4442_v27 = vmax.f32 %v4366_v17, %v4437_v49  ;;  %v4439_v29 = vpop.f32.mrb[5].mxu1  ;;  %v6935_v17 = vrot.slane %v6925_v53, 2  ;;  %v12763_v53 = vld [vmem:[%s17315_s3 + $0x194] ss:$8 sps:$4 sm:$0xff]  }
 0x50e   : > { %v4443_v5 = vmax.f32 %v4368_v32, %v4439_v29  ;;  %v6936_v32 = vrot.slane %v6927_v63, 2 }
 0x50f   : > { %v4468_v12 = vrot.slane %v4442_v27, 7  ;;  %v12710_v27 = vld [vmem:[%s17315_s3] ss:$8 sps:$4 sm:$0xff]  }
 0x510   : > { %v4469_v10 = vrot.slane %v4443_v5, 7  ;;  %v6937_v47 = vsel %vm6774_vm6, %v6935_v17, %v6936_v32  ;;  %v12715_v5 = vld [vmem:[%s17315_s3 + $0x14] ss:$8 sps:$4 sm:$0xff]   ;;  %v12764_v17 = vld [vmem:[%s17315_s3 + $0x1a0] ss:$8 sps:$4 sm:$0xff]  }
 0x511   : > { %4472 = vst [vmem:[#allocation3] sm:$0xfe] %v4468_v12  ;;  %4474 = vst [vmem:[#allocation3 + $0x10] sm:$0x1] %v4468_v12  ;;  %v12769_v32 = vld [vmem:[%s17315_s3 + $0x1b4] ss:$8 sps:$4 sm:$0xff]  }
 0x512   : > { %4473 = vst.msk [vmem:[#allocation3 + $0x8] sm:$0xfe] %vm4461_vm3, %v4469_v10 }
 0x513   : > { %4475 = vst.msk [vmem:[#allocation3 + $0x18] sm:$0x1] %vm4464_vm4, %v4469_v10  ;;  %v12718_v10 = vld [vmem:[%s17315_s3 + $0x24] ss:$8 sps:$4 sm:$0xff]  }
 0x518   : > { %v15456_v36 = vld [vmem:[#allocation3] sm:$0xff]  ;;  %v6152_v16 = vld [vmem:[#allocation3 + $0x10] sm:$0x1] }
 0x519   : > { %v15459_v14 = vpack.c.bf16 %v15456_v36, %v4476_v28  ;;  %v4496_v6 = vld [vmem:[#allocation3 + $0x8] sm:$0xff]  ;;  %v5393_v9 = vpack.c.bf16 %v5387_v33, %v15456_v36  ;;  %v6150_v59 = vld [vmem:[#allocation3] sm:$0xfe]  ;;  %v6159_v13 = vrot.slane %v6152_v16, 1  ;;  %v7699_v11 = vld [vmem:[#allocation3 + $0x10] sm:$0x3] }
 0x51a   : > { %v4497_v26 = vpack.c.bf16 %v4496_v6, %v4495_v1  ;;  %v5394_v55 = vpack.c.bf16 %v5390_v25, %v4496_v6  ;;  %v6151_v24 = vld [vmem:[#allocation3 + $0x8] sm:$0xfe]  ;;  %v6153_v20 = vld [vmem:[#allocation3 + $0x18] sm:$0x1]  ;;  %v6158_v48 = vrot.slane %v6150_v59, 1  ;;  %v7706_v22 = vrot.slane %v7699_v11, 2 }
 0x51b   : > { %4517 = vrot.lane.b32.xlu0 %v15459_v14, %s13456_s16  ;;  %v6161_v46 = vrot.slane %v6151_v24, 1  ;;  %v6162_v45 = vrot.slane %v6153_v20, 1  ;;  %v7697_v39 = vld [vmem:[#allocation3] sm:$0xfc]  ;;  %v7698_v58 = vld [vmem:[#allocation3 + $0x8] sm:$0xfc] }
 0x51c   : > { %4519 = vrot.lane.b32.xlu1 %v4497_v26, %s13456_s16  ;;  %v6160_v18 = vsel %vm5227_vm5, %v6158_v48, %v6159_v13  ;;  %v7700_v37 = vld [vmem:[#allocation3 + $0x18] sm:$0x3]  ;;  %v7705_v41 = vrot.slane %v7697_v39, 2  ;;  %v7708_v30 = vrot.slane %v7698_v58, 2  ;;  %v12716_v28 = vld [vmem:[%s17315_s3 + $0x20] ss:$8 sps:$4 sm:$0xff]  }
 0x51d   : > { %v6163_v19 = vsel %vm5227_vm5, %v6161_v46, %v6162_v45  ;;  %v6166_v34 = vpack.c.bf16 %v6160_v18, %v5387_v33  ;;  %v6940_v44 = vpack.c.bf16 %v6934_v23, %v6160_v18  ;;  %v7709_v35 = vrot.slane %v7700_v37, 2  ;;  %v12721_v1 = vld [vmem:[%s17315_s3 + $0x34] ss:$8 sps:$4 sm:$0xff]   ;;  %v12719_v6 = vld [vmem:[%s17315_s3 + $0x30] ss:$8 sps:$4 sm:$0xff]  }
 0x51e   : > { %v6167_v42 = vpack.c.bf16 %v6163_v19, %v5390_v25  ;;  %v6941_v61 = vpack.c.bf16 %v6937_v47, %v6163_v19  ;;  %v7707_v52 = vsel %vm6774_vm6, %v7705_v41, %v7706_v22  ;;  %v12734_v33 = vld [vmem:[%s17315_s3 + $0x100] ss:$8 sps:$4 sm:$0xff]   ;;  %v12737_v25 = vld [vmem:[%s17315_s3 + $0x110] ss:$8 sps:$4 sm:$0xff]   ;;  %v12748_v24 = vld [vmem:[%s17315_s3 + $0x144] ss:$8 sps:$4 sm:$0xff]  }
 0x51f   : > { %4787 = vrot.lane.b32.xlu0 %v15459_v14, %s13457_s25  ;;  %v7710_v56 = vsel %vm6774_vm6, %v7708_v30, %v7709_v35  ;;  %v7713_v50 = vpack.c.bf16 %v7707_v52, %v6934_v23  ;;  %v12740_v59 = vld [vmem:[%s17315_s3 + $0x120] ss:$8 sps:$4 sm:$0xff]   ;;  %v12743_v16 = vld [vmem:[%s17315_s3 + $0x130] ss:$8 sps:$4 sm:$0xff]   ;;  %v12751_v48 = vld [vmem:[%s17315_s3 + $0x154] ss:$8 sps:$4 sm:$0xff]  }
 0x520   : > { %4789 = vrot.lane.b32.xlu1 %v4497_v26, %s13457_s25  ;;  %v7714_v60 = vpack.c.bf16 %v7710_v56, %v6937_v47  ;;  %v12746_v20 = vld [vmem:[%s17315_s3 + $0x140] ss:$8 sps:$4 sm:$0xff]   ;;  %v12749_v13 = vld [vmem:[%s17315_s3 + $0x150] ss:$8 sps:$4 sm:$0xff]   ;;  %v12754_v46 = vld [vmem:[%s17315_s3 + $0x164] ss:$8 sps:$4 sm:$0xff]  }
 0x521   : > { %v12752_v45 = vld [vmem:[%s17315_s3 + $0x160] ss:$8 sps:$4 sm:$0xff]   ;;  %v12757_v18 = vld [vmem:[%s17315_s3 + $0x174] ss:$8 sps:$4 sm:$0xff]   ;;  %v12755_v19 = vld [vmem:[%s17315_s3 + $0x170] ss:$8 sps:$4 sm:$0xff]  }
 0x522   : > { %v12767_v23 = vld [vmem:[%s17315_s3 + $0x1b0] ss:$8 sps:$4 sm:$0xff]   ;;  %v12770_v47 = vld [vmem:[%s17315_s3 + $0x1c0] ss:$8 sps:$4 sm:$0xff]   ;;  %v12778_v11 = vld [vmem:[%s17315_s3 + $0x1e4] ss:$8 sps:$4 sm:$0xff]  }
 0x523   : > { %4938 = vrot.lane.b32.xlu0 %v15459_v14, %s13458_s26  ;;  %v12773_v39 = vld [vmem:[%s17315_s3 + $0x1d0] ss:$8 sps:$4 sm:$0xff]   ;;  %v12776_v58 = vld [vmem:[%s17315_s3 + $0x1e0] ss:$8 sps:$4 sm:$0xff]   ;;  %v12781_v37 = vld [vmem:[%s17315_s3 + $0x1f4] ss:$8 sps:$4 sm:$0xff]  }
 0x524   : > { %4940 = vrot.lane.b32.xlu1 %v4497_v26, %s13458_s26  ;;  %v12779_v41 = vld [vmem:[%s17315_s3 + $0x1f0] ss:$8 sps:$4 sm:$0xff]   ;;  %v12784_v22 = vld [vmem:[%s17315_s3 + $0x204] ss:$8 sps:$4 sm:$0xff]   ;;  %v12782_v52 = vld [vmem:[%s17315_s3 + $0x200] ss:$8 sps:$4 sm:$0xff]  }
 0x525   : > { %v12787_v56 = vld [vmem:[%s17315_s3 + $0x214] ss:$8 sps:$4 sm:$0xff]  }
 0x527   : > { %5089 = vrot.lane.b32.xlu0 %v15459_v14, %s13459_s28 }
 0x528   : > { %5091 = vrot.lane.b32.xlu1 %v4497_v26, %s13459_s28  ;;  %v12724_v26 = vld [vmem:[%s17315_s3 + $0x44] ss:$8 sps:$4 sm:$0xff]  }
 0x52b   : > { %5414 = vrot.lane.b32.xlu0 %v5393_v9, %s13456_s16 }
 0x52c   : > { %5416 = vrot.lane.b32.xlu1 %v5394_v55, %s13456_s16 }
 0x52f   : > { %5564 = vrot.lane.b32.xlu0 %v5393_v9, %s13457_s25 }
 0x530   : > { %5566 = vrot.lane.b32.xlu1 %v5394_v55, %s13457_s25 }
 0x533   : > { %5714 = vrot.lane.b32.xlu0 %v5393_v9, %s13458_s26 }
 0x534   : > { %5716 = vrot.lane.b32.xlu1 %v5394_v55, %s13458_s26 }
 0x537   : > { %5864 = vrot.lane.b32.xlu0 %v5393_v9, %s13459_s28  ;;  %v12739_v9 = vld [vmem:[%s17315_s3 + $0x114] ss:$8 sps:$4 sm:$0xff]  }
 0x538   : > { %5866 = vrot.lane.b32.xlu1 %v5394_v55, %s13459_s28  ;;  %v12742_v55 = vld [vmem:[%s17315_s3 + $0x124] ss:$8 sps:$4 sm:$0xff]  }
 0x53b   : > { %6187 = vrot.lane.b32.xlu0 %v6166_v34, %s13456_s16 }
 0x53c   : > { %6189 = vrot.lane.b32.xlu1 %v6167_v42, %s13456_s16 }
 0x53f   : > { %6337 = vrot.lane.b32.xlu0 %v6166_v34, %s13457_s25 }
 0x540   : > { %6339 = vrot.lane.b32.xlu1 %v6167_v42, %s13457_s25 }
 0x543   : > { %6487 = vrot.lane.b32.xlu0 %v6166_v34, %s13458_s26 }
 0x544   : > { %6489 = vrot.lane.b32.xlu1 %v6167_v42, %s13458_s26 }
 0x547   : > { %6637 = vrot.lane.b32.xlu0 %v6166_v34, %s13459_s28  ;;  %v12760_v34 = vld [vmem:[%s17315_s3 + $0x184] ss:$8 sps:$4 sm:$0xff]  }
 0x548   : > { %6639 = vrot.lane.b32.xlu1 %v6167_v42, %s13459_s28 }
 0x54b   : > { %6961 = vrot.lane.b32.xlu0 %v6940_v44, %s13456_s16 }
 0x54c   : > { %6963 = vrot.lane.b32.xlu1 %v6941_v61, %s13456_s16 }
 0x54f   : > { %7111 = vrot.lane.b32.xlu0 %v6940_v44, %s13457_s25 }
 0x550   : > { %7113 = vrot.lane.b32.xlu1 %v6941_v61, %s13457_s25 }
 0x553   : > { %7261 = vrot.lane.b32.xlu0 %v6940_v44, %s13458_s26 }
 0x554   : > { %7263 = vrot.lane.b32.xlu1 %v6941_v61, %s13458_s26 }
 0x557   : > { %7411 = vrot.lane.b32.xlu0 %v6940_v44, %s13459_s28  ;;  %v12772_v44 = vld [vmem:[%s17315_s3 + $0x1c4] ss:$8 sps:$4 sm:$0xff]  }
 0x558   : > { %7413 = vrot.lane.b32.xlu1 %v6941_v61, %s13459_s28  ;;  %v12775_v61 = vld [vmem:[%s17315_s3 + $0x1d4] ss:$8 sps:$4 sm:$0xff]  }
 0x55b   : > { %7734 = vrot.lane.b32.xlu0 %v7713_v50, %s13456_s16 }
 0x55c   : > { %7736 = vrot.lane.b32.xlu1 %v7714_v60, %s13456_s16 }
 0x55f   : > { %7884 = vrot.lane.b32.xlu0 %v7713_v50, %s13457_s25 }
 0x560   : > { %7886 = vrot.lane.b32.xlu1 %v7714_v60, %s13457_s25  ;;  %s17228_s25 = sand.u32 1, %s13440_s30  }
 0x561   : > { %s469_s18 = scalar_lea.vmem [#allocation6], %s17228_s25  ;;  %s9497_s29 = scalar_lea.sflag [#allocation7], %s17228_s25 }
 0x562   : > { %s9522_s15 = sshll.u32 %s469_s18, 4  ;;  %s9523_s15 = int_to_ptr.vmem [resolvable:$true] %s9522_s15 }
 0x563   : > { %8034 = vrot.lane.b32.xlu0 %v7713_v50, %s13458_s26  ;;  %s13354_s20 = scalar_lea.vmem %s9523_s15, 16  ;;  %p13361_p0 = scmp.lt.s32.totalorder %s9523_s15, %s13359_s21 }
 0x564   : > { %8036 = vrot.lane.b32.xlu1 %v7714_v60, %s13458_s26  ;;  %p13355_p11 = scmp.ne.s32.totalorder %s9523_s15, %s13354_s20  ;;  %p13362_p1 = scmp.lt.s32.totalorder %s13360_s13, %s13354_s20 }
 0x566   : > { %p13356_p12 = pnand %p13355_p11, %p13576_p5  ;;  %p13363_p2 = por %p13362_p1, %p13361_p0 }
 0x567   : > { %8184 = vrot.lane.b32.xlu0 %v7713_v50, %s13459_s28 }
 0x568   : > { %8186 = vrot.lane.b32.xlu1 %v7714_v60, %s13459_s28  ;;  %v12785_v60 = vld [vmem:[%s17315_s3 + $0x210] ss:$8 sps:$4 sm:$0xff]   ;;  %p13357_p13 = pneg %p13356_p12 }
 0x56a   : > { %p13364_p3 = pnand %p13363_p2, %p13357_p13 }
 0x58d   : > { %v4518_v49 = vpop.permute.xlu0 %4517 }
 0x58e   : > { %v4520_v29 = vpop.permute.xlu1 %4519 }
 0x58f   : > { %v4522_v12 = vsel %vm4521_vm7, %v4518_v49, %v4520_v29  ;;  %v12790_v49 = vld [vmem:[%s17315_s3 + $0x224] ss:$8 sps:$4 sm:$0xff]   ;;  %v12793_v29 = vld [vmem:[%s17315_s3 + $0x234] ss:$8 sps:$4 sm:$0xff]  }
 0x590   : > { %4637 = vmatmul.mubr.bf16.vlgmr.msra.gmra.mrb[8].mxu1 %v4522_v12  ;;  %v12796_v12 = vld [vmem:[%s17315_s3 + $0x244] ss:$8 sps:$4 sm:$0xff]  }
 0x591   : > { %4728 = vmatpush1.bf16.msra.mxu1 %v12710_v27  ;;  %4759 = vmatprep.mubr.bf16.mxu1 %v17429_v7  ;;  %v4788_v42 = vpop.permute.xlu0 %4787  ;;  %v12788_v27 = vld [vmem:[%s17315_s3 + $0x220] ss:$8 sps:$4 sm:$0xff]  }
 0x592   : > { %4729 = vmatprep.subr.bf16.mxu1 %v12715_v5  ;;  %v4790_v43 = vpop.permute.xlu1 %4789  ;;  %v12791_v5 = vld [vmem:[%s17315_s3 + $0x230] ss:$8 sps:$4 sm:$0xff]  }
 0x593   : > { %v4792_v63 = vsel %vm4791_vm8, %v4788_v42, %v4790_v43  ;;  %v12832_v42 = vld [vmem:[%s17315_s3 + $0x304] ss:$8 sps:$4 sm:$0xff]  }
 0x595   : > { %4730 = vmatpush1.bf16.msra.mxu1 %v12713_v3  ;;  %v4939_v30 = vpop.permute.xlu0 %4938  ;;  %v12794_v3 = vld [vmem:[%s17315_s3 + $0x240] ss:$8 sps:$4 sm:$0xff]  }
 0x596   : > { %4731 = vmatprep.subr.bf16.mxu1 %v12718_v10  ;;  %v4941_v35 = vpop.permute.xlu1 %4940  ;;  %v12799_v10 = vld [vmem:[%s17315_s3 + $0x254] ss:$8 sps:$4 sm:$0xff]  }
 0x597   : > { %v4943_v50 = vsel %vm4942_vm9, %v4939_v30, %v4941_v35  ;;  %v12854_v35 = vld [vmem:[%s17315_s3 + $0x380] ss:$8 sps:$4 sm:$0xff]  }
 0x599   : > { %4732 = vmatpush1.bf16.msra.mxu1 %v12716_v28  ;;  %v12797_v28 = vld [vmem:[%s17315_s3 + $0x250] ss:$8 sps:$4 sm:$0xff]  }
 0x59a   : > { %4733 = vmatprep.subr.bf16.mxu1 %v12721_v1  ;;  %v12802_v1 = vld [vmem:[%s17315_s3 + $0x264] ss:$8 sps:$4 sm:$0xff]  }
 0x59d   : > { %4734 = vmatpush1.bf16.msra.mxu1 %v12719_v6  ;;  %v12800_v6 = vld [vmem:[%s17315_s3 + $0x260] ss:$8 sps:$4 sm:$0xff]  }
 0x59e   : > { %4735 = vmatprep.subr.bf16.mxu1 %v12724_v26  ;;  %v12805_v26 = vld [vmem:[%s17315_s3 + $0x274] ss:$8 sps:$4 sm:$0xff]  }
 0x5a1   : > { %4736 = vmatpush1.bf16.msra.mxu1 %v12722_v62  ;;  %v12803_v62 = vld [vmem:[%s17315_s3 + $0x270] ss:$8 sps:$4 sm:$0xff]  }
 0x5a2   : > { %4737 = vmatprep.subr.bf16.mxu1 %v12727_v0  ;;  %v12808_v0 = vld [vmem:[%s17315_s3 + $0x284] ss:$8 sps:$4 sm:$0xff]  }
 0x5a5   : > { %4738 = vmatpush1.bf16.msra.mxu1 %v12725_v2  ;;  %v5090_v2 = vpop.permute.xlu0 %5089 }
 0x5a6   : > { %4739 = vmatprep.subr.bf16.mxu1 %v12730_v8  ;;  %v5092_v8 = vpop.permute.xlu1 %5091 }
 0x5a9   : > { %4740 = vmatpush1.bf16.msra.mxu1 %v12728_v57  ;;  %v12806_v57 = vld [vmem:[%s17315_s3 + $0x280] ss:$8 sps:$4 sm:$0xff]  }
 0x5aa   : > { %4741 = vmatprep.subr.bf16.mxu1 %v12733_v54  ;;  %v12811_v54 = vld [vmem:[%s17315_s3 + $0x294] ss:$8 sps:$4 sm:$0xff]   ;;  %v5417_v30 = vpop.permute.xlu1 %5416 }
 0x5ad   : > { %4742 = vmatpush1.bf16.msra.mxu1 %v12731_v21  ;;  %v5094_v21 = vsel %vm576_vm0, %v5090_v2, %v5092_v8  ;;  %v12878_v8 = vld [vmem:[%s17315_s3 + $0x400] ss:$8 sps:$4 sm:$0xff]  }
 0x5ae   : > { %4874 = vmatprep.subr.bf16.mxu1 %v12736_v31  ;;  %v12809_v31 = vld [vmem:[%s17315_s3 + $0x290] ss:$8 sps:$4 sm:$0xff]   ;;  %v5567_v2 = vpop.permute.xlu1 %5566 }
 0x5b0   : > { %4760 = vmatmul.mubr.bf16.vlgmr.msra.gmra.mrb[8].mxu1 %v15459_v14  ;;  %v12745_v14 = vld [vmem:[%s17315_s3 + $0x134] ss:$8 sps:$4 sm:$0xff]  }
 0x5b1   : > { %4875 = vmatpush1.bf16.msra.mxu1 %v12734_v33  ;;  %4906 = vmatprep.mubr.bf16.mxu1 %v17429_v7  ;;  %v12814_v33 = vld [vmem:[%s17315_s3 + $0x2a4] ss:$8 sps:$4 sm:$0xff]  }
 0x5b2   : > { %4876 = vmatprep.subr.bf16.mxu1 %v12739_v9  ;;  %v12812_v9 = vld [vmem:[%s17315_s3 + $0x2a0] ss:$8 sps:$4 sm:$0xff]  }
 0x5b5   : > { %4877 = vmatpush1.bf16.msra.mxu1 %v12737_v25  ;;  %v12817_v25 = vld [vmem:[%s17315_s3 + $0x2b4] ss:$8 sps:$4 sm:$0xff]  }
 0x5b6   : > { %4878 = vmatprep.subr.bf16.mxu1 %v12742_v55  ;;  %v12815_v55 = vld [vmem:[%s17315_s3 + $0x2b0] ss:$8 sps:$4 sm:$0xff]  }
 0x5b9   : > { %4879 = vmatpush1.bf16.msra.mxu1 %v12740_v59  ;;  %v12820_v59 = vld [vmem:[%s17315_s3 + $0x2c4] ss:$8 sps:$4 sm:$0xff]  }
 0x5ba   : > { %4880 = vmatprep.subr.bf16.mxu1 %v12745_v14  ;;  %v12818_v14 = vld [vmem:[%s17315_s3 + $0x2c0] ss:$8 sps:$4 sm:$0xff]  }
 0x5bd   : > { %4881 = vmatpush1.bf16.msra.mxu1 %v12743_v16  ;;  %v12823_v16 = vld [vmem:[%s17315_s3 + $0x2d4] ss:$8 sps:$4 sm:$0xff]  }
 0x5be   : > { %4882 = vmatprep.subr.bf16.mxu1 %v12748_v24  ;;  %v12821_v24 = vld [vmem:[%s17315_s3 + $0x2d0] ss:$8 sps:$4 sm:$0xff]  }
 0x5c1   : > { %4883 = vmatpush1.bf16.msra.mxu1 %v12746_v20  ;;  %v12826_v20 = vld [vmem:[%s17315_s3 + $0x2e4] ss:$8 sps:$4 sm:$0xff]  }
 0x5c2   : > { %4884 = vmatprep.subr.bf16.mxu1 %v12751_v48  ;;  %v12824_v48 = vld [vmem:[%s17315_s3 + $0x2e0] ss:$8 sps:$4 sm:$0xff]  }
 0x5c5   : > { %4885 = vmatpush1.bf16.msra.mxu1 %v12749_v13  ;;  %v12829_v13 = vld [vmem:[%s17315_s3 + $0x2f4] ss:$8 sps:$4 sm:$0xff]  }
 0x5c6   : > { %4886 = vmatprep.subr.bf16.mxu1 %v12754_v46  ;;  %v5223_v46 = vld [vmem:[#allocation2] sm:$0xfe] }
 0x5c9   : > { %4887 = vmatpush1.bf16.msra.mxu1 %v12752_v45  ;;  %v5224_v45 = vld [vmem:[#allocation2 + $0x10] sm:$0x1] }
 0x5ca   : > { %4888 = vmatprep.subr.bf16.mxu1 %v12757_v18  ;;  %v12827_v18 = vld [vmem:[%s17315_s3 + $0x2f0] ss:$8 sps:$4 sm:$0xff]  }
 0x5cd   : > { %4889 = vmatpush1.bf16.msra.mxu1 %v12755_v19  ;;  %v5228_v19 = vrot.slane %v5223_v46, 1  ;;  %v12904_v46 = vld [vmem:[%s17315_s3 + $0x484] ss:$8 sps:$4 sm:$0xff]  }
 0x5ce   : > { %5025 = vmatprep.subr.bf16.mxu1 %v12760_v34  ;;  %v5229_v34 = vrot.slane %v5224_v45, 1 }
 0x5d0   : > { %4907 = vmatmul.mubr.bf16.vlgmr.msra.gmra.mrb[8].mxu1 %v4792_v63  ;;  %v15765_v43 = vsel %vm5227_vm5, %v5228_v19, %v5229_v34  ;;  %v12835_v63 = vld [vmem:[%s17315_s3 + $0x314] ss:$8 sps:$4 sm:$0xff]   ;;  %v12902_v19 = vld [vmem:[%s17315_s3 + $0x480] ss:$8 sps:$4 sm:$0xff]  }
 0x5d1   : > { %5026 = vmatpush1.bf16.msra.mxu1 %v12758_v51  ;;  %5057 = vmatprep.mubr.bf16.mxu1 %v17429_v7  ;;  %v12830_v51 = vld [vmem:[%s17315_s3 + $0x300] ss:$8 sps:$4 sm:$0xff]   ;;  %v12907_v34 = vld [vmem:[%s17315_s3 + $0x494] ss:$8 sps:$4 sm:$0xff]  }
 0x5d2   : > { %5027 = vmatprep.subr.bf16.mxu1 %v12763_v53  ;;  %v5232_v53 = vpack.c.bf16 %v15765_v43, %v15456_v36  ;;  %v12836_v36 = vld [vmem:[%s17315_s3 + $0x320] ss:$8 sps:$4 sm:$0xff]  }
 0x5d5   : > { %5028 = vmatpush1.bf16.msra.mxu1 %v12761_v4  ;;  %v12833_v4 = vld [vmem:[%s17315_s3 + $0x310] ss:$8 sps:$4 sm:$0xff]  }
 0x5d6   : > { %5029 = vmatprep.subr.bf16.mxu1 %v12766_v15  ;;  %v12838_v15 = vld [vmem:[%s17315_s3 + $0x324] ss:$8 sps:$4 sm:$0xff]  }
 0x5d9   : > { %5030 = vmatpush1.bf16.msra.mxu1 %v12764_v17  ;;  %v12841_v17 = vld [vmem:[%s17315_s3 + $0x334] ss:$8 sps:$4 sm:$0xff]  }
 0x5da   : > { %5031 = vmatprep.subr.bf16.mxu1 %v12769_v32  ;;  %v12839_v32 = vld [vmem:[%s17315_s3 + $0x330] ss:$8 sps:$4 sm:$0xff]  }
 0x5dd   : > { %5032 = vmatpush1.bf16.msra.mxu1 %v12767_v23  ;;  %v12844_v23 = vld [vmem:[%s17315_s3 + $0x344] ss:$8 sps:$4 sm:$0xff]  }
 0x5de   : > { %5033 = vmatprep.subr.bf16.mxu1 %v12772_v44  ;;  %v12842_v44 = vld [vmem:[%s17315_s3 + $0x340] ss:$8 sps:$4 sm:$0xff]  }
 0x5e1   : > { %5034 = vmatpush1.bf16.msra.mxu1 %v12770_v47  ;;  %v12847_v47 = vld [vmem:[%s17315_s3 + $0x354] ss:$8 sps:$4 sm:$0xff]  }
 0x5e2   : > { %5035 = vmatprep.subr.bf16.mxu1 %v12775_v61  ;;  %v12845_v61 = vld [vmem:[%s17315_s3 + $0x350] ss:$8 sps:$4 sm:$0xff]  }
 0x5e5   : > { %5036 = vmatpush1.bf16.msra.mxu1 %v12773_v39  ;;  %v12850_v39 = vld [vmem:[%s17315_s3 + $0x364] ss:$8 sps:$4 sm:$0xff]  }
 0x5e6   : > { %5037 = vmatprep.subr.bf16.mxu1 %v12778_v11  ;;  %v12848_v11 = vld [vmem:[%s17315_s3 + $0x360] ss:$8 sps:$4 sm:$0xff]  }
 0x5e9   : > { %5038 = vmatpush1.bf16.msra.mxu1 %v12776_v58  ;;  %v12853_v58 = vld [vmem:[%s17315_s3 + $0x374] ss:$8 sps:$4 sm:$0xff]  }
 0x5ea   : > { %5039 = vmatprep.subr.bf16.mxu1 %v12781_v37  ;;  %v12851_v37 = vld [vmem:[%s17315_s3 + $0x370] ss:$8 sps:$4 sm:$0xff]  }
 0x5ed   : > { %5040 = vmatpush1.bf16.msra.mxu1 %v12779_v41  ;;  %v12856_v41 = vld [vmem:[%s17315_s3 + $0x384] ss:$8 sps:$4 sm:$0xff]  }
 0x5ee   : > { %5176 = vmatprep.subr.bf16.mxu1 %v12784_v22  ;;  %v5415_v22 = vpop.permute.xlu0 %5414 }
 0x5f0   : > { %5058 = vmatmul.mubr.bf16.vlgmr.msra.gmra.mrb[8].mxu1 %v4943_v50  ;;  %v12857_v50 = vld [vmem:[%s17315_s3 + $0x390] ss:$8 sps:$4 sm:$0xff]  }
 0x5f1   : > { %5177 = vmatpush1.bf16.msra.mxu1 %v12782_v52  ;;  %5208 = vmatprep.mubr.bf16.mxu1 %v17429_v7  ;;  %v12859_v52 = vld [vmem:[%s17315_s3 + $0x394] ss:$8 sps:$4 sm:$0xff]  }
 0x5f2   : > { %5178 = vmatprep.subr.bf16.mxu1 %v12787_v56  ;;  %v5418_v56 = vsel %vm4521_vm7, %v5415_v22, %v5417_v30  ;;  %v12931_v22 = vld [vmem:[%s17315_s3 + $0x514] ss:$8 sps:$4 sm:$0xff]  }
 0x5f5   : > { %5179 = vmatpush1.bf16.msra.mxu1 %v12785_v60  ;;  %v12862_v60 = vld [vmem:[%s17315_s3 + $0x3a4] ss:$8 sps:$4 sm:$0xff]  }
 0x5f6   : > { %5180 = vmatprep.subr.bf16.mxu1 %v12790_v49  ;;  %v12860_v49 = vld [vmem:[%s17315_s3 + $0x3a0] ss:$8 sps:$4 sm:$0xff]  }
 0x5f9   : > { %5181 = vmatpush1.bf16.msra.mxu1 %v12788_v27  ;;  %v12865_v27 = vld [vmem:[%s17315_s3 + $0x3b4] ss:$8 sps:$4 sm:$0xff]  }
 0x5fa   : > { %5182 = vmatprep.subr.bf16.mxu1 %v12793_v29  ;;  %v12863_v29 = vld [vmem:[%s17315_s3 + $0x3b0] ss:$8 sps:$4 sm:$0xff]  }
 0x5fd   : > { %5183 = vmatpush1.bf16.msra.mxu1 %v12791_v5  ;;  %v12868_v5 = vld [vmem:[%s17315_s3 + $0x3c4] ss:$8 sps:$4 sm:$0xff]  }
 0x5fe   : > { %5184 = vmatprep.subr.bf16.mxu1 %v12796_v12  ;;  %v12866_v12 = vld [vmem:[%s17315_s3 + $0x3c0] ss:$8 sps:$4 sm:$0xff]  }
 0x601   : > { %5185 = vmatpush1.bf16.msra.mxu1 %v12794_v3  ;;  %v12871_v3 = vld [vmem:[%s17315_s3 + $0x3d4] ss:$8 sps:$4 sm:$0xff]  }
 0x602   : > { %5186 = vmatprep.subr.bf16.mxu1 %v12799_v10  ;;  %v12869_v10 = vld [vmem:[%s17315_s3 + $0x3d0] ss:$8 sps:$4 sm:$0xff]  }
 0x605   : > { %5187 = vmatpush1.bf16.msra.mxu1 %v12797_v28  ;;  %v12874_v28 = vld [vmem:[%s17315_s3 + $0x3e4] ss:$8 sps:$4 sm:$0xff]  }
 0x606   : > { %5188 = vmatprep.subr.bf16.mxu1 %v12802_v1  ;;  %v12872_v1 = vld [vmem:[%s17315_s3 + $0x3e0] ss:$8 sps:$4 sm:$0xff]  }
 0x609   : > { %5189 = vmatpush1.bf16.msra.mxu1 %v12800_v6  ;;  %v12877_v6 = vld [vmem:[%s17315_s3 + $0x3f4] ss:$8 sps:$4 sm:$0xff]  }
 0x60a   : > { %5190 = vmatprep.subr.bf16.mxu1 %v12805_v26  ;;  %v12875_v26 = vld [vmem:[%s17315_s3 + $0x3f0] ss:$8 sps:$4 sm:$0xff]  }
 0x60d   : > { %5191 = vmatpush1.bf16.msra.mxu1 %v12803_v62  ;;  %v12880_v62 = vld [vmem:[%s17315_s3 + $0x404] ss:$8 sps:$4 sm:$0xff]  }
 0x60e   : > { %5330 = vmatprep.subr.bf16.mxu1 %v12808_v0  ;;  %v5565_v0 = vpop.permute.xlu0 %5564 }
 0x610   : > { %5209 = vmatmul.mubr.bf16.vlgmr.msra.gmra.mrb[8].mxu1 %v5094_v21  ;;  %v12881_v21 = vld [vmem:[%s17315_s3 + $0x410] ss:$8 sps:$4 sm:$0xff]  }
 0x611   : > { %5331 = vmatpush1.bf16.msra.mxu1 %v12806_v57  ;;  %5362 = vmatprep.mubr.bf16.mxu1 %v17429_v7  ;;  %v12883_v57 = vld [vmem:[%s17315_s3 + $0x414] ss:$8 sps:$4 sm:$0xff]  }
 0x612   : > { %5332 = vmatprep.subr.bf16.mxu1 %v12811_v54  ;;  %v5568_v54 = vsel %vm4791_vm8, %v5565_v0, %v5567_v2  ;;  %v5715_v45 = vpop.permute.xlu0 %5714  ;;  %v12952_v0 = vld [vmem:[%s17315_s3 + $0x584] ss:$8 sps:$4 sm:$0xff]  }
 0x615   : > { %5333 = vmatpush1.bf16.msra.mxu1 %v12809_v31  ;;  %v12886_v31 = vld [vmem:[%s17315_s3 + $0x424] ss:$8 sps:$4 sm:$0xff]  }
 0x616   : > { %5334 = vmatprep.subr.bf16.mxu1 %v12814_v33  ;;  %v12884_v33 = vld [vmem:[%s17315_s3 + $0x420] ss:$8 sps:$4 sm:$0xff]  }
 0x619   : > { %5335 = vmatpush1.bf16.msra.mxu1 %v12812_v9  ;;  %v12889_v9 = vld [vmem:[%s17315_s3 + $0x434] ss:$8 sps:$4 sm:$0xff]  }
 0x61a   : > { %5336 = vmatprep.subr.bf16.mxu1 %v12817_v25  ;;  %v12887_v25 = vld [vmem:[%s17315_s3 + $0x430] ss:$8 sps:$4 sm:$0xff]  }
 0x61d   : > { %5337 = vmatpush1.bf16.msra.mxu1 %v12815_v55  ;;  %v12892_v55 = vld [vmem:[%s17315_s3 + $0x444] ss:$8 sps:$4 sm:$0xff]  }
 0x61e   : > { %5338 = vmatprep.subr.bf16.mxu1 %v12820_v59  ;;  %v12890_v59 = vld [vmem:[%s17315_s3 + $0x440] ss:$8 sps:$4 sm:$0xff]  }
 0x621   : > { %5339 = vmatpush1.bf16.msra.mxu1 %v12818_v14  ;;  %v12895_v14 = vld [vmem:[%s17315_s3 + $0x454] ss:$8 sps:$4 sm:$0xff]  }
 0x622   : > { %5340 = vmatprep.subr.bf16.mxu1 %v12823_v16  ;;  %v12893_v16 = vld [vmem:[%s17315_s3 + $0x450] ss:$8 sps:$4 sm:$0xff]  }
 0x625   : > { %5341 = vmatpush1.bf16.msra.mxu1 %v12821_v24  ;;  %v12898_v24 = vld [vmem:[%s17315_s3 + $0x464] ss:$8 sps:$4 sm:$0xff]  }
 0x626   : > { %5342 = vmatprep.subr.bf16.mxu1 %v12826_v20  ;;  %v12896_v20 = vld [vmem:[%s17315_s3 + $0x460] ss:$8 sps:$4 sm:$0xff]  }
 0x629   : > { %5343 = vmatpush1.bf16.msra.mxu1 %v12824_v48  ;;  %v12901_v48 = vld [vmem:[%s17315_s3 + $0x474] ss:$8 sps:$4 sm:$0xff]  }
 0x62a   : > { %5344 = vmatprep.subr.bf16.mxu1 %v12829_v13  ;;  %v12899_v13 = vld [vmem:[%s17315_s3 + $0x470] ss:$8 sps:$4 sm:$0xff]  }
 0x62d   : > { %5345 = vmatpush1.bf16.msra.mxu1 %v12827_v18  ;;  %v5717_v18 = vpop.permute.xlu1 %5716 }
 0x62e   : > { %5500 = vmatprep.subr.bf16.mxu1 %v12832_v42  ;;  %v5718_v42 = vsel %vm4942_vm9, %v5715_v45, %v5717_v18  ;;  %v12974_v18 = vld [vmem:[%s17315_s3 + $0x600] ss:$8 sps:$4 sm:$0xff]  }
 0x630   : > { %5363 = vmatmul.mubr.bf16.vlgmr.msra.gmra.mrb[8].mxu1 %v5232_v53  ;;  %v12910_v53 = vld [vmem:[%s17315_s3 + $0x4a4] ss:$8 sps:$4 sm:$0xff]  }
 0x631   : > { %5501 = vmatpush1.bf16.msra.mxu1 %v12830_v51  ;;  %5532 = vmatprep.mubr.bf16.mxu1 %v17429_v7  ;;  %v12905_v51 = vld [vmem:[%s17315_s3 + $0x490] ss:$8 sps:$4 sm:$0xff]  }
 0x632   : > { %5502 = vmatprep.subr.bf16.mxu1 %v12835_v63  ;;  %v12908_v63 = vld [vmem:[%s17315_s3 + $0x4a0] ss:$8 sps:$4 sm:$0xff]  }
 0x635   : > { %5503 = vmatpush1.bf16.msra.mxu1 %v12833_v4  ;;  %v12913_v4 = vld [vmem:[%s17315_s3 + $0x4b4] ss:$8 sps:$4 sm:$0xff]  }
 0x636   : > { %5504 = vmatprep.subr.bf16.mxu1 %v12838_v15  ;;  %v12911_v15 = vld [vmem:[%s17315_s3 + $0x4b0] ss:$8 sps:$4 sm:$0xff]  }
 0x639   : > { %5505 = vmatpush1.bf16.msra.mxu1 %v12836_v36  ;;  %v12916_v36 = vld [vmem:[%s17315_s3 + $0x4c4] ss:$8 sps:$4 sm:$0xff]  }
 0x63a   : > { %5506 = vmatprep.subr.bf16.mxu1 %v12841_v17  ;;  %v12914_v17 = vld [vmem:[%s17315_s3 + $0x4c0] ss:$8 sps:$4 sm:$0xff]  }
 0x63d   : > { %5507 = vmatpush1.bf16.msra.mxu1 %v12839_v32  ;;  %v12919_v32 = vld [vmem:[%s17315_s3 + $0x4d4] ss:$8 sps:$4 sm:$0xff]  }
 0x63e   : > { %5508 = vmatprep.subr.bf16.mxu1 %v12844_v23  ;;  %v12917_v23 = vld [vmem:[%s17315_s3 + $0x4d0] ss:$8 sps:$4 sm:$0xff]  }
 0x641   : > { %5509 = vmatpush1.bf16.msra.mxu1 %v12842_v44  ;;  %v12922_v44 = vld [vmem:[%s17315_s3 + $0x4e4] ss:$8 sps:$4 sm:$0xff]  }
 0x642   : > { %5510 = vmatprep.subr.bf16.mxu1 %v12847_v47  ;;  %v12920_v47 = vld [vmem:[%s17315_s3 + $0x4e0] ss:$8 sps:$4 sm:$0xff]  }
 0x645   : > { %5511 = vmatpush1.bf16.msra.mxu1 %v12845_v61  ;;  %v12925_v61 = vld [vmem:[%s17315_s3 + $0x4f4] ss:$8 sps:$4 sm:$0xff]  }
 0x646   : > { %5512 = vmatprep.subr.bf16.mxu1 %v12850_v39  ;;  %v12923_v39 = vld [vmem:[%s17315_s3 + $0x4f0] ss:$8 sps:$4 sm:$0xff]  }
 0x649   : > { %5513 = vmatpush1.bf16.msra.mxu1 %v12848_v11  ;;  %v12928_v11 = vld [vmem:[%s17315_s3 + $0x504] ss:$8 sps:$4 sm:$0xff]  }
 0x64a   : > { %5514 = vmatprep.subr.bf16.mxu1 %v12853_v58  ;;  %v5865_v58 = vpop.permute.xlu0 %5864 }
 0x64d   : > { %5515 = vmatpush1.bf16.msra.mxu1 %v12851_v37  ;;  %v5867_v37 = vpop.permute.xlu1 %5866 }
 0x64e   : > { %5650 = vmatprep.subr.bf16.mxu1 %v12856_v41  ;;  %v12926_v41 = vld [vmem:[%s17315_s3 + $0x500] ss:$8 sps:$4 sm:$0xff]   ;;  %v5868_v30 = vsel %vm576_vm0, %v5865_v58, %v5867_v37 }
 0x64f   : > { %v12998_v37 = vld [vmem:[%s17315_s3 + $0x680] ss:$8 sps:$4 sm:$0xff]  }
 0x650   : > { %5533 = vmatmul.mubr.bf16.vlgmr.msra.gmra.mrb[8].mxu1 %v5418_v56  ;;  %v12932_v56 = vld [vmem:[%s17315_s3 + $0x520] ss:$8 sps:$4 sm:$0xff]  }
 0x651   : > { %5651 = vmatpush1.bf16.msra.mxu1 %v12854_v35  ;;  %5682 = vmatprep.mubr.bf16.mxu1 %v17429_v7  ;;  %v12929_v35 = vld [vmem:[%s17315_s3 + $0x510] ss:$8 sps:$4 sm:$0xff]   ;;  %v6190_v45 = vpop.permute.xlu1 %6189 }
 0x652   : > { %5652 = vmatprep.subr.bf16.mxu1 %v12859_v52  ;;  %v12934_v52 = vld [vmem:[%s17315_s3 + $0x524] ss:$8 sps:$4 sm:$0xff]  }
 0x655   : > { %5653 = vmatpush1.bf16.msra.mxu1 %v12857_v50  ;;  %v12937_v50 = vld [vmem:[%s17315_s3 + $0x534] ss:$8 sps:$4 sm:$0xff]   ;;  %v6340_v58 = vpop.permute.xlu1 %6339 }
 0x656   : > { %5654 = vmatprep.subr.bf16.mxu1 %v12862_v60  ;;  %v12935_v60 = vld [vmem:[%s17315_s3 + $0x530] ss:$8 sps:$4 sm:$0xff]  }
 0x659   : > { %5655 = vmatpush1.bf16.msra.mxu1 %v12860_v49  ;;  %v12940_v49 = vld [vmem:[%s17315_s3 + $0x544] ss:$8 sps:$4 sm:$0xff]  }
 0x65a   : > { %5656 = vmatprep.subr.bf16.mxu1 %v12865_v27  ;;  %v12938_v27 = vld [vmem:[%s17315_s3 + $0x540] ss:$8 sps:$4 sm:$0xff]  }
 0x65d   : > { %5657 = vmatpush1.bf16.msra.mxu1 %v12863_v29  ;;  %v12943_v29 = vld [vmem:[%s17315_s3 + $0x554] ss:$8 sps:$4 sm:$0xff]  }
 0x65e   : > { %5658 = vmatprep.subr.bf16.mxu1 %v12868_v5  ;;  %v12941_v5 = vld [vmem:[%s17315_s3 + $0x550] ss:$8 sps:$4 sm:$0xff]  }
 0x661   : > { %5659 = vmatpush1.bf16.msra.mxu1 %v12866_v12  ;;  %v12946_v12 = vld [vmem:[%s17315_s3 + $0x564] ss:$8 sps:$4 sm:$0xff]  }
 0x662   : > { %5660 = vmatprep.subr.bf16.mxu1 %v12871_v3  ;;  %v5997_v3 = vld [vmem:[#allocation3] sm:$0xfe] }
 0x665   : > { %5661 = vmatpush1.bf16.msra.mxu1 %v12869_v10  ;;  %v5998_v10 = vld [vmem:[#allocation3 + $0x10] sm:$0x1] }
 0x666   : > { %5662 = vmatprep.subr.bf16.mxu1 %v12874_v28  ;;  %v12944_v28 = vld [vmem:[%s17315_s3 + $0x560] ss:$8 sps:$4 sm:$0xff]  }
 0x669   : > { %5663 = vmatpush1.bf16.msra.mxu1 %v12872_v1  ;;  %v12949_v1 = vld [vmem:[%s17315_s3 + $0x574] ss:$8 sps:$4 sm:$0xff]  }
 0x66a   : > { %5664 = vmatprep.subr.bf16.mxu1 %v12877_v6  ;;  %v6001_v6 = vrot.slane %v5997_v3, 1  ;;  %v13021_v3 = vld [vmem:[%s17315_s3 + $0x6f4] ss:$8 sps:$4 sm:$0xff]  }
 0x66d   : > { %5665 = vmatpush1.bf16.msra.mxu1 %v12875_v26  ;;  %v6002_v26 = vrot.slane %v5998_v10, 1  ;;  %v13019_v10 = vld [vmem:[%s17315_s3 + $0x6f0] ss:$8 sps:$4 sm:$0xff]  }
 0x66e   : > { %5800 = vmatprep.subr.bf16.mxu1 %v12880_v62  ;;  %v12947_v62 = vld [vmem:[%s17315_s3 + $0x570] ss:$8 sps:$4 sm:$0xff]  }
 0x66f   : > { %v16019_v2 = vsel %vm5227_vm5, %v6001_v6, %v6002_v26  ;;  %v6490_v6 = vpop.permute.xlu1 %6489  ;;  %v13022_v26 = vld [vmem:[%s17315_s3 + $0x700] ss:$8 sps:$4 sm:$0xff]  }
 0x670   : > { %5683 = vmatmul.mubr.bf16.vlgmr.msra.gmra.mrb[8].mxu1 %v5568_v54  ;;  %v12955_v54 = vld [vmem:[%s17315_s3 + $0x594] ss:$8 sps:$4 sm:$0xff]  }
 0x671   : > { %5801 = vmatpush1.bf16.msra.mxu1 %v12878_v8  ;;  %5832 = vmatprep.mubr.bf16.mxu1 %v17429_v7  ;;  %v12950_v8 = vld [vmem:[%s17315_s3 + $0x580] ss:$8 sps:$4 sm:$0xff]  }
 0x672   : > { %5802 = vmatprep.subr.bf16.mxu1 %v12883_v57  ;;  %v6005_v57 = vpack.c.bf16 %v16019_v2, %v15765_v43  ;;  %v12956_v43 = vld [vmem:[%s17315_s3 + $0x5a0] ss:$8 sps:$4 sm:$0xff]  }
 0x675   : > { %5803 = vmatpush1.bf16.msra.mxu1 %v12881_v21  ;;  %v12953_v21 = vld [vmem:[%s17315_s3 + $0x590] ss:$8 sps:$4 sm:$0xff]  }
 0x676   : > { %5804 = vmatprep.subr.bf16.mxu1 %v12886_v31  ;;  %v12958_v31 = vld [vmem:[%s17315_s3 + $0x5a4] ss:$8 sps:$4 sm:$0xff]  }
 0x679   : > { %5805 = vmatpush1.bf16.msra.mxu1 %v12884_v33  ;;  %v12961_v33 = vld [vmem:[%s17315_s3 + $0x5b4] ss:$8 sps:$4 sm:$0xff]  }
 0x67a   : > { %5806 = vmatprep.subr.bf16.mxu1 %v12889_v9  ;;  %v12959_v9 = vld [vmem:[%s17315_s3 + $0x5b0] ss:$8 sps:$4 sm:$0xff]  }
 0x67d   : > { %5807 = vmatpush1.bf16.msra.mxu1 %v12887_v25  ;;  %v12964_v25 = vld [vmem:[%s17315_s3 + $0x5c4] ss:$8 sps:$4 sm:$0xff]  }
 0x67e   : > { %5808 = vmatprep.subr.bf16.mxu1 %v12892_v55  ;;  %v12962_v55 = vld [vmem:[%s17315_s3 + $0x5c0] ss:$8 sps:$4 sm:$0xff]  }
 0x681   : > { %5809 = vmatpush1.bf16.msra.mxu1 %v12890_v59  ;;  %v12967_v59 = vld [vmem:[%s17315_s3 + $0x5d4] ss:$8 sps:$4 sm:$0xff]  }
 0x682   : > { %5810 = vmatprep.subr.bf16.mxu1 %v12895_v14  ;;  %v12965_v14 = vld [vmem:[%s17315_s3 + $0x5d0] ss:$8 sps:$4 sm:$0xff]  }
 0x685   : > { %5811 = vmatpush1.bf16.msra.mxu1 %v12893_v16  ;;  %v12970_v16 = vld [vmem:[%s17315_s3 + $0x5e4] ss:$8 sps:$4 sm:$0xff]  }
 0x686   : > { %5812 = vmatprep.subr.bf16.mxu1 %v12898_v24  ;;  %v12968_v24 = vld [vmem:[%s17315_s3 + $0x5e0] ss:$8 sps:$4 sm:$0xff]  }
 0x689   : > { %5813 = vmatpush1.bf16.msra.mxu1 %v12896_v20  ;;  %v12973_v20 = vld [vmem:[%s17315_s3 + $0x5f4] ss:$8 sps:$4 sm:$0xff]  }
 0x68a   : > { %5814 = vmatprep.subr.bf16.mxu1 %v12901_v48  ;;  %v12971_v48 = vld [vmem:[%s17315_s3 + $0x5f0] ss:$8 sps:$4 sm:$0xff]  }
 0x68d   : > { %5815 = vmatpush1.bf16.msra.mxu1 %v12899_v13  ;;  %v12976_v13 = vld [vmem:[%s17315_s3 + $0x604] ss:$8 sps:$4 sm:$0xff]  }
 0x68e   : > { %5950 = vmatprep.subr.bf16.mxu1 %v12904_v46  ;;  %v6188_v46 = vpop.permute.xlu0 %6187 }
 0x690   : > { %5833 = vmatmul.mubr.bf16.vlgmr.msra.gmra.mrb[8].mxu1 %v5718_v42  ;;  %v12977_v42 = vld [vmem:[%s17315_s3 + $0x610] ss:$8 sps:$4 sm:$0xff]  }
 0x691   : > { %5951 = vmatpush1.bf16.msra.mxu1 %v12902_v19  ;;  %5982 = vmatprep.mubr.bf16.mxu1 %v17429_v7  ;;  %v12979_v19 = vld [vmem:[%s17315_s3 + $0x614] ss:$8 sps:$4 sm:$0xff]  }
 0x692   : > { %5952 = vmatprep.subr.bf16.mxu1 %v12907_v34  ;;  %v6191_v34 = vsel %vm4521_vm7, %v6188_v46, %v6190_v45  ;;  %v13051_v46 = vld [vmem:[%s17315_s3 + $0x794] ss:$8 sps:$4 sm:$0xff]  }
 0x695   : > { %5953 = vmatpush1.bf16.msra.mxu1 %v12905_v51  ;;  %v12982_v51 = vld [vmem:[%s17315_s3 + $0x624] ss:$8 sps:$4 sm:$0xff]  }
 0x696   : > { %5954 = vmatprep.subr.bf16.mxu1 %v12910_v53  ;;  %v12980_v53 = vld [vmem:[%s17315_s3 + $0x620] ss:$8 sps:$4 sm:$0xff]  }
 0x699   : > { %5955 = vmatpush1.bf16.msra.mxu1 %v12908_v63  ;;  %v12985_v63 = vld [vmem:[%s17315_s3 + $0x634] ss:$8 sps:$4 sm:$0xff]  }
 0x69a   : > { %5956 = vmatprep.subr.bf16.mxu1 %v12913_v4  ;;  %v12983_v4 = vld [vmem:[%s17315_s3 + $0x630] ss:$8 sps:$4 sm:$0xff]  }
 0x69d   : > { %5957 = vmatpush1.bf16.msra.mxu1 %v12911_v15  ;;  %v12988_v15 = vld [vmem:[%s17315_s3 + $0x644] ss:$8 sps:$4 sm:$0xff]  }
 0x69e   : > { %5958 = vmatprep.subr.bf16.mxu1 %v12916_v36  ;;  %v12986_v36 = vld [vmem:[%s17315_s3 + $0x640] ss:$8 sps:$4 sm:$0xff]  }
 0x6a1   : > { %5959 = vmatpush1.bf16.msra.mxu1 %v12914_v17  ;;  %v12991_v17 = vld [vmem:[%s17315_s3 + $0x654] ss:$8 sps:$4 sm:$0xff]  }
 0x6a2   : > { %5960 = vmatprep.subr.bf16.mxu1 %v12919_v32  ;;  %v12989_v32 = vld [vmem:[%s17315_s3 + $0x650] ss:$8 sps:$4 sm:$0xff]  }
 0x6a5   : > { %5961 = vmatpush1.bf16.msra.mxu1 %v12917_v23  ;;  %v12994_v23 = vld [vmem:[%s17315_s3 + $0x664] ss:$8 sps:$4 sm:$0xff]  }
 0x6a6   : > { %5962 = vmatprep.subr.bf16.mxu1 %v12922_v44  ;;  %v12992_v44 = vld [vmem:[%s17315_s3 + $0x660] ss:$8 sps:$4 sm:$0xff]  }
 0x6a9   : > { %5963 = vmatpush1.bf16.msra.mxu1 %v12920_v47  ;;  %v12997_v47 = vld [vmem:[%s17315_s3 + $0x674] ss:$8 sps:$4 sm:$0xff]  }
 0x6aa   : > { %5964 = vmatprep.subr.bf16.mxu1 %v12925_v61  ;;  %v12995_v61 = vld [vmem:[%s17315_s3 + $0x670] ss:$8 sps:$4 sm:$0xff]  }
 0x6ad   : > { %5965 = vmatpush1.bf16.msra.mxu1 %v12923_v39  ;;  %v13000_v39 = vld [vmem:[%s17315_s3 + $0x684] ss:$8 sps:$4 sm:$0xff]  }
 0x6ae   : > { %6103 = vmatprep.subr.bf16.mxu1 %v12928_v11  ;;  %v6338_v11 = vpop.permute.xlu0 %6337 }
 0x6b0   : > { %5983 = vmatmul.mubr.bf16.vlgmr.msra.gmra.mrb[8].mxu1 %v5868_v30  ;;  %v13001_v30 = vld [vmem:[%s17315_s3 + $0x690] ss:$8 sps:$4 sm:$0xff]  }
 0x6b1   : > { %6104 = vmatpush1.bf16.msra.mxu1 %v12926_v41  ;;  %6135 = vmatprep.mubr.bf16.mxu1 %v17429_v7  ;;  %v13003_v41 = vld [vmem:[%s17315_s3 + $0x694] ss:$8 sps:$4 sm:$0xff]  }
 0x6b2   : > { %6105 = vmatprep.subr.bf16.mxu1 %v12931_v22  ;;  %v6341_v22 = vsel %vm4791_vm8, %v6338_v11, %v6340_v58  ;;  %v13072_v11 = vld [vmem:[%s17315_s3 + $0x804] ss:$8 sps:$4 sm:$0xff]  }
 0x6b5   : > { %6106 = vmatpush1.bf16.msra.mxu1 %v12929_v35  ;;  %v13006_v35 = vld [vmem:[%s17315_s3 + $0x6a4] ss:$8 sps:$4 sm:$0xff]  }
 0x6b6   : > { %6107 = vmatprep.subr.bf16.mxu1 %v12934_v52  ;;  %v13004_v52 = vld [vmem:[%s17315_s3 + $0x6a0] ss:$8 sps:$4 sm:$0xff]  }
 0x6b9   : > { %6108 = vmatpush1.bf16.msra.mxu1 %v12932_v56  ;;  %v13009_v56 = vld [vmem:[%s17315_s3 + $0x6b4] ss:$8 sps:$4 sm:$0xff]  }
 0x6ba   : > { %6109 = vmatprep.subr.bf16.mxu1 %v12937_v50  ;;  %v13007_v50 = vld [vmem:[%s17315_s3 + $0x6b0] ss:$8 sps:$4 sm:$0xff]  }
 0x6bd   : > { %6110 = vmatpush1.bf16.msra.mxu1 %v12935_v60  ;;  %v13012_v60 = vld [vmem:[%s17315_s3 + $0x6c4] ss:$8 sps:$4 sm:$0xff]  }
 0x6be   : > { %6111 = vmatprep.subr.bf16.mxu1 %v12940_v49  ;;  %v13010_v49 = vld [vmem:[%s17315_s3 + $0x6c0] ss:$8 sps:$4 sm:$0xff]  }
 0x6c1   : > { %6112 = vmatpush1.bf16.msra.mxu1 %v12938_v27  ;;  %v13015_v27 = vld [vmem:[%s17315_s3 + $0x6d4] ss:$8 sps:$4 sm:$0xff]  }
 0x6c2   : > { %6113 = vmatprep.subr.bf16.mxu1 %v12943_v29  ;;  %v13013_v29 = vld [vmem:[%s17315_s3 + $0x6d0] ss:$8 sps:$4 sm:$0xff]  }
 0x6c5   : > { %6114 = vmatpush1.bf16.msra.mxu1 %v12941_v5  ;;  %v13018_v5 = vld [vmem:[%s17315_s3 + $0x6e4] ss:$8 sps:$4 sm:$0xff]  }
 0x6c6   : > { %6115 = vmatprep.subr.bf16.mxu1 %v12946_v12  ;;  %v13016_v12 = vld [vmem:[%s17315_s3 + $0x6e0] ss:$8 sps:$4 sm:$0xff]  }
 0x6c9   : > { %6116 = vmatpush1.bf16.msra.mxu1 %v12944_v28  ;;  %v13024_v28 = vld [vmem:[%s17315_s3 + $0x704] ss:$8 sps:$4 sm:$0xff]  }
 0x6ca   : > { %6117 = vmatprep.subr.bf16.mxu1 %v12949_v1  ;;  %v6488_v1 = vpop.permute.xlu0 %6487 }
 0x6cd   : > { %6118 = vmatpush1.bf16.msra.mxu1 %v12947_v62  ;;  %v13027_v62 = vld [vmem:[%s17315_s3 + $0x714] ss:$8 sps:$4 sm:$0xff]  }
 0x6ce   : > { %6273 = vmatprep.subr.bf16.mxu1 %v12952_v0  ;;  %v6491_v0 = vsel %vm4942_vm9, %v6488_v1, %v6490_v6  ;;  %v13094_v6 = vld [vmem:[%s17315_s3 + $0x880] ss:$8 sps:$4 sm:$0xff]  }
 0x6d0   : > { %6136 = vmatmul.mubr.bf16.vlgmr.msra.gmra.mrb[8].mxu1 %v6005_v57  ;;  %v13030_v57 = vld [vmem:[%s17315_s3 + $0x724] ss:$8 sps:$4 sm:$0xff]  }
 0x6d1   : > { %6274 = vmatpush1.bf16.msra.mxu1 %v12950_v8  ;;  %6305 = vmatprep.mubr.bf16.mxu1 %v17429_v7  ;;  %v13025_v8 = vld [vmem:[%s17315_s3 + $0x710] ss:$8 sps:$4 sm:$0xff]  }
 0x6d2   : > { %6275 = vmatprep.subr.bf16.mxu1 %v12955_v54  ;;  %v13028_v54 = vld [vmem:[%s17315_s3 + $0x720] ss:$8 sps:$4 sm:$0xff]  }
 0x6d5   : > { %6276 = vmatpush1.bf16.msra.mxu1 %v12953_v21  ;;  %v13033_v21 = vld [vmem:[%s17315_s3 + $0x734] ss:$8 sps:$4 sm:$0xff]  }
 0x6d6   : > { %6277 = vmatprep.subr.bf16.mxu1 %v12958_v31  ;;  %v13031_v31 = vld [vmem:[%s17315_s3 + $0x730] ss:$8 sps:$4 sm:$0xff]  }
 0x6d9   : > { %6278 = vmatpush1.bf16.msra.mxu1 %v12956_v43  ;;  %v13036_v43 = vld [vmem:[%s17315_s3 + $0x744] ss:$8 sps:$4 sm:$0xff]  }
 0x6da   : > { %6279 = vmatprep.subr.bf16.mxu1 %v12961_v33  ;;  %v13034_v33 = vld [vmem:[%s17315_s3 + $0x740] ss:$8 sps:$4 sm:$0xff]  }
 0x6dd   : > { %6280 = vmatpush1.bf16.msra.mxu1 %v12959_v9  ;;  %v13039_v9 = vld [vmem:[%s17315_s3 + $0x754] ss:$8 sps:$4 sm:$0xff]  }
 0x6de   : > { %6281 = vmatprep.subr.bf16.mxu1 %v12964_v25  ;;  %v13037_v25 = vld [vmem:[%s17315_s3 + $0x750] ss:$8 sps:$4 sm:$0xff]  }
 0x6e1   : > { %6282 = vmatpush1.bf16.msra.mxu1 %v12962_v55  ;;  %v13042_v55 = vld [vmem:[%s17315_s3 + $0x764] ss:$8 sps:$4 sm:$0xff]  }
 0x6e2   : > { %6283 = vmatprep.subr.bf16.mxu1 %v12967_v59  ;;  %v13040_v59 = vld [vmem:[%s17315_s3 + $0x760] ss:$8 sps:$4 sm:$0xff]  }
 0x6e5   : > { %6284 = vmatpush1.bf16.msra.mxu1 %v12965_v14  ;;  %v13045_v14 = vld [vmem:[%s17315_s3 + $0x774] ss:$8 sps:$4 sm:$0xff]  }
 0x6e6   : > { %6285 = vmatprep.subr.bf16.mxu1 %v12970_v16  ;;  %v13043_v16 = vld [vmem:[%s17315_s3 + $0x770] ss:$8 sps:$4 sm:$0xff]  }
 0x6e9   : > { %6286 = vmatpush1.bf16.msra.mxu1 %v12968_v24  ;;  %v13048_v24 = vld [vmem:[%s17315_s3 + $0x784] ss:$8 sps:$4 sm:$0xff]  }
 0x6ea   : > { %6287 = vmatprep.subr.bf16.mxu1 %v12973_v20  ;;  %v6638_v20 = vpop.permute.xlu0 %6637 }
 0x6ed   : > { %6288 = vmatpush1.bf16.msra.mxu1 %v12971_v48  ;;  %v6640_v48 = vpop.permute.xlu1 %6639 }
 0x6ee   : > { %6423 = vmatprep.subr.bf16.mxu1 %v12976_v13  ;;  %v13046_v13 = vld [vmem:[%s17315_s3 + $0x780] ss:$8 sps:$4 sm:$0xff]   ;;  %v6641_v45 = vsel %vm576_vm0, %v6638_v20, %v6640_v48 }
 0x6ef   : > { %v13118_v48 = vld [vmem:[%s17315_s3 + $0x900] ss:$8 sps:$4 sm:$0xff]  }
 0x6f0   : > { %6306 = vmatmul.mubr.bf16.vlgmr.msra.gmra.mrb[8].mxu1 %v6191_v34  ;;  %v13052_v34 = vld [vmem:[%s17315_s3 + $0x7a0] ss:$8 sps:$4 sm:$0xff]  }
 0x6f1   : > { %6424 = vmatpush1.bf16.msra.mxu1 %v12974_v18  ;;  %6455 = vmatprep.mubr.bf16.mxu1 %v17429_v7  ;;  %v13049_v18 = vld [vmem:[%s17315_s3 + $0x790] ss:$8 sps:$4 sm:$0xff]   ;;  %v6964_v1 = vpop.permute.xlu1 %6963 }
 0x6f2   : > { %6425 = vmatprep.subr.bf16.mxu1 %v12979_v19  ;;  %v13054_v19 = vld [vmem:[%s17315_s3 + $0x7a4] ss:$8 sps:$4 sm:$0xff]  }
 0x6f5   : > { %6426 = vmatpush1.bf16.msra.mxu1 %v12977_v42  ;;  %v13057_v42 = vld [vmem:[%s17315_s3 + $0x7b4] ss:$8 sps:$4 sm:$0xff]   ;;  %v7114_v20 = vpop.permute.xlu1 %7113 }
 0x6f6   : > { %6427 = vmatprep.subr.bf16.mxu1 %v12982_v51  ;;  %v13055_v51 = vld [vmem:[%s17315_s3 + $0x7b0] ss:$8 sps:$4 sm:$0xff]  }
 0x6f9   : > { %6428 = vmatpush1.bf16.msra.mxu1 %v12980_v53  ;;  %v13060_v53 = vld [vmem:[%s17315_s3 + $0x7c4] ss:$8 sps:$4 sm:$0xff]  }
 0x6fa   : > { %6429 = vmatprep.subr.bf16.mxu1 %v12985_v63  ;;  %v13058_v63 = vld [vmem:[%s17315_s3 + $0x7c0] ss:$8 sps:$4 sm:$0xff]  }
 0x6fd   : > { %6430 = vmatpush1.bf16.msra.mxu1 %v12983_v4  ;;  %v13063_v4 = vld [vmem:[%s17315_s3 + $0x7d4] ss:$8 sps:$4 sm:$0xff]  }
 0x6fe   : > { %6431 = vmatprep.subr.bf16.mxu1 %v12988_v15  ;;  %v13061_v15 = vld [vmem:[%s17315_s3 + $0x7d0] ss:$8 sps:$4 sm:$0xff]  }
 0x701   : > { %6432 = vmatpush1.bf16.msra.mxu1 %v12986_v36  ;;  %v13066_v36 = vld [vmem:[%s17315_s3 + $0x7e4] ss:$8 sps:$4 sm:$0xff]  }
 0x702   : > { %6433 = vmatprep.subr.bf16.mxu1 %v12991_v17  ;;  %v13064_v17 = vld [vmem:[%s17315_s3 + $0x7e0] ss:$8 sps:$4 sm:$0xff]  }
 0x705   : > { %6434 = vmatpush1.bf16.msra.mxu1 %v12989_v32  ;;  %v13069_v32 = vld [vmem:[%s17315_s3 + $0x7f4] ss:$8 sps:$4 sm:$0xff]  }
 0x706   : > { %6435 = vmatprep.subr.bf16.mxu1 %v12994_v23  ;;  %v6770_v23 = vld [vmem:[#allocation2] sm:$0xfc] }
 0x709   : > { %6436 = vmatpush1.bf16.msra.mxu1 %v12992_v44  ;;  %v6771_v44 = vld [vmem:[#allocation2 + $0x10] sm:$0x3] }
 0x70a   : > { %6437 = vmatprep.subr.bf16.mxu1 %v12997_v47  ;;  %v13067_v47 = vld [vmem:[%s17315_s3 + $0x7f0] ss:$8 sps:$4 sm:$0xff]  }
 0x70d   : > { %6438 = vmatpush1.bf16.msra.mxu1 %v12995_v61  ;;  %v6775_v61 = vrot.slane %v6770_v23, 2  ;;  %v13144_v23 = vld [vmem:[%s17315_s3 + $0x984] ss:$8 sps:$4 sm:$0xff]  }
 0x70e   : > { %6573 = vmatprep.subr.bf16.mxu1 %v13000_v39  ;;  %v6776_v39 = vrot.slane %v6771_v44, 2 }
 0x710   : > { %6456 = vmatmul.mubr.bf16.vlgmr.msra.gmra.mrb[8].mxu1 %v6341_v22  ;;  %v16273_v58 = vsel %vm6774_vm6, %v6775_v61, %v6776_v39  ;;  %v13075_v22 = vld [vmem:[%s17315_s3 + $0x814] ss:$8 sps:$4 sm:$0xff]   ;;  %v13142_v61 = vld [vmem:[%s17315_s3 + $0x980] ss:$8 sps:$4 sm:$0xff]  }
 0x711   : > { %6574 = vmatpush1.bf16.msra.mxu1 %v12998_v37  ;;  %6605 = vmatprep.mubr.bf16.mxu1 %v17429_v7  ;;  %v13070_v37 = vld [vmem:[%s17315_s3 + $0x800] ss:$8 sps:$4 sm:$0xff]   ;;  %v13147_v39 = vld [vmem:[%s17315_s3 + $0x994] ss:$8 sps:$4 sm:$0xff]  }
 0x712   : > { %6575 = vmatprep.subr.bf16.mxu1 %v13003_v41  ;;  %v6779_v41 = vpack.c.bf16 %v16273_v58, %v16019_v2  ;;  %v13076_v2 = vld [vmem:[%s17315_s3 + $0x820] ss:$8 sps:$4 sm:$0xff]  }
 0x715   : > { %6576 = vmatpush1.bf16.msra.mxu1 %v13001_v30  ;;  %v13073_v30 = vld [vmem:[%s17315_s3 + $0x810] ss:$8 sps:$4 sm:$0xff]  }
 0x716   : > { %6577 = vmatprep.subr.bf16.mxu1 %v13006_v35  ;;  %v13078_v35 = vld [vmem:[%s17315_s3 + $0x824] ss:$8 sps:$4 sm:$0xff]  }
 0x719   : > { %6578 = vmatpush1.bf16.msra.mxu1 %v13004_v52  ;;  %v13081_v52 = vld [vmem:[%s17315_s3 + $0x834] ss:$8 sps:$4 sm:$0xff]  }
 0x71a   : > { %6579 = vmatprep.subr.bf16.mxu1 %v13009_v56  ;;  %v13079_v56 = vld [vmem:[%s17315_s3 + $0x830] ss:$8 sps:$4 sm:$0xff]  }
 0x71d   : > { %6580 = vmatpush1.bf16.msra.mxu1 %v13007_v50  ;;  %v13084_v50 = vld [vmem:[%s17315_s3 + $0x844] ss:$8 sps:$4 sm:$0xff]  }
 0x71e   : > { %6581 = vmatprep.subr.bf16.mxu1 %v13012_v60  ;;  %v13082_v60 = vld [vmem:[%s17315_s3 + $0x840] ss:$8 sps:$4 sm:$0xff]  }
 0x721   : > { %6582 = vmatpush1.bf16.msra.mxu1 %v13010_v49  ;;  %v13087_v49 = vld [vmem:[%s17315_s3 + $0x854] ss:$8 sps:$4 sm:$0xff]  }
 0x722   : > { %6583 = vmatprep.subr.bf16.mxu1 %v13015_v27  ;;  %v13085_v27 = vld [vmem:[%s17315_s3 + $0x850] ss:$8 sps:$4 sm:$0xff]  }
 0x725   : > { %6584 = vmatpush1.bf16.msra.mxu1 %v13013_v29  ;;  %v13090_v29 = vld [vmem:[%s17315_s3 + $0x864] ss:$8 sps:$4 sm:$0xff]  }
 0x726   : > { %6585 = vmatprep.subr.bf16.mxu1 %v13018_v5  ;;  %v13088_v5 = vld [vmem:[%s17315_s3 + $0x860] ss:$8 sps:$4 sm:$0xff]  }
 0x729   : > { %6586 = vmatpush1.bf16.msra.mxu1 %v13016_v12  ;;  %v13093_v12 = vld [vmem:[%s17315_s3 + $0x874] ss:$8 sps:$4 sm:$0xff]  }
 0x72a   : > { %6587 = vmatprep.subr.bf16.mxu1 %v13021_v3  ;;  %v13091_v3 = vld [vmem:[%s17315_s3 + $0x870] ss:$8 sps:$4 sm:$0xff]  }
 0x72d   : > { %6588 = vmatpush1.bf16.msra.mxu1 %v13019_v10  ;;  %v13096_v10 = vld [vmem:[%s17315_s3 + $0x884] ss:$8 sps:$4 sm:$0xff]  }
 0x72e   : > { %6723 = vmatprep.subr.bf16.mxu1 %v13024_v28  ;;  %v6962_v28 = vpop.permute.xlu0 %6961 }
 0x730   : > { %6606 = vmatmul.mubr.bf16.vlgmr.msra.gmra.mrb[8].mxu1 %v6491_v0  ;;  %v13097_v0 = vld [vmem:[%s17315_s3 + $0x890] ss:$8 sps:$4 sm:$0xff]  }
 0x731   : > { %6724 = vmatpush1.bf16.msra.mxu1 %v13022_v26  ;;  %6755 = vmatprep.mubr.bf16.mxu1 %v17429_v7  ;;  %v13099_v26 = vld [vmem:[%s17315_s3 + $0x894] ss:$8 sps:$4 sm:$0xff]  }
 0x732   : > { %6725 = vmatprep.subr.bf16.mxu1 %v13027_v62  ;;  %v6965_v62 = vsel %vm4521_vm7, %v6962_v28, %v6964_v1  ;;  %v13171_v28 = vld [vmem:[%s17315_s3 + $0xa14] ss:$8 sps:$4 sm:$0xff]  }
 0x735   : > { %6726 = vmatpush1.bf16.msra.mxu1 %v13025_v8  ;;  %v13102_v8 = vld [vmem:[%s17315_s3 + $0x8a4] ss:$8 sps:$4 sm:$0xff]  }
 0x736   : > { %6727 = vmatprep.subr.bf16.mxu1 %v13030_v57  ;;  %v13100_v57 = vld [vmem:[%s17315_s3 + $0x8a0] ss:$8 sps:$4 sm:$0xff]  }
 0x739   : > { %6728 = vmatpush1.bf16.msra.mxu1 %v13028_v54  ;;  %v13105_v54 = vld [vmem:[%s17315_s3 + $0x8b4] ss:$8 sps:$4 sm:$0xff]  }
 0x73a   : > { %6729 = vmatprep.subr.bf16.mxu1 %v13033_v21  ;;  %v13103_v21 = vld [vmem:[%s17315_s3 + $0x8b0] ss:$8 sps:$4 sm:$0xff]  }
 0x73d   : > { %6730 = vmatpush1.bf16.msra.mxu1 %v13031_v31  ;;  %v13108_v31 = vld [vmem:[%s17315_s3 + $0x8c4] ss:$8 sps:$4 sm:$0xff]  }
 0x73e   : > { %6731 = vmatprep.subr.bf16.mxu1 %v13036_v43  ;;  %v13106_v43 = vld [vmem:[%s17315_s3 + $0x8c0] ss:$8 sps:$4 sm:$0xff]  }
 0x741   : > { %6732 = vmatpush1.bf16.msra.mxu1 %v13034_v33  ;;  %v13111_v33 = vld [vmem:[%s17315_s3 + $0x8d4] ss:$8 sps:$4 sm:$0xff]  }
 0x742   : > { %6733 = vmatprep.subr.bf16.mxu1 %v13039_v9  ;;  %v13109_v9 = vld [vmem:[%s17315_s3 + $0x8d0] ss:$8 sps:$4 sm:$0xff]  }
 0x745   : > { %6734 = vmatpush1.bf16.msra.mxu1 %v13037_v25  ;;  %v13114_v25 = vld [vmem:[%s17315_s3 + $0x8e4] ss:$8 sps:$4 sm:$0xff]  }
 0x746   : > { %6735 = vmatprep.subr.bf16.mxu1 %v13042_v55  ;;  %v13112_v55 = vld [vmem:[%s17315_s3 + $0x8e0] ss:$8 sps:$4 sm:$0xff]  }
 0x749   : > { %6736 = vmatpush1.bf16.msra.mxu1 %v13040_v59  ;;  %v13117_v59 = vld [vmem:[%s17315_s3 + $0x8f4] ss:$8 sps:$4 sm:$0xff]  }
 0x74a   : > { %6737 = vmatprep.subr.bf16.mxu1 %v13045_v14  ;;  %v13115_v14 = vld [vmem:[%s17315_s3 + $0x8f0] ss:$8 sps:$4 sm:$0xff]  }
 0x74d   : > { %6738 = vmatpush1.bf16.msra.mxu1 %v13043_v16  ;;  %v13120_v16 = vld [vmem:[%s17315_s3 + $0x904] ss:$8 sps:$4 sm:$0xff]  }
 0x74e   : > { %6877 = vmatprep.subr.bf16.mxu1 %v13048_v24  ;;  %v7112_v24 = vpop.permute.xlu0 %7111 }
 0x750   : > { %6756 = vmatmul.mubr.bf16.vlgmr.msra.gmra.mrb[8].mxu1 %v6641_v45  ;;  %v13121_v45 = vld [vmem:[%s17315_s3 + $0x910] ss:$8 sps:$4 sm:$0xff]  }
 0x751   : > { %6878 = vmatpush1.bf16.msra.mxu1 %v13046_v13  ;;  %6909 = vmatprep.mubr.bf16.mxu1 %v17429_v7  ;;  %v13123_v13 = vld [vmem:[%s17315_s3 + $0x914] ss:$8 sps:$4 sm:$0xff]  }
 0x752   : > { %6879 = vmatprep.subr.bf16.mxu1 %v13051_v46  ;;  %v7115_v46 = vsel %vm4791_vm8, %v7112_v24, %v7114_v20  ;;  %v7262_v44 = vpop.permute.xlu0 %7261  ;;  %v13192_v24 = vld [vmem:[%s17315_s3 + $0xa84] ss:$8 sps:$4 sm:$0xff]  }
 0x755   : > { %6880 = vmatpush1.bf16.msra.mxu1 %v13049_v18  ;;  %v13126_v18 = vld [vmem:[%s17315_s3 + $0x924] ss:$8 sps:$4 sm:$0xff]  }
 0x756   : > { %6881 = vmatprep.subr.bf16.mxu1 %v13054_v19  ;;  %v13124_v19 = vld [vmem:[%s17315_s3 + $0x920] ss:$8 sps:$4 sm:$0xff]  }
 0x759   : > { %6882 = vmatpush1.bf16.msra.mxu1 %v13052_v34  ;;  %v13129_v34 = vld [vmem:[%s17315_s3 + $0x934] ss:$8 sps:$4 sm:$0xff]  }
 0x75a   : > { %6883 = vmatprep.subr.bf16.mxu1 %v13057_v42  ;;  %v13127_v42 = vld [vmem:[%s17315_s3 + $0x930] ss:$8 sps:$4 sm:$0xff]  }
 0x75d   : > { %6884 = vmatpush1.bf16.msra.mxu1 %v13055_v51  ;;  %v13132_v51 = vld [vmem:[%s17315_s3 + $0x944] ss:$8 sps:$4 sm:$0xff]  }
 0x75e   : > { %6885 = vmatprep.subr.bf16.mxu1 %v13060_v53  ;;  %v13130_v53 = vld [vmem:[%s17315_s3 + $0x940] ss:$8 sps:$4 sm:$0xff]  }
 0x761   : > { %6886 = vmatpush1.bf16.msra.mxu1 %v13058_v63  ;;  %v13135_v63 = vld [vmem:[%s17315_s3 + $0x954] ss:$8 sps:$4 sm:$0xff]  }
 0x762   : > { %6887 = vmatprep.subr.bf16.mxu1 %v13063_v4  ;;  %v13133_v4 = vld [vmem:[%s17315_s3 + $0x950] ss:$8 sps:$4 sm:$0xff]  }
 0x765   : > { %6888 = vmatpush1.bf16.msra.mxu1 %v13061_v15  ;;  %v13138_v15 = vld [vmem:[%s17315_s3 + $0x964] ss:$8 sps:$4 sm:$0xff]  }
 0x766   : > { %6889 = vmatprep.subr.bf16.mxu1 %v13066_v36  ;;  %v13136_v36 = vld [vmem:[%s17315_s3 + $0x960] ss:$8 sps:$4 sm:$0xff]  }
 0x769   : > { %6890 = vmatpush1.bf16.msra.mxu1 %v13064_v17  ;;  %v13141_v17 = vld [vmem:[%s17315_s3 + $0x974] ss:$8 sps:$4 sm:$0xff]  }
 0x76a   : > { %6891 = vmatprep.subr.bf16.mxu1 %v13069_v32  ;;  %v13139_v32 = vld [vmem:[%s17315_s3 + $0x970] ss:$8 sps:$4 sm:$0xff]  }
 0x76d   : > { %6892 = vmatpush1.bf16.msra.mxu1 %v13067_v47  ;;  %v7264_v47 = vpop.permute.xlu1 %7263 }
 0x76e   : > { %7047 = vmatprep.subr.bf16.mxu1 %v13072_v11  ;;  %v7265_v11 = vsel %vm4942_vm9, %v7262_v44, %v7264_v47  ;;  %v13196_v47 = vld [vmem:[%s17315_s3 + $0xaa0] ss:$8 sps:$4 sm:$0xff]  }
 0x770   : > { %6910 = vmatmul.mubr.bf16.vlgmr.msra.gmra.mrb[8].mxu1 %v6779_v41  ;;  %v13150_v41 = vld [vmem:[%s17315_s3 + $0x9a4] ss:$8 sps:$4 sm:$0xff]  }
 0x771   : > { %7048 = vmatpush1.bf16.msra.mxu1 %v13070_v37  ;;  %7079 = vmatprep.mubr.bf16.mxu1 %v17429_v7  ;;  %v13145_v37 = vld [vmem:[%s17315_s3 + $0x990] ss:$8 sps:$4 sm:$0xff]  }
 0x772   : > { %7049 = vmatprep.subr.bf16.mxu1 %v13075_v22  ;;  %v13148_v22 = vld [vmem:[%s17315_s3 + $0x9a0] ss:$8 sps:$4 sm:$0xff]  }
 0x775   : > { %7050 = vmatpush1.bf16.msra.mxu1 %v13073_v30  ;;  %v13153_v30 = vld [vmem:[%s17315_s3 + $0x9b4] ss:$8 sps:$4 sm:$0xff]  }
 0x776   : > { %7051 = vmatprep.subr.bf16.mxu1 %v13078_v35  ;;  %v13151_v35 = vld [vmem:[%s17315_s3 + $0x9b0] ss:$8 sps:$4 sm:$0xff]  }
 0x779   : > { %7052 = vmatpush1.bf16.msra.mxu1 %v13076_v2  ;;  %v13156_v2 = vld [vmem:[%s17315_s3 + $0x9c4] ss:$8 sps:$4 sm:$0xff]  }
 0x77a   : > { %7053 = vmatprep.subr.bf16.mxu1 %v13081_v52  ;;  %v13154_v52 = vld [vmem:[%s17315_s3 + $0x9c0] ss:$8 sps:$4 sm:$0xff]  }
 0x77d   : > { %7054 = vmatpush1.bf16.msra.mxu1 %v13079_v56  ;;  %v13159_v56 = vld [vmem:[%s17315_s3 + $0x9d4] ss:$8 sps:$4 sm:$0xff]  }
 0x77e   : > { %7055 = vmatprep.subr.bf16.mxu1 %v13084_v50  ;;  %v13157_v50 = vld [vmem:[%s17315_s3 + $0x9d0] ss:$8 sps:$4 sm:$0xff]  }
 0x781   : > { %7056 = vmatpush1.bf16.msra.mxu1 %v13082_v60  ;;  %v13162_v60 = vld [vmem:[%s17315_s3 + $0x9e4] ss:$8 sps:$4 sm:$0xff]  }
 0x782   : > { %7057 = vmatprep.subr.bf16.mxu1 %v13087_v49  ;;  %v13160_v49 = vld [vmem:[%s17315_s3 + $0x9e0] ss:$8 sps:$4 sm:$0xff]  }
 0x785   : > { %7058 = vmatpush1.bf16.msra.mxu1 %v13085_v27  ;;  %v13165_v27 = vld [vmem:[%s17315_s3 + $0x9f4] ss:$8 sps:$4 sm:$0xff]  }
 0x786   : > { %7059 = vmatprep.subr.bf16.mxu1 %v13090_v29  ;;  %v13163_v29 = vld [vmem:[%s17315_s3 + $0x9f0] ss:$8 sps:$4 sm:$0xff]  }
 0x789   : > { %7060 = vmatpush1.bf16.msra.mxu1 %v13088_v5  ;;  %v13168_v5 = vld [vmem:[%s17315_s3 + $0xa04] ss:$8 sps:$4 sm:$0xff]  }
 0x78a   : > { %7061 = vmatprep.subr.bf16.mxu1 %v13093_v12  ;;  %v7412_v12 = vpop.permute.xlu0 %7411 }
 0x78d   : > { %7062 = vmatpush1.bf16.msra.mxu1 %v13091_v3  ;;  %v7414_v3 = vpop.permute.xlu1 %7413 }
 0x78e   : > { %7197 = vmatprep.subr.bf16.mxu1 %v13096_v10  ;;  %v13166_v10 = vld [vmem:[%s17315_s3 + $0xa00] ss:$8 sps:$4 sm:$0xff]   ;;  %v7415_v1 = vsel %vm576_vm0, %v7412_v12, %v7414_v3 }
 0x78f   : > { %v8347_v12 = vld [vmem:[%s17319_s7 + $0x40] sm:$0xff]  ;;  %v8348_v3 = vld [vmem:[%s17319_s7 + $0x48] sm:$0xff] }
 0x790   : > { %7080 = vmatmul.mubr.bf16.vlgmr.msra.gmra.mrb[8].mxu1 %v6965_v62  ;;  %v13172_v62 = vld [vmem:[%s17315_s3 + $0xa20] ss:$8 sps:$4 sm:$0xff]  }
 0x791   : > { %7198 = vmatpush1.bf16.msra.mxu1 %v13094_v6  ;;  %7229 = vmatprep.mubr.bf16.mxu1 %v17429_v7  ;;  %v13169_v6 = vld [vmem:[%s17315_s3 + $0xa10] ss:$8 sps:$4 sm:$0xff]  }
 0x792   : > { %7199 = vmatprep.subr.bf16.mxu1 %v13099_v26  ;;  %v13174_v26 = vld [vmem:[%s17315_s3 + $0xa24] ss:$8 sps:$4 sm:$0xff]  }
 0x795   : > { %7200 = vmatpush1.bf16.msra.mxu1 %v13097_v0  ;;  %v13177_v0 = vld [vmem:[%s17315_s3 + $0xa34] ss:$8 sps:$4 sm:$0xff]  }
 0x796   : > { %7201 = vmatprep.subr.bf16.mxu1 %v13102_v8  ;;  %v13175_v8 = vld [vmem:[%s17315_s3 + $0xa30] ss:$8 sps:$4 sm:$0xff]  }
 0x799   : > { %7202 = vmatpush1.bf16.msra.mxu1 %v13100_v57  ;;  %v13180_v57 = vld [vmem:[%s17315_s3 + $0xa44] ss:$8 sps:$4 sm:$0xff]  }
 0x79a   : > { %7203 = vmatprep.subr.bf16.mxu1 %v13105_v54  ;;  %v13178_v54 = vld [vmem:[%s17315_s3 + $0xa40] ss:$8 sps:$4 sm:$0xff]  }
 0x79d   : > { %7204 = vmatpush1.bf16.msra.mxu1 %v13103_v21  ;;  %v13183_v21 = vld [vmem:[%s17315_s3 + $0xa54] ss:$8 sps:$4 sm:$0xff]  }
 0x79e   : > { %7205 = vmatprep.subr.bf16.mxu1 %v13108_v31  ;;  %v13181_v31 = vld [vmem:[%s17315_s3 + $0xa50] ss:$8 sps:$4 sm:$0xff]  }
 0x7a1   : > { %7206 = vmatpush1.bf16.msra.mxu1 %v13106_v43  ;;  %v13186_v43 = vld [vmem:[%s17315_s3 + $0xa64] ss:$8 sps:$4 sm:$0xff]  }
 0x7a2   : > { %7207 = vmatprep.subr.bf16.mxu1 %v13111_v33  ;;  %v7544_v33 = vld [vmem:[#allocation3] sm:$0xfc] }
 0x7a5   : > { %7208 = vmatpush1.bf16.msra.mxu1 %v13109_v9  ;;  %v7545_v9 = vld [vmem:[#allocation3 + $0x10] sm:$0x3] }
 0x7a6   : > { %7209 = vmatprep.subr.bf16.mxu1 %v13114_v25  ;;  %v13184_v25 = vld [vmem:[%s17315_s3 + $0xa60] ss:$8 sps:$4 sm:$0xff]  }
 0x7a9   : > { %7210 = vmatpush1.bf16.msra.mxu1 %v13112_v55  ;;  %v13189_v55 = vld [vmem:[%s17315_s3 + $0xa74] ss:$8 sps:$4 sm:$0xff]  }
 0x7aa   : > { %7211 = vmatprep.subr.bf16.mxu1 %v13117_v59  ;;  %v7548_v59 = vrot.slane %v7544_v33, 2  ;;  %v13216_v33 = vld [vmem:[%s17315_s3 + $0xb04] ss:$8 sps:$4 sm:$0xff]  }
 0x7ad   : > { %7212 = vmatpush1.bf16.msra.mxu1 %v13115_v14  ;;  %v7549_v14 = vrot.slane %v7545_v9, 2  ;;  %v7735_v9 = vpop.permute.xlu0 %7734 }
 0x7ae   : > { %7347 = vmatprep.subr.bf16.mxu1 %v13120_v16  ;;  %v13187_v16 = vld [vmem:[%s17315_s3 + $0xa70] ss:$8 sps:$4 sm:$0xff]  }
 0x7af   : > { %v7550_v20 = vsel %vm6774_vm6, %v7548_v59, %v7549_v14  ;;  %v13219_v59 = vld [vmem:[%s17315_s3 + $0xb14] ss:$8 sps:$4 sm:$0xff]  }
 0x7b0   : > { %7230 = vmatmul.mubr.bf16.vlgmr.msra.gmra.mrb[8].mxu1 %v7115_v46  ;;  %v13195_v46 = vld [vmem:[%s17315_s3 + $0xa94] ss:$8 sps:$4 sm:$0xff]  }
 0x7b1   : > { %7348 = vmatpush1.bf16.msra.mxu1 %v13118_v48  ;;  %7379 = vmatprep.mubr.bf16.mxu1 %v17429_v7  ;;  %v13190_v48 = vld [vmem:[%s17315_s3 + $0xa80] ss:$8 sps:$4 sm:$0xff]  }
 0x7b2   : > { %7349 = vmatprep.subr.bf16.mxu1 %v13123_v13  ;;  %v7552_v13 = vpack.c.bf16 %v7550_v20, %v16273_v58  ;;  %v8356_v58 = vld [vmem:[%s17319_s7 + $0x88] sm:$0xff] }
 0x7b3   : > { %v13220_v20 = vld [vmem:[%s17315_s3 + $0xb20] ss:$8 sps:$4 sm:$0xff]  }
 0x7b5   : > { %7350 = vmatpush1.bf16.msra.mxu1 %v13121_v45  ;;  %v13193_v45 = vld [vmem:[%s17315_s3 + $0xa90] ss:$8 sps:$4 sm:$0xff]  }
 0x7b6   : > { %7351 = vmatprep.subr.bf16.mxu1 %v13126_v18  ;;  %v13198_v18 = vld [vmem:[%s17315_s3 + $0xaa4] ss:$8 sps:$4 sm:$0xff]  }
 0x7b9   : > { %7352 = vmatpush1.bf16.msra.mxu1 %v13124_v19  ;;  %v8355_v19 = vld [vmem:[%s17319_s7 + $0x80] sm:$0xff] }
 0x7ba   : > { %7353 = vmatprep.subr.bf16.mxu1 %v13129_v34  ;;  %v8339_v34 = vld [vmem:[%s17319_s7] sm:$0xff] }
 0x7bd   : > { %7354 = vmatpush1.bf16.msra.mxu1 %v13127_v42  ;;  %v11800_v42 = vpack.c.bf16 %v8356_v58, %v8355_v19  ;;  %v13229_v19 = vld [vmem:[%s17315_s3 + $0xb50] ss:$8 sps:$4 sm:$0xff]   ;;  %v13234_v58 = vld [vmem:[%s17315_s3 + $0xb64] ss:$8 sps:$4 sm:$0xff]  }
 0x7be   : > { %7355 = vmatprep.subr.bf16.mxu1 %v13132_v51  ;;  %v8340_v51 = vld [vmem:[%s17319_s7 + $0x8] sm:$0xff] }
 0x7bf   : > { %11801 = vmatprep.subr.bf16.mxu0 %v11800_v42  ;;  %v13237_v42 = vld [vmem:[%s17315_s3 + $0xb74] ss:$8 sps:$4 sm:$0xff]  }
 0x7c1   : > { %7356 = vmatpush1.bf16.msra.mxu1 %v13130_v53  ;;  %v8357_v53 = vld [vmem:[%s17319_s7 + $0x90] sm:$0xff] }
 0x7c2   : > { %7357 = vmatprep.subr.bf16.mxu1 %v13135_v63  ;;  %v8358_v63 = vld [vmem:[%s17319_s7 + $0x98] sm:$0xff] }
 0x7c5   : > { %7358 = vmatpush1.bf16.msra.mxu1 %v13133_v4  ;;  %v11802_v4 = vpack.c.bf16 %v8340_v51, %v8339_v34  ;;  %v13232_v34 = vld [vmem:[%s17315_s3 + $0xb60] ss:$8 sps:$4 sm:$0xff]   ;;  %v13235_v51 = vld [vmem:[%s17315_s3 + $0xb70] ss:$8 sps:$4 sm:$0xff]  }
 0x7c6   : > { %7359 = vmatprep.subr.bf16.mxu1 %v13138_v15  ;;  %v11804_v15 = vpack.c.bf16 %v8358_v63, %v8357_v53  ;;  %v13240_v53 = vld [vmem:[%s17315_s3 + $0xb84] ss:$8 sps:$4 sm:$0xff]   ;;  %v7885_v63 = vpop.permute.xlu0 %7884 }
 0x7c7   : > { %11803 = vmatpush3.bf16.msra.mxu0 %v11802_v4 }
 0x7c8   : > { %11805 = vmatprep.subr.bf16.mxu0 %v11804_v15  ;;  %v13238_v15 = vld [vmem:[%s17315_s3 + $0xb80] ss:$8 sps:$4 sm:$0xff]  }
 0x7c9   : > { %7360 = vmatpush1.bf16.msra.mxu1 %v13136_v36  ;;  %v8341_v36 = vld [vmem:[%s17319_s7 + $0x10] sm:$0xff] }
 0x7ca   : > { %7361 = vmatprep.subr.bf16.mxu1 %v13141_v17  ;;  %v8342_v17 = vld [vmem:[%s17319_s7 + $0x18] sm:$0xff] }
 0x7cb   : > { %v11806_v44 = vpack.c.bf16 %v8342_v17, %v8341_v36  ;;  %v13243_v36 = vld [vmem:[%s17315_s3 + $0xb94] ss:$8 sps:$4 sm:$0xff]  }
 0x7cd   : > { %7362 = vmatpush1.bf16.msra.mxu1 %v13139_v32  ;;  %v8359_v32 = vld [vmem:[%s17319_s7 + $0xa0] sm:$0xff]  ;;  %11807 = vmatpush3.bf16.msra.mxu0 %v11806_v44 }
 0x7ce   : > { %7497 = vmatprep.subr.bf16.mxu1 %v13144_v23  ;;  %v8360_v23 = vld [vmem:[%s17319_s7 + $0xa8] sm:$0xff] }
 0x7cf   : > { %v13244_v44 = vld [vmem:[%s17315_s3 + $0xba0] ss:$8 sps:$4 sm:$0xff]  }
 0x7d0   : > { %7380 = vmatmul.mubr.bf16.vlgmr.msra.gmra.mrb[8].mxu1 %v7265_v11  ;;  %v8344_v11 = vld [vmem:[%s17319_s7 + $0x28] sm:$0xff] }
 0x7d1   : > { %7498 = vmatpush1.bf16.msra.mxu1 %v13142_v61  ;;  %7529 = vmatprep.mubr.bf16.mxu1 %v17429_v7  ;;  %v11808_v61 = vpack.c.bf16 %v8360_v23, %v8359_v32  ;;  %v13241_v32 = vld [vmem:[%s17315_s3 + $0xb90] ss:$8 sps:$4 sm:$0xff]   ;;  %v13246_v23 = vld [vmem:[%s17315_s3 + $0xba4] ss:$8 sps:$4 sm:$0xff]  }
 0x7d2   : > { %7499 = vmatprep.subr.bf16.mxu1 %v13147_v39  ;;  %v8343_v39 = vld [vmem:[%s17319_s7 + $0x20] sm:$0xff] }
 0x7d3   : > { %11809 = vmatprep.subr.bf16.mxu0 %v11808_v61  ;;  %v13247_v61 = vld [vmem:[%s17315_s3 + $0xbb0] ss:$8 sps:$4 sm:$0xff]  }
 0x7d5   : > { %7500 = vmatpush1.bf16.msra.mxu1 %v13145_v37  ;;  %v13201_v37 = vld [vmem:[%s17315_s3 + $0xab4] ss:$8 sps:$4 sm:$0xff]  }
 0x7d6   : > { %7501 = vmatprep.subr.bf16.mxu1 %v13150_v41  ;;  %v8361_v41 = vld [vmem:[%s17319_s7 + $0xb0] sm:$0xff] }
 0x7d9   : > { %7502 = vmatpush1.bf16.msra.mxu1 %v13148_v22  ;;  %v8362_v22 = vld [vmem:[%s17319_s7 + $0xb8] sm:$0xff] }
 0x7da   : > { %7503 = vmatprep.subr.bf16.mxu1 %v13153_v30  ;;  %v11810_v30 = vpack.c.bf16 %v8344_v11, %v8343_v39  ;;  %v13252_v39 = vld [vmem:[%s17315_s3 + $0xbc4] ss:$8 sps:$4 sm:$0xff]   ;;  %v13250_v11 = vld [vmem:[%s17315_s3 + $0xbc0] ss:$8 sps:$4 sm:$0xff]  }
 0x7dc   : > { %11811 = vmatpush3.bf16.msra.mxu0 %v11810_v30  ;;  %v13256_v30 = vld [vmem:[%s17315_s3 + $0xbe0] ss:$8 sps:$4 sm:$0xff]  }
 0x7dd   : > { %7504 = vmatpush1.bf16.msra.mxu1 %v13151_v35  ;;  %v13199_v35 = vld [vmem:[%s17315_s3 + $0xab0] ss:$8 sps:$4 sm:$0xff]  }
 0x7de   : > { %7505 = vmatprep.subr.bf16.mxu1 %v13156_v2  ;;  %v11812_v2 = vpack.c.bf16 %v8362_v22, %v8361_v41  ;;  %v13253_v41 = vld [vmem:[%s17315_s3 + $0xbd0] ss:$8 sps:$4 sm:$0xff]   ;;  %v13258_v22 = vld [vmem:[%s17315_s3 + $0xbe4] ss:$8 sps:$4 sm:$0xff]  }
 0x7e0   : > { %11813 = vmatprep.subr.bf16.mxu0 %v11812_v2  ;;  %v13259_v2 = vld [vmem:[%s17315_s3 + $0xbf0] ss:$8 sps:$4 sm:$0xff]  }
 0x7e1   : > { %7506 = vmatpush1.bf16.msra.mxu1 %v13154_v52  ;;  %v8345_v52 = vld [vmem:[%s17319_s7 + $0x30] sm:$0xff] }
 0x7e2   : > { %7507 = vmatprep.subr.bf16.mxu1 %v13159_v56  ;;  %v8346_v56 = vld [vmem:[%s17319_s7 + $0x38] sm:$0xff] }
 0x7e5   : > { %7508 = vmatpush1.bf16.msra.mxu1 %v13157_v50  ;;  %v13204_v50 = vld [vmem:[%s17315_s3 + $0xac4] ss:$8 sps:$4 sm:$0xff]  }
 0x7e6   : > { %7509 = vmatprep.subr.bf16.mxu1 %v13162_v60  ;;  %v8363_v60 = vld [vmem:[%s17319_s7 + $0xc0] sm:$0xff] }
 0x7e9   : > { %7510 = vmatpush1.bf16.msra.mxu1 %v13160_v49  ;;  %v8364_v49 = vld [vmem:[%s17319_s7 + $0xc8] sm:$0xff] }
 0x7ea   : > { %7511 = vmatprep.subr.bf16.mxu1 %v13165_v27  ;;  %v11814_v27 = vpack.c.bf16 %v8346_v56, %v8345_v52  ;;  %v13264_v52 = vld [vmem:[%s17315_s3 + $0xc04] ss:$8 sps:$4 sm:$0xff]   ;;  %v8035_v56 = vpop.permute.xlu0 %8034 }
 0x7ec   : > { %11815 = vmatpush3.bf16.msra.mxu0 %v11814_v27 }
 0x7ed   : > { %7512 = vmatpush1.bf16.msra.mxu1 %v13163_v29  ;;  %v13202_v29 = vld [vmem:[%s17315_s3 + $0xac0] ss:$8 sps:$4 sm:$0xff]  }
 0x7ee   : > { %7650 = vmatprep.subr.bf16.mxu1 %v13168_v5  ;;  %v11816_v5 = vpack.c.bf16 %v8364_v49, %v8363_v60  ;;  %v13262_v60 = vld [vmem:[%s17315_s3 + $0xc00] ss:$8 sps:$4 sm:$0xff]   ;;  %v13267_v49 = vld [vmem:[%s17315_s3 + $0xc14] ss:$8 sps:$4 sm:$0xff]  }
 0x7f0   : > { %7530 = vmatmul.mubr.bf16.vlgmr.msra.gmra.mrb[8].mxu1 %v7415_v1  ;;  %v8366_v1 = vld [vmem:[%s17319_s7 + $0xd8] sm:$0xff]  ;;  %11817 = vmatprep.subr.bf16.mxu0 %v11816_v5  ;;  %v13270_v5 = vld [vmem:[%s17315_s3 + $0xc24] ss:$8 sps:$4 sm:$0xff]  }
 0x7f1   : > { %7651 = vmatpush1.bf16.msra.mxu1 %v13166_v10  ;;  %7682 = vmatprep.mubr.bf16.mxu1 %v17429_v7  ;;  %v13207_v10 = vld [vmem:[%s17315_s3 + $0xad4] ss:$8 sps:$4 sm:$0xff]  }
 0x7f2   : > { %7652 = vmatprep.subr.bf16.mxu1 %v13171_v28  ;;  %v8365_v28 = vld [vmem:[%s17319_s7 + $0xd0] sm:$0xff] }
 0x7f5   : > { %7653 = vmatpush1.bf16.msra.mxu1 %v13169_v6  ;;  %v11818_v6 = vpack.c.bf16 %v8348_v3, %v8347_v12  ;;  %v13268_v12 = vld [vmem:[%s17315_s3 + $0xc20] ss:$8 sps:$4 sm:$0xff]   ;;  %v13273_v3 = vld [vmem:[%s17315_s3 + $0xc34] ss:$8 sps:$4 sm:$0xff]  }
 0x7f6   : > { %7654 = vmatprep.subr.bf16.mxu1 %v13174_v26  ;;  %v13205_v26 = vld [vmem:[%s17315_s3 + $0xad0] ss:$8 sps:$4 sm:$0xff]  }
 0x7f7   : > { %11819 = vmatpush3.bf16.msra.mxu0 %v11818_v6  ;;  %v13277_v6 = vld [vmem:[%s17315_s3 + $0xc50] ss:$8 sps:$4 sm:$0xff]  }
 0x7f9   : > { %7655 = vmatpush1.bf16.msra.mxu1 %v13172_v62  ;;  %v11820_v62 = vpack.c.bf16 %v8366_v1, %v8365_v28  ;;  %v13274_v28 = vld [vmem:[%s17315_s3 + $0xc40] ss:$8 sps:$4 sm:$0xff]   ;;  %v13279_v1 = vld [vmem:[%s17315_s3 + $0xc54] ss:$8 sps:$4 sm:$0xff]  }
 0x7fa   : > { %7656 = vmatprep.subr.bf16.mxu1 %v13177_v0  ;;  %v8349_v0 = vld [vmem:[%s17319_s7 + $0x50] sm:$0xff] }
 0x7fb   : > { %11821 = vmatprep.subr.bf16.mxu0 %v11820_v62  ;;  %v13280_v62 = vld [vmem:[%s17315_s3 + $0xc60] ss:$8 sps:$4 sm:$0xff]  }
 0x7fd   : > { %7657 = vmatpush1.bf16.msra.mxu1 %v13175_v8  ;;  %v8350_v8 = vld [vmem:[%s17319_s7 + $0x58] sm:$0xff] }
 0x7fe   : > { %7658 = vmatprep.subr.bf16.mxu1 %v13180_v57  ;;  %v13210_v57 = vld [vmem:[%s17315_s3 + $0xae4] ss:$8 sps:$4 sm:$0xff]  }
 0x801   : > { %7659 = vmatpush1.bf16.msra.mxu1 %v13178_v54  ;;  %v11822_v54 = vpack.c.bf16 %v8350_v8, %v8349_v0  ;;  %v13285_v0 = vld [vmem:[%s17315_s3 + $0xc74] ss:$8 sps:$4 sm:$0xff]   ;;  %v13283_v8 = vld [vmem:[%s17315_s3 + $0xc70] ss:$8 sps:$4 sm:$0xff]  }
 0x802   : > { %7660 = vmatprep.subr.bf16.mxu1 %v13183_v21  ;;  %v13208_v21 = vld [vmem:[%s17315_s3 + $0xae0] ss:$8 sps:$4 sm:$0xff]  }
 0x803   : > { %11823 = vmatpush3.bf16.msra.mxu0 %v11822_v54 }
 0x805   : > { %7661 = vmatpush1.bf16.msra.mxu1 %v13181_v31  ;;  %v13213_v31 = vld [vmem:[%s17315_s3 + $0xaf4] ss:$8 sps:$4 sm:$0xff]  }
 0x806   : > { %7662 = vmatprep.subr.bf16.mxu1 %v13186_v43  ;;  %v13211_v43 = vld [vmem:[%s17315_s3 + $0xaf0] ss:$8 sps:$4 sm:$0xff]  }
 0x809   : > { %7663 = vmatpush1.bf16.msra.mxu1 %v13184_v25  ;;  %v7737_v25 = vpop.permute.xlu1 %7736 }
 0x80a   : > { %7664 = vmatprep.subr.bf16.mxu1 %v13189_v55  ;;  %v13214_v55 = vld [vmem:[%s17315_s3 + $0xb00] ss:$8 sps:$4 sm:$0xff]   ;;  %v7738_v14 = vsel %vm4521_vm7, %v7735_v9, %v7737_v25 }
 0x80b   : > { %v8351_v9 = vld [vmem:[%s17319_s7 + $0x60] sm:$0xff]  ;;  %v8352_v25 = vld [vmem:[%s17319_s7 + $0x68] sm:$0xff] }
 0x80d   : > { %7665 = vmatpush1.bf16.msra.mxu1 %v13187_v16  ;;  %v13217_v16 = vld [vmem:[%s17315_s3 + $0xb10] ss:$8 sps:$4 sm:$0xff]   ;;  %v7887_v4 = vpop.permute.xlu1 %7886 }
 0x80e   : > { %7820 = vmatprep.subr.bf16.mxu1 %v13192_v24  ;;  %v13222_v24 = vld [vmem:[%s17315_s3 + $0xb24] ss:$8 sps:$4 sm:$0xff]   ;;  %v7888_v17 = vsel %vm4791_vm8, %v7885_v63, %v7887_v4 }
 0x810   : > { %7683 = vmatmul.mubr.bf16.vlgmr.msra.gmra.mrb[8].mxu1 %v7552_v13  ;;  %v13223_v13 = vld [vmem:[%s17315_s3 + $0xb30] ss:$8 sps:$4 sm:$0xff]  }
 0x811   : > { %7821 = vmatpush1.bf16.msra.mxu1 %v13190_v48  ;;  %7852 = vmatprep.mubr.bf16.mxu1 %v17429_v7  ;;  %v13225_v48 = vld [vmem:[%s17315_s3 + $0xb34] ss:$8 sps:$4 sm:$0xff]  }
 0x812   : > { %7822 = vmatprep.subr.bf16.mxu1 %v13195_v46  ;;  %v13228_v46 = vld [vmem:[%s17315_s3 + $0xb44] ss:$8 sps:$4 sm:$0xff]  }
 0x815   : > { %7823 = vmatpush1.bf16.msra.mxu1 %v13193_v45  ;;  %v13226_v45 = vld [vmem:[%s17315_s3 + $0xb40] ss:$8 sps:$4 sm:$0xff]  }
 0x816   : > { %7824 = vmatprep.subr.bf16.mxu1 %v13198_v18  ;;  %v13231_v18 = vld [vmem:[%s17315_s3 + $0xb54] ss:$8 sps:$4 sm:$0xff]  }
 0x819   : > { %7825 = vmatpush1.bf16.msra.mxu1 %v13196_v47  ;;  %v13249_v47 = vld [vmem:[%s17315_s3 + $0xbb4] ss:$8 sps:$4 sm:$0xff]  }
 0x81a   : > { %7826 = vmatprep.subr.bf16.mxu1 %v13201_v37  ;;  %v13255_v37 = vld [vmem:[%s17315_s3 + $0xbd4] ss:$8 sps:$4 sm:$0xff]  }
 0x81d   : > { %7827 = vmatpush1.bf16.msra.mxu1 %v13199_v35  ;;  %v13261_v35 = vld [vmem:[%s17315_s3 + $0xbf4] ss:$8 sps:$4 sm:$0xff]  }
 0x81e   : > { %7828 = vmatprep.subr.bf16.mxu1 %v13204_v50  ;;  %v8037_v50 = vpop.permute.xlu1 %8036 }
 0x81f   : > { %v8038_v27 = vsel %vm4942_vm9, %v8035_v56, %v8037_v50  ;;  %v8461_v56 = vld [vmem:[%s17320_s8 + $0xa0] sm:$0xff]  ;;  %v8462_v50 = vld [vmem:[%s17320_s8 + $0xa8] sm:$0xff] }
 0x821   : > { %7829 = vmatpush1.bf16.msra.mxu1 %v13202_v29  ;;  %v13265_v29 = vld [vmem:[%s17315_s3 + $0xc10] ss:$8 sps:$4 sm:$0xff]  }
 0x822   : > { %7830 = vmatprep.subr.bf16.mxu1 %v13207_v10  ;;  %v13276_v10 = vld [vmem:[%s17315_s3 + $0xc44] ss:$8 sps:$4 sm:$0xff]   ;;  %v8187_v54 = vpop.permute.xlu1 %8186 }
 0x825   : > { %7831 = vmatpush1.bf16.msra.mxu1 %v13205_v26  ;;  %v13282_v26 = vld [vmem:[%s17315_s3 + $0xc64] ss:$8 sps:$4 sm:$0xff]  }
 0x826   : > { %7832 = vmatprep.subr.bf16.mxu1 %v13210_v57  ;;  %v8185_v57 = vpop.permute.xlu0 %8184 }
 0x829   : > { %7833 = vmatpush1.bf16.msra.mxu1 %v13208_v21  ;;  %v8188_v21 = vsel %vm576_vm0, %v8185_v57, %v8187_v54  ;;  %v8467_v57 = vld [vmem:[%s17320_s8 + $0xd0] sm:$0xff]  ;;  %v8468_v54 = vld [vmem:[%s17320_s8 + $0xd8] sm:$0xff] }
 0x82a   : > { %7834 = vmatprep.subr.bf16.mxu1 %v13213_v31  ;;  %v8367_v31 = vld [vmem:[%s17319_s7 + $0xe0] sm:$0xff] }
 0x82d   : > { %7835 = vmatpush1.bf16.msra.mxu1 %v13211_v43  ;;  %v8368_v43 = vld [vmem:[%s17319_s7 + $0xe8] sm:$0xff] }
 0x82e   : > { %7970 = vmatprep.subr.bf16.mxu1 %v13216_v33  ;;  %v11824_v33 = vpack.c.bf16 %v8368_v43, %v8367_v31  ;;  %v11852_v31 = vpack.c.bf16 %v8468_v54, %v8467_v57  ;;  %v8451_v43 = vld [vmem:[%s17320_s8 + $0x50] sm:$0xff]  ;;  %v13319_v57 = vld [vmem:[%s17321_s9 + $0x108] sm:$0xff]  }
 0x82f   : > { %v13320_v54 = vld [vmem:[%s17321_s9 + $0x110] sm:$0xff]  }
 0x830   : > { %7853 = vmatmul.mubr.bf16.vlgmr.msra.gmra.mrb[8].mxu1 %v7738_v14  ;;  %v8370_v14 = vld [vmem:[%s17319_s7 + $0xf8] sm:$0xff]  ;;  %11825 = vmatprep.subr.bf16.mxu0 %v11824_v33 }
 0x831   : > { %7971 = vmatpush1.bf16.msra.mxu1 %v13214_v55  ;;  %8002 = vmatprep.mubr.bf16.mxu1 %v17429_v7  ;;  %v11826_v55 = vpack.c.bf16 %v8352_v25, %v8351_v9  ;;  %v8452_v33 = vld [vmem:[%s17320_s8 + $0x58] sm:$0xff]  ;;  %v8469_v9 = vld [vmem:[%s17320_s8 + $0xe0] sm:$0xff]  ;;  %v8470_v25 = vld [vmem:[%s17320_s8 + $0xe8] sm:$0xff] }
 0x832   : > { %7972 = vmatprep.subr.bf16.mxu1 %v13219_v59  ;;  %v8369_v59 = vld [vmem:[%s17319_s7 + $0xf0] sm:$0xff] }
 0x833   : > { %11827 = vmatpush3.bf16.msra.mxu0 %v11826_v55  ;;  %v11854_v55 = vpack.c.bf16 %v8452_v33, %v8451_v43  ;;  %v13323_v43 = vld [vmem:[%s17321_s9 + $0x128] sm:$0xff]   ;;  %v13324_v33 = vld [vmem:[%s17321_s9 + $0x130] sm:$0xff]  }
 0x835   : > { %7973 = vmatpush1.bf16.msra.mxu1 %v13217_v16  ;;  %v8353_v16 = vld [vmem:[%s17319_s7 + $0x70] sm:$0xff] }
 0x836   : > { %7974 = vmatprep.subr.bf16.mxu1 %v13222_v24  ;;  %v11828_v24 = vpack.c.bf16 %v8370_v14, %v8369_v59  ;;  %v11856_v59 = vpack.c.bf16 %v8470_v25, %v8469_v9  ;;  %v8453_v14 = vld [vmem:[%s17320_s8 + $0x60] sm:$0xff]  ;;  %v13325_v9 = vld [vmem:[%s17321_s9 + $0x138] sm:$0xff]  }
 0x837   : > { %v13326_v25 = vld [vmem:[%s17321_s9 + $0x140] sm:$0xff]  }
 0x838   : > { %11829 = vmatprep.subr.bf16.mxu0 %v11828_v24  ;;  %v8471_v24 = vld [vmem:[%s17320_s8 + $0xf0] sm:$0xff] }
 0x839   : > { %7975 = vmatpush1.bf16.msra.mxu1 %v13220_v20  ;;  %v8354_v20 = vld [vmem:[%s17319_s7 + $0x78] sm:$0xff] }
 0x83a   : > { %7976 = vmatprep.subr.bf16.mxu1 %v13225_v48  ;;  %v11830_v48 = vpack.c.bf16 %v8354_v20, %v8353_v16  ;;  %v8454_v16 = vld [vmem:[%s17320_s8 + $0x68] sm:$0xff]  ;;  %v8472_v20 = vld [vmem:[%s17320_s8 + $0xf8] sm:$0xff] }
 0x83c   : > { %11831 = vmatpush3.bf16.msra.mxu0 %v11830_v48  ;;  %v11858_v48 = vpack.c.bf16 %v8454_v16, %v8453_v14  ;;  %v13328_v14 = vld [vmem:[%s17321_s9 + $0x150] sm:$0xff]   ;;  %v13329_v16 = vld [vmem:[%s17321_s9 + $0x158] sm:$0xff]  }
 0x83d   : > { %7977 = vmatpush1.bf16.msra.mxu1 %v13223_v13  ;;  %v8457_v13 = vld [vmem:[%s17320_s8 + $0x80] sm:$0xff] }
 0x83e   : > { %7978 = vmatprep.subr.bf16.mxu1 %v13228_v46  ;;  %v8458_v46 = vld [vmem:[%s17320_s8 + $0x88] sm:$0xff] }
 0x841   : > { %7979 = vmatpush1.bf16.msra.mxu1 %v13226_v45  ;;  %v11832_v45 = vpack.c.bf16 %v8458_v46, %v8457_v13  ;;  %v11860_v13 = vpack.c.bf16 %v8472_v20, %v8471_v24  ;;  %v8455_v46 = vld [vmem:[%s17320_s8 + $0x70] sm:$0xff]  ;;  %v13330_v24 = vld [vmem:[%s17321_s9 + $0x160] sm:$0xff]   ;;  %v13331_v20 = vld [vmem:[%s17321_s9 + $0x168] sm:$0xff]  }
 0x842   : > { %7980 = vmatprep.subr.bf16.mxu1 %v13231_v18  ;;  %v8317_v18 = vld [vmem:[%s17316_s4] sm:$0x3] }
 0x843   : > { %11833 = vmatprep.subr.bf16.mxu0 %v11832_v45  ;;  %v8456_v45 = vld [vmem:[%s17320_s8 + $0x78] sm:$0xff] }
 0x845   : > { %7981 = vmatpush1.bf16.msra.mxu1 %v13229_v19  ;;  %v17430_v19 = vld [vmem:[#allocation38_spill] sm:$0xff] }
 0x846   : > { %7982 = vmatprep.subr.bf16.mxu1 %v13234_v58  ;;  %v17431_v58 = vsub.s32 0, %v17430_v19  ;;  %v13286_v19 = vld [vmem:[%s17321_s9] sm:$0xff]  }
 0x849   : > { %7983 = vmatpush1.bf16.msra.mxu1 %v13232_v34  ;;  %v8322_v34 = vrot.slane %v8317_v18, %v17431_v58  ;;  %v13287_v58 = vld [vmem:[%s17321_s9 + $0x8] sm:$0xff]  }
 0x84a   : > { %7984 = vmatprep.subr.bf16.mxu1 %v13237_v42  ;;  %v8326_v42 = vrot.slane %v8317_v18, %v4004_v38  ;;  %v11862_v18 = vpack.c.bf16 %v8456_v45, %v8455_v46  ;;  %v13334_v46 = vld [vmem:[%s17321_s9 + $0x180] sm:$0xff]  }
 0x84d   : > { %7985 = vmatpush1.bf16.msra.mxu1 %v13235_v51 }
 0x84e   : > { %8120 = vmatprep.subr.bf16.mxu1 %v13240_v53 }
 0x850   : > { %8003 = vmatmul.mubr.bf16.vlgmr.msra.gmra.mrb[8].mxu1 %v7888_v17 }
 0x851   : > { %8121 = vmatpush1.bf16.msra.mxu1 %v13238_v15  ;;  %8152 = vmatprep.mubr.bf16.mxu1 %v17429_v7 }
 0x852   : > { %8122 = vmatprep.subr.bf16.mxu1 %v13243_v36 }
 0x855   : > { %8123 = vmatpush1.bf16.msra.mxu1 %v13241_v32 }
 0x856   : > { %8124 = vmatprep.subr.bf16.mxu1 %v13246_v23 }
 0x859   : > { %8125 = vmatpush1.bf16.msra.mxu1 %v13244_v44 }
 0x85a   : > { %8126 = vmatprep.subr.bf16.mxu1 %v13249_v47  ;;  %v8441_v47 = vld [vmem:[%s17320_s8] sm:$0xff] }
 0x85d   : > { %8127 = vmatpush1.bf16.msra.mxu1 %v13247_v61  ;;  %v8442_v61 = vld [vmem:[%s17320_s8 + $0x8] sm:$0xff] }
 0x85e   : > { %8128 = vmatprep.subr.bf16.mxu1 %v13252_v39 }
 0x861   : > { %8129 = vmatpush1.bf16.msra.mxu1 %v13250_v11  ;;  %v8459_v11 = vld [vmem:[%s17320_s8 + $0x90] sm:$0xff] }
 0x862   : > { %8130 = vmatprep.subr.bf16.mxu1 %v13255_v37  ;;  %v8460_v37 = vld [vmem:[%s17320_s8 + $0x98] sm:$0xff] }
 0x865   : > { %8131 = vmatpush1.bf16.msra.mxu1 %v13253_v41 }
 0x866   : > { %8132 = vmatprep.subr.bf16.mxu1 %v13258_v22 }
 0x869   : > { %8133 = vmatpush1.bf16.msra.mxu1 %v13256_v30  ;;  %v11834_v30 = vpack.c.bf16 %v8442_v61, %v8441_v47  ;;  %v13294_v61 = vld [vmem:[%s17321_s9 + $0x40] sm:$0xff]  }
 0x86a   : > { %8134 = vmatprep.subr.bf16.mxu1 %v13261_v35  ;;  %v11836_v35 = vpack.c.bf16 %v8460_v37, %v8459_v11  ;;  %v13296_v11 = vld [vmem:[%s17321_s9 + $0x50] sm:$0xff]   ;;  %v13297_v37 = vld [vmem:[%s17321_s9 + $0x58] sm:$0xff]  }
 0x86d   : > { %8135 = vmatpush1.bf16.msra.mxu1 %v13259_v2  ;;  %v8443_v2 = vld [vmem:[%s17320_s8 + $0x10] sm:$0xff] }
 0x86e   : > { %8270 = vmatprep.subr.bf16.mxu1 %v13264_v52  ;;  %v8444_v52 = vld [vmem:[%s17320_s8 + $0x18] sm:$0xff] }
 0x870   : > { %8153 = vmatmul.mubr.bf16.vlgmr.msra.gmra.mrb[8].mxu1 %v8038_v27  ;;  %v8445_v27 = vld [vmem:[%s17320_s8 + $0x20] sm:$0xff] }
 0x871   : > { %8271 = vmatpush1.bf16.msra.mxu1 %v13262_v60  ;;  %8302 = vmatprep.mubr.bf16.mxu1 %v17429_v7  ;;  %v13271_v7 = vld [vmem:[%s17315_s3 + $0xc30] ss:$8 sps:$4 sm:$0xff]   ;;  %v11838_v60 = vpack.c.bf16 %v8444_v52, %v8443_v2  ;;  %v13302_v2 = vld [vmem:[%s17321_s9 + $0x80] sm:$0xff]  }
 0x872   : > { %8272 = vmatprep.subr.bf16.mxu1 %v13267_v49  ;;  %v11840_v49 = vpack.c.bf16 %v8462_v50, %v8461_v56  ;;  %v13303_v56 = vld [vmem:[%s17321_s9 + $0x88] sm:$0xff]   ;;  %v13304_v50 = vld [vmem:[%s17321_s9 + $0x90] sm:$0xff]  }
 0x875   : > { %8273 = vmatpush1.bf16.msra.mxu1 %v13265_v29  ;;  %v8446_v29 = vld [vmem:[%s17320_s8 + $0x28] sm:$0xff] }
 0x876   : > { %8274 = vmatprep.subr.bf16.mxu1 %v13270_v5  ;;  %v8463_v5 = vld [vmem:[%s17320_s8 + $0xb0] sm:$0xff] }
 0x879   : > { %8275 = vmatpush1.bf16.msra.mxu1 %v13268_v12  ;;  %v8464_v12 = vld [vmem:[%s17320_s8 + $0xb8] sm:$0xff] }
 0x87a   : > { %8276 = vmatprep.subr.bf16.mxu1 %v13273_v3  ;;  %v11842_v3 = vpack.c.bf16 %v8446_v29, %v8445_v27  ;;  %v13307_v27 = vld [vmem:[%s17321_s9 + $0xa8] sm:$0xff]   ;;  %v13308_v29 = vld [vmem:[%s17321_s9 + $0xb0] sm:$0xff]  }
 0x87d   : > { %8277 = vmatpush1.bf16.msra.mxu1 %v13271_v7  ;;  %v11844_v7 = vpack.c.bf16 %v8464_v12, %v8463_v5  ;;  %v13309_v5 = vld [vmem:[%s17321_s9 + $0xb8] sm:$0xff]   ;;  %v13310_v12 = vld [vmem:[%s17321_s9 + $0xc0] sm:$0xff]  }
 0x87e   : > { %8278 = vmatprep.subr.bf16.mxu1 %v13276_v10  ;;  %v8447_v10 = vld [vmem:[%s17320_s8 + $0x30] sm:$0xff] }
 0x881   : > { %8279 = vmatpush1.bf16.msra.mxu1 %v13274_v28  ;;  %v8448_v28 = vld [vmem:[%s17320_s8 + $0x38] sm:$0xff] }
 0x882   : > { %8280 = vmatprep.subr.bf16.mxu1 %v13279_v1  ;;  %v8465_v1 = vld [vmem:[%s17320_s8 + $0xc0] sm:$0xff] }
 0x885   : > { %8281 = vmatpush1.bf16.msra.mxu1 %v13277_v6  ;;  %v8466_v6 = vld [vmem:[%s17320_s8 + $0xc8] sm:$0xff] }
 0x886   : > { %8282 = vmatprep.subr.bf16.mxu1 %v13282_v26  ;;  %v11846_v26 = vpack.c.bf16 %v8448_v28, %v8447_v10  ;;  %v13312_v10 = vld [vmem:[%s17321_s9 + $0xd0] sm:$0xff]   ;;  %v13313_v28 = vld [vmem:[%s17321_s9 + $0xd8] sm:$0xff]  }
 0x889   : > { %8283 = vmatpush1.bf16.msra.mxu1 %v13280_v62  ;;  %v11848_v62 = vpack.c.bf16 %v8466_v6, %v8465_v1  ;;  %v13314_v1 = vld [vmem:[%s17321_s9 + $0xe0] sm:$0xff]   ;;  %v13315_v6 = vld [vmem:[%s17321_s9 + $0xe8] sm:$0xff]  }
 0x88a   : > { %8284 = vmatprep.subr.bf16.mxu1 %v13285_v0  ;;  %v8449_v0 = vld [vmem:[%s17320_s8 + $0x40] sm:$0xff] }
 0x88d   : > { %8285 = vmatpush1.bf16.msra.mxu1 %v13283_v8  ;;  %v8450_v8 = vld [vmem:[%s17320_s8 + $0x48] sm:$0xff] }
 0x890   : > { %8303 = vmatmul.mubr.bf16.vlgmr.msra.gmra.mrb[8].mxu1 %v8188_v21  ;;  %v11850_v21 = vpack.c.bf16 %v8450_v8, %v8449_v0  ;;  %v13318_v0 = vld [vmem:[%s17321_s9 + $0x100] sm:$0xff]  }
 0x963   : > { %v8304_v51 = vpop.f32.mrb[8].mxu1 }
 0x964   : > { %v8329_v53 = vadd.f32 %v8322_v34, %v8304_v51  ;;  %v8306_v63 = vpop.f32.mrb[9].mxu1  ;;  %v13290_v51 = vld [vmem:[%s17321_s9 + $0x20] sm:$0xff]  }
 0x965   : > { %v8330_v4 = vadd.f32 %v8326_v42, %v8306_v63  ;;  %v8308_v15 = vpop.f32.mrb[10].mxu1  ;;  %v13292_v63 = vld [vmem:[%s17321_s9 + $0x30] sm:$0xff]  }
 0x966   : > { %v8331_v36 = vadd.f32 %v8322_v34, %v8308_v15  ;;  %v8310_v17 = vpop.f32.mrb[11].mxu1  ;;  %v8333_v23 = vmax.f32 %v8329_v53, 0.0  ;;  %v13288_v34 = vld [vmem:[%s17321_s9 + $0x10] sm:$0xff]   ;;  %v13291_v53 = vld [vmem:[%s17321_s9 + $0x28] sm:$0xff]  }
 0x967   : > { %v8332_v32 = vadd.f32 %v8326_v42, %v8310_v17  ;;  %v8334_v39 = vmax.f32 %v8330_v4, 0.0  ;;  %v13289_v42 = vld [vmem:[%s17321_s9 + $0x18] sm:$0xff]  }
 0x968   : > { %v8335_v44 = vmax.f32 %v8331_v36, 0.0  ;;  %v13293_v4 = vld [vmem:[%s17321_s9 + $0x38] sm:$0xff]  }
 0x969   : > { %v8336_v38 = vmax.f32 %v8332_v32, 0.0 }
 0x96a   : > { %v8337_v41 = vmax.f32 %v8333_v23, %v8335_v44 }
 0x96b   : > { %v8338_v22 = vmax.f32 %v8334_v39, %v8336_v38  ;;  %v13295_v38 = vld [vmem:[%s17321_s9 + $0x48] sm:$0xff]  }
 0x96d   : > { %8435 = vmatprep.mubr.f32.mxu0 %v8338_v22 }
 0x96e   : > { %8436 = vmatmul.mubr.f32.vlgmr.msra.gmra.mrb[10].mxu0 %v8337_v41 }
 0x96f   : > { %11835 = vmatpush3.bf16.msra.mxu0 %v11834_v30  ;;  %8537 = vmatprep.mubr.f32.mxu0 %v8338_v22  ;;  %v13299_v22 = vld [vmem:[%s17321_s9 + $0x68] sm:$0xff]   ;;  %v13300_v30 = vld [vmem:[%s17321_s9 + $0x70] sm:$0xff]  }
 0x970   : > { %11837 = vmatprep.subr.bf16.mxu0 %v11836_v35  ;;  %v13301_v35 = vld [vmem:[%s17321_s9 + $0x78] sm:$0xff]  }
 0x973   : > { %11839 = vmatpush3.bf16.msra.mxu0 %v11838_v60  ;;  %v13305_v60 = vld [vmem:[%s17321_s9 + $0x98] sm:$0xff]  }
 0x974   : > { %11841 = vmatprep.subr.bf16.mxu0 %v11840_v49  ;;  %v13306_v49 = vld [vmem:[%s17321_s9 + $0xa0] sm:$0xff]  }
 0x977   : > { %11843 = vmatpush3.bf16.msra.mxu0 %v11842_v3 }
 0x978   : > { %11845 = vmatprep.subr.bf16.mxu0 %v11844_v7  ;;  %v13311_v7 = vld [vmem:[%s17321_s9 + $0xc8] sm:$0xff]  }
 0x97b   : > { %11847 = vmatpush3.bf16.msra.mxu0 %v11846_v26  ;;  %v13316_v26 = vld [vmem:[%s17321_s9 + $0xf0] sm:$0xff]  }
 0x97c   : > { %11849 = vmatprep.subr.bf16.mxu0 %v11848_v62  ;;  %v13317_v62 = vld [vmem:[%s17321_s9 + $0xf8] sm:$0xff]  }
 0x97f   : > { %11851 = vmatpush3.bf16.msra.mxu0 %v11850_v21  ;;  %v13321_v21 = vld [vmem:[%s17321_s9 + $0x118] sm:$0xff]  }
 0x980   : > { %11853 = vmatprep.subr.bf16.mxu0 %v11852_v31  ;;  %v13322_v31 = vld [vmem:[%s17321_s9 + $0x120] sm:$0xff]  }
 0x983   : > { %11855 = vmatpush3.bf16.msra.mxu0 %v11854_v55 }
 0x984   : > { %11857 = vmatprep.subr.bf16.mxu0 %v11856_v59  ;;  %v13327_v59 = vld [vmem:[%s17321_s9 + $0x148] sm:$0xff]  }
 0x987   : > { %11859 = vmatpush3.bf16.msra.mxu0 %v11858_v48  ;;  %v13332_v48 = vld [vmem:[%s17321_s9 + $0x170] sm:$0xff]  }
 0x988   : > { %11861 = vmatprep.subr.bf16.mxu0 %v11860_v13  ;;  %v13333_v13 = vld [vmem:[%s17321_s9 + $0x178] sm:$0xff]  }
 0x98b   : > { %11863 = vmatpush3.bf16.msra.mxu0 %v11862_v18  ;;  %v13335_v18 = vld [vmem:[%s17321_s9 + $0x188] sm:$0xff]  }
 0x98c   : > { %11372 = vmatprep.subr.bf16.mxu0 %v13455_v40 }
 0x98e   : > { %8538 = vmatmul.mubr.f32.vlgmr.msra.gmra.mrb[12].mxu0 %v8337_v41  ;;  %v13298_v41 = vld [vmem:[%s17321_s9 + $0x60] sm:$0xff]  }
 0x98f   : > { %11373 = vmatpush3.bf16.msra.mxu0 %v13286_v19  ;;  %11388 = vmatprep.mubr.msk.bf16.mxu0 %vm13460_vm10, %v13455_v40  ;;  %v13336_v19 = vld [vmem:[%s17321_s9 + $0x190] sm:$0xff]  }
 0x990   : > { %11374 = vmatprep.subr.bf16.mxu0 %v13455_v40 }
 0x993   : > { %11375 = vmatpush3.bf16.msra.mxu0 %v13287_v58  ;;  %v13337_v58 = vld [vmem:[%s17321_s9 + $0x198] sm:$0xff]  }
 0x994   : > { %11376 = vmatprep.subr.bf16.mxu0 %v13455_v40 }
 0x997   : > { %11377 = vmatpush3.bf16.msra.mxu0 %v13288_v34  ;;  %v13338_v34 = vld [vmem:[%s17321_s9 + $0x1a0] sm:$0xff]  }
 0x998   : > { %11378 = vmatprep.subr.bf16.mxu0 %v13455_v40 }
 0x99b   : > { %11379 = vmatpush3.bf16.msra.mxu0 %v13289_v42  ;;  %v13339_v42 = vld [vmem:[%s17321_s9 + $0x1a8] sm:$0xff]  }
 0x99c   : > { %11380 = vmatprep.subr.bf16.mxu0 %v13455_v40 }
 0x99f   : > { %11381 = vmatpush3.bf16.msra.mxu0 %v13290_v51  ;;  %v13340_v51 = vld [vmem:[%s17321_s9 + $0x1b0] sm:$0xff]  }
 0x9a0   : > { %11382 = vmatprep.subr.bf16.mxu0 %v13455_v40 }
 0x9a3   : > { %11383 = vmatpush3.bf16.msra.mxu0 %v13291_v53  ;;  %v13341_v53 = vld [vmem:[%s17321_s9 + $0x1b8] sm:$0xff]  }
 0x9a4   : > { %11384 = vmatprep.subr.bf16.mxu0 %v13455_v40 }
 0x9a7   : > { %11385 = vmatpush3.bf16.msra.mxu0 %v13292_v63  ;;  %v13342_v63 = vld [vmem:[%s17321_s9 + $0x1c0] sm:$0xff]  }
 0x9a8   : > { %11386 = vmatprep.subr.bf16.mxu0 %v13455_v40 }
 0x9ab   : > { %11387 = vmatpush3.bf16.msra.mxu0 %v13293_v4 }
 0x9ac   : > { %11392 = vmatprep.subr.bf16.mxu0 %v13455_v40 }
 0xa41   : > { %v11257_v15 = vpop.f32.mrb[10].mxu0 }
 0xa42   : > { %v11258_v36 = vpop.f32.mrb[11].mxu0 }
 0xa43   : > { %v11259_v17 = vadd.f32 %v11258_v36, %v11257_v15  ;;  %v13343_v15 = vld [vmem:[%s17321_s9 + $0x1c8] sm:$0xff]   ;;  %v13344_v36 = vld [vmem:[%s17321_s9 + $0x1d0] sm:$0xff]  }
 0xa61   : > { %v11292_v32 = vpop.f32.mrb[12].mxu0 }
 0xa62   : > { %v11293_v23 = vpop.f32.mrb[13].mxu0 }
 0xa63   : > { %v11294_v44 = vadd.f32 %v11293_v23, %v11292_v32  ;;  %v13346_v32 = vld [vmem:[%s17321_s9 + $0x1e0] sm:$0xff]   ;;  %v13347_v23 = vld [vmem:[%s17321_s9 + $0x1e8] sm:$0xff]  }
 0xa65   : > { %v8543_v47 = vmax.f32 %v11259_v17, %v11294_v44  ;;  %v13345_v17 = vld [vmem:[%s17321_s9 + $0x1d8] sm:$0xff]   ;;  %v13348_v44 = vld [vmem:[%s17321_s9 + $0x1f0] sm:$0xff]  }
 0xa67   : > { %v16962_v39 = vpack.c.bf16 %v8543_v47, %v8543_v47  ;;  %v13349_v47 = vld [vmem:[%s17321_s9 + $0x1f8] sm:$0xff]  }
 0xa69   : > { %11389 = vmatmul.mubr.bf16.vlgmr.msra.gmra.mrb[16].mxu0 %v16962_v39  ;;  %v16999_v52 = vshrl.u32 %v16962_v39, 16  ;;  %v8779_v3 = vrot.slane %v16962_v39, 1  ;;  %v8995_v55 = vrot.slane %v16962_v39, 2  ;;  %v9211_v4 = vrot.slane %v16962_v39, 3 }
 0xa6a   : > { %11393 = vmatpush3.bf16.msra.mxu0 %v13294_v61  ;;  %11408 = vmatprep.mubr.msk.bf16.mxu0 %vm13460_vm10, %v13455_v40  ;;  %v13350_v61 = vld [vmem:[%s17323_s11] sm:$0xff]  }
 0xa6b   : > { %11394 = vmatprep.subr.bf16.mxu0 %v13455_v40  ;;  %v8887_v8 = vrot.slane %v16999_v52, 1  ;;  %v9103_v45 = vrot.slane %v16999_v52, 2  ;;  %v9319_v39 = vrot.slane %v16999_v52, 3 }
 0xa6e   : > { %11395 = vmatpush3.bf16.msra.mxu0 %v13295_v38  ;;  %v13351_v38 = vld [vmem:[%s17323_s11 + $0x8] sm:$0xff]  }
 0xa6f   : > { %11396 = vmatprep.subr.bf16.mxu0 %v13455_v40 }
 0xa72   : > { %11397 = vmatpush3.bf16.msra.mxu0 %v13296_v11  ;;  %v13352_v11 = vld [vmem:[%s17323_s11 + $0x10] sm:$0xff]  }
 0xa73   : > { %11398 = vmatprep.subr.bf16.mxu0 %v13455_v40 }
 0xa76   : > { %11399 = vmatpush3.bf16.msra.mxu0 %v13297_v37  ;;  %v13353_v37 = vld [vmem:[%s17323_s11 + $0x18] sm:$0xff]  }
 0xa77   : > { %11400 = vmatprep.subr.bf16.mxu0 %v13455_v40 }
 0xa7a   : > { %11401 = vmatpush3.bf16.msra.mxu0 %v13298_v41  ;;  %v8545_v41 = vld [vmem:[%s17322_s10] sm:$0x1] }
 0xa7b   : > { %11402 = vmatprep.subr.bf16.mxu0 %v13455_v40 }
 0xa7e   : > { %11403 = vmatpush3.bf16.msra.mxu0 %v13299_v22 }
 0xa7f   : > { %11404 = vmatprep.subr.bf16.mxu0 %v13455_v40 }
 0xa82   : > { %11405 = vmatpush3.bf16.msra.mxu0 %v13300_v30 }
 0xa83   : > { %11406 = vmatprep.subr.bf16.mxu0 %v13455_v40 }
 0xa86   : > { %11407 = vmatpush3.bf16.msra.mxu0 %v13301_v35 }
 0xa87   : > { %11412 = vmatprep.subr.bf16.mxu0 %v13455_v40 }
 0xa89   : > { %11409 = vmatmul.mubr.bf16.vlgmr.msra.gmra.mrb[16].mxu0 %v16999_v52 }
 0xa8a   : > { %11413 = vmatpush3.bf16.msra.mxu0 %v13302_v2  ;;  %11428 = vmatprep.mubr.msk.bf16.mxu0 %vm13460_vm10, %v13455_v40 }
 0xa8b   : > { %11414 = vmatprep.subr.bf16.mxu0 %v13455_v40 }
 0xa8e   : > { %11415 = vmatpush3.bf16.msra.mxu0 %v13303_v56 }
 0xa8f   : > { %11416 = vmatprep.subr.bf16.mxu0 %v13455_v40 }
 0xa92   : > { %11417 = vmatpush3.bf16.msra.mxu0 %v13304_v50 }
 0xa93   : > { %11418 = vmatprep.subr.bf16.mxu0 %v13455_v40 }
 0xa96   : > { %11419 = vmatpush3.bf16.msra.mxu0 %v13305_v60 }
 0xa97   : > { %11420 = vmatprep.subr.bf16.mxu0 %v13455_v40 }
 0xa9a   : > { %11421 = vmatpush3.bf16.msra.mxu0 %v13306_v49 }
 0xa9b   : > { %11422 = vmatprep.subr.bf16.mxu0 %v13455_v40 }
 0xa9e   : > { %11423 = vmatpush3.bf16.msra.mxu0 %v13307_v27 }
 0xa9f   : > { %11424 = vmatprep.subr.bf16.mxu0 %v13455_v40 }
 0xaa2   : > { %11425 = vmatpush3.bf16.msra.mxu0 %v13308_v29 }
 0xaa3   : > { %11426 = vmatprep.subr.bf16.mxu0 %v13455_v40 }
 0xaa6   : > { %11427 = vmatpush3.bf16.msra.mxu0 %v13309_v5 }
 0xaa7   : > { %11432 = vmatprep.subr.bf16.mxu0 %v13455_v40 }
 0xaa9   : > { %11429 = vmatmul.mubr.bf16.vlgmr.msra.gmra.mrb[16].mxu0 %v8779_v3 }
 0xaaa   : > { %11433 = vmatpush3.bf16.msra.mxu0 %v13310_v12  ;;  %11448 = vmatprep.mubr.msk.bf16.mxu0 %vm13460_vm10, %v13455_v40 }
 0xaab   : > { %11434 = vmatprep.subr.bf16.mxu0 %v13455_v40 }
 0xaae   : > { %11435 = vmatpush3.bf16.msra.mxu0 %v13311_v7 }
 0xaaf   : > { %11436 = vmatprep.subr.bf16.mxu0 %v13455_v40 }
 0xab2   : > { %11437 = vmatpush3.bf16.msra.mxu0 %v13312_v10 }
 0xab3   : > { %11438 = vmatprep.subr.bf16.mxu0 %v13455_v40 }
 0xab6   : > { %11439 = vmatpush3.bf16.msra.mxu0 %v13313_v28 }
 0xab7   : > { %11440 = vmatprep.subr.bf16.mxu0 %v13455_v40 }
 0xaba   : > { %11441 = vmatpush3.bf16.msra.mxu0 %v13314_v1 }
 0xabb   : > { %11442 = vmatprep.subr.bf16.mxu0 %v13455_v40 }
 0xabe   : > { %11443 = vmatpush3.bf16.msra.mxu0 %v13315_v6 }
 0xabf   : > { %11444 = vmatprep.subr.bf16.mxu0 %v13455_v40 }
 0xac2   : > { %11445 = vmatpush3.bf16.msra.mxu0 %v13316_v26 }
 0xac3   : > { %11446 = vmatprep.subr.bf16.mxu0 %v13455_v40 }
 0xac6   : > { %11447 = vmatpush3.bf16.msra.mxu0 %v13317_v62 }
 0xac7   : > { %11452 = vmatprep.subr.bf16.mxu0 %v13455_v40 }
 0xac9   : > { %11449 = vmatmul.mubr.bf16.vlgmr.msra.gmra.mrb[16].mxu0 %v8887_v8 }
 0xaca   : > { %11453 = vmatpush3.bf16.msra.mxu0 %v13318_v0  ;;  %11468 = vmatprep.mubr.msk.bf16.mxu0 %vm13460_vm10, %v13455_v40 }
 0xacb   : > { %11454 = vmatprep.subr.bf16.mxu0 %v13455_v40 }
 0xace   : > { %11455 = vmatpush3.bf16.msra.mxu0 %v13319_v57 }
 0xacf   : > { %11456 = vmatprep.subr.bf16.mxu0 %v13455_v40 }
 0xad2   : > { %11457 = vmatpush3.bf16.msra.mxu0 %v13320_v54 }
 0xad3   : > { %11458 = vmatprep.subr.bf16.mxu0 %v13455_v40 }
 0xad6   : > { %11459 = vmatpush3.bf16.msra.mxu0 %v13321_v21 }
 0xad7   : > { %11460 = vmatprep.subr.bf16.mxu0 %v13455_v40 }
 0xada   : > { %11461 = vmatpush3.bf16.msra.mxu0 %v13322_v31 }
 0xadb   : > { %11462 = vmatprep.subr.bf16.mxu0 %v13455_v40 }
 0xade   : > { %11463 = vmatpush3.bf16.msra.mxu0 %v13323_v43 }
 0xadf   : > { %11464 = vmatprep.subr.bf16.mxu0 %v13455_v40 }
 0xae2   : > { %11465 = vmatpush3.bf16.msra.mxu0 %v13324_v33 }
 0xae3   : > { %11466 = vmatprep.subr.bf16.mxu0 %v13455_v40 }
 0xae6   : > { %11467 = vmatpush3.bf16.msra.mxu0 %v13325_v9 }
 0xae7   : > { %11472 = vmatprep.subr.bf16.mxu0 %v13455_v40 }
 0xae9   : > { %11469 = vmatmul.mubr.bf16.vlgmr.msra.gmra.mrb[16].mxu0 %v8995_v55 }
 0xaea   : > { %11473 = vmatpush3.bf16.msra.mxu0 %v13326_v25  ;;  %11488 = vmatprep.mubr.msk.bf16.mxu0 %vm13460_vm10, %v13455_v40 }
 0xaeb   : > { %11474 = vmatprep.subr.bf16.mxu0 %v13455_v40 }
 0xaee   : > { %11475 = vmatpush3.bf16.msra.mxu0 %v13327_v59 }
 0xaef   : > { %11476 = vmatprep.subr.bf16.mxu0 %v13455_v40 }
 0xaf2   : > { %11477 = vmatpush3.bf16.msra.mxu0 %v13328_v14 }
 0xaf3   : > { %11478 = vmatprep.subr.bf16.mxu0 %v13455_v40 }
 0xaf6   : > { %11479 = vmatpush3.bf16.msra.mxu0 %v13329_v16 }
 0xaf7   : > { %11480 = vmatprep.subr.bf16.mxu0 %v13455_v40 }
 0xafa   : > { %11481 = vmatpush3.bf16.msra.mxu0 %v13330_v24 }
 0xafb   : > { %11482 = vmatprep.subr.bf16.mxu0 %v13455_v40 }
 0xafe   : > { %11483 = vmatpush3.bf16.msra.mxu0 %v13331_v20 }
 0xaff   : > { %11484 = vmatprep.subr.bf16.mxu0 %v13455_v40 }
 0xb02   : > { %11485 = vmatpush3.bf16.msra.mxu0 %v13332_v48 }
 0xb03   : > { %11486 = vmatprep.subr.bf16.mxu0 %v13455_v40 }
 0xb06   : > { %11487 = vmatpush3.bf16.msra.mxu0 %v13333_v13 }
 0xb07   : > { %11492 = vmatprep.subr.bf16.mxu0 %v13455_v40 }
 0xb09   : > { %11489 = vmatmul.mubr.bf16.vlgmr.msra.gmra.mrb[16].mxu0 %v9103_v45 }
 0xb0a   : > { %11493 = vmatpush3.bf16.msra.mxu0 %v13334_v46  ;;  %11508 = vmatprep.mubr.msk.bf16.mxu0 %vm13460_vm10, %v13455_v40 }
 0xb0b   : > { %11494 = vmatprep.subr.bf16.mxu0 %v13455_v40 }
 0xb0e   : > { %11495 = vmatpush3.bf16.msra.mxu0 %v13335_v18 }
 0xb0f   : > { %11496 = vmatprep.subr.bf16.mxu0 %v13455_v40 }
 0xb12   : > { %11497 = vmatpush3.bf16.msra.mxu0 %v13336_v19 }
 0xb13   : > { %11498 = vmatprep.subr.bf16.mxu0 %v13455_v40 }
 0xb16   : > { %11499 = vmatpush3.bf16.msra.mxu0 %v13337_v58 }
 0xb17   : > { %11500 = vmatprep.subr.bf16.mxu0 %v13455_v40 }
 0xb1a   : > { %11501 = vmatpush3.bf16.msra.mxu0 %v13338_v34 }
 0xb1b   : > { %11502 = vmatprep.subr.bf16.mxu0 %v13455_v40 }
 0xb1e   : > { %11503 = vmatpush3.bf16.msra.mxu0 %v13339_v42 }
 0xb1f   : > { %11504 = vmatprep.subr.bf16.mxu0 %v13455_v40 }
 0xb22   : > { %11505 = vmatpush3.bf16.msra.mxu0 %v13340_v51 }
 0xb23   : > { %11506 = vmatprep.subr.bf16.mxu0 %v13455_v40 }
 0xb26   : > { %11507 = vmatpush3.bf16.msra.mxu0 %v13341_v53 }
 0xb27   : > { %11512 = vmatprep.subr.bf16.mxu0 %v13455_v40 }
 0xb29   : > { %11509 = vmatmul.mubr.bf16.vlgmr.msra.gmra.mrb[16].mxu0 %v9211_v4 }
 0xb2a   : > { %11513 = vmatpush3.bf16.msra.mxu0 %v13342_v63  ;;  %11528 = vmatprep.mubr.msk.bf16.mxu0 %vm13460_vm10, %v13455_v40 }
 0xb2b   : > { %11514 = vmatprep.subr.bf16.mxu0 %v13455_v40 }
 0xb2e   : > { %11515 = vmatpush3.bf16.msra.mxu0 %v13343_v15 }
 0xb2f   : > { %11516 = vmatprep.subr.bf16.mxu0 %v13455_v40 }
 0xb32   : > { %11517 = vmatpush3.bf16.msra.mxu0 %v13344_v36 }
 0xb33   : > { %11518 = vmatprep.subr.bf16.mxu0 %v13455_v40 }
 0xb36   : > { %11519 = vmatpush3.bf16.msra.mxu0 %v13345_v17 }
 0xb37   : > { %11520 = vmatprep.subr.bf16.mxu0 %v13455_v40 }
 0xb3a   : > { %11521 = vmatpush3.bf16.msra.mxu0 %v13346_v32 }
 0xb3b   : > { %11522 = vmatprep.subr.bf16.mxu0 %v13455_v40 }
 0xb3e   : > { %11523 = vmatpush3.bf16.msra.mxu0 %v13347_v23 }
 0xb3f   : > { %11524 = vmatprep.subr.bf16.mxu0 %v13455_v40 }
 0xb42   : > { %11525 = vmatpush3.bf16.msra.mxu0 %v13348_v44 }
 0xb43   : > { %11526 = vmatprep.subr.bf16.mxu0 %v13455_v40 }
 0xb46   : > { %11527 = vmatpush3.bf16.msra.mxu0 %v13349_v47 }
 0xb47   : > { %11532 = vmatprep.subr.bf16.mxu0 %v13455_v40 }
 0xb49   : > { %11529 = vmatmul.mubr.bf16.vlgmr.msra.gmra.mrb[16].mxu0 %v9319_v39 }
 0xb4a   : > { %11533 = vmatpush3.bf16.msra.mxu0 %v13350_v61  ;;  %11540 = vmatprep.mubr.msk.bf16.mxu0 %vm13460_vm10, %v13455_v40 }
 0xb4b   : > { %11534 = vmatprep.subr.bf16.mxu0 %v13455_v40 }
 0xb4e   : > { %11535 = vmatpush3.bf16.msra.mxu0 %v13351_v38 }
 0xb4f   : > { %11536 = vmatprep.subr.bf16.mxu0 %v13455_v40 }
 0xb52   : > { %11537 = vmatpush3.bf16.msra.mxu0 %v13352_v11 }
 0xb53   : > { %11538 = vmatprep.subr.bf16.mxu0 %v13455_v40 }
 0xb56   : > { %11539 = vmatpush3.bf16.msra.mxu0 %v13353_v37 }
 0xc1c   : > { %v9403_v22 = vpop.f32.mrb[16].mxu0 }
 0xc1d   : > { %v11864_v30 = vadd.f32 %v9403_v22, %v8545_v41  ;;  %v11530_v40 = vpop.f32.mrb[17].mxu0 }
 0xc1e   : > { %v9406_v35 = vpop.f32.mrb[18].mxu0 }
 0xc1f   : > { %v9410_v2 = vpack.c.bf16 %v11864_v30, %v11864_v30  ;;  %v11531_v52 = vpop.f32.mrb[19].mxu0  ;;  %9491 = vst.msk [vmem:[%s469_s18] sm:$0x1] %vm9490_vm11, %v11864_v30 }
 0xc21   : > { %11541 = vmatmul.mubr.msk.bf16.vlgmr.msra.gmra.mrb[20].mxu0 %vm9444_vm12, %v9410_v2 }
 0xc22   : > { %13367 = shalt.err (!%p13364_p3)
}
 0xc23   : > { %s13368_s16 = scalar_lea.hbm %s17240_s19, 16  ;;  %s13372_s18 = scalar_lea.hbm %s17326_s14, 32 }
 0xc24   : > { %p13369_p4 = scmp.ne.s32.totalorder %s17240_s19, %s13368_s16  ;;  %p13373_p9 = scmp.lt.u32.totalorder %s17240_s19, %s17326_s14 }
 0xc25   : > { %p13374_p10 = scmp.lt.u32.totalorder %s13372_s18, %s13368_s16  ;;  %p13376_p12 = scmp.lt.u32.totalorder %s13368_s16, %s17240_s19 }
 0xc26   : > { %p13370_p7 = pnand %p13369_p4, %p13576_p5 }
 0xc27   : > { %p13375_p11 = por %p13374_p10, %p13373_p9 }
 0xc28   : > { %p13371_p8 = pneg %p13370_p7 }
 0xc29   : > { %p13377_p13 = por %p13376_p12, %p13375_p11 }
 0xc2b   : > { %p13378_p0 = pnand %p13377_p13, %p13371_p8 }
 0xc2d   : > { %13381 = shalt.err (!%p13378_p0)
}
 0xc2e   : > { %12182 = dma.vmem_to_hbm [thread:$0]  (%p13576_p5), %s9523_s15, 16, %s17240_s19, %s9497_s29   ;;  %v9419_v56 = vld [vmem:[%s17324_s12] sm:$0x1]  ;;  %vm9488_vm13 = vcmask 57344  }
 0xc2f   : > { %s463_s21 = scalar_lea.vmem [#allocation4], %s17228_s25  ;;  %s17432_s28 = sld [smem:[#allocation40_spill]] }
 0xc30   : > { %s9509_s13 = sshll.u32 %s463_s21, 4  ;;  %s9493_s19 = scalar_lea.sflag [#allocation5], %s17228_s25  ;;  %s17271_s13 = int_to_ptr.vmem [resolvable:$true] %s9509_s13 }
 0xc31   : > { %s13382_s15 = scalar_lea.vmem %s17271_s13, 16  ;;  %s13462_s17 = smov [#allocation4]  }
 0xc32   : > { %p13383_p1 = scmp.ne.s32.totalorder %s17271_s13, %s13382_s15  ;;  %s13386_s29 = sshll.u32 %s13462_s17, 4  ;;  %s13387_s29 = int_to_ptr.vmem [resolvable:$false] %s13386_s29 }
 0xc33   : > { %s13388_s0 = scalar_lea.vmem %s13387_s29, 32  ;;  %p13389_p4 = scmp.lt.s32.totalorder %s17271_s13, %s13387_s29 }
 0xc34   : > { %p13384_p2 = pnand %p13383_p1, %p13576_p5  ;;  %p13390_p7 = scmp.lt.s32.totalorder %s13388_s0, %s13382_s15 }
 0xc35   : > { %s17269_s18 = scalar_lea.hbm %s17432_s28, %s11220_s22 }
 0xc36   : > { %p13385_p3 = pneg %p13384_p2  ;;  %p13391_p8 = por %p13390_p7, %p13389_p4 }
 0xc38   : > { %p13392_p9 = pnand %p13391_p8, %p13385_p3 }
 0xcf4   : > { %v9482_v50 = vpop.f32.mrb[20].mxu0 }
 0xcf5   : > { %v9483_v60 = vadd.f32 %v9482_v50, %v9419_v56  ;;  %v11542_v49 = vpop.f32.mrb[21].mxu0 }
 0xcf6   : > { %v9485_v27 = vpop.f32.mrb[22].mxu0 }
 0xcf7   : > { %v11543_v29 = vpop.f32.mrb[23].mxu0  ;;  %9489 = vst.msk [vmem:[%s463_s21] sm:$0x1] %vm9488_vm13, %v9483_v60 }
 0xcf8   : > { %13395 = shalt.err (!%p13392_p9)
}
 0xcf9   : > { %s13396_s25 = scalar_lea.hbm %s17269_s18, 16  ;;  %s13400_s20 = scalar_lea.hbm %s17432_s28, 32 }
 0xcfa   : > { %p13397_p10 = scmp.ne.s32.totalorder %s17269_s18, %s13396_s25  ;;  %p13401_p13 = scmp.lt.u32.totalorder %s17269_s18, %s17432_s28 }
 0xcfb   : > { %p13402_p0 = scmp.lt.u32.totalorder %s13400_s20, %s13396_s25  ;;  %p13404_p2 = scmp.lt.u32.totalorder %s13396_s25, %s17269_s18 }
 0xcfc   : > { %p13398_p11 = pnand %p13397_p10, %p13576_p5 }
 0xcfd   : > { %p13403_p1 = por %p13402_p0, %p13401_p13 }
 0xcfe   : > { %p13399_p12 = pneg %p13398_p11 }
 0xcff   : > { %p13405_p3 = por %p13404_p2, %p13403_p1 }
 0xd01   : > { %p13406_p4 = pnand %p13405_p3, %p13399_p12 }
 0xd03   : > { %13409 = shalt.err (!%p13406_p4)
}
 0xd04   : > { %12181 = dma.vmem_to_hbm [thread:$0]  (%p13576_p5), %s17271_s13, 16, %s17269_s18, %s9493_s19  }
 0xd05 PF: > { %s17433_s16 = sld [smem:[#allocation12_spill]]  ;;  %s17434_s26 = sld [smem:[#allocation10_spill]] }
 0xd0b   : > { %p12192_p7 = scmp.ge.s32.totalorder %s17433_s16, 2  ;;  %s9534_s17 = sand.u32 1, %s17434_s26  }
 0xd0c   : > { %s9535_s29 = scalar_lea.sflag [#allocation5], %s9534_s17 }
 0xd0d   : > { %p12186_p8 = pnand %p12192_p7, %p13580_p6 }
 0xd0f   : > { %13427 = dma.done.wait (!%p12186_p8), %s9535_s29, 16  }
 0xd10   : > { %13429 = vsyncadd (!%p12186_p8), %s9535_s29, 4294967280  ;;  %s9543_s0 = scalar_lea.sflag [#allocation7], %s9534_s17 }
 0xd11   : > { %13431 = dma.done.wait (!%p12186_p8), %s9543_s0, 16  }
 0xd12   : > { %13433 = vsyncadd (!%p12186_p8), %s9543_s0, 4294967280  ;;  %s17436_s16 = sld [smem:[#allocation13_spill]]  ;;  %s17437_s23 = sld [smem:[#allocation11_spill]] }
 0xd13   : > { %s17438_s15 = sld [smem:[#allocation14_spill]]  ;;  %s17439_s29 = smov %s13440_s30 }
 0xd18   : > { %p28_p5 = scmp.ge.s32.totalorder %s17436_s16, 4   ;;  %s17440_s30 = smov %s17437_s23 }
 0xd1a   :  { %30 = sbr.rel (!%p28_p5) target bundleno = 8 (0x8), region = 182 }
 0xd21   :  { %9547 = vsyncpa [#allocation5], 1 }
 0xd22   :  { %9549 = vsyncpa [#allocation5 + $0x1], 1 }
 0xd23   :  { %9550 = vsyncpa [#allocation7], 1 }
 0xd24   :  { %9552 = vsyncpa [#allocation7 + $0x1], 1 }

</bundles_post_ra>
